<compile_context>
chip_gen: v5e
topology: v5e:2x2
jax: 0.10.0
libtpu: 0.0.40
codegen_flags: <defaults>
</compile_context>

<pallas_src>
import jax
import jax.numpy as jnp
from jax.experimental import pallas as pl
from jax.experimental.pallas import tpu as pltpu

RMS_EPS = 1e-6
LEAKY_SLOPE = 0.01  # torch.nn.LeakyReLU default negative_slope


def _rmsnorm(x, gain):
    # x: (R, H) f32, gain: (1, H) f32
    ms = jnp.mean(x * x, axis=-1, keepdims=True)
    return x * jax.lax.rsqrt(ms + RMS_EPS) * gain


def _default_vmem_limit_bytes():
    """Generation-aware VMEM limit: ~3/4 of per-core capacity, capped."""
    try:
        cap = int(pltpu.get_tpu_info().vmem_capacity_bytes)
    except Exception:
        cap = 64 * 1024 * 1024  # conservative fallback (v7x per-TC size)
    return min((cap * 3) // 4, 100 * 1024 * 1024)


def _make_kernel(num_heads):
    def kernel(x_ref, wqkv_ref, bqkv_ref, wo_ref, bo_ref, g1_ref,
               w1_ref, b1_ref, w2_ref, b2_ref, g2_ref, out_ref):
        xb = x_ref[...].astype(jnp.float32)            # (Bt, S, H)
        Bt, S, H = xb.shape
        dh = H // num_heads
        R = Bt * S
        x2 = xb.reshape(R, H)                          # flattened rows

        # ----- fused, lane-dense QKV projection (scale folded into wq/bq) ----
        qkv = jnp.dot(x2.astype(jnp.bfloat16), wqkv_ref[...],
                      preferred_element_type=jnp.float32) + bqkv_ref[...]  # (R, 3H)

        # Head split with static lane slices + leading-axis concat only
        # (no narrow per-head matmuls, no 4-D transposes).
        def split_heads(z):                            # (R, H) f32 -> (NH*Bt, S, dh) bf16
            parts = [z[:, h * dh:(h + 1) * dh].reshape(Bt, S, dh)
                     for h in range(num_heads)]
            return jnp.concatenate(parts, axis=0).astype(jnp.bfloat16)

        q = split_heads(qkv[:, 0:H])
        k = split_heads(qkv[:, H:2 * H])
        v = split_heads(qkv[:, 2 * H:3 * H])

        # ----- attention, batched over the (head, batch) leading axis --------
        s = jnp.einsum("nqd,nkd->nqk", q, k,
                       preferred_element_type=jnp.float32)           # (NH*Bt, S, S)
        s = s - jnp.max(s, axis=-1, keepdims=True)
        p = jnp.exp(s)                                               # softmax in f32
        l = jnp.sum(p, axis=-1, keepdims=True)                       # (NH*Bt, S, 1)
        o = jnp.einsum("nqk,nkd->nqd", p.astype(jnp.bfloat16), v,
                       preferred_element_type=jnp.float32)           # (NH*Bt, S, dh)
        # fold softmax normalization into the small (S, dh) head outputs (EUP recip)
        o = o * pl.reciprocal(l, approx=True)

        # Merge heads back to a lane-dense (R, H) slab (head-major feature order).
        o = jnp.concatenate(
            [o[h * Bt:(h + 1) * Bt].reshape(R, dh) for h in range(num_heads)],
            axis=-1)                                                 # (R, H) f32

        # ----- output projection: single (R, H) @ (H, H) matmul --------------
        mha = jnp.dot(o.astype(jnp.bfloat16), wo_ref[...],
                      preferred_element_type=jnp.float32) + bo_ref[...]

        # dropout1 is identity in eval mode
        h1 = _rmsnorm(x2 + mha, g1_ref[...])                         # (R, H) f32

        # ----- feed forward ---------------------------------------------------
        f = jnp.dot(h1.astype(jnp.bfloat16), w1_ref[...],
                    preferred_element_type=jnp.float32) + b1_ref[...]
        f = jnp.where(f > 0, f, LEAKY_SLOPE * f)                     # LeakyReLU (f32)
        f = jnp.dot(f.astype(jnp.bfloat16), w2_ref[...],
                    preferred_element_type=jnp.float32) + b2_ref[...]

        # dropout2 is identity in eval mode
        h2 = _rmsnorm(h1 + f, g2_ref[...])
        out_ref[...] = h2.reshape(Bt, S, H).astype(out_ref.dtype)

    return kernel


def output_token_block(x, params, *, block_batch=None,
                       single_buffer_weights=True, vmem_limit_bytes=None):
    """x: (B, S, H) float32; params: dict of weights (see init_params)."""
    B, S, H = x.shape
    num_heads = params["num_heads"]
    F = params["w1"].shape[1]

    if vmem_limit_bytes is None:
        vmem_limit_bytes = _default_vmem_limit_bytes()

    if block_batch is None:
        # Aim for a large per-step block (>=256 rows) while keeping >= 2 grid
        # steps so the ("parallel",) batch axis can feed both v7x TensorCores.
        target = max(1, pl.cdiv(256, S))
        cap = max(1, B // 2)
        block_batch = 1
        for d in range(1, B + 1):
            if B % d == 0 and d <= min(target, cap):
                block_batch = d
    assert B % block_batch == 0, "batch must be divisible by block_batch"
    grid = (B // block_batch,)

    w_kwargs = dict(pipeline_mode=pl.Buffered(1)) if single_buffer_weights else {}

    def wspec(shape):
        # Grid-invariant operand: constant index_map (+ single-buffered).
        nd = len(shape)
        return pl.BlockSpec(shape, lambda b, _n=nd: (0,) * _n, **w_kwargs)

    xo_spec = pl.BlockSpec((block_batch, S, H), lambda b: (b, 0, 0))

    return pl.pallas_call(
        _make_kernel(num_heads),
        out_shape=jax.ShapeDtypeStruct((B, S, H), x.dtype),
        grid_spec=pltpu.PrefetchScalarGridSpec(
            num_scalar_prefetch=0,
            grid=grid,
            in_specs=[
                xo_spec,               # x       (B, S, H)  f32
                wspec((H, 3 * H)),     # wqkv    bf16 (q cols pre-scaled by 1/sqrt(dh))
                wspec((1, 3 * H)),     # bqkv    f32  (q part pre-scaled)
                wspec((H, H)),         # wo      bf16
                wspec((1, H)),         # bo      f32
                wspec((1, H)),         # rmsnorm1 gain
                wspec((H, F)),         # ff w1   bf16
                wspec((1, F)),         # ff b1   f32
                wspec((F, H)),         # ff w2   bf16
                wspec((1, H)),         # ff b2   f32
                wspec((1, H)),         # rmsnorm2 gain
            ],
            out_specs=xo_spec,
        ),
        compiler_params=pltpu.CompilerParams(
            dimension_semantics=("parallel",),
            vmem_limit_bytes=vmem_limit_bytes),
    )(x, params["wqkv"], params["bqkv"], params["wo"], params["bo"],
      params["g1"], params["w1"], params["b1"], params["w2"], params["b2"],
      params["g2"])


def init_params(key, hidden_dim, ff_dim, num_heads):
    assert hidden_dim % num_heads == 0
    dh = hidden_dim // num_heads
    ks = jax.random.split(key, 12)
    scale = 0.02
    f32, bf16 = jnp.float32, jnp.bfloat16
    inv_sqrt_dh = 1.0 / float(dh) ** 0.5

    wq = scale * jax.random.normal(ks[0], (hidden_dim, hidden_dim), f32)
    wk = scale * jax.random.normal(ks[1], (hidden_dim, hidden_dim), f32)
    wv = scale * jax.random.normal(ks[2], (hidden_dim, hidden_dim), f32)
    bq = scale * jax.random.normal(ks[3], (hidden_dim,), f32)
    bk = scale * jax.random.normal(ks[4], (hidden_dim,), f32)
    bv = scale * jax.random.normal(ks[5], (hidden_dim,), f32)

    # Fused, lane-dense QKV with the 1/sqrt(dh) attention scale folded into the
    # q columns / bias (host-side weight prep -> zero in-kernel cost).
    wqkv = jnp.concatenate([wq * inv_sqrt_dh, wk, wv], axis=1).astype(bf16)   # (H, 3H)
    bqkv = jnp.concatenate([bq * inv_sqrt_dh, bk, bv])[None, :]               # (1, 3H) f32

    return {
        "num_heads": num_heads,
        "wqkv": wqkv,                                                          # (H, 3H) bf16
        "bqkv": bqkv,                                                          # (1, 3H) f32
        "wo": (scale * jax.random.normal(ks[6], (hidden_dim, hidden_dim), f32)).astype(bf16),
        "bo": scale * jax.random.normal(ks[7], (1, hidden_dim), f32),
        "g1": jnp.ones((1, hidden_dim), f32),                                  # RMSNorm1 weight
        "w1": (scale * jax.random.normal(ks[8], (hidden_dim, ff_dim), f32)).astype(bf16),
        "b1": scale * jax.random.normal(ks[9], (1, ff_dim), f32),
        "w2": (scale * jax.random.normal(ks[10], (ff_dim, hidden_dim), f32)).astype(bf16),
        "b2": scale * jax.random.normal(ks[11], (1, hidden_dim), f32),
        "g2": jnp.ones((1, hidden_dim), f32),                                  # RMSNorm2 weight
    }


def output_token_block_reference(x, params):
    """Pure-JAX reference with the same bf16/f32 mixed precision as the kernel."""
    f32, bf16 = jnp.float32, jnp.bfloat16
    B, S, H = x.shape
    NH = params["num_heads"]
    dh = H // NH

    x2 = x.astype(f32).reshape(B * S, H)
    qkv = jnp.dot(x2.astype(bf16), params["wqkv"],
                  preferred_element_type=f32) + params["bqkv"]

    def split(z):
        return z.reshape(B, S, NH, dh).transpose(0, 2, 1, 3).astype(bf16)

    q = split(qkv[:, 0:H])
    k = split(qkv[:, H:2 * H])
    v = split(qkv[:, 2 * H:3 * H])
    s = jnp.einsum("bnqd,bnkd->bnqk", q, k, preferred_element_type=f32)
    p = jax.nn.softmax(s, axis=-1)
    o = jnp.einsum("bnqk,bnkd->bnqd", p.astype(bf16), v, preferred_element_type=f32)
    o = o.transpose(0, 2, 1, 3).reshape(B * S, H)
    mha = jnp.dot(o.astype(bf16), params["wo"],
                  preferred_element_type=f32) + params["bo"]
    h1 = _rmsnorm(x2 + mha, params["g1"])
    f = jnp.dot(h1.astype(bf16), params["w1"],
                preferred_element_type=f32) + params["b1"]
    f = jnp.where(f > 0, f, LEAKY_SLOPE * f)
    f = jnp.dot(f.astype(bf16), params["w2"],
                preferred_element_type=f32) + params["b2"]
    h2 = _rmsnorm(h1 + f, params["g2"])
    return h2.reshape(B, S, H).astype(x.dtype)


if __name__ == "__main__":
    # Small but layout-friendly shapes: H multiple of 128 (lane-dense stores),
    # S multiple of 8, dh = H / NH = 128 (tile-aligned head slices),
    # grid = B / block_batch = 2 (>= 2 steps for the parallel axis).
    B, S, H, F, NH = 4, 16, 256, 512, 2
    key = jax.random.PRNGKey(0)
    k_x, k_p = jax.random.split(key)
    x = jax.random.normal(k_x, (B, S, H), jnp.float32)
    params = init_params(k_p, H, F, NH)

    try:
        out = jax.block_until_ready(output_token_block(x, params))
    except Exception:
        # Fallback for JAX versions where pl.Buffered(1) is not accepted on a
        # top-level BlockSpec; identical kernel, default (double) buffering.
        out = jax.block_until_ready(
            output_token_block(x, params, single_buffer_weights=False))

    assert out.shape == (B, S, H)
    assert bool(jnp.all(jnp.isfinite(out)))
    ref = jax.block_until_ready(output_token_block_reference(x, params))
    assert bool(jnp.allclose(out, ref, atol=5e-2, rtol=5e-2))
    print("KERNEL_OK")
</pallas_src>

<mosaic_0001>
module attributes {stable_mosaic.version = 11 : i64} {
  func.func @kernel(%arg0: i32, %arg1: memref<2x16x256xf32, #tpu.memory_space<vmem>>, %arg2: memref<256x768xbf16, #tpu.memory_space<vmem>>, %arg3: memref<1x768xf32, #tpu.memory_space<vmem>>, %arg4: memref<256x256xbf16, #tpu.memory_space<vmem>>, %arg5: memref<1x256xf32, #tpu.memory_space<vmem>>, %arg6: memref<1x256xf32, #tpu.memory_space<vmem>>, %arg7: memref<256x512xbf16, #tpu.memory_space<vmem>>, %arg8: memref<1x512xf32, #tpu.memory_space<vmem>>, %arg9: memref<512x256xbf16, #tpu.memory_space<vmem>>, %arg10: memref<1x256xf32, #tpu.memory_space<vmem>>, %arg11: memref<1x256xf32, #tpu.memory_space<vmem>>, %arg12: memref<2x16x256xf32, #tpu.memory_space<vmem>>) attributes {dimension_semantics = [#tpu.dimension_semantics<parallel>], iteration_bounds = array<i64: 2>, scalar_prefetch = 0 : i64, scratch_operands = 0 : i64, tpu.core_type = #tpu.core_type<tc>, window_params = [{transform_indices = @transform_0, window_bounds = array<i64: 2, 16, 256>}, {pipeline_mode = #tpu.pipeline_mode<synchronous>, transform_indices = @transform_1, window_bounds = array<i64: 256, 768>}, {pipeline_mode = #tpu.pipeline_mode<synchronous>, transform_indices = @transform_2, window_bounds = array<i64: 1, 768>}, {pipeline_mode = #tpu.pipeline_mode<synchronous>, transform_indices = @transform_3, window_bounds = array<i64: 256, 256>}, {pipeline_mode = #tpu.pipeline_mode<synchronous>, transform_indices = @transform_4, window_bounds = array<i64: 1, 256>}, {pipeline_mode = #tpu.pipeline_mode<synchronous>, transform_indices = @transform_5, window_bounds = array<i64: 1, 256>}, {pipeline_mode = #tpu.pipeline_mode<synchronous>, transform_indices = @transform_6, window_bounds = array<i64: 256, 512>}, {pipeline_mode = #tpu.pipeline_mode<synchronous>, transform_indices = @transform_7, window_bounds = array<i64: 1, 512>}, {pipeline_mode = #tpu.pipeline_mode<synchronous>, transform_indices = @transform_8, window_bounds = array<i64: 512, 256>}, {pipeline_mode = #tpu.pipeline_mode<synchronous>, transform_indices = @transform_9, window_bounds = array<i64: 1, 256>}, {pipeline_mode = #tpu.pipeline_mode<synchronous>, transform_indices = @transform_10, window_bounds = array<i64: 1, 256>}, {transform_indices = @transform_11, window_bounds = array<i64: 2, 16, 256>}]} {
    %c0 = arith.constant 0 : index
    %c0_0 = arith.constant 0 : index
    %c0_1 = arith.constant 0 : index
    %0 = vector.load %arg1[%c0, %c0_0, %c0_1] : memref<2x16x256xf32, #tpu.memory_space<vmem>>, vector<2x16x256xf32>
    %1 = vector.shape_cast %0 : vector<2x16x256xf32> to vector<32x256xf32>
    %2 = arith.truncf %1 : vector<32x256xf32> to vector<32x256xbf16>
    %c0_2 = arith.constant 0 : index
    %c0_3 = arith.constant 0 : index
    %3 = vector.load %arg2[%c0_2, %c0_3] : memref<256x768xbf16, #tpu.memory_space<vmem>>, vector<256x768xbf16>
    %cst = arith.constant dense<0.000000e+00> : vector<32x768xf32>
    %4 = tpu.matmul %2, %3, %cst {dimension_numbers = #tpu.dot_dimension_numbers<[1], [0], [0], [1], [0, 0, 1, 1], [], []>} : vector<32x256xbf16>, vector<256x768xbf16>, vector<32x768xf32> -> vector<32x768xf32>
    %c0_4 = arith.constant 0 : index
    %c0_5 = arith.constant 0 : index
    %5 = vector.load %arg3[%c0_4, %c0_5] : memref<1x768xf32, #tpu.memory_space<vmem>>, vector<1x768xf32>
    %6 = vector.broadcast %5 : vector<1x768xf32> to vector<32x768xf32>
    %7 = arith.addf %4, %6 : vector<32x768xf32>
    %8 = vector.extract_strided_slice %7 {offsets = [0, 0], sizes = [32, 256], strides = [1, 1]} : vector<32x768xf32> to vector<32x256xf32>
    %9 = vector.extract_strided_slice %8 {offsets = [0, 0], sizes = [32, 128], strides = [1, 1]} : vector<32x256xf32> to vector<32x128xf32>
    %10 = vector.shape_cast %9 : vector<32x128xf32> to vector<2x16x128xf32>
    %11 = vector.extract_strided_slice %8 {offsets = [0, 128], sizes = [32, 128], strides = [1, 1]} : vector<32x256xf32> to vector<32x128xf32>
    %12 = vector.shape_cast %11 : vector<32x128xf32> to vector<2x16x128xf32>
    %13 = tpu.concatenate %10, %12 in 0 : vector<2x16x128xf32>, vector<2x16x128xf32> -> vector<4x16x128xf32>
    %14 = arith.truncf %13 : vector<4x16x128xf32> to vector<4x16x128xbf16>
    %15 = vector.extract_strided_slice %7 {offsets = [0, 256], sizes = [32, 256], strides = [1, 1]} : vector<32x768xf32> to vector<32x256xf32>
    %16 = vector.extract_strided_slice %15 {offsets = [0, 0], sizes = [32, 128], strides = [1, 1]} : vector<32x256xf32> to vector<32x128xf32>
    %17 = vector.shape_cast %16 : vector<32x128xf32> to vector<2x16x128xf32>
    %18 = vector.extract_strided_slice %15 {offsets = [0, 128], sizes = [32, 128], strides = [1, 1]} : vector<32x256xf32> to vector<32x128xf32>
    %19 = vector.shape_cast %18 : vector<32x128xf32> to vector<2x16x128xf32>
    %20 = tpu.concatenate %17, %19 in 0 : vector<2x16x128xf32>, vector<2x16x128xf32> -> vector<4x16x128xf32>
    %21 = arith.truncf %20 : vector<4x16x128xf32> to vector<4x16x128xbf16>
    %22 = vector.extract_strided_slice %7 {offsets = [0, 512], sizes = [32, 256], strides = [1, 1]} : vector<32x768xf32> to vector<32x256xf32>
    %23 = vector.extract_strided_slice %22 {offsets = [0, 0], sizes = [32, 128], strides = [1, 1]} : vector<32x256xf32> to vector<32x128xf32>
    %24 = vector.shape_cast %23 : vector<32x128xf32> to vector<2x16x128xf32>
    %25 = vector.extract_strided_slice %22 {offsets = [0, 128], sizes = [32, 128], strides = [1, 1]} : vector<32x256xf32> to vector<32x128xf32>
    %26 = vector.shape_cast %25 : vector<32x128xf32> to vector<2x16x128xf32>
    %27 = tpu.concatenate %24, %26 in 0 : vector<2x16x128xf32>, vector<2x16x128xf32> -> vector<4x16x128xf32>
    %28 = arith.truncf %27 : vector<4x16x128xf32> to vector<4x16x128xbf16>
    "tpu.trace_start"() <{level = 10 : i32, message = "nqd,nkd->nqk"}> : () -> ()
    %cst_6 = arith.constant dense<0.000000e+00> : vector<4x16x16xf32>
    %29 = tpu.matmul %14, %21, %cst_6 {dimension_numbers = #tpu.dot_dimension_numbers<[2], [2], [1], [1], [0, 0, 0, 1, 1, 1], [0], [0]>} : vector<4x16x128xbf16>, vector<4x16x128xbf16>, vector<4x16x16xf32> -> vector<4x16x16xf32>
    "tpu.trace_stop"() : () -> ()
    %cst_7 = arith.constant dense<0xFF800000> : vector<4x16xf32>
    %30 = vector.multi_reduction <maximumf>, %29, %cst_7 [2] : vector<4x16x16xf32> to vector<4x16xf32>
    %31 = vector.shape_cast %30 : vector<4x16xf32> to vector<4x16x1xf32>
    %32 = vector.broadcast %31 : vector<4x16x1xf32> to vector<4x16x16xf32>
    %33 = arith.subf %29, %32 : vector<4x16x16xf32>
    %34 = math.exp %33 : vector<4x16x16xf32>
    %cst_8 = arith.constant dense<0.000000e+00> : vector<4x16xf32>
    %35 = vector.multi_reduction <add>, %34, %cst_8 [2] : vector<4x16x16xf32> to vector<4x16xf32>
    %36 = vector.shape_cast %35 : vector<4x16xf32> to vector<4x16x1xf32>
    %37 = arith.truncf %34 : vector<4x16x16xf32> to vector<4x16x16xbf16>
    "tpu.trace_start"() <{level = 10 : i32, message = "nqk,nkd->nqd"}> : () -> ()
    %cst_9 = arith.constant dense<0.000000e+00> : vector<4x16x128xf32>
    %38 = tpu.matmul %37, %28, %cst_9 {dimension_numbers = #tpu.dot_dimension_numbers<[2], [1], [1], [2], [0, 0, 0, 1, 1, 2], [0], [0]>} : vector<4x16x16xbf16>, vector<4x16x128xbf16>, vector<4x16x128xf32> -> vector<4x16x128xf32>
    "tpu.trace_stop"() : () -> ()
    %39 = tpu.reciprocal %36 {approx = true} : vector<4x16x1xf32> -> vector<4x16x1xf32>
    %40 = vector.broadcast %39 : vector<4x16x1xf32> to vector<4x16x128xf32>
    %41 = arith.mulf %38, %40 : vector<4x16x128xf32>
    %42 = vector.extract_strided_slice %41 {offsets = [0, 0, 0], sizes = [2, 16, 128], strides = [1, 1, 1]} : vector<4x16x128xf32> to vector<2x16x128xf32>
    %43 = vector.shape_cast %42 : vector<2x16x128xf32> to vector<32x128xf32>
    %44 = vector.extract_strided_slice %41 {offsets = [2, 0, 0], sizes = [2, 16, 128], strides = [1, 1, 1]} : vector<4x16x128xf32> to vector<2x16x128xf32>
    %45 = vector.shape_cast %44 : vector<2x16x128xf32> to vector<32x128xf32>
    %46 = tpu.concatenate %43, %45 in 1 : vector<32x128xf32>, vector<32x128xf32> -> vector<32x256xf32>
    %47 = arith.truncf %46 : vector<32x256xf32> to vector<32x256xbf16>
    %c0_10 = arith.constant 0 : index
    %c0_11 = arith.constant 0 : index
    %48 = vector.load %arg4[%c0_10, %c0_11] : memref<256x256xbf16, #tpu.memory_space<vmem>>, vector<256x256xbf16>
    %cst_12 = arith.constant dense<0.000000e+00> : vector<32x256xf32>
    %49 = tpu.matmul %47, %48, %cst_12 {dimension_numbers = #tpu.dot_dimension_numbers<[1], [0], [0], [1], [0, 0, 1, 1], [], []>} : vector<32x256xbf16>, vector<256x256xbf16>, vector<32x256xf32> -> vector<32x256xf32>
    %c0_13 = arith.constant 0 : index
    %c0_14 = arith.constant 0 : index
    %50 = vector.load %arg5[%c0_13, %c0_14] : memref<1x256xf32, #tpu.memory_space<vmem>>, vector<1x256xf32>
    %51 = vector.broadcast %50 : vector<1x256xf32> to vector<32x256xf32>
    %52 = arith.addf %49, %51 : vector<32x256xf32>
    %53 = arith.addf %1, %52 : vector<32x256xf32>
    %c0_15 = arith.constant 0 : index
    %c0_16 = arith.constant 0 : index
    %54 = vector.load %arg6[%c0_15, %c0_16] : memref<1x256xf32, #tpu.memory_space<vmem>>, vector<1x256xf32>
    %55 = arith.mulf %53, %53 : vector<32x256xf32>
    %cst_17 = arith.constant dense<0.000000e+00> : vector<32xf32>
    %56 = vector.multi_reduction <add>, %55, %cst_17 [1] : vector<32x256xf32> to vector<32xf32>
    %57 = vector.shape_cast %56 : vector<32xf32> to vector<32x1xf32>
    %cst_18 = arith.constant 2.560000e+02 : f32
    %58 = vector.broadcast %cst_18 : f32 to vector<32x1xf32>
    %59 = arith.divf %57, %58 : vector<32x1xf32>
    %cst_19 = arith.constant 9.99999997E-7 : f32
    %60 = vector.broadcast %cst_19 : f32 to vector<32x1xf32>
    %61 = arith.addf %59, %60 : vector<32x1xf32>
    %62 = math.rsqrt %61 : vector<32x1xf32>
    %63 = vector.broadcast %62 : vector<32x1xf32> to vector<32x256xf32>
    %64 = arith.mulf %53, %63 : vector<32x256xf32>
    %65 = vector.broadcast %54 : vector<1x256xf32> to vector<32x256xf32>
    %66 = arith.mulf %64, %65 : vector<32x256xf32>
    %67 = arith.truncf %66 : vector<32x256xf32> to vector<32x256xbf16>
    %c0_20 = arith.constant 0 : index
    %c0_21 = arith.constant 0 : index
    %68 = vector.load %arg7[%c0_20, %c0_21] : memref<256x512xbf16, #tpu.memory_space<vmem>>, vector<256x512xbf16>
    %cst_22 = arith.constant dense<0.000000e+00> : vector<32x512xf32>
    %69 = tpu.matmul %67, %68, %cst_22 {dimension_numbers = #tpu.dot_dimension_numbers<[1], [0], [0], [1], [0, 0, 1, 1], [], []>} : vector<32x256xbf16>, vector<256x512xbf16>, vector<32x512xf32> -> vector<32x512xf32>
    %c0_23 = arith.constant 0 : index
    %c0_24 = arith.constant 0 : index
    %70 = vector.load %arg8[%c0_23, %c0_24] : memref<1x512xf32, #tpu.memory_space<vmem>>, vector<1x512xf32>
    %71 = vector.broadcast %70 : vector<1x512xf32> to vector<32x512xf32>
    %72 = arith.addf %69, %71 : vector<32x512xf32>
    %cst_25 = arith.constant 0.000000e+00 : f32
    %73 = vector.broadcast %cst_25 : f32 to vector<32x512xf32>
    %74 = arith.cmpf ogt, %72, %73 : vector<32x512xf32>
    %cst_26 = arith.constant 0.00999999977 : f32
    %75 = vector.broadcast %cst_26 : f32 to vector<32x512xf32>
    %76 = arith.mulf %75, %72 : vector<32x512xf32>
    %77 = arith.select %74, %72, %76 : vector<32x512xi1>, vector<32x512xf32>
    %78 = arith.truncf %77 : vector<32x512xf32> to vector<32x512xbf16>
    %c0_27 = arith.constant 0 : index
    %c0_28 = arith.constant 0 : index
    %79 = vector.load %arg9[%c0_27, %c0_28] : memref<512x256xbf16, #tpu.memory_space<vmem>>, vector<512x256xbf16>
    %cst_29 = arith.constant dense<0.000000e+00> : vector<32x256xf32>
    %80 = tpu.matmul %78, %79, %cst_29 {dimension_numbers = #tpu.dot_dimension_numbers<[1], [0], [0], [1], [0, 0, 1, 1], [], []>} : vector<32x512xbf16>, vector<512x256xbf16>, vector<32x256xf32> -> vector<32x256xf32>
    %c0_30 = arith.constant 0 : index
    %c0_31 = arith.constant 0 : index
    %81 = vector.load %arg10[%c0_30, %c0_31] : memref<1x256xf32, #tpu.memory_space<vmem>>, vector<1x256xf32>
    %82 = vector.broadcast %81 : vector<1x256xf32> to vector<32x256xf32>
    %83 = arith.addf %80, %82 : vector<32x256xf32>
    %84 = arith.addf %66, %83 : vector<32x256xf32>
    %c0_32 = arith.constant 0 : index
    %c0_33 = arith.constant 0 : index
    %85 = vector.load %arg11[%c0_32, %c0_33] : memref<1x256xf32, #tpu.memory_space<vmem>>, vector<1x256xf32>
    %86 = arith.mulf %84, %84 : vector<32x256xf32>
    %cst_34 = arith.constant dense<0.000000e+00> : vector<32xf32>
    %87 = vector.multi_reduction <add>, %86, %cst_34 [1] : vector<32x256xf32> to vector<32xf32>
    %88 = vector.shape_cast %87 : vector<32xf32> to vector<32x1xf32>
    %cst_35 = arith.constant 2.560000e+02 : f32
    %89 = vector.broadcast %cst_35 : f32 to vector<32x1xf32>
    %90 = arith.divf %88, %89 : vector<32x1xf32>
    %cst_36 = arith.constant 9.99999997E-7 : f32
    %91 = vector.broadcast %cst_36 : f32 to vector<32x1xf32>
    %92 = arith.addf %90, %91 : vector<32x1xf32>
    %93 = math.rsqrt %92 : vector<32x1xf32>
    %94 = vector.broadcast %93 : vector<32x1xf32> to vector<32x256xf32>
    %95 = arith.mulf %84, %94 : vector<32x256xf32>
    %96 = vector.broadcast %85 : vector<1x256xf32> to vector<32x256xf32>
    %97 = arith.mulf %95, %96 : vector<32x256xf32>
    %98 = vector.shape_cast %97 : vector<32x256xf32> to vector<2x16x256xf32>
    %c0_37 = arith.constant 0 : index
    %c0_38 = arith.constant 0 : index
    %c0_39 = arith.constant 0 : index
    %99 = vector.load %arg12[%c0_37, %c0_38, %c0_39] : memref<2x16x256xf32, #tpu.memory_space<vmem>>, vector<2x16x256xf32>
    tpu.vector_store %arg12[%c0_37, %c0_38, %c0_39], %98 {strides = array<i32>} : memref<2x16x256xf32, #tpu.memory_space<vmem>>, vector<2x16x256xf32>,
    return
  }
  func.func @transform_0(%arg0: i32) -> (i32, i32, i32) {
    %c0_i32 = arith.constant 0 : i32
    %c0_i32_0 = arith.constant 0 : i32
    %c0_i32_1 = arith.constant 0 : i32
    return %arg0, %c0_i32, %c0_i32_0 : i32, i32, i32
  }
  func.func @transform_1(%arg0: i32) -> (i32, i32) {
    %c0_i32 = arith.constant 0 : i32
    %c0_i32_0 = arith.constant 0 : i32
    %c0_i32_1 = arith.constant 0 : i32
    return %c0_i32, %c0_i32_0 : i32, i32
  }
  func.func @transform_2(%arg0: i32) -> (i32, i32) {
    %c0_i32 = arith.constant 0 : i32
    %c0_i32_0 = arith.constant 0 : i32
    %c0_i32_1 = arith.constant 0 : i32
    return %c0_i32, %c0_i32_0 : i32, i32
  }
  func.func @transform_3(%arg0: i32) -> (i32, i32) {
    %c0_i32 = arith.constant 0 : i32
    %c0_i32_0 = arith.constant 0 : i32
    %c0_i32_1 = arith.constant 0 : i32
    return %c0_i32, %c0_i32_0 : i32, i32
  }
  func.func @transform_4(%arg0: i32) -> (i32, i32) {
    %c0_i32 = arith.constant 0 : i32
    %c0_i32_0 = arith.constant 0 : i32
    %c0_i32_1 = arith.constant 0 : i32
    return %c0_i32, %c0_i32_0 : i32, i32
  }
  func.func @transform_5(%arg0: i32) -> (i32, i32) {
    %c0_i32 = arith.constant 0 : i32
    %c0_i32_0 = arith.constant 0 : i32
    %c0_i32_1 = arith.constant 0 : i32
    return %c0_i32, %c0_i32_0 : i32, i32
  }
  func.func @transform_6(%arg0: i32) -> (i32, i32) {
    %c0_i32 = arith.constant 0 : i32
    %c0_i32_0 = arith.constant 0 : i32
    %c0_i32_1 = arith.constant 0 : i32
    return %c0_i32, %c0_i32_0 : i32, i32
  }
  func.func @transform_7(%arg0: i32) -> (i32, i32) {
    %c0_i32 = arith.constant 0 : i32
    %c0_i32_0 = arith.constant 0 : i32
    %c0_i32_1 = arith.constant 0 : i32
    return %c0_i32, %c0_i32_0 : i32, i32
  }
  func.func @transform_8(%arg0: i32) -> (i32, i32) {
    %c0_i32 = arith.constant 0 : i32
    %c0_i32_0 = arith.constant 0 : i32
    %c0_i32_1 = arith.constant 0 : i32
    return %c0_i32, %c0_i32_0 : i32, i32
  }
  func.func @transform_9(%arg0: i32) -> (i32, i32) {
    %c0_i32 = arith.constant 0 : i32
    %c0_i32_0 = arith.constant 0 : i32
    %c0_i32_1 = arith.constant 0 : i32
    return %c0_i32, %c0_i32_0 : i32, i32
  }
  func.func @transform_10(%arg0: i32) -> (i32, i32) {
    %c0_i32 = arith.constant 0 : i32
    %c0_i32_0 = arith.constant 0 : i32
    %c0_i32_1 = arith.constant 0 : i32
    return %c0_i32, %c0_i32_0 : i32, i32
  }
  func.func @transform_11(%arg0: i32) -> (i32, i32, i32) {
    %c0_i32 = arith.constant 0 : i32
    %c0_i32_0 = arith.constant 0 : i32
    %c0_i32_1 = arith.constant 0 : i32
    return %arg0, %c0_i32, %c0_i32_0 : i32, i32, i32
  }
}

module attributes {stable_mosaic.version = 11 : i64} {
  func.func @kernel(%arg0: i32, %arg1: memref<2x16x256xf32, #tpu.memory_space<vmem>>, %arg2: memref<256x768xbf16, #tpu.memory_space<vmem>>, %arg3: memref<1x768xf32, #tpu.memory_space<vmem>>, %arg4: memref<256x256xbf16, #tpu.memory_space<vmem>>, %arg5: memref<1x256xf32, #tpu.memory_space<vmem>>, %arg6: memref<1x256xf32, #tpu.memory_space<vmem>>, %arg7: memref<256x512xbf16, #tpu.memory_space<vmem>>, %arg8: memref<1x512xf32, #tpu.memory_space<vmem>>, %arg9: memref<512x256xbf16, #tpu.memory_space<vmem>>, %arg10: memref<1x256xf32, #tpu.memory_space<vmem>>, %arg11: memref<1x256xf32, #tpu.memory_space<vmem>>, %arg12: memref<2x16x256xf32, #tpu.memory_space<vmem>>) attributes {dimension_semantics = [#tpu.dimension_semantics<parallel>], iteration_bounds = array<i64: 2>, scalar_prefetch = 0 : i64, scratch_operands = 0 : i64, tpu.core_type = #tpu.core_type<tc>, window_params = [{transform_indices = @transform_0, window_bounds = array<i64: 2, 16, 256>}, {pipeline_mode = #tpu.pipeline_mode<synchronous>, transform_indices = @transform_1, window_bounds = array<i64: 256, 768>}, {pipeline_mode = #tpu.pipeline_mode<synchronous>, transform_indices = @transform_2, window_bounds = array<i64: 1, 768>}, {pipeline_mode = #tpu.pipeline_mode<synchronous>, transform_indices = @transform_3, window_bounds = array<i64: 256, 256>}, {pipeline_mode = #tpu.pipeline_mode<synchronous>, transform_indices = @transform_4, window_bounds = array<i64: 1, 256>}, {pipeline_mode = #tpu.pipeline_mode<synchronous>, transform_indices = @transform_5, window_bounds = array<i64: 1, 256>}, {pipeline_mode = #tpu.pipeline_mode<synchronous>, transform_indices = @transform_6, window_bounds = array<i64: 256, 512>}, {pipeline_mode = #tpu.pipeline_mode<synchronous>, transform_indices = @transform_7, window_bounds = array<i64: 1, 512>}, {pipeline_mode = #tpu.pipeline_mode<synchronous>, transform_indices = @transform_8, window_bounds = array<i64: 512, 256>}, {pipeline_mode = #tpu.pipeline_mode<synchronous>, transform_indices = @transform_9, window_bounds = array<i64: 1, 256>}, {pipeline_mode = #tpu.pipeline_mode<synchronous>, transform_indices = @transform_10, window_bounds = array<i64: 1, 256>}, {transform_indices = @transform_11, window_bounds = array<i64: 2, 16, 256>}]} {
    %c0 = arith.constant 0 : index
    %c0_0 = arith.constant 0 : index
    %c0_1 = arith.constant 0 : index
    %0 = vector.load %arg1[%c0, %c0_0, %c0_1] : memref<2x16x256xf32, #tpu.memory_space<vmem>>, vector<2x16x256xf32>
    %1 = vector.shape_cast %0 : vector<2x16x256xf32> to vector<32x256xf32>
    %2 = arith.truncf %1 : vector<32x256xf32> to vector<32x256xbf16>
    %c0_2 = arith.constant 0 : index
    %c0_3 = arith.constant 0 : index
    %3 = vector.load %arg2[%c0_2, %c0_3] : memref<256x768xbf16, #tpu.memory_space<vmem>>, vector<256x768xbf16>
    %cst = arith.constant dense<0.000000e+00> : vector<32x768xf32>
    %4 = tpu.matmul %2, %3, %cst {dimension_numbers = #tpu.dot_dimension_numbers<[1], [0], [0], [1], [0, 0, 1, 1], [], []>} : vector<32x256xbf16>, vector<256x768xbf16>, vector<32x768xf32> -> vector<32x768xf32>
    %c0_4 = arith.constant 0 : index
    %c0_5 = arith.constant 0 : index
    %5 = vector.load %arg3[%c0_4, %c0_5] : memref<1x768xf32, #tpu.memory_space<vmem>>, vector<1x768xf32>
    %6 = vector.broadcast %5 : vector<1x768xf32> to vector<32x768xf32>
    %7 = arith.addf %4, %6 : vector<32x768xf32>
    %8 = vector.extract_strided_slice %7 {offsets = [0, 0], sizes = [32, 256], strides = [1, 1]} : vector<32x768xf32> to vector<32x256xf32>
    %9 = vector.extract_strided_slice %8 {offsets = [0, 0], sizes = [32, 128], strides = [1, 1]} : vector<32x256xf32> to vector<32x128xf32>
    %10 = vector.shape_cast %9 : vector<32x128xf32> to vector<2x16x128xf32>
    %11 = vector.extract_strided_slice %8 {offsets = [0, 128], sizes = [32, 128], strides = [1, 1]} : vector<32x256xf32> to vector<32x128xf32>
    %12 = vector.shape_cast %11 : vector<32x128xf32> to vector<2x16x128xf32>
    %13 = tpu.concatenate %10, %12 in 0 : vector<2x16x128xf32>, vector<2x16x128xf32> -> vector<4x16x128xf32>
    %14 = arith.truncf %13 : vector<4x16x128xf32> to vector<4x16x128xbf16>
    %15 = vector.extract_strided_slice %7 {offsets = [0, 256], sizes = [32, 256], strides = [1, 1]} : vector<32x768xf32> to vector<32x256xf32>
    %16 = vector.extract_strided_slice %15 {offsets = [0, 0], sizes = [32, 128], strides = [1, 1]} : vector<32x256xf32> to vector<32x128xf32>
    %17 = vector.shape_cast %16 : vector<32x128xf32> to vector<2x16x128xf32>
    %18 = vector.extract_strided_slice %15 {offsets = [0, 128], sizes = [32, 128], strides = [1, 1]} : vector<32x256xf32> to vector<32x128xf32>
    %19 = vector.shape_cast %18 : vector<32x128xf32> to vector<2x16x128xf32>
    %20 = tpu.concatenate %17, %19 in 0 : vector<2x16x128xf32>, vector<2x16x128xf32> -> vector<4x16x128xf32>
    %21 = arith.truncf %20 : vector<4x16x128xf32> to vector<4x16x128xbf16>
    %22 = vector.extract_strided_slice %7 {offsets = [0, 512], sizes = [32, 256], strides = [1, 1]} : vector<32x768xf32> to vector<32x256xf32>
    %23 = vector.extract_strided_slice %22 {offsets = [0, 0], sizes = [32, 128], strides = [1, 1]} : vector<32x256xf32> to vector<32x128xf32>
    %24 = vector.shape_cast %23 : vector<32x128xf32> to vector<2x16x128xf32>
    %25 = vector.extract_strided_slice %22 {offsets = [0, 128], sizes = [32, 128], strides = [1, 1]} : vector<32x256xf32> to vector<32x128xf32>
    %26 = vector.shape_cast %25 : vector<32x128xf32> to vector<2x16x128xf32>
    %27 = tpu.concatenate %24, %26 in 0 : vector<2x16x128xf32>, vector<2x16x128xf32> -> vector<4x16x128xf32>
    %28 = arith.truncf %27 : vector<4x16x128xf32> to vector<4x16x128xbf16>
    "tpu.trace_start"() <{level = 10 : i32, message = "nqd,nkd->nqk"}> : () -> ()
    %cst_6 = arith.constant dense<0.000000e+00> : vector<4x16x16xf32>
    %29 = tpu.matmul %14, %21, %cst_6 {dimension_numbers = #tpu.dot_dimension_numbers<[2], [2], [1], [1], [0, 0, 0, 1, 1, 1], [0], [0]>} : vector<4x16x128xbf16>, vector<4x16x128xbf16>, vector<4x16x16xf32> -> vector<4x16x16xf32>
    "tpu.trace_stop"() : () -> ()
    %cst_7 = arith.constant dense<0xFF800000> : vector<4x16xf32>
    %30 = vector.multi_reduction <maximumf>, %29, %cst_7 [2] : vector<4x16x16xf32> to vector<4x16xf32>
    %31 = vector.shape_cast %30 : vector<4x16xf32> to vector<4x16x1xf32>
    %32 = vector.broadcast %31 : vector<4x16x1xf32> to vector<4x16x16xf32>
    %33 = arith.subf %29, %32 : vector<4x16x16xf32>
    %34 = math.exp %33 : vector<4x16x16xf32>
    %cst_8 = arith.constant dense<0.000000e+00> : vector<4x16xf32>
    %35 = vector.multi_reduction <add>, %34, %cst_8 [2] : vector<4x16x16xf32> to vector<4x16xf32>
    %36 = vector.shape_cast %35 : vector<4x16xf32> to vector<4x16x1xf32>
    %37 = arith.truncf %34 : vector<4x16x16xf32> to vector<4x16x16xbf16>
    "tpu.trace_start"() <{level = 10 : i32, message = "nqk,nkd->nqd"}> : () -> ()
    %cst_9 = arith.constant dense<0.000000e+00> : vector<4x16x128xf32>
    %38 = tpu.matmul %37, %28, %cst_9 {dimension_numbers = #tpu.dot_dimension_numbers<[2], [1], [1], [2], [0, 0, 0, 1, 1, 2], [0], [0]>} : vector<4x16x16xbf16>, vector<4x16x128xbf16>, vector<4x16x128xf32> -> vector<4x16x128xf32>
    "tpu.trace_stop"() : () -> ()
    %39 = tpu.reciprocal %36 {approx = true} : vector<4x16x1xf32> -> vector<4x16x1xf32>
    %40 = vector.broadcast %39 : vector<4x16x1xf32> to vector<4x16x128xf32>
    %41 = arith.mulf %38, %40 : vector<4x16x128xf32>
    %42 = vector.extract_strided_slice %41 {offsets = [0, 0, 0], sizes = [2, 16, 128], strides = [1, 1, 1]} : vector<4x16x128xf32> to vector<2x16x128xf32>
    %43 = vector.shape_cast %42 : vector<2x16x128xf32> to vector<32x128xf32>
    %44 = vector.extract_strided_slice %41 {offsets = [2, 0, 0], sizes = [2, 16, 128], strides = [1, 1, 1]} : vector<4x16x128xf32> to vector<2x16x128xf32>
    %45 = vector.shape_cast %44 : vector<2x16x128xf32> to vector<32x128xf32>
    %46 = tpu.concatenate %43, %45 in 1 : vector<32x128xf32>, vector<32x128xf32> -> vector<32x256xf32>
    %47 = arith.truncf %46 : vector<32x256xf32> to vector<32x256xbf16>
    %c0_10 = arith.constant 0 : index
    %c0_11 = arith.constant 0 : index
    %48 = vector.load %arg4[%c0_10, %c0_11] : memref<256x256xbf16, #tpu.memory_space<vmem>>, vector<256x256xbf16>
    %cst_12 = arith.constant dense<0.000000e+00> : vector<32x256xf32>
    %49 = tpu.matmul %47, %48, %cst_12 {dimension_numbers = #tpu.dot_dimension_numbers<[1], [0], [0], [1], [0, 0, 1, 1], [], []>} : vector<32x256xbf16>, vector<256x256xbf16>, vector<32x256xf32> -> vector<32x256xf32>
    %c0_13 = arith.constant 0 : index
    %c0_14 = arith.constant 0 : index
    %50 = vector.load %arg5[%c0_13, %c0_14] : memref<1x256xf32, #tpu.memory_space<vmem>>, vector<1x256xf32>
    %51 = vector.broadcast %50 : vector<1x256xf32> to vector<32x256xf32>
    %52 = arith.addf %49, %51 : vector<32x256xf32>
    %53 = arith.addf %1, %52 : vector<32x256xf32>
    %c0_15 = arith.constant 0 : index
    %c0_16 = arith.constant 0 : index
    %54 = vector.load %arg6[%c0_15, %c0_16] : memref<1x256xf32, #tpu.memory_space<vmem>>, vector<1x256xf32>
    %55 = arith.mulf %53, %53 : vector<32x256xf32>
    %cst_17 = arith.constant dense<0.000000e+00> : vector<32xf32>
    %56 = vector.multi_reduction <add>, %55, %cst_17 [1] : vector<32x256xf32> to vector<32xf32>
    %57 = vector.shape_cast %56 : vector<32xf32> to vector<32x1xf32>
    %cst_18 = arith.constant 2.560000e+02 : f32
    %58 = vector.broadcast %cst_18 : f32 to vector<32x1xf32>
    %59 = arith.divf %57, %58 : vector<32x1xf32>
    %cst_19 = arith.constant 9.99999997E-7 : f32
    %60 = vector.broadcast %cst_19 : f32 to vector<32x1xf32>
    %61 = arith.addf %59, %60 : vector<32x1xf32>
    %62 = math.rsqrt %61 : vector<32x1xf32>
    %63 = vector.broadcast %62 : vector<32x1xf32> to vector<32x256xf32>
    %64 = arith.mulf %53, %63 : vector<32x256xf32>
    %65 = vector.broadcast %54 : vector<1x256xf32> to vector<32x256xf32>
    %66 = arith.mulf %64, %65 : vector<32x256xf32>
    %67 = arith.truncf %66 : vector<32x256xf32> to vector<32x256xbf16>
    %c0_20 = arith.constant 0 : index
    %c0_21 = arith.constant 0 : index
    %68 = vector.load %arg7[%c0_20, %c0_21] : memref<256x512xbf16, #tpu.memory_space<vmem>>, vector<256x512xbf16>
    %cst_22 = arith.constant dense<0.000000e+00> : vector<32x512xf32>
    %69 = tpu.matmul %67, %68, %cst_22 {dimension_numbers = #tpu.dot_dimension_numbers<[1], [0], [0], [1], [0, 0, 1, 1], [], []>} : vector<32x256xbf16>, vector<256x512xbf16>, vector<32x512xf32> -> vector<32x512xf32>
    %c0_23 = arith.constant 0 : index
    %c0_24 = arith.constant 0 : index
    %70 = vector.load %arg8[%c0_23, %c0_24] : memref<1x512xf32, #tpu.memory_space<vmem>>, vector<1x512xf32>
    %71 = vector.broadcast %70 : vector<1x512xf32> to vector<32x512xf32>
    %72 = arith.addf %69, %71 : vector<32x512xf32>
    %cst_25 = arith.constant 0.000000e+00 : f32
    %73 = vector.broadcast %cst_25 : f32 to vector<32x512xf32>
    %74 = arith.cmpf ogt, %72, %73 : vector<32x512xf32>
    %cst_26 = arith.constant 0.00999999977 : f32
    %75 = vector.broadcast %cst_26 : f32 to vector<32x512xf32>
    %76 = arith.mulf %75, %72 : vector<32x512xf32>
    %77 = arith.select %74, %72, %76 : vector<32x512xi1>, vector<32x512xf32>
    %78 = arith.truncf %77 : vector<32x512xf32> to vector<32x512xbf16>
    %c0_27 = arith.constant 0 : index
    %c0_28 = arith.constant 0 : index
    %79 = vector.load %arg9[%c0_27, %c0_28] : memref<512x256xbf16, #tpu.memory_space<vmem>>, vector<512x256xbf16>
    %cst_29 = arith.constant dense<0.000000e+00> : vector<32x256xf32>
    %80 = tpu.matmul %78, %79, %cst_29 {dimension_numbers = #tpu.dot_dimension_numbers<[1], [0], [0], [1], [0, 0, 1, 1], [], []>} : vector<32x512xbf16>, vector<512x256xbf16>, vector<32x256xf32> -> vector<32x256xf32>
    %c0_30 = arith.constant 0 : index
    %c0_31 = arith.constant 0 : index
    %81 = vector.load %arg10[%c0_30, %c0_31] : memref<1x256xf32, #tpu.memory_space<vmem>>, vector<1x256xf32>
    %82 = vector.broadcast %81 : vector<1x256xf32> to vector<32x256xf32>
    %83 = arith.addf %80, %82 : vector<32x256xf32>
    %84 = arith.addf %66, %83 : vector<32x256xf32>
    %c0_32 = arith.constant 0 : index
    %c0_33 = arith.constant 0 : index
    %85 = vector.load %arg11[%c0_32, %c0_33] : memref<1x256xf32, #tpu.memory_space<vmem>>, vector<1x256xf32>
    %86 = arith.mulf %84, %84 : vector<32x256xf32>
    %cst_34 = arith.constant dense<0.000000e+00> : vector<32xf32>
    %87 = vector.multi_reduction <add>, %86, %cst_34 [1] : vector<32x256xf32> to vector<32xf32>
    %88 = vector.shape_cast %87 : vector<32xf32> to vector<32x1xf32>
    %cst_35 = arith.constant 2.560000e+02 : f32
    %89 = vector.broadcast %cst_35 : f32 to vector<32x1xf32>
    %90 = arith.divf %88, %89 : vector<32x1xf32>
    %cst_36 = arith.constant 9.99999997E-7 : f32
    %91 = vector.broadcast %cst_36 : f32 to vector<32x1xf32>
    %92 = arith.addf %90, %91 : vector<32x1xf32>
    %93 = math.rsqrt %92 : vector<32x1xf32>
    %94 = vector.broadcast %93 : vector<32x1xf32> to vector<32x256xf32>
    %95 = arith.mulf %84, %94 : vector<32x256xf32>
    %96 = vector.broadcast %85 : vector<1x256xf32> to vector<32x256xf32>
    %97 = arith.mulf %95, %96 : vector<32x256xf32>
    %98 = vector.shape_cast %97 : vector<32x256xf32> to vector<2x16x256xf32>
    %c0_37 = arith.constant 0 : index
    %c0_38 = arith.constant 0 : index
    %c0_39 = arith.constant 0 : index
    %99 = vector.load %arg12[%c0_37, %c0_38, %c0_39] : memref<2x16x256xf32, #tpu.memory_space<vmem>>, vector<2x16x256xf32>
    tpu.vector_store %arg12[%c0_37, %c0_38, %c0_39], %98 {strides = array<i32>} : memref<2x16x256xf32, #tpu.memory_space<vmem>>, vector<2x16x256xf32>,
    return
  }
  func.func @transform_0(%arg0: i32) -> (i32, i32, i32) {
    %c0_i32 = arith.constant 0 : i32
    %c0_i32_0 = arith.constant 0 : i32
    %c0_i32_1 = arith.constant 0 : i32
    return %arg0, %c0_i32, %c0_i32_0 : i32, i32, i32
  }
  func.func @transform_1(%arg0: i32) -> (i32, i32) {
    %c0_i32 = arith.constant 0 : i32
    %c0_i32_0 = arith.constant 0 : i32
    %c0_i32_1 = arith.constant 0 : i32
    return %c0_i32, %c0_i32_0 : i32, i32
  }
  func.func @transform_2(%arg0: i32) -> (i32, i32) {
    %c0_i32 = arith.constant 0 : i32
    %c0_i32_0 = arith.constant 0 : i32
    %c0_i32_1 = arith.constant 0 : i32
    return %c0_i32, %c0_i32_0 : i32, i32
  }
  func.func @transform_3(%arg0: i32) -> (i32, i32) {
    %c0_i32 = arith.constant 0 : i32
    %c0_i32_0 = arith.constant 0 : i32
    %c0_i32_1 = arith.constant 0 : i32
    return %c0_i32, %c0_i32_0 : i32, i32
  }
  func.func @transform_4(%arg0: i32) -> (i32, i32) {
    %c0_i32 = arith.constant 0 : i32
    %c0_i32_0 = arith.constant 0 : i32
    %c0_i32_1 = arith.constant 0 : i32
    return %c0_i32, %c0_i32_0 : i32, i32
  }
  func.func @transform_5(%arg0: i32) -> (i32, i32) {
    %c0_i32 = arith.constant 0 : i32
    %c0_i32_0 = arith.constant 0 : i32
    %c0_i32_1 = arith.constant 0 : i32
    return %c0_i32, %c0_i32_0 : i32, i32
  }
  func.func @transform_6(%arg0: i32) -> (i32, i32) {
    %c0_i32 = arith.constant 0 : i32
    %c0_i32_0 = arith.constant 0 : i32
    %c0_i32_1 = arith.constant 0 : i32
    return %c0_i32, %c0_i32_0 : i32, i32
  }
  func.func @transform_7(%arg0: i32) -> (i32, i32) {
    %c0_i32 = arith.constant 0 : i32
    %c0_i32_0 = arith.constant 0 : i32
    %c0_i32_1 = arith.constant 0 : i32
    return %c0_i32, %c0_i32_0 : i32, i32
  }
  func.func @transform_8(%arg0: i32) -> (i32, i32) {
    %c0_i32 = arith.constant 0 : i32
    %c0_i32_0 = arith.constant 0 : i32
    %c0_i32_1 = arith.constant 0 : i32
    return %c0_i32, %c0_i32_0 : i32, i32
  }
  func.func @transform_9(%arg0: i32) -> (i32, i32) {
    %c0_i32 = arith.constant 0 : i32
    %c0_i32_0 = arith.constant 0 : i32
    %c0_i32_1 = arith.constant 0 : i32
    return %c0_i32, %c0_i32_0 : i32, i32
  }
  func.func @transform_10(%arg0: i32) -> (i32, i32) {
    %c0_i32 = arith.constant 0 : i32
    %c0_i32_0 = arith.constant 0 : i32
    %c0_i32_1 = arith.constant 0 : i32
    return %c0_i32, %c0_i32_0 : i32, i32
  }
  func.func @transform_11(%arg0: i32) -> (i32, i32, i32) {
    %c0_i32 = arith.constant 0 : i32
    %c0_i32_0 = arith.constant 0 : i32
    %c0_i32_1 = arith.constant 0 : i32
    return %arg0, %c0_i32, %c0_i32_0 : i32, i32, i32
  }
}

</mosaic_0001>

<bundles_post_ra>
// kernel: tpu_custom_call.1
= control target key start
LH: loop header
LB: loop body
LE: loop exit
PB: predicated region body
PF: predicated region fallthrough
CT: control target
= control target key end

     0   :  { %s5953_s0 = inlined_call_operand.hbm [shape: f32[4,16,256], index: 0, kind: input, shape index: {}]   ;;  %s5954_s1 = inlined_call_operand.hbm [shape: bf16[256,768], index: 1, kind: input, shape index: {}]   ;;  %s5955_s2 = inlined_call_operand.hbm [shape: f32[1,768], index: 2, kind: input, shape index: {}]   ;;  %s5956_s3 = inlined_call_operand.hbm [shape: bf16[256,256], index: 3, kind: input, shape index: {}]   ;;  %s5957_s4 = inlined_call_operand.vmem [shape: f32[1,256], index: 4, kind: input, shape index: {}]   ;;  %s5958_s5 = inlined_call_operand.hbm [shape: f32[1,256], index: 5, kind: input, shape index: {}]   ;;  %s5959_s6 = inlined_call_operand.hbm [shape: bf16[256,512], index: 6, kind: input, shape index: {}]   ;;  %s5960_s7 = inlined_call_operand.vmem [shape: f32[1,512], index: 7, kind: input, shape index: {}]   ;;  %s5961_s8 = inlined_call_operand.hbm [shape: bf16[512,256], index: 8, kind: input, shape index: {}]   ;;  %s5962_s9 = inlined_call_operand.vmem [shape: f32[1,256], index: 9, kind: input, shape index: {}]   ;;  %s5963_s10 = inlined_call_operand.hbm [shape: f32[1,256], index: 10, kind: input, shape index: {}]   ;;  %s5964_s11 = inlined_call_operand.hbm [shape: f32[4,16,256], index: 11, kind: output, shape index: {}]  }
   0x1   :  { %5969 = sst [smem:[#allocation23_spill]] %s5954_s1 }
   0x2   :  { %5970 = sst [smem:[#allocation24_spill]] %s5955_s2 }
   0x3   :  { %5971 = sst [smem:[#allocation25_spill]] %s5956_s3 }
   0x4   :  { %5972 = sst [smem:[#allocation26_spill]] %s5958_s5 }
   0x5   :  { %5973 = sst [smem:[#allocation27_spill]] %s5964_s11 }
   0x6   :  { %16 = vsyncpa [#allocation3], 0 }
   0x7   :  { %18 = vsyncpa [#allocation3 + $0x1], 0 }
   0x8   :  { %19 = vsyncpa [#allocation6], 0 }
   0x9   :  { %20 = vsyncpa [#allocation9], 0 }
   0xa   :  { %21 = vsyncpa [#allocation12], 0 }
   0xb   :  { %22 = vsyncpa [#allocation15], 0 }
   0xc   :  { %23 = vsyncpa [#allocation4], 0 }
   0xd   :  { %25 = vsyncpa [#allocation4 + $0x1], 0  ;;  %s5384_s17 = smov 0   ;;  %s5386_s18 = smov 0  }
   0xe   :  { %s5388_s19 = smov 0   ;;  %s5390_s20 = smov 0  }
   0xf LB: > { %s5974_s1 = sld [smem:[#allocation23_spill]]  ;;  %s5408_s24 = sadd.s32 4294967295, %s5306_s20   ;;  %s5306_s20 = sphi %s5390_s20, %s5992_s20   ;;  %s5302_s19 = sphi %s5388_s19, %s5991_s19   ;;  %s5298_s18 = sphi %s5386_s18, %s5990_s18   ;;  %s5294_s17 = sphi %s5384_s17, %s5989_s17  }
  0x10   : > { %p3483_p0 = scmp.ge.s32.totalorder %s5306_s20, 1  ;;  %p52_p1 = scmp.eq.s32.totalorder %s5408_s24, 0 }
  0x11   : > { %p298_p2 = scmp.lt.s32.totalorder %s5306_s20, 3  ;;  %s5308_s26 = smov [#allocation5]  }
  0x12   : > { %s311_s27 = sshll.u32 %s5308_s26, 4  ;;  %s5976_s3 = sld [smem:[#allocation25_spill]]  ;;  %s312_s27 = int_to_ptr.vmem [resolvable:$true] %s311_s27 }
  0x13   : > { %p5413_p3 = pnand %p3483_p0, %p298_p2  ;;  %s5309_s13 = smov [#allocation8]  }
  0x14   : > { %s337_s14 = sshll.u32 %s5309_s13, 4  ;;  %s5310_s15 = smov 384   ;;  %s338_s14 = int_to_ptr.vmem [resolvable:$true] %s337_s14 }
  0x15   : > { %s309_s23 = sshll.u32 %s5974_s1, 4  ;;  %p4832_p4 = pneg %p5413_p3  ;;  %s310_s23 = int_to_ptr.hbm [resolvable:$true] %s309_s23 }
  0x16   : > { %s5311_s16 = smov 24   ;;  %s5966_s21 = smov 128  }
  0x17   : > { %p5425_p6 = pnand %p4832_p4, %p52_p1  ;;  %s5313_s22 = smov 8  }
  0x18   : > { %s335_s30 = sshll.u32 %s5976_s3, 4  ;;  %s364_s29 = sshll.u32 %s5959_s6, 4  ;;  %s336_s30 = int_to_ptr.hbm [resolvable:$true] %s335_s30  ;;  %s365_s29 = int_to_ptr.hbm [resolvable:$true] %s364_s29 }
  0x19   : > { %4835 = dma.hbm_to_vmem [thread:$0]  (!%p5425_p6), %s310_s23, 12288, %s312_s27, [#allocation6], %s5310_s15, %s5310_s15, %s5311_s16  }
  0x1a   : > { %4841 = dma.hbm_to_vmem [thread:$0]  (!%p5425_p6), %s336_s30, 4096, %s338_s14, [#allocation9], %s5966_s21, %s5966_s21, %s5313_s22  }
  0x1b   : > { %s5314_s13 = smov [#allocation11]   ;;  %s5978_s2 = sld [smem:[#allocation24_spill]] }
  0x1c   : > { %s366_s1 = sshll.u32 %s5314_s13, 4  ;;  %s5967_s27 = smov 256   ;;  %s367_s1 = int_to_ptr.vmem [resolvable:$true] %s366_s1 }
  0x1d   : > { %s5968_s15 = smov 16   ;;  %s5317_s30 = smov [#allocation7]  }
  0x1e   : > { %4847 = dma.hbm_to_vmem [thread:$0]  (!%p5425_p6), %s365_s29, 8192, %s367_s1, [#allocation12], %s5967_s27, %s5967_s27, %s5968_s15  }
  0x1f   : > { %s326_s14 = sshll.u32 %s5317_s30, 4  ;;  %s5979_s5 = sld [smem:[#allocation26_spill]]  ;;  %s327_s14 = int_to_ptr.vmem [resolvable:$true] %s326_s14 }
  0x20   : > { %s381_s13 = sshll.u32 %s5961_s8, 4  ;;  %s5318_s21 = smov [#allocation10]   ;;  %s382_s13 = int_to_ptr.hbm [resolvable:$true] %s381_s13 }
  0x21   : > { %s324_s23 = sshll.u32 %s5978_s2, 4  ;;  %s355_s1 = sshll.u32 %s5318_s21, 4  ;;  %s325_s23 = int_to_ptr.hbm [resolvable:$true] %s324_s23  ;;  %s356_s1 = int_to_ptr.vmem [resolvable:$true] %s355_s1 }
  0x22   : > { %4838 = dma.hbm_to_vmem [thread:$0]  (!%p5425_p6), %s325_s23, 96, %s327_s14, [#allocation6]  }
  0x23   : > { %s5319_s29 = smov [#allocation13]   ;;  %s399_s16 = sshll.u32 %s5963_s10, 4  ;;  %s400_s16 = int_to_ptr.hbm [resolvable:$true] %s399_s16 }
  0x24   : > { %s383_s23 = sshll.u32 %s5319_s29, 4  ;;  %s5980_s21 = smov 128   ;;  %s384_s23 = int_to_ptr.vmem [resolvable:$true] %s383_s23 }
  0x25   : > { %s353_s28 = sshll.u32 %s5979_s5, 4  ;;  %s5320_s26 = smov [#allocation14]   ;;  %s354_s28 = int_to_ptr.hbm [resolvable:$true] %s353_s28 }
  0x26   : > { %4844 = dma.hbm_to_vmem [thread:$0]  (!%p5425_p6), %s354_s28, 32, %s356_s1, [#allocation9]  }
  0x27   : > { %4850 = dma.hbm_to_vmem [thread:$0]  (!%p5425_p6), %s382_s13, 8192, %s384_s23, [#allocation12], %s5980_s21, %s5980_s21, %s5313_s22  }
  0x28   : > { %s401_s28 = sshll.u32 %s5320_s26, 4  ;;  %s3482_s3 = sadd.s32 4294967294, %s5306_s20   ;;  %s402_s28 = int_to_ptr.vmem [resolvable:$true] %s401_s28 }
  0x29   : > { %4853 = dma.hbm_to_vmem [thread:$0]  (!%p5425_p6), %s400_s16, 32, %s402_s28, [#allocation15]  }
  0x2a   : > { %s5469_s11 = sadd.s32 1, %s5306_s20   ;;  %s38_s1 = sadd.s32 1, %s5302_s19 }
  0x2b   : > { %s35_s29 = ssub.s32 %s5306_s20, %s5469_s11  ;;  %p45_p7 = scmp.ne.s32.totalorder %s5302_s19, %s5298_s18 }
  0x2c   : > { %p36_p8 = scmp.eq.s32.totalorder %s35_s29, 0  ;;  %p46_p9 = scmp.eq.s32.totalorder %s5306_s20, 0 }
  0x2d   : > { %p51_p10 = scmp.ne.s32.totalorder %s5298_s18, %s5294_s17  ;;  %p285_p11 = scmp.eq.s32.totalorder %s5408_s24, 1 }
  0x2e   : > { %s5481_s22 = scalar_select %p36_p8, %s5302_s19, %s38_s1  }
  0x2f   : > { %p5485_p12 = por %p52_p1, %p51_p10  ;;  %p5489_p13 = por %p285_p11, %p45_p7 }
  0x30   : > { %p291_p0 = scmp.eq.s32.totalorder %s3482_s3, 1  ;;  %p47_p2 = por %p46_p9, %p45_p7 }
  0x31   : > { %s412_s23 = sand.u32 1, %s5302_s19   ;;  %p4869_p6 = scmp.lt.s32.totalorder %s5306_s20, 2 }
  0x32   : > { %p5494_p4 = por %p291_p0, %p51_p10  ;;  %s3492_s14 = sshll.u32 %s412_s23, 6 }
  0x33   : > { %s4541_s16 = sshll.u32 %s5306_s20, 6  ;;  %s416_s29 = scalar_lea.vmem [#allocation2], %s3492_s14 }
  0x34   : > { %s422_s28 = scalar_lea.hbm %s5953_s0, %s4541_s16  ;;  %s425_s27 = sshll.u32 %s416_s29, 4  ;;  %s426_s27 = int_to_ptr.vmem [resolvable:$true] %s425_s27 }
  0x35   : > { %s423_s1 = sshll.u32 %s422_s28, 4  ;;  %p5503_p8 = pnand %p4869_p6, %p47_p2  ;;  %s424_s1 = int_to_ptr.hbm [resolvable:$true] %s423_s1 }
  0x36   : > { %s413_s15 = scalar_lea.sflag [#allocation3], %s412_s23  ;;  %s5194_s2 = sshra.s32 %s424_s1, 4  ;;  %s5195_s2 = int_to_ptr.hbm [resolvable:$true] %s5194_s2 }
  0x37   : > { %s5196_s5 = scalar_lea.hbm %s5195_s2, 64  ;;  %p5198_p9 = pneg %p5503_p8 }
  0x38   : > { %p5197_p7 = scmp.ne.s32.totalorder %s5195_s2, %s5196_s5  ;;  %s5201_s14 = scalar_lea.hbm %s5953_s0, 128 }
  0x39   : > { %p5202_p0 = scmp.lt.s32.totalorder %s5195_s2, %s5953_s0  ;;  %p5203_p2 = scmp.lt.s32.totalorder %s5201_s14, %s5196_s5 }
  0x3a   : > { %p5199_p10 = pnand %p5198_p9, %p5197_p7 }
  0x3b   : > { %p5204_p6 = por %p5203_p2, %p5202_p0 }
  0x3c   : > { %p5200_p11 = pneg %p5199_p10 }
  0x3e   : > { %p5205_p5 = pnand %p5204_p6, %p5200_p11 }
  0x40   : > { %5208 = shalt.err (!%p5205_p5)
}
  0x41   : > { %s5985_s23 = smov 16   ;;  %s5986_s29 = smov 256  }
  0x42   : > { %4857 = dma.hbm_to_vmem [thread:$0]  (!%p5503_p8), %s424_s1, 1024, %s426_s27, %s413_s15, %s5986_s29, %s5986_s29, %s5985_s23  }
  0x43   : > { %437 = sbr.rel (%p5413_p3) target bundleno = 1540 (0x604), region = 64  ;;  %s5523_s16 = sand.u32 (!%p5413_p3), 1, %s5298_s18  }
  0x44   : > { %s3497_s2 = sshll.u32 (!%p5413_p3), %s5523_s16, 6  ;;  %s440_s5 = scalar_lea.sflag (!%p5413_p3), [#allocation3], %s5523_s16 }
  0x45   : > { %s5529_s21 = scalar_lea.vmem (!%p5413_p3), [#allocation2], %s3497_s2 }
  0x48   : > { %5269 = dma.done.wait (%p5485_p12), %s440_s5, 1024  }
  0x49   : > { %5271 = vsyncadd (%p5485_p12), %s440_s5, 4294966272 }
  0x4a   : > { %5273 = dma.done.wait (%p52_p1), [#allocation6], 12384  }
  0x4b   : > { %5275 = vsyncadd (%p52_p1), [#allocation6], 4294954912 }
  0x4c   : > { %5277 = dma.done.wait (%p52_p1), [#allocation9], 4128  }
  0x4d   : > { %5279 = vsyncadd (%p52_p1), [#allocation9], 4294963168 }
  0x4e   : > { %5281 = dma.done.wait (%p52_p1), [#allocation12], 16384  }
  0x4f   : > { %5283 = vsyncadd (%p52_p1), [#allocation12], 4294950912 }
  0x50   : > { %5285 = dma.done.wait (%p52_p1), [#allocation15], 32  }
  0x51   : > { %5287 = vsyncadd (%p52_p1), [#allocation15], 4294967264  ;;  %v3676_v0 = vld [vmem:[#allocation5 + $0x150] sm:$0xf]  ;;  %v4587_v1 = vld [vmem:[#allocation5 + $0x164] sm:$0xf0] }
  0x52   : > { %v4584_v2 = vld [vmem:[#allocation5 + $0x154] sm:$0xf]  ;;  %v3677_v3 = vor.u32 %v4587_v1, %v3676_v0  ;;  %v3678_v4 = vld [vmem:[#allocation5 + $0x168] sm:$0xf0]  ;;  %v3868_v9 = vld [vmem:[#allocation5 + $0x2d0] sm:$0xf] }
  0x53   : > { %v4632_v5 = vld [vmem:[#allocation5 + $0x2d4] sm:$0xf]  ;;  %v3870_v6 = vld [vmem:[#allocation5 + $0x2e8] sm:$0xf0]  ;;  %v3681_v7 = vor.u32 %v4584_v2, %v3678_v4  ;;  %v4635_v10 = vld [vmem:[#allocation5 + $0x2e4] sm:$0xf0] }
  0x54   : > { %v3873_v8 = vor.u32 %v4632_v5, %v3870_v6  ;;  %v3652_v11 = vld [vmem:[#allocation5 + $0x120] sm:$0xf]  ;;  %1123 = vmatpush.bf16.msra.mxu0 %v3677_v3  ;;  %v3869_v12 = vor.u32 %v4635_v10, %v3868_v9  ;;  %v4581_v13 = vld [vmem:[#allocation5 + $0x134] sm:$0xf0]  ;;  %v4578_v14 = vld [vmem:[#allocation5 + $0x124] sm:$0xf] }
  0x55   : > { %v3654_v15 = vld [vmem:[#allocation5 + $0x138] sm:$0xf0]  ;;  %1161 = vmatpush.bf16.msra.mxu2 %v3681_v7  ;;  %v3653_v16 = vor.u32 %v4581_v13, %v3652_v11  ;;  %v4626_v18 = vld [vmem:[#allocation5 + $0x2a4] sm:$0xf]  ;;  %v3844_v20 = vld [vmem:[#allocation5 + $0x2a0] sm:$0xf] }
  0x56   : > { %1180 = vmatpush.bf16.msra.mxu3 %v3873_v8  ;;  %v3657_v17 = vor.u32 %v4578_v14, %v3654_v15  ;;  %v3846_v19 = vld [vmem:[#allocation5 + $0x2b8] sm:$0xf0]  ;;  %1142 = vmatpush.bf16.msra.mxu1 %v3869_v12  ;;  %v4629_v22 = vld [vmem:[#allocation5 + $0x2b4] sm:$0xf0]  ;;  %v3628_v23 = vld [vmem:[#allocation5 + $0xf0] sm:$0xf] }
  0x57   : > { %v3849_v21 = vor.u32 %v4626_v18, %v3846_v19  ;;  %v4575_v24 = vld [vmem:[#allocation5 + $0x104] sm:$0xf0]  ;;  %v3845_v25 = vor.u32 %v4629_v22, %v3844_v20  ;;  %v4572_v26 = vld [vmem:[#allocation5 + $0xf4] sm:$0xf]  ;;  %v3630_v27 = vld [vmem:[#allocation5 + $0x108] sm:$0xf0] }
  0x58   : > { %v4620_v28 = vld [vmem:[#allocation5 + $0x274] sm:$0xf]  ;;  %1124 = vmatpush.bf16.msra.mxu0 %v3653_v16  ;;  %v3629_v29 = vor.u32 %v4575_v24, %v3628_v23  ;;  %v3822_v30 = vld [vmem:[#allocation5 + $0x288] sm:$0xf0]  ;;  %v3820_v31 = vld [vmem:[#allocation5 + $0x270] sm:$0xf]  ;;  %v3633_v33 = vor.u32 %v4572_v26, %v3630_v27 }
  0x59   : > { %v4623_v32 = vld [vmem:[#allocation5 + $0x284] sm:$0xf0]  ;;  %1162 = vmatpush.bf16.msra.mxu2 %v3657_v17  ;;  %v3825_v34 = vor.u32 %v4620_v28, %v3822_v30  ;;  %v3604_v35 = vld [vmem:[#allocation5 + $0xc0] sm:$0xf]  ;;  %v4569_v36 = vld [vmem:[#allocation5 + $0xd4] sm:$0xf0] }
  0x5a   : > { %1181 = vmatpush.bf16.msra.mxu3 %v3849_v21  ;;  %v4566_v37 = vld [vmem:[#allocation5 + $0xc4] sm:$0xf]  ;;  %1143 = vmatpush.bf16.msra.mxu1 %v3845_v25  ;;  %v3821_v38 = vor.u32 %v4623_v32, %v3820_v31  ;;  %v3606_v39 = vld [vmem:[#allocation5 + $0xd8] sm:$0xf0]  ;;  %v3796_v42 = vld [vmem:[#allocation5 + $0x240] sm:$0xf]  ;;  %v3605_v44 = vor.u32 %v4569_v36, %v3604_v35 }
  0x5b   : > { %v4614_v40 = vld [vmem:[#allocation5 + $0x244] sm:$0xf]  ;;  %v3798_v41 = vld [vmem:[#allocation5 + $0x258] sm:$0xf0]  ;;  %v4617_v43 = vld [vmem:[#allocation5 + $0x254] sm:$0xf0]  ;;  %v3609_v45 = vor.u32 %v4566_v37, %v3606_v39 }
  0x5c   : > { %1125 = vmatpush.bf16.msra.mxu0 %v3629_v29  ;;  %v3801_v46 = vor.u32 %v4614_v40, %v3798_v41  ;;  %v3580_v47 = vld [vmem:[#allocation5 + $0x90] sm:$0xf]  ;;  %v4563_v48 = vld [vmem:[#allocation5 + $0xa4] sm:$0xf0]  ;;  %v4560_v49 = vld [vmem:[#allocation5 + $0x94] sm:$0xf]  ;;  %v3797_v50 = vor.u32 %v4617_v43, %v3796_v42 }
  0x5d   : > { %1163 = vmatpush.bf16.msra.mxu2 %v3633_v33  ;;  %v3582_v51 = vld [vmem:[#allocation5 + $0xa8] sm:$0xf0]  ;;  %v4608_v52 = vld [vmem:[#allocation5 + $0x214] sm:$0xf]  ;;  %v3772_v54 = vld [vmem:[#allocation5 + $0x210] sm:$0xf]  ;;  %v3581_v56 = vor.u32 %v4563_v48, %v3580_v47 }
  0x5e   : > { %1182 = vmatpush.bf16.msra.mxu3 %v3825_v34  ;;  %1144 = vmatpush.bf16.msra.mxu1 %v3821_v38  ;;  %v3774_v53 = vld [vmem:[#allocation5 + $0x228] sm:$0xf0]  ;;  %v4611_v55 = vld [vmem:[#allocation5 + $0x224] sm:$0xf0]  ;;  %v3585_v57 = vor.u32 %v4560_v49, %v3582_v51  ;;  %v3556_v59 = vld [vmem:[#allocation5 + $0x60] sm:$0xf] }
  0x5f   : > { %v3777_v58 = vor.u32 %v4608_v52, %v3774_v53  ;;  %v4557_v60 = vld [vmem:[#allocation5 + $0x74] sm:$0xf0]  ;;  %v4554_v61 = vld [vmem:[#allocation5 + $0x64] sm:$0xf]  ;;  %v3773_v62 = vor.u32 %v4611_v55, %v3772_v54  ;;  %v3558_v63 = vld [vmem:[#allocation5 + $0x78] sm:$0xf0] }
  0x60   : > { %1126 = vmatpush.bf16.msra.mxu0 %v3605_v44  ;;  %v4602_v0 = vld [vmem:[#allocation5 + $0x1e4] sm:$0xf]  ;;  %v3750_v1 = vld [vmem:[#allocation5 + $0x1f8] sm:$0xf0]  ;;  %v3748_v2 = vld [vmem:[#allocation5 + $0x1e0] sm:$0xf]  ;;  %v3557_v4 = vor.u32 %v4557_v60, %v3556_v59  ;;  %v3561_v5 = vor.u32 %v4554_v61, %v3558_v63 }
  0x61   : > { %1164 = vmatpush.bf16.msra.mxu2 %v3609_v45  ;;  %v4605_v3 = vld [vmem:[#allocation5 + $0x1f4] sm:$0xf0]  ;;  %v3753_v6 = vor.u32 %v4602_v0, %v3750_v1  ;;  %v3532_v7 = vld [vmem:[#allocation5 + $0x30] sm:$0xf]  ;;  %v4551_v8 = vld [vmem:[#allocation5 + $0x44] sm:$0xf0] }
  0x62   : > { %1183 = vmatpush.bf16.msra.mxu3 %v3801_v46  ;;  %1145 = vmatpush.bf16.msra.mxu1 %v3797_v50  ;;  %v4548_v9 = vld [vmem:[#allocation5 + $0x34] sm:$0xf]  ;;  %v3749_v10 = vor.u32 %v4605_v3, %v3748_v2  ;;  %v3534_v11 = vld [vmem:[#allocation5 + $0x48] sm:$0xf0]  ;;  %v3724_v14 = vld [vmem:[#allocation5 + $0x1b0] sm:$0xf]  ;;  %v3533_v16 = vor.u32 %v4551_v8, %v3532_v7 }
  0x63   : > { %v4596_v12 = vld [vmem:[#allocation5 + $0x1b4] sm:$0xf]  ;;  %v3726_v13 = vld [vmem:[#allocation5 + $0x1c8] sm:$0xf0]  ;;  %v4599_v15 = vld [vmem:[#allocation5 + $0x1c4] sm:$0xf0]  ;;  %v3537_v19 = vor.u32 %v4548_v9, %v3534_v11 }
  0x64   : > { %1127 = vmatpush.bf16.msra.mxu0 %v3581_v56  ;;  %v3508_v17 = vld [vmem:[#allocation5] sm:$0xf]  ;;  %v4545_v18 = vld [vmem:[#allocation5 + $0x14] sm:$0xf0]  ;;  %v3729_v20 = vor.u32 %v4596_v12, %v3726_v13  ;;  %v4542_v21 = vld [vmem:[#allocation5 + $0x4] sm:$0xf]  ;;  %v3725_v24 = vor.u32 %v4599_v15, %v3724_v14 }
  0x65   : > { %1165 = vmatpush.bf16.msra.mxu2 %v3585_v57  ;;  %v3510_v22 = vld [vmem:[#allocation5 + $0x18] sm:$0xf0]  ;;  %v4590_v23 = vld [vmem:[#allocation5 + $0x184] sm:$0xf]  ;;  %v3700_v26 = vld [vmem:[#allocation5 + $0x180] sm:$0xf]  ;;  %v3509_v31 = vor.u32 %v4545_v18, %v3508_v17 }
  0x66   : > { %1184 = vmatpush.bf16.msra.mxu3 %v3777_v58  ;;  %1146 = vmatpush.bf16.msra.mxu1 %v3773_v62  ;;  %v3702_v25 = vld [vmem:[#allocation5 + $0x198] sm:$0xf0]  ;;  %v4593_v27 = vld [vmem:[#allocation5 + $0x194] sm:$0xf0]  ;;  %v521_v28 = vld [vmem:[%s5529_s21] sm:$0xff]  ;;  %v3513_v35 = vor.u32 %v4542_v21, %v3510_v22  ;;  %vm1479_vm0 = vcmask 130048  }
  0x67   : > { %v3684_v29 = vld [vmem:[#allocation5 + $0x158] sm:$0xf]  ;;  %v4588_v30 = vld [vmem:[#allocation5 + $0x16c] sm:$0xf0]  ;;  %v4585_v33 = vld [vmem:[#allocation5 + $0x15c] sm:$0xf]  ;;  %v3705_v36 = vor.u32 %v4590_v23, %v3702_v25  ;;  %v3701_v39 = vor.u32 %v4593_v27, %v3700_v26 }
  0x68   : > { %1128 = vmatpush.bf16.msra.mxu0 %v3557_v4  ;;  %v523_v32 = vld [vmem:[%s5529_s21 + $0x10] sm:$0xff]  ;;  %v522_v37 = vld [vmem:[%s5529_s21 + $0x8] sm:$0xff]  ;;  %v524_v38 = vld [vmem:[%s5529_s21 + $0x18] sm:$0xff]  ;;  %v3685_v40 = vor.u32 %v4588_v30, %v3684_v29  ;;  %s5903_s14 = scalar_lea.vmem [#allocation16], %s3497_s2  ;;  %s4799_s26 = sshll.u32 %s5408_s24, 6 }
  0x69   : > { %1166 = vmatpush.bf16.msra.mxu2 %v3561_v5  ;;  %v3686_v34 = vld [vmem:[#allocation5 + $0x170] sm:$0xf0]  ;;  %v4633_v41 = vld [vmem:[#allocation5 + $0x2dc] sm:$0xf]  ;;  %v3876_v43 = vld [vmem:[#allocation5 + $0x2d8] sm:$0xf]  ;;  %v5555_v44 = vpack.c.bf16 %v523_v32, %v521_v28  ;;  %v5557_v49 = vpack.c.bf16 %v524_v38, %v522_v37 }
  0x6a   : > { %1185 = vmatpush.bf16.msra.mxu3 %v3753_v6  ;;  %1147 = vmatpush.bf16.msra.mxu1 %v3749_v10  ;;  %v3878_v42 = vld [vmem:[#allocation5 + $0x2f0] sm:$0xf0]  ;;  %v3689_v45 = vor.u32 %v4585_v33, %v3686_v34  ;;  %v4636_v46 = vld [vmem:[#allocation5 + $0x2ec] sm:$0xf0]  ;;  %v3660_v47 = vld [vmem:[#allocation5 + $0x128] sm:$0xf] }
  0x6b   : > { %v4582_v48 = vld [vmem:[#allocation5 + $0x13c] sm:$0xf0]  ;;  %v4579_v50 = vld [vmem:[#allocation5 + $0x12c] sm:$0xf]  ;;  %v3662_v51 = vld [vmem:[#allocation5 + $0x140] sm:$0xf0]  ;;  %v3881_v52 = vor.u32 %v4633_v41, %v3878_v42  ;;  %v3877_v53 = vor.u32 %v4636_v46, %v3876_v43 }
  0x6c   : > { %1129 = vmatpush.bf16.msra.mxu0 %v3533_v16  ;;  %v3661_v54 = vor.u32 %v4582_v48, %v3660_v47  ;;  %v4627_v55 = vld [vmem:[#allocation5 + $0x2ac] sm:$0xf]  ;;  %v3854_v56 = vld [vmem:[#allocation5 + $0x2c0] sm:$0xf0]  ;;  %v3852_v57 = vld [vmem:[#allocation5 + $0x2a8] sm:$0xf]  ;;  %v3665_v58 = vor.u32 %v4579_v50, %v3662_v51 }
  0x6d   : > { %1167 = vmatpush.bf16.msra.mxu2 %v3537_v19  ;;  %v4630_v59 = vld [vmem:[#allocation5 + $0x2bc] sm:$0xf0]  ;;  %v3636_v60 = vld [vmem:[#allocation5 + $0xf8] sm:$0xf]  ;;  %v4576_v61 = vld [vmem:[#allocation5 + $0x10c] sm:$0xf0]  ;;  %v3857_v0 = vor.u32 %v4627_v55, %v3854_v56 }
  0x6e   : > { %1186 = vmatpush.bf16.msra.mxu3 %v3729_v20  ;;  %1148 = vmatpush.bf16.msra.mxu1 %v3725_v24  ;;  %v4573_v62 = vld [vmem:[#allocation5 + $0xfc] sm:$0xf]  ;;  %v3638_v63 = vld [vmem:[#allocation5 + $0x110] sm:$0xf0]  ;;  %v3853_v1 = vor.u32 %v4630_v59, %v3852_v57  ;;  %v3637_v2 = vor.u32 %v4576_v61, %v3636_v60  ;;  %v3828_v5 = vld [vmem:[#allocation5 + $0x278] sm:$0xf] }
  0x6f   : > { %v4621_v3 = vld [vmem:[#allocation5 + $0x27c] sm:$0xf]  ;;  %v3830_v4 = vld [vmem:[#allocation5 + $0x290] sm:$0xf0]  ;;  %v3641_v6 = vor.u32 %v4573_v62, %v3638_v63  ;;  %v4624_v7 = vld [vmem:[#allocation5 + $0x28c] sm:$0xf0] }
  0x70   : > { %1130 = vmatpush.bf16.msra.mxu0 %v3509_v31  ;;  %v3612_v8 = vld [vmem:[#allocation5 + $0xc8] sm:$0xf]  ;;  %v4570_v9 = vld [vmem:[#allocation5 + $0xdc] sm:$0xf0]  ;;  %v4567_v10 = vld [vmem:[#allocation5 + $0xcc] sm:$0xf]  ;;  %v3833_v12 = vor.u32 %v4621_v3, %v3830_v4  ;;  %v3829_v14 = vor.u32 %v4624_v7, %v3828_v5 }
  0x71   : > { %1168 = vmatpush.bf16.msra.mxu2 %v3513_v35  ;;  %v3614_v11 = vld [vmem:[#allocation5 + $0xe0] sm:$0xf0]  ;;  %v4615_v13 = vld [vmem:[#allocation5 + $0x24c] sm:$0xf]  ;;  %v3613_v15 = vor.u32 %v4570_v9, %v3612_v8  ;;  %v3804_v17 = vld [vmem:[#allocation5 + $0x248] sm:$0xf] }
  0x72   : > { %1187 = vmatpush.bf16.msra.mxu3 %v3705_v36  ;;  %1149 = vmatpush.bf16.msra.mxu1 %v3701_v39  ;;  %v3806_v16 = vld [vmem:[#allocation5 + $0x260] sm:$0xf0]  ;;  %v4618_v18 = vld [vmem:[#allocation5 + $0x25c] sm:$0xf0]  ;;  %v3617_v19 = vor.u32 %v4567_v10, %v3614_v11  ;;  %v3588_v21 = vld [vmem:[#allocation5 + $0x98] sm:$0xf] }
  0x73   : > { %1131 = vmatmul.bf16.vlgmr.msra.gmra.mxu0 %v5555_v44  ;;  %v525_v20 = vld [vmem:[%s5529_s21 + $0x20] sm:$0xff]  ;;  %v4564_v22 = vld [vmem:[#allocation5 + $0xac] sm:$0xf0]  ;;  %v4561_v24 = vld [vmem:[#allocation5 + $0x9c] sm:$0xf]  ;;  %v3809_v26 = vor.u32 %v4615_v13, %v3806_v16  ;;  %v3805_v29 = vor.u32 %v4618_v18, %v3804_v17  ;;  %s5987_s29 = sld [smem:[#allocation27_spill]] }
  0x74   : > { %1199 = vmatpush.bf16.msrb.mxu0 %v3685_v40  ;;  %1169 = vmatmul.bf16.vlgmr.msra.gmra.mxu2 %v5555_v44  ;;  %v527_v23 = vld [vmem:[%s5529_s21 + $0x30] sm:$0xff]  ;;  %v526_v27 = vld [vmem:[%s5529_s21 + $0x28] sm:$0xff]  ;;  %v528_v28 = vld [vmem:[%s5529_s21 + $0x38] sm:$0xff]  ;;  %v3589_v30 = vor.u32 %v4564_v22, %v3588_v21  ;;  %s3339_s5 = sshll.u32 %s5903_s14, 4  ;;  %s3340_s5 = int_to_ptr.vmem [resolvable:$true] %s3339_s5 }
  0x75   : > { %1237 = vmatpush.bf16.msrb.mxu2 %v3689_v45  ;;  %1188 = vmatmul.bf16.vlgmr.msra.gmra.mxu3 %v5557_v49  ;;  %v3590_v25 = vld [vmem:[#allocation5 + $0xb0] sm:$0xf0]  ;;  %v4609_v31 = vld [vmem:[#allocation5 + $0x21c] sm:$0xf]  ;;  %v3780_v33 = vld [vmem:[#allocation5 + $0x218] sm:$0xf]  ;;  %v5567_v34 = vpack.c.bf16 %v527_v23, %v525_v20  ;;  %v5569_v39 = vpack.c.bf16 %v528_v28, %v526_v27 }
  0x76   : > { %1256 = vmatpush.bf16.msrb.mxu3 %v3881_v52  ;;  %1150 = vmatmul.bf16.vlgmr.msra.gmra.mxu1 %v5557_v49  ;;  %v3782_v32 = vld [vmem:[#allocation5 + $0x230] sm:$0xf0]  ;;  %v3593_v35 = vor.u32 %v4561_v24, %v3590_v25  ;;  %v4612_v36 = vld [vmem:[#allocation5 + $0x22c] sm:$0xf0]  ;;  %v3564_v37 = vld [vmem:[#allocation5 + $0x68] sm:$0xf] }
  0x77   : > { %1218 = vmatpush.bf16.msrb.mxu1 %v3877_v53  ;;  %v4558_v38 = vld [vmem:[#allocation5 + $0x7c] sm:$0xf0]  ;;  %v4555_v40 = vld [vmem:[#allocation5 + $0x6c] sm:$0xf]  ;;  %v3566_v41 = vld [vmem:[#allocation5 + $0x80] sm:$0xf0]  ;;  %v3785_v42 = vor.u32 %v4609_v31, %v3782_v32  ;;  %v3781_v43 = vor.u32 %v4612_v36, %v3780_v33 }
  0x78   : > { %1200 = vmatpush.bf16.msrb.mxu0 %v3661_v54  ;;  %v3565_v45 = vor.u32 %v4558_v38, %v3564_v37  ;;  %v4603_v46 = vld [vmem:[#allocation5 + $0x1ec] sm:$0xf]  ;;  %v3758_v47 = vld [vmem:[#allocation5 + $0x200] sm:$0xf0]  ;;  %v3756_v48 = vld [vmem:[#allocation5 + $0x1e8] sm:$0xf]  ;;  %v3569_v50 = vor.u32 %v4555_v40, %v3566_v41 }
  0x79   : > { %1238 = vmatpush.bf16.msrb.mxu2 %v3665_v58  ;;  %v4606_v51 = vld [vmem:[#allocation5 + $0x1fc] sm:$0xf0]  ;;  %v3540_v52 = vld [vmem:[#allocation5 + $0x38] sm:$0xf]  ;;  %v4552_v53 = vld [vmem:[#allocation5 + $0x4c] sm:$0xf0]  ;;  %v3761_v56 = vor.u32 %v4603_v46, %v3758_v47  ;;  %s3338_s2 = scalar_lea.hbm %s5987_s29, %s4799_s26 }
  0x7a   : > { %1257 = vmatpush.bf16.msrb.mxu3 %v3857_v0  ;;  %v4549_v54 = vld [vmem:[#allocation5 + $0x3c] sm:$0xf]  ;;  %v3542_v55 = vld [vmem:[#allocation5 + $0x50] sm:$0xf0]  ;;  %v3757_v58 = vor.u32 %v4606_v51, %v3756_v48  ;;  %v3541_v59 = vor.u32 %v4552_v53, %v3540_v52  ;;  %v3732_v61 = vld [vmem:[#allocation5 + $0x1b8] sm:$0xf] }
  0x7b   : > { %1219 = vmatpush.bf16.msrb.mxu1 %v3853_v1  ;;  %v4597_v57 = vld [vmem:[#allocation5 + $0x1bc] sm:$0xf]  ;;  %v3734_v60 = vld [vmem:[#allocation5 + $0x1d0] sm:$0xf0]  ;;  %v4600_v62 = vld [vmem:[#allocation5 + $0x1cc] sm:$0xf0]  ;;  %v3545_v63 = vor.u32 %v4549_v54, %v3542_v55 }
  0x7c   : > { %1201 = vmatpush.bf16.msrb.mxu0 %v3637_v2  ;;  %v3516_v0 = vld [vmem:[#allocation5 + $0x8] sm:$0xf]  ;;  %v4546_v1 = vld [vmem:[#allocation5 + $0x1c] sm:$0xf0]  ;;  %v4543_v2 = vld [vmem:[#allocation5 + $0xc] sm:$0xf]  ;;  %v3733_v7 = vor.u32 %v4600_v62, %v3732_v61 }
  0x7d   : > { %1239 = vmatpush.bf16.msrb.mxu2 %v3641_v6  ;;  %v3518_v3 = vld [vmem:[#allocation5 + $0x20] sm:$0xf0]  ;;  %v3692_v4 = vld [vmem:[#allocation5 + $0x160] sm:$0xf]  ;;  %v4589_v5 = vld [vmem:[#allocation5 + $0x174] sm:$0xf0]  ;;  %v3737_v6 = vor.u32 %v4597_v57, %v3734_v60  ;;  %v3517_v8 = vor.u32 %v4546_v1, %v3516_v0 }
  0x7e   : > { %1258 = vmatpush.bf16.msrb.mxu3 %v3833_v12  ;;  %v4591_v9 = vld [vmem:[#allocation5 + $0x18c] sm:$0xf]  ;;  %v3710_v10 = vld [vmem:[#allocation5 + $0x1a0] sm:$0xf0]  ;;  %v3521_v11 = vor.u32 %v4543_v2, %v3518_v3  ;;  %v3708_v12 = vld [vmem:[#allocation5 + $0x188] sm:$0xf] }
  0x7f   : > { %1220 = vmatpush.bf16.msrb.mxu1 %v3829_v14  ;;  %v4594_v13 = vld [vmem:[#allocation5 + $0x19c] sm:$0xf0]  ;;  %v3693_v14 = vor.u32 %v4589_v5, %v3692_v4  ;;  %v3668_v17 = vld [vmem:[#allocation5 + $0x130] sm:$0xf]  ;;  %v4583_v18 = vld [vmem:[#allocation5 + $0x144] sm:$0xf0] }
  0x80   : > { %1202 = vmatpush.bf16.msrb.mxu0 %v3613_v15  ;;  %v3713_v15 = vor.u32 %v4591_v9, %v3710_v10  ;;  %v3709_v16 = vor.u32 %v4594_v13, %v3708_v12  ;;  %v4586_v20 = vld [vmem:[#allocation5 + $0x164] sm:$0xf]  ;;  %v3694_v21 = vld [vmem:[#allocation5 + $0x178] sm:$0xf0]  ;;  %v3670_v27 = vld [vmem:[#allocation5 + $0x148] sm:$0xf0] }
  0x81   : > { %1240 = vmatpush.bf16.msrb.mxu2 %v3617_v19  ;;  %v3669_v19 = vor.u32 %v4583_v18, %v3668_v17  ;;  %v3697_v22 = vor.u32 %v4586_v20, %v3694_v21  ;;  %v4634_v23 = vld [vmem:[#allocation5 + $0x2e4] sm:$0xf]  ;;  %v3886_v24 = vld [vmem:[#allocation5 + $0x2f8] sm:$0xf0]  ;;  %v3644_v36 = vld [vmem:[#allocation5 + $0x100] sm:$0xf] }
  0x82   : > { %1259 = vmatpush.bf16.msrb.mxu3 %v3809_v26  ;;  %v3889_v25 = vor.u32 %v4634_v23, %v3886_v24  ;;  %v4580_v26 = vld [vmem:[#allocation5 + $0x134] sm:$0xf]  ;;  %v4574_v32 = vld [vmem:[#allocation5 + $0x104] sm:$0xf]  ;;  %v3646_v33 = vld [vmem:[#allocation5 + $0x118] sm:$0xf0] }
  0x83   : > { %1221 = vmatpush.bf16.msrb.mxu1 %v3805_v29  ;;  %1136 = vmatmul.bf16.gmra.mxu0 %v5567_v34  ;;  %v3673_v28 = vor.u32 %v4580_v26, %v3670_v27  ;;  %v4628_v29 = vld [vmem:[#allocation5 + $0x2b4] sm:$0xf]  ;;  %v4577_v37 = vld [vmem:[#allocation5 + $0x114] sm:$0xf0]  ;;  %v4622_v38 = vld [vmem:[#allocation5 + $0x284] sm:$0xf] }
  0x84   : > { %1203 = vmatpush.bf16.msrb.mxu0 %v3589_v30  ;;  %1174 = vmatmul.bf16.gmra.mxu2 %v5567_v34  ;;  %v3862_v30 = vld [vmem:[#allocation5 + $0x2c8] sm:$0xf0]  ;;  %v3645_v40 = vor.u32 %v4577_v37, %v3644_v36  ;;  %v3838_v41 = vld [vmem:[#allocation5 + $0x298] sm:$0xf0]  ;;  %v4571_v51 = vld [vmem:[#allocation5 + $0xe4] sm:$0xf0] }
  0x85   : > { %1241 = vmatpush.bf16.msrb.mxu2 %v3593_v35  ;;  %1193 = vmatmul.bf16.gmra.mxu3 %v5569_v39  ;;  %v3865_v31 = vor.u32 %v4628_v29, %v3862_v30  ;;  %v3649_v35 = vor.u32 %v4574_v32, %v3646_v33  ;;  %v3841_v46 = vor.u32 %v4622_v38, %v3838_v41  ;;  %v3622_v48 = vld [vmem:[#allocation5 + $0xe8] sm:$0xf0]  ;;  %v4616_v53 = vld [vmem:[#allocation5 + $0x254] sm:$0xf]  ;;  %v4631_v57 = vld [vmem:[#allocation5 + $0x2c4] sm:$0xf0] }
  0x86   : > { %1260 = vmatpush.bf16.msrb.mxu3 %v3785_v42  ;;  %1155 = vmatmul.bf16.gmra.mxu1 %v5569_v39  ;;  %v3884_v42 = vld [vmem:[#allocation5 + $0x2e0] sm:$0xf]  ;;  %v3814_v55 = vld [vmem:[#allocation5 + $0x268] sm:$0xf0]  ;;  %v3598_v61 = vld [vmem:[#allocation5 + $0xb8] sm:$0xf0] }
  0x87   : > { %1222 = vmatpush.bf16.msrb.mxu1 %v3781_v43  ;;  %v4637_v43 = vld [vmem:[#allocation5 + $0x2f4] sm:$0xf0]  ;;  %v3596_v62 = vld [vmem:[#allocation5 + $0xa0] sm:$0xf]  ;;  %v4610_v1 = vld [vmem:[#allocation5 + $0x224] sm:$0xf] }
  0x88   : > { %1204 = vmatpush.bf16.msrb.mxu0 %v3565_v45  ;;  %v4568_v45 = vld [vmem:[#allocation5 + $0xd4] sm:$0xf]  ;;  %v3885_v47 = vor.u32 %v4637_v43, %v3884_v42  ;;  %v3790_v3 = vld [vmem:[#allocation5 + $0x238] sm:$0xf0]  ;;  %v3836_v4 = vld [vmem:[#allocation5 + $0x280] sm:$0xf] }
  0x89   : > { %1242 = vmatpush.bf16.msrb.mxu2 %v3569_v50  ;;  %v3620_v50 = vld [vmem:[#allocation5 + $0xd0] sm:$0xf]  ;;  %v3625_v52 = vor.u32 %v4568_v45, %v3622_v48  ;;  %v4625_v5 = vld [vmem:[#allocation5 + $0x294] sm:$0xf0]  ;;  %v3574_v9 = vld [vmem:[#allocation5 + $0x88] sm:$0xf0] }
  0x8a   : > { %1261 = vmatpush.bf16.msrb.mxu3 %v3761_v56  ;;  %v3621_v54 = vor.u32 %v4571_v51, %v3620_v50  ;;  %v3860_v56 = vld [vmem:[#allocation5 + $0x2b0] sm:$0xf]  ;;  %v4604_v13 = vld [vmem:[#allocation5 + $0x1f4] sm:$0xf]  ;;  %v4619_v17 = vld [vmem:[#allocation5 + $0x264] sm:$0xf0] }
  0x8b   : > { %1223 = vmatpush.bf16.msrb.mxu1 %v3757_v58  ;;  %v4562_v58 = vld [vmem:[#allocation5 + $0xa4] sm:$0xf]  ;;  %v3861_v60 = vor.u32 %v4631_v57, %v3860_v56  ;;  %v3572_v10 = vld [vmem:[#allocation5 + $0x70] sm:$0xf]  ;;  %v3550_v21 = vld [vmem:[#allocation5 + $0x58] sm:$0xf0] }
  0x8c   : > { %1205 = vmatpush.bf16.msrb.mxu0 %v3541_v59  ;;  %v3817_v59 = vor.u32 %v4616_v53, %v3814_v55  ;;  %v3601_v0 = vor.u32 %v4562_v58, %v3598_v61  ;;  %v4550_v18 = vld [vmem:[#allocation5 + $0x44] sm:$0xf]  ;;  %v4553_v23 = vld [vmem:[#allocation5 + $0x54] sm:$0xf0]  ;;  %v3742_v27 = vld [vmem:[#allocation5 + $0x1d8] sm:$0xf0] }
  0x8d   : > { %1243 = vmatpush.bf16.msrb.mxu2 %v3545_v63  ;;  %v4565_v63 = vld [vmem:[#allocation5 + $0xb4] sm:$0xf0]  ;;  %v3553_v24 = vor.u32 %v4550_v18, %v3550_v21  ;;  %v4544_v30 = vld [vmem:[#allocation5 + $0x14] sm:$0xf]  ;;  %v3526_v33 = vld [vmem:[#allocation5 + $0x28] sm:$0xf0] }
  0x8e   : > { %1262 = vmatpush.bf16.msrb.mxu3 %v3737_v6  ;;  %v3597_v2 = vor.u32 %v4565_v63, %v3596_v62  ;;  %v4556_v6 = vld [vmem:[#allocation5 + $0x74] sm:$0xf]  ;;  %v4613_v29 = vld [vmem:[#allocation5 + $0x234] sm:$0xf0]  ;;  %v4547_v36 = vld [vmem:[#allocation5 + $0x24] sm:$0xf0]  ;;  %v3529_v37 = vor.u32 %v4544_v30, %v3526_v33 }
  0x8f   : > { %1224 = vmatpush.bf16.msrb.mxu1 %v3733_v7  ;;  %v3793_v7 = vor.u32 %v4610_v1, %v3790_v3  ;;  %v3577_v12 = vor.u32 %v4556_v6, %v3574_v9  ;;  %v4592_v38 = vld [vmem:[#allocation5 + $0x194] sm:$0xf]  ;;  %v3718_v41 = vld [vmem:[#allocation5 + $0x1a8] sm:$0xf0]  ;;  %v3764_v42 = vld [vmem:[#allocation5 + $0x1f0] sm:$0xf] }
  0x90   : > { %1206 = vmatpush.bf16.msrb.mxu0 %v3517_v8  ;;  %v3837_v8 = vor.u32 %v4625_v5, %v3836_v4  ;;  %v4607_v43 = vld [vmem:[#allocation5 + $0x204] sm:$0xf0]  ;;  %v3721_v45 = vor.u32 %v4592_v38, %v3718_v41  ;;  %v4601_v48 = vld [vmem:[#allocation5 + $0x1d4] sm:$0xf0]  ;;  %v3716_v51 = vld [vmem:[#allocation5 + $0x190] sm:$0xf] }
  0x91   : > { %1244 = vmatpush.bf16.msrb.mxu2 %v3521_v11  ;;  %v4559_v11 = vld [vmem:[#allocation5 + $0x84] sm:$0xf0]  ;;  %s3341_s24 = sshll.u32 %s3338_s2, 4  ;;  %s5244_s1 = scalar_lea.hbm %s5987_s29, 128  ;;  %s3342_s24 = int_to_ptr.hbm [resolvable:$true] %s3341_s24 }
  0x92   : > { %1263 = vmatpush.bf16.msrb.mxu3 %v3713_v15  ;;  %v3766_v15 = vld [vmem:[#allocation5 + $0x208] sm:$0xf0]  ;;  %s5238_s25 = sshra.s32 %s3342_s24, 4  ;;  %s5239_s25 = int_to_ptr.hbm [resolvable:$true] %s5238_s25 }
  0x93   : > { %1225 = vmatpush.bf16.msrb.mxu1 %v3709_v16  ;;  %1207 = vmatmul.bf16.vlgmr.msrb.gmra.mxu0 %v5555_v44  ;;  %v3812_v16 = vld [vmem:[#allocation5 + $0x250] sm:$0xf]  ;;  %s5240_s27 = scalar_lea.hbm %s5239_s25, 64  ;;  %p5245_p12 = scmp.lt.s32.totalorder %s5239_s25, %s5987_s29 }
  0x94   : > { %1275 = vmatpush.bf16.msra.mxu0 %v3693_v14  ;;  %1245 = vmatmul.bf16.vlgmr.msrb.gmra.mxu2 %v5555_v44  ;;  %v3573_v14 = vor.u32 %v4559_v11, %v3572_v10  ;;  %v3813_v20 = vor.u32 %v4619_v17, %v3812_v16  ;;  %p5241_p1 = scmp.ne.s32.totalorder %s5239_s25, %s5240_s27  ;;  %p5246_p8 = scmp.lt.s32.totalorder %s5244_s1, %s5240_s27 }
  0x95   : > { %1264 = vmatmul.bf16.vlgmr.msrb.gmra.mxu3 %v5557_v49  ;;  %1313 = vmatpush.bf16.msra.mxu2 %v3697_v22  ;;  %v3548_v22 = vld [vmem:[#allocation5 + $0x40] sm:$0xf] }
  0x96   : > { %1226 = vmatmul.bf16.vlgmr.msrb.gmra.mxu1 %v5557_v49  ;;  %1332 = vmatpush.bf16.msra.mxu3 %v3889_v25  ;;  %v4598_v25 = vld [vmem:[#allocation5 + $0x1c4] sm:$0xf]  ;;  %v3549_v26 = vor.u32 %v4553_v23, %v3548_v22  ;;  %p5242_p3 = pnand %p5241_p1, %p5489_p13  ;;  %p5247_p7 = por %p5246_p8, %p5245_p12 }
  0x97   : > { %1294 = vmatpush.bf16.msra.mxu1 %v3885_v47  ;;  %v3740_v47 = vld [vmem:[#allocation5 + $0x1c0] sm:$0xf] }
  0x98   : > { %1276 = vmatpush.bf16.msra.mxu0 %v3669_v19  ;;  %v3769_v19 = vor.u32 %v4604_v13, %v3766_v15  ;;  %v3741_v50 = vor.u32 %v4601_v48, %v3740_v47  ;;  %p5243_p5 = pneg %p5242_p3 }
  0x99   : > { %1314 = vmatpush.bf16.msra.mxu2 %v3673_v28  ;;  %v3788_v28 = vld [vmem:[#allocation5 + $0x220] sm:$0xf] }
  0x9a   : > { %1333 = vmatpush.bf16.msra.mxu3 %v3865_v31  ;;  %v3745_v31 = vor.u32 %v4598_v25, %v3742_v27  ;;  %v3789_v32 = vor.u32 %v4613_v29, %v3788_v28  ;;  %p5248_p9 = pnand %p5247_p7, %p5243_p5 }
  0x9b   : > { %1295 = vmatpush.bf16.msra.mxu1 %v3861_v60 }
  0x9c   : > { %1277 = vmatpush.bf16.msra.mxu0 %v3645_v40 }
  0x9d   : > { %1315 = vmatpush.bf16.msra.mxu2 %v3649_v35  ;;  %v3524_v35 = vld [vmem:[#allocation5 + $0x10] sm:$0xf] }
  0x9e   : > { %1334 = vmatpush.bf16.msra.mxu3 %v3841_v46  ;;  %v3525_v40 = vor.u32 %v4547_v36, %v3524_v35  ;;  %v3765_v46 = vor.u32 %v4607_v43, %v3764_v42 }
  0x9f   : > { %1296 = vmatpush.bf16.msra.mxu1 %v3837_v8 }
  0xa0   : > { %1278 = vmatpush.bf16.msra.mxu0 %v3621_v54 }
  0xa1   : > { %1316 = vmatpush.bf16.msra.mxu2 %v3625_v52  ;;  %v4595_v52 = vld [vmem:[#allocation5 + $0x1a4] sm:$0xf0] }
  0xa2   : > { %1335 = vmatpush.bf16.msra.mxu3 %v3817_v59  ;;  %v3717_v54 = vor.u32 %v4595_v52, %v3716_v51 }
  0xa3   : > { %1212 = vmatmul.bf16.gmra.mxu0 %v5567_v34  ;;  %1297 = vmatpush.bf16.msra.mxu1 %v3813_v20 }
  0xa4   : > { %1250 = vmatmul.bf16.gmra.mxu2 %v5567_v34  ;;  %1279 = vmatpush.bf16.msra.mxu0 %v3597_v2  ;;  %v5599_v2 = vld [vmem:[#allocation7] sm:$0x3f] }
  0xa5   : > { %1269 = vmatmul.bf16.gmra.mxu3 %v5569_v39  ;;  %1317 = vmatpush.bf16.msra.mxu2 %v3601_v0  ;;  %v5608_v9 = vperm.slane %v5599_v2, 3  ;;  %v632_v22 = vperm.slane %v5599_v2, 1 }
  0xa6   : > { %1231 = vmatmul.bf16.gmra.mxu1 %v5569_v39  ;;  %1336 = vmatpush.bf16.msra.mxu3 %v3793_v7 }
  0xa7   : > { %1298 = vmatpush.bf16.msra.mxu1 %v3789_v32 }
  0xa8   : > { %1280 = vmatpush.bf16.msra.mxu0 %v3573_v14 }
  0xa9   : > { %1318 = vmatpush.bf16.msra.mxu2 %v3577_v12 }
  0xaa   : > { %1337 = vmatpush.bf16.msra.mxu3 %v3769_v19 }
  0xab   : > { %1299 = vmatpush.bf16.msra.mxu1 %v3765_v46 }
  0xac   : > { %1281 = vmatpush.bf16.msra.mxu0 %v3549_v26 }
  0xad   : > { %1319 = vmatpush.bf16.msra.mxu2 %v3553_v24 }
  0xae   : > { %1338 = vmatpush.bf16.msra.mxu3 %v3745_v31 }
  0xaf   : > { %1300 = vmatpush.bf16.msra.mxu1 %v3741_v50 }
  0xb0   : > { %1282 = vmatpush.bf16.msra.mxu0 %v3525_v40 }
  0xb1   : > { %1320 = vmatpush.bf16.msra.mxu2 %v3529_v37 }
  0xb2   : > { %1339 = vmatpush.bf16.msra.mxu3 %v3721_v45 }
  0xb3   : > { %1283 = vmatmul.bf16.vlgmr.msra.gmra.mxu0 %v5555_v44  ;;  %1301 = vmatpush.bf16.msra.mxu1 %v3717_v54 }
  0xb4   : > { %1321 = vmatmul.bf16.vlgmr.msra.gmra.mxu2 %v5555_v44 }
  0xb5   : > { %1340 = vmatmul.bf16.vlgmr.msra.gmra.mxu3 %v5557_v49 }
  0xb6   : > { %1302 = vmatmul.bf16.vlgmr.msra.gmra.mxu1 %v5557_v49 }
  0xc3   : > { %1288 = vmatmul.bf16.gmra.mxu0 %v5567_v34 }
  0xc4   : > { %1326 = vmatmul.bf16.gmra.mxu2 %v5567_v34  ;;  %v633_v34 = vperm.slane %v5599_v2, 2 }
  0xc5   : > { %1345 = vmatmul.bf16.gmra.mxu3 %v5569_v39 }
  0xc6   : > { %1307 = vmatmul.bf16.gmra.mxu1 %v5569_v39  ;;  %v631_v39 = vperm.slane %v5599_v2, 0 }
  0xf0   : > { %v1132_v53 = vpop.f32.mrf.mxu0 }
  0xf1   : > { %v1133_v12 = vadd.f32 %v1132_v53, %v631_v39 }
  0xf3   : > { %v1151_v55 = vpop.f32.mrf.mxu1 }
  0xf4   : > { %v1152_v20 = vadd.f32 %v1151_v55, %v1133_v12 }
  0xf6   : > { %v1351_v30 = vpack.c.bf16 %v1152_v20, %v1152_v20 }
  0xf7   : > { %v1170_v56 = vpop.f32.mrf.mxu2 }
  0xf8   : > { %v1189_v57 = vpop.f32.mrf.mxu3  ;;  %v1134_v58 = vpop.f32.mrf.mxu0  ;;  %v1171_v35 = vadd.f32 %v1170_v56, %v632_v22  ;;  %v1377_v43 = vunpack.c.l.b16 %v1351_v30 }
  0xf9   : > { %v1135_v13 = vadd.f32 %v1134_v58, %v631_v39 }
  0xfa   : > { %v1190_v47 = vadd.f32 %v1189_v57, %v1171_v35 }
  0xfb   : > { %v1153_v59 = vpop.f32.mrf.mxu1 }
  0xfc   : > { %v1154_v21 = vadd.f32 %v1153_v59, %v1135_v13 }
  0xfe   : > { %v1352_v31 = vpack.c.bf16 %v1154_v21, %v1154_v21 }
  0xff   : > { %v1172_v44 = vpop.f32.mrf.mxu2 }
 0x100   : > { %v1191_v60 = vpop.f32.mrf.mxu3  ;;  %v1137_v61 = vpop.f32.mrf.mxu0  ;;  %v1173_v26 = vadd.f32 %v1172_v44, %v632_v22  ;;  %v1378_v45 = vunpack.c.l.b16 %v1352_v31 }
 0x101   : > { %v1138_v58 = vadd.f32 %v1137_v61, %v631_v39 }
 0x102   : > { %v1192_v42 = vadd.f32 %v1191_v60, %v1173_v26  ;;  %v1379_v55 = vpack.c.b16 %v1378_v45, %v1377_v43 }
 0x103   : > { %v5590_v62 = vpop.f32.mrf.mxu1 }
 0x104   : > { %v1356_v52 = vpack.c.bf16 %v1192_v42, %v1192_v42 }
 0x106   : > { %v1430_v57 = vunpack.c.l.b16 %v1356_v52 }
 0x107   : > { %v5593_v63 = vpop.f32.mrf.mxu2 }
 0x108   : > { %v5595_v49 = vpop.f32.mrf.mxu3  ;;  %v1139_v0 = vpop.f32.mrf.mxu0  ;;  %v1176_v20 = vadd.f32 %v5593_v63, %v632_v22 }
 0x109   : > { %v1140_v56 = vadd.f32 %v1139_v0, %v631_v39 }
 0x10b   : > { %v5597_v1 = vpop.f32.mrf.mxu1 }
 0x10c   : > { %v1159_v12 = vadd.f32 %v5597_v1, %v1140_v56 }
 0x10f   : > { %v5602_v3 = vpop.f32.mrf.mxu2 }
 0x110   : > { %v5604_v4 = vpop.f32.mrf.mxu3  ;;  %v1208_v5 = vpop.f32.mrf.mxu0 }
 0x111   : > { %v1209_v6 = vadd.f32 %v1208_v5, %v633_v34  ;;  %v1355_v5 = vpack.c.bf16 %v1190_v47, %v1190_v47 }
 0x113   : > { %v1227_v7 = vpop.f32.mrf.mxu1  ;;  %v1429_v13 = vunpack.c.l.b16 %v1355_v5 }
 0x114   : > { %v1228_v8 = vadd.f32 %v1227_v7, %v1209_v6 }
 0x115   : > { %v1431_v39 = vpack.c.b16 %v1430_v57, %v1429_v13 }
 0x116   : > { %v1359_v15 = vpack.c.bf16 %v1228_v8, %v1228_v8 }
 0x117   : > { %v1246_v10 = vpop.f32.mrf.mxu2 }
 0x118   : > { %v1265_v11 = vpop.f32.mrf.mxu3  ;;  %v1210_v14 = vpop.f32.mrf.mxu0  ;;  %v1247_v17 = vadd.f32 %v1246_v10, %v5608_v9  ;;  %v1383_v23 = vunpack.c.l.b16 %v1359_v15  ;;  %v1178_v15 = vadd.f32 %v5602_v3, %v632_v22  ;;  %v1195_v3 = vadd.f32 %v5595_v49, %v1176_v20 }
 0x119   : > { %v1211_v16 = vadd.f32 %v1210_v14, %v633_v34 }
 0x11a   : > { %v1266_v25 = vadd.f32 %v1265_v11, %v1247_v17  ;;  %v1157_v11 = vadd.f32 %v5590_v62, %v1138_v58 }
 0x11b   : > { %v1229_v18 = vpop.f32.mrf.mxu1 }
 0x11c   : > { %v1230_v19 = vadd.f32 %v1229_v18, %v1211_v16  ;;  %v1363_v38 = vpack.c.bf16 %v1266_v25, %v1266_v25  ;;  %v1353_v17 = vpack.c.bf16 %v1157_v11, %v1157_v11  ;;  %v1354_v18 = vpack.c.bf16 %v1159_v12, %v1159_v12 }
 0x11e   : > { %v1360_v24 = vpack.c.bf16 %v1230_v19, %v1230_v19  ;;  %v1435_v50 = vunpack.c.l.b16 %v1363_v38  ;;  %v1403_v25 = vunpack.c.l.b16 %v1353_v17  ;;  %v1404_v26 = vunpack.c.l.b16 %v1354_v18 }
 0x11f   : > { %v1248_v28 = vpop.f32.mrf.mxu2 }
 0x120   : > { %v1384_v27 = vunpack.c.l.b16 %v1360_v24  ;;  %v1267_v29 = vpop.f32.mrf.mxu3  ;;  %v1249_v32 = vadd.f32 %v1248_v28, %v5608_v9  ;;  %v1213_v33 = vpop.f32.mrf.mxu0  ;;  %v1197_v24 = vadd.f32 %v5604_v4, %v1178_v15  ;;  %v1405_v31 = vpack.c.b16 %v1404_v26, %v1403_v25 }
 0x121   : > { %v1214_v37 = vadd.f32 %v1213_v33, %v633_v34  ;;  %v636_v4 = vperm.slane %v5599_v2, 5 }
 0x122   : > { %v1385_v36 = vpack.c.b16 %v1384_v27, %v1383_v23  ;;  %v1268_v40 = vadd.f32 %v1267_v29, %v1249_v32  ;;  %v1358_v30 = vpack.c.bf16 %v1197_v24, %v1197_v24  ;;  %v1357_v32 = vpack.c.bf16 %v1195_v3, %v1195_v3 }
 0x123   : > { %v1232_v41 = vpop.f32.mrf.mxu1 }
 0x124   : > { %1394 = vmatpush.bf16.xpose.msrb.mxu0 %v1385_v36  ;;  %v1364_v46 = vpack.c.bf16 %v1268_v40, %v1268_v40  ;;  %v1233_v48 = vadd.f32 %v1232_v41, %v1214_v37  ;;  %v1456_v63 = vunpack.c.l.b16 %v1358_v30  ;;  %v1455_v22 = vunpack.c.l.b16 %v1357_v32 }
 0x125   : > { %v635_v36 = vperm.slane %v5599_v2, 4 }
 0x126   : > { %v1436_v51 = vunpack.c.l.b16 %v1364_v46  ;;  %v1361_v6 = vpack.c.bf16 %v1233_v48, %v1233_v48  ;;  %v1457_v33 = vpack.c.b16 %v1456_v63, %v1455_v22 }
 0x127   : > { %v1251_v53 = vpop.f32.mrf.mxu2 }
 0x128   : > { %v1270_v54 = vpop.f32.mrf.mxu3  ;;  %v1437_v59 = vpack.c.b16 %v1436_v51, %v1435_v50  ;;  %v1215_v44 = vpop.f32.mrf.mxu0  ;;  %v1252_v60 = vadd.f32 %v1251_v53, %v5608_v9  ;;  %v1409_v14 = vunpack.c.l.b16 %v1361_v6 }
 0x129   : > { %v1216_v7 = vadd.f32 %v1215_v44, %v633_v34 }
 0x12a   : > { %1446 = vmatpush.bf16.xpose.msrb.mxu2 %v1437_v59  ;;  %v1271_v0 = vadd.f32 %v1270_v54, %v1252_v60 }
 0x12b   : > { %v1234_v8 = vpop.f32.mrf.mxu1  ;;  %1395 = vmatmul.bf16.vlgmr.msrb.gmra.mxu0 %v1379_v55 }
 0x12c   : > { %v1235_v10 = vadd.f32 %v1234_v8, %v1216_v7  ;;  %v1365_v62 = vpack.c.bf16 %v1271_v0, %v1271_v0 }
 0x12e   : > { %v1362_v61 = vpack.c.bf16 %v1235_v10, %v1235_v10  ;;  %v1461_v28 = vunpack.c.l.b16 %v1365_v62 }
 0x12f   : > { %v1253_v34 = vpop.f32.mrf.mxu2 }
 0x130   : > { %v1410_v16 = vunpack.c.l.b16 %v1362_v61  ;;  %v1254_v19 = vadd.f32 %v1253_v34, %v5608_v9  ;;  %v1272_v23 = vpop.f32.mrf.mxu3  ;;  %v1284_v35 = vpop.f32.mrf.mxu0 }
 0x131   : > { %1447 = vmatmul.bf16.vlgmr.msrb.gmra.mxu2 %v1431_v39  ;;  %v1285_v40 = vadd.f32 %v1284_v35, %v635_v36 }
 0x132   : > { %v1411_v21 = vpack.c.b16 %v1410_v16, %v1409_v14  ;;  %v1273_v1 = vadd.f32 %v1272_v23, %v1254_v19 }
 0x133   : > { %v1303_v42 = vpop.f32.mrf.mxu1 }
 0x134   : > { %1420 = vmatpush.bf16.xpose.msrb.mxu1 %v1411_v21  ;;  %v1366_v27 = vpack.c.bf16 %v1273_v1, %v1273_v1  ;;  %v1304_v45 = vadd.f32 %v1303_v42, %v1285_v40 }
 0x136   : > { %v1462_v29 = vunpack.c.l.b16 %v1366_v27  ;;  %v1367_v53 = vpack.c.bf16 %v1304_v45, %v1304_v45 }
 0x137   : > { %v1322_v37 = vpop.f32.mrf.mxu2 }
 0x138   : > { %v1463_v9 = vpack.c.b16 %v1462_v29, %v1461_v28  ;;  %v1323_v38 = vadd.f32 %v1322_v37, %v636_v4  ;;  %v1341_v49 = vpop.f32.mrf.mxu3  ;;  %v1286_v41 = vpop.f32.mrf.mxu0  ;;  %v1567_v44 = vunpack.c.l.b16 %v1367_v53 }
 0x139   : > { %v1287_v50 = vadd.f32 %v1286_v41, %v635_v36 }
 0x13a   : > { %1472 = vmatpush.bf16.xpose.msrb.mxu3 %v1463_v9  ;;  %v1342_v43 = vadd.f32 %v1341_v49, %v1323_v38 }
 0x13b   : > { %1421 = vmatmul.bf16.vlgmr.msrb.gmra.mxu1 %v1405_v31  ;;  %v1305_v54 = vpop.f32.mrf.mxu1 }
 0x13c   : > { %v1371_v48 = vpack.c.bf16 %v1342_v43, %v1342_v43  ;;  %v1306_v56 = vadd.f32 %v1305_v54, %v1287_v50 }
 0x13e   : > { %v1623_v55 = vunpack.c.l.b16 %v1371_v48  ;;  %v1368_v5 = vpack.c.bf16 %v1306_v56, %v1306_v56 }
 0x13f   : > { %v1324_v46 = vpop.f32.mrf.mxu2 }
 0x140   : > { %v1325_v47 = vadd.f32 %v1324_v46, %v636_v4  ;;  %v1343_v51 = vpop.f32.mrf.mxu3  ;;  %v1289_v2 = vpop.f32.mrf.mxu0  ;;  %v1568_v60 = vunpack.c.l.b16 %v1368_v5 }
 0x141   : > { %1473 = vmatmul.bf16.vlgmr.msrb.gmra.mxu3 %v1457_v33  ;;  %v1290_v57 = vadd.f32 %v1289_v2, %v635_v36 }
 0x142   : > { %v1344_v52 = vadd.f32 %v1343_v51, %v1325_v47  ;;  %v1569_v10 = vpack.c.b16 %v1568_v60, %v1567_v44 }
 0x143   : > { %v1308_v11 = vpop.f32.mrf.mxu1 }
 0x144   : > { %v1372_v58 = vpack.c.bf16 %v1344_v52, %v1344_v52  ;;  %1581 = vmatpush.bf16.msra.mxu0 %v1569_v10  ;;  %v1309_v13 = vadd.f32 %v1308_v11, %v1290_v57 }
 0x146   : > { %v1624_v59 = vunpack.c.l.b16 %v1372_v58  ;;  %v1369_v17 = vpack.c.bf16 %v1309_v13, %v1309_v13 }
 0x147   : > { %v1327_v6 = vpop.f32.mrf.mxu2 }
 0x148   : > { %v1625_v7 = vpack.c.b16 %v1624_v59, %v1623_v55  ;;  %v1346_v8 = vpop.f32.mrf.mxu3  ;;  %v1328_v12 = vadd.f32 %v1327_v6, %v636_v4  ;;  %v1291_v61 = vpop.f32.mrf.mxu0  ;;  %v1595_v1 = vunpack.c.l.b16 %v1369_v17 }
 0x149   : > { %v1292_v39 = vadd.f32 %v1291_v61, %v635_v36 }
 0x14a   : > { %1637 = vmatpush.bf16.msra.mxu2 %v1625_v7  ;;  %v1347_v15 = vadd.f32 %v1346_v8, %v1328_v12 }
 0x14b   : > { %v1310_v19 = vpop.f32.mrf.mxu1 }
 0x14c   : > { %v1373_v18 = vpack.c.bf16 %v1347_v15, %v1347_v15  ;;  %v1311_v21 = vadd.f32 %v1310_v19, %v1292_v39 }
 0x14e   : > { %v1651_v23 = vunpack.c.l.b16 %v1373_v18  ;;  %v1370_v24 = vpack.c.bf16 %v1311_v21, %v1311_v21 }
 0x14f   : > { %v1329_v14 = vpop.f32.mrf.mxu2 }
 0x150   : > { %v1330_v0 = vadd.f32 %v1329_v14, %v636_v4  ;;  %v1348_v16 = vpop.f32.mrf.mxu3  ;;  %v1596_v26 = vunpack.c.l.b16 %v1370_v24 }
 0x152   : > { %v1349_v34 = vadd.f32 %v1348_v16, %v1330_v0  ;;  %v1597_v27 = vpack.c.b16 %v1596_v26, %v1595_v1 }
 0x154   : > { %v1374_v20 = vpack.c.bf16 %v1349_v34, %v1349_v34  ;;  %1609 = vmatpush.bf16.msra.mxu1 %v1597_v27 }
 0x156   : > { %v1652_v62 = vunpack.c.l.b16 %v1374_v20 }
 0x158   : > { %v1653_v25 = vpack.c.b16 %v1652_v62, %v1651_v23 }
 0x15a   : > { %1665 = vmatpush.bf16.msra.mxu3 %v1653_v25 }
 0x1a8   : > { %v1396_v3 = vpop.f32.mrf.mxu0 }
 0x1a9   : > { %v1480_v28 = vsel %vm1479_vm0, %v1396_v3, -inf }
 0x1aa   : > { %1481 = vmax.xlane.f32.xlu1 %v1480_v28 }
 0x1b0   : > { %v1398_v29 = vpop.f32.mrf.mxu0 }
 0x1b1   : > { %v1483_v30 = vsel %vm1479_vm0, %v1398_v29, -inf }
 0x1b2   : > { %1484 = vmax.xlane.f32.xlu1 %v1483_v30 }
 0x1b4   : > { %v1448_v31 = vpop.f32.mrf.mxu2 }
 0x1b5   : > { %v1492_v9 = vsel %vm1479_vm0, %v1448_v31, -inf }
 0x1b6   : > { %1493 = vmax.xlane.f32.xlu0 %v1492_v9 }
 0x1b8   : > { %v1422_v32 = vpop.f32.mrf.mxu1 }
 0x1b9   : > { %v1486_v37 = vsel %vm1479_vm0, %v1422_v32, -inf }
 0x1bc   : > { %v1450_v63 = vpop.f32.mrf.mxu2 }
 0x1bd   : > { %v1495_v22 = vsel %vm1479_vm0, %v1450_v63, -inf }
 0x1be   : > { %1496 = vmax.xlane.f32.xlu0 %v1495_v22 }
 0x1c0   : > { %v1424_v33 = vpop.f32.mrf.mxu1 }
 0x1c1   : > { %v1489_v35 = vsel %vm1479_vm0, %v1424_v33, -inf }
 0x1c2   : > { %1490 = vmax.xlane.f32.xlu1 %v1489_v35 }
 0x1c4   : > { %v1474_v4 = vpop.f32.mrf.mxu3 }
 0x1c5   : > { %v1498_v36 = vsel %vm1479_vm0, %v1474_v4, -inf }
 0x1c6   : > { %1499 = vmax.xlane.f32.xlu2 %v1498_v36  ;;  %1487 = vmax.xlane.f32.xlu0 %v1486_v37  ;;  %v3952_v36 = vld [vmem:[#allocation8 + $0x70] sm:$0xf]  ;;  %v4653_v37 = vld [vmem:[#allocation8 + $0x74] sm:$0xf0] }
 0x1cc   : > { %v1476_v38 = vpop.f32.mrf.mxu3 }
 0x1cd   : > { %v1501_v49 = vsel %vm1479_vm0, %v1476_v38, -inf }
 0x1ce   : > { %1502 = vmax.xlane.f32.xlu2 %v1501_v49  ;;  %v3953_v49 = vor.u32 %v4653_v37, %v3952_v36  ;;  %v3898_v36 = vld [vmem:[#allocation8 + $0x8] sm:$0xf0] }
 0x1d0   : > { %1890 = vmatpush.bf16.msrb.mxu0 %v3953_v49  ;;  %v4663_v49 = vld [vmem:[#allocation8 + $0xc4] sm:$0xf0] }
 0x21d   : > { %v1482_v40 = vpop.xlane.xlu1 %1481 }
 0x21e   : > { %v1504_v41 = vsub.f32 %v1396_v3, %v1482_v40  ;;  %v3954_v40 = vld [vmem:[#allocation8 + $0x78] sm:$0xf0] }
 0x220   : > { %v1512_v42 = vmul.f32 1.442695, %v1504_v41 }
 0x222   : > { %4926 = vpow2.f32 %v1512_v42  ;;  %v3944_v42 = vld [vmem:[#allocation8 + $0x60] sm:$0xf] }
 0x225   : > { %v1485_v43 = vpop.xlane.xlu1 %1484 }
 0x226   : > { %v1505_v45 = vsub.f32 %v1398_v29, %v1485_v43  ;;  %v4651_v43 = vld [vmem:[#allocation8 + $0x64] sm:$0xf0] }
 0x228   : > { %v4927_v46 = vpop.eup %4926  ;;  %v1514_v47 = vmul.f32 1.442695, %v1505_v45  ;;  %v4650_v45 = vld [vmem:[#allocation8 + $0x64] sm:$0xf] }
 0x229   : > { %v1528_v48 = vsel %vm1479_vm0, %v4927_v46, 0.0  ;;  %v1494_v50 = vpop.xlane.xlu0 %1493  ;;  %v1552_v53 = vpack.c.bf16 %v4927_v46, %v4927_v46  ;;  %v3945_v46 = vor.u32 %v4651_v43, %v3944_v42  ;;  %v3994_v42 = vld [vmem:[#allocation8 + $0xc8] sm:$0xf0] }
 0x22a   : > { %4928 = vpow2.f32 %v1514_v47  ;;  %1529 = vadd.xlane.f32.xlu2 %v1528_v48  ;;  %v1508_v51 = vsub.f32 %v1448_v31, %v1494_v50  ;;  %v3946_v47 = vld [vmem:[#allocation8 + $0x68] sm:$0xf0]  ;;  %v3936_v50 = vld [vmem:[#allocation8 + $0x50] sm:$0xf] }
 0x22b   : > { %v1562_v2 = vunpack.c.l.b16 %v1552_v53  ;;  %v3949_v48 = vor.u32 %v4650_v45, %v3946_v47  ;;  %1891 = vmatpush.bf16.msrb.mxu0 %v3945_v46  ;;  %v3984_v45 = vld [vmem:[#allocation8 + $0xb0] sm:$0xf]  ;;  %v4661_v46 = vld [vmem:[#allocation8 + $0xb4] sm:$0xf0]  ;;  %v4660_v47 = vld [vmem:[#allocation8 + $0xb4] sm:$0xf] }
 0x22c   : > { %v1520_v52 = vmul.f32 1.442695, %v1508_v51  ;;  %v4649_v51 = vld [vmem:[#allocation8 + $0x54] sm:$0xf0] }
 0x22d   : > { %v3937_v53 = vor.u32 %v4649_v51, %v3936_v50  ;;  %v3986_v50 = vld [vmem:[#allocation8 + $0xb8] sm:$0xf0] }
 0x22e   : > { %4930 = vpow2.f32 %v1520_v52  ;;  %v4648_v52 = vld [vmem:[#allocation8 + $0x54] sm:$0xf]  ;;  %v3989_v51 = vor.u32 %v4660_v47, %v3986_v50 }
 0x22f   : > { %1892 = vmatpush.bf16.msrb.mxu0 %v3937_v53  ;;  %v4659_v53 = vld [vmem:[#allocation8 + $0xa4] sm:$0xf0] }
 0x230   : > { %v4929_v54 = vpop.eup %4928 }
 0x231   : > { %v1553_v55 = vpack.c.bf16 %v4929_v54, %v4929_v54  ;;  %v1531_v58 = vsel %vm1479_vm0, %v4929_v54, 0.0  ;;  %v1497_v56 = vpop.xlane.xlu0 %1496  ;;  %v3938_v54 = vld [vmem:[#allocation8 + $0x58] sm:$0xf0] }
 0x232   : > { %1532 = vadd.xlane.f32.xlu0 %v1531_v58  ;;  %v1509_v44 = vsub.f32 %v1450_v63, %v1497_v56  ;;  %v3928_v58 = vld [vmem:[#allocation8 + $0x40] sm:$0xf]  ;;  %v4647_v56 = vld [vmem:[#allocation8 + $0x44] sm:$0xf0] }
 0x233   : > { %v1563_v59 = vunpack.c.l.b16 %v1553_v55  ;;  %v3941_v55 = vor.u32 %v4648_v52, %v3938_v54  ;;  %v3976_v52 = vld [vmem:[#allocation8 + $0xa0] sm:$0xf]  ;;  %v4658_v54 = vld [vmem:[#allocation8 + $0xa4] sm:$0xf] }
 0x234   : > { %v4931_v5 = vpop.eup %4930  ;;  %v1522_v7 = vmul.f32 1.442695, %v1509_v44  ;;  %v3930_v44 = vld [vmem:[#allocation8 + $0x48] sm:$0xf0] }
 0x235   : > { %v1564_v6 = vpack.c.b16 %v1563_v59, %v1562_v2  ;;  %v1491_v60 = vpop.xlane.xlu1 %1490  ;;  %v1540_v57 = vsel %vm1479_vm0, %v4931_v5, 0.0  ;;  %v1556_v61 = vpack.c.bf16 %v4931_v5, %v4931_v5  ;;  %v4646_v2 = vld [vmem:[#allocation8 + $0x44] sm:$0xf]  ;;  %v3929_v59 = vor.u32 %v4647_v56, %v3928_v58  ;;  %v3978_v58 = vld [vmem:[#allocation8 + $0xa8] sm:$0xf0] }
 0x236   : > { %v1507_v8 = vsub.f32 %v1424_v33, %v1491_v60  ;;  %4932 = vpow2.f32 %v1522_v7  ;;  %1541 = vadd.xlane.f32.xlu1 %v1540_v57  ;;  %v3933_v5 = vor.u32 %v4646_v2, %v3930_v44  ;;  %v4645_v7 = vld [vmem:[#allocation8 + $0x34] sm:$0xf0]  ;;  %v4644_v60 = vld [vmem:[#allocation8 + $0x34] sm:$0xf]  ;;  %v3922_v57 = vld [vmem:[#allocation8 + $0x38] sm:$0xf0]  ;;  %v3981_v56 = vor.u32 %v4658_v54, %v3978_v58 }
 0x237   : > { %3890 = vmatmul.msk.bf16.vlgmr.msra.gmra.mxu0 %vm1479_vm0, %v1564_v6  ;;  %v1618_v18 = vunpack.c.l.b16 %v1556_v61  ;;  %v3920_v6 = vld [vmem:[#allocation8 + $0x30] sm:$0xf]  ;;  %v4018_v61 = vld [vmem:[#allocation8 + $0xf8] sm:$0xf0]  ;;  %v4656_v44 = vld [vmem:[#allocation8 + $0x94] sm:$0xf] }
 0x238   : > { %v1518_v10 = vmul.f32 1.442695, %v1507_v8  ;;  %1893 = vmatpush.bf16.msrb.mxu0 %v3929_v59  ;;  %v3921_v8 = vor.u32 %v4645_v7, %v3920_v6  ;;  %v3968_v2 = vld [vmem:[#allocation8 + $0x90] sm:$0xf]  ;;  %v4657_v59 = vld [vmem:[#allocation8 + $0x94] sm:$0xf0] }
 0x239   : > { %v1500_v11 = vpop.xlane.xlu2 %1499  ;;  %v1488_v12 = vpop.xlane.xlu0 %1487  ;;  %v3970_v6 = vld [vmem:[#allocation8 + $0x98] sm:$0xf0] }
 0x23a   : > { %4934 = vpow2.f32 %v1518_v10  ;;  %v1510_v13 = vsub.f32 %v1474_v4, %v1500_v11  ;;  %v1506_v14 = vsub.f32 %v1422_v32, %v1488_v12  ;;  %v3925_v10 = vor.u32 %v4644_v60, %v3922_v57  ;;  %v4016_v11 = vld [vmem:[#allocation8 + $0xf0] sm:$0xf]  ;;  %v4669_v12 = vld [vmem:[#allocation8 + $0xf4] sm:$0xf0]  ;;  %v3960_v60 = vld [vmem:[#allocation8 + $0x80] sm:$0xf] }
 0x23b   : > { %v3973_v7 = vor.u32 %v4656_v44, %v3970_v6  ;;  %v4654_v57 = vld [vmem:[#allocation8 + $0x84] sm:$0xf] }
 0x23c   : > { %v4933_v0 = vpop.eup %4932  ;;  %v1524_v39 = vmul.f32 1.442695, %v1510_v13  ;;  %v1516_v15 = vmul.f32 1.442695, %v1506_v14  ;;  %v4668_v13 = vld [vmem:[#allocation8 + $0xf4] sm:$0xf]  ;;  %1894 = vmatpush.bf16.msrb.mxu0 %v3921_v8  ;;  %v4017_v14 = vor.u32 %v4669_v12, %v4016_v11 }
 0x23d   : > { %v1557_v16 = vpack.c.bf16 %v4933_v0, %v4933_v0  ;;  %v1543_v34 = vsel %vm1479_vm0, %v4933_v0, 0.0  ;;  %v4021_v0 = vor.u32 %v4668_v13, %v4018_v61  ;;  %v4655_v8 = vld [vmem:[#allocation8 + $0x84] sm:$0xf0]  ;;  %v3962_v11 = vld [vmem:[#allocation8 + $0x88] sm:$0xf0] }
 0x23e   : > { %4936 = vpow2.f32 %v1524_v39  ;;  %1544 = vadd.xlane.f32.xlu2 %v1543_v34  ;;  %v3912_v39 = vld [vmem:[#allocation8 + $0x20] sm:$0xf]  ;;  %1909 = vmatpush.bf16.msrb.mxu1 %v4017_v14  ;;  %v3965_v12 = vor.u32 %v4654_v57, %v3962_v11  ;;  %v4978_v11 = vld [vmem:[%s5529_s21 + $0x10] sm:$0xff] }
 0x23f   : > { %v1619_v19 = vunpack.c.l.b16 %v1557_v16  ;;  %4938 = vpow2.f32 %v1516_v15  ;;  %v4643_v15 = vld [vmem:[#allocation8 + $0x24] sm:$0xf0]  ;;  %v4642_v16 = vld [vmem:[#allocation8 + $0x24] sm:$0xf]  ;;  %1947 = vmatpush.bf16.msrb.mxu3 %v4021_v0 }
 0x240   : > { %v4935_v17 = vpop.eup %4934  ;;  %v3913_v34 = vor.u32 %v4643_v15, %v3912_v39 }
 0x241   : > { %v1537_v20 = vsel %vm1479_vm0, %v4935_v17, 0.0  ;;  %v1620_v21 = vpack.c.b16 %v1619_v19, %v1618_v18  ;;  %v1503_v23 = vpop.xlane.xlu2 %1502  ;;  %v1555_v24 = vpack.c.bf16 %v4935_v17, %v4935_v17  ;;  %v3914_v17 = vld [vmem:[#allocation8 + $0x28] sm:$0xf0]  ;;  %v4008_v18 = vld [vmem:[#allocation8 + $0xe0] sm:$0xf] }
 0x242   : > { %1538 = vadd.xlane.f32.xlu1 %v1537_v20  ;;  %v1511_v62 = vsub.f32 %v1476_v38, %v1503_v23  ;;  %v4652_v38 = vld [vmem:[#allocation8 + $0x74] sm:$0xf]  ;;  %v4667_v19 = vld [vmem:[#allocation8 + $0xe4] sm:$0xf0]  ;;  %v3917_v20 = vor.u32 %v4642_v16, %v3914_v17  ;;  %v4666_v23 = vld [vmem:[#allocation8 + $0xe4] sm:$0xf]  ;;  %1895 = vmatpush.bf16.msrb.mxu0 %v3913_v34 }
 0x243   : > { %3892 = vmatmul.msk.bf16.vlgmr.msra.gmra.mxu2 %vm1479_vm0, %v1620_v21  ;;  %v1591_v29 = vunpack.c.l.b16 %v1555_v24  ;;  %v3957_v41 = vor.u32 %v4652_v38, %v3954_v40  ;;  %v4009_v21 = vor.u32 %v4667_v19, %v4008_v18  ;;  %v3904_v24 = vld [vmem:[#allocation8 + $0x10] sm:$0xf]  ;;  %v3992_v38 = vld [vmem:[#allocation8 + $0xc0] sm:$0xf]  ;;  %v4662_v40 = vld [vmem:[#allocation8 + $0xc4] sm:$0xf] }
 0x244   : > { %v4937_v1 = vpop.eup %4936  ;;  %v1526_v25 = vmul.f32 1.442695, %v1511_v62  ;;  %v4010_v62 = vld [vmem:[#allocation8 + $0xe8] sm:$0xf0]  ;;  %v3997_v43 = vor.u32 %v4662_v40, %v3994_v42  ;;  %v1724_v40 = vld [vmem:[%s5957_s4] sm:$0x3] }
 0x245   : > { %v4939_v26 = vpop.eup %4938  ;;  %v1546_v27 = vsel %vm1479_vm0, %v4937_v1, 0.0  ;;  %v1558_v9 = vpack.c.bf16 %v4937_v1, %v4937_v1  ;;  %1928 = vmatpush.bf16.msrb.mxu2 %v3957_v41  ;;  %v4013_v1 = vor.u32 %v4666_v23, %v4010_v62  ;;  %1910 = vmatpush.bf16.msrb.mxu1 %v4009_v21  ;;  %v3993_v41 = vor.u32 %v4663_v49, %v3992_v38 }
 0x246   : > { %v1554_v3 = vpack.c.bf16 %v4939_v26, %v4939_v26  ;;  %4940 = vpow2.f32 %v1526_v25  ;;  %1547 = vadd.xlane.f32.xlu2 %v1546_v27  ;;  %v1534_v28 = vsel %vm1479_vm0, %v4939_v26, 0.0  ;;  %v4641_v25 = vld [vmem:[#allocation8 + $0x14] sm:$0xf0]  ;;  %v4640_v26 = vld [vmem:[#allocation8 + $0x14] sm:$0xf]  ;;  %v1726_v42 = vperm.slane %v1724_v40, 0 }
 0x247   : > { %1535 = vadd.xlane.f32.xlu0 %v1534_v28  ;;  %v1646_v33 = vunpack.c.l.b16 %v1558_v9  ;;  %v3905_v27 = vor.u32 %v4641_v25, %v3904_v24  ;;  %1948 = vmatpush.bf16.msrb.mxu3 %v4013_v1  ;;  %v1727_v47 = vperm.slane %v1724_v40, 1  ;;  %v4700_v40 = vld [vmem:[#allocation11 + $0xec] sm:$0xf0] }
 0x248   : > { %v1590_v30 = vunpack.c.l.b16 %v1554_v3  ;;  %v3906_v3 = vld [vmem:[#allocation8 + $0x18] sm:$0xf0] }
 0x249   : > { %1929 = vmatpush.bf16.msrb.mxu2 %v3949_v48  ;;  %v3909_v28 = vor.u32 %v4640_v26, %v3906_v3  ;;  %1896 = vmatpush.bf16.msrb.mxu0 %v3905_v27  ;;  %v3985_v48 = vor.u32 %v4661_v46, %v3984_v45 }
 0x24a   : > { %v1592_v31 = vpack.c.b16 %v1591_v29, %v1590_v30  ;;  %v4000_v29 = vld [vmem:[#allocation8 + $0xd0] sm:$0xf]  ;;  %v4665_v30 = vld [vmem:[#allocation8 + $0xd4] sm:$0xf0] }
 0x24b   : > { %v4001_v9 = vor.u32 %v4665_v30, %v4000_v29 }
 0x24c   : > { %v4941_v32 = vpop.eup %4940  ;;  %3891 = vmatmul.msk.bf16.vlgmr.msra.gmra.mxu1 %vm1479_vm0, %v1592_v31  ;;  %v4664_v31 = vld [vmem:[#allocation8 + $0xd4] sm:$0xf] }
 0x24d   : > { %v1559_v63 = vpack.c.bf16 %v4941_v32, %v4941_v32  ;;  %v1549_v22 = vsel %vm1479_vm0, %v4941_v32, 0.0  ;;  %1930 = vmatpush.bf16.msrb.mxu2 %v3941_v55  ;;  %v4002_v32 = vld [vmem:[#allocation8 + $0xd8] sm:$0xf0]  ;;  %1911 = vmatpush.bf16.msrb.mxu1 %v4001_v9  ;;  %v3977_v55 = vor.u32 %v4659_v53, %v3976_v52 }
 0x24e   : > { %v4976_v53 = vld [vmem:[%s5529_s21] sm:$0xff] }
 0x24f   : > { %v1647_v35 = vunpack.c.l.b16 %v1559_v63  ;;  %1550 = vadd.xlane.f32.xlu0 %v1549_v22  ;;  %v4005_v63 = vor.u32 %v4664_v31, %v4002_v32  ;;  %v3896_v22 = vld [vmem:[#allocation8] sm:$0xf] }
 0x251   : > { %v1648_v4 = vpack.c.b16 %v1647_v35, %v1646_v33  ;;  %1931 = vmatpush.bf16.msrb.mxu2 %v3933_v5  ;;  %v4639_v33 = vld [vmem:[#allocation8 + $0x4] sm:$0xf0]  ;;  %v4638_v35 = vld [vmem:[#allocation8 + $0x4] sm:$0xf]  ;;  %1949 = vmatpush.bf16.msrb.mxu3 %v4005_v63  ;;  %v3969_v5 = vor.u32 %v4657_v59, %v3968_v2 }
 0x252   : > { %v3901_v37 = vor.u32 %v4638_v35, %v3898_v36  ;;  %1912 = vmatpush.bf16.msrb.mxu1 %v3993_v41  ;;  %v4977_v59 = vld [vmem:[%s5529_s21 + $0x8] sm:$0xff] }
 0x253   : > { %3893 = vmatmul.msk.bf16.vlgmr.msra.gmra.mxu3 %vm1479_vm0, %v1648_v4  ;;  %v3897_v4 = vor.u32 %v4639_v33, %v3896_v22 }
 0x255   : > { %1932 = vmatpush.bf16.msrb.mxu2 %v3925_v10  ;;  %1897 = vmatpush.bf16.msrb.mxu0 %v3897_v4  ;;  %v3961_v10 = vor.u32 %v4655_v8, %v3960_v60 }
 0x256   : > { %1950 = vmatpush.bf16.msrb.mxu3 %v3997_v43  ;;  %1913 = vmatpush.bf16.msrb.mxu1 %v3985_v48 }
 0x259   : > { %1933 = vmatpush.bf16.msrb.mxu2 %v3917_v20 }
 0x25a   : > { %1951 = vmatpush.bf16.msrb.mxu3 %v3989_v51  ;;  %1914 = vmatpush.bf16.msrb.mxu1 %v3977_v55 }
 0x25d   : > { %1934 = vmatpush.bf16.msrb.mxu2 %v3909_v28 }
 0x25e   : > { %1952 = vmatpush.bf16.msrb.mxu3 %v3981_v56  ;;  %1915 = vmatpush.bf16.msrb.mxu1 %v3969_v5 }
 0x261   : > { %1935 = vmatpush.bf16.msrb.mxu2 %v3901_v37 }
 0x262   : > { %1953 = vmatpush.bf16.msrb.mxu3 %v3973_v7  ;;  %1916 = vmatpush.bf16.msrb.mxu1 %v3961_v10 }
 0x266   : > { %1954 = vmatpush.bf16.msrb.mxu3 %v3965_v12 }
 0x29d   : > { %v1530_v13 = vpop.xlane.xlu2 %1529 }
 0x29e   : > { %4942 = vrcp.f32 %v1530_v13 }
 0x2a4   : > { %v4943_v0 = vpop.eup %4942 }
 0x2a5   : > { %v1533_v14 = vpop.xlane.xlu0 %1532 }
 0x2a6   : > { %4944 = vrcp.f32 %v1533_v14 }
 0x2a9   : > { %v1542_v18 = vpop.xlane.xlu1 %1541 }
 0x2aa   : > { %4946 = vrcp.f32 %v1542_v18 }
 0x2ac   : > { %v4945_v39 = vpop.eup %4944 }
 0x2b0   : > { %v4947_v1 = vpop.eup %4946 }
 0x2b1   : > { %v1545_v19 = vpop.xlane.xlu2 %1544 }
 0x2b2   : > { %4948 = vrcp.f32 %v1545_v19 }
 0x2b4   : > { %v1583_v61 = vpop.f32.mrf.mxu0 }
 0x2b5   : > { %v1680_v16 = vmul.f32 %v4943_v0, %v1583_v61  ;;  %v1539_v21 = vpop.xlane.xlu1 %1538 }
 0x2b6   : > { %4950 = vrcp.f32 %v1539_v21 }
 0x2b8   : > { %v4949_v24 = vpop.eup %4948 }
 0x2b9   : > { %v1548_v32 = vpop.xlane.xlu2 %1547 }
 0x2ba   : > { %v1536_v23 = vpop.xlane.xlu0 %1535 }
 0x2bb   : > { %4952 = vrcp.f32 %v1536_v23  ;;  %v4980_v23 = vld [vmem:[%s5529_s21 + $0x20] sm:$0xff] }
 0x2bc   : > { %v1585_v15 = vpop.f32.mrf.mxu0  ;;  %v4951_v3 = vpop.eup %4950  ;;  %4954 = vrcp.f32 %v1548_v32 }
 0x2bd   : > { %v1681_v34 = vmul.f32 %v4945_v39, %v1585_v15  ;;  %v4979_v39 = vld [vmem:[%s5529_s21 + $0x18] sm:$0xff] }
 0x2bf   : > { %v1688_v17 = vpack.c.bf16 %v1681_v34, %v1680_v16 }
 0x2c1   : > { %1898 = vmatmul.bf16.vlgmr.msrb.gmra.mxu0 %v1688_v17  ;;  %1936 = vmatmul.bf16.vlgmr.msrb.gmra.mxu2 %v1688_v17  ;;  %v4953_v28 = vpop.eup %4952 }
 0x2c2   : > { %v1551_v22 = vpop.xlane.xlu0 %1550  ;;  %v4955_v35 = vpop.eup %4954 }
 0x2c3   : > { %4956 = vrcp.f32 %v1551_v22 }
 0x2c6   : > { %v1639_v20 = vpop.f32.mrf.mxu2 }
 0x2c7   : > { %v1684_v26 = vmul.f32 %v4947_v1, %v1639_v20 }
 0x2c9   : > { %v1611_v62 = vpop.f32.mrf.mxu1  ;;  %v4957_v4 = vpop.eup %4956 }
 0x2ca   : > { %v1682_v31 = vmul.f32 %v4953_v28, %v1611_v62 }
 0x2ce   : > { %v1641_v25 = vpop.f32.mrf.mxu2 }
 0x2cf   : > { %v1685_v27 = vmul.f32 %v4949_v24, %v1641_v25 }
 0x2d1   : > { %v1689_v29 = vpack.c.bf16 %v1685_v27, %v1684_v26  ;;  %v1613_v30 = vpop.f32.mrf.mxu1  ;;  %v4981_v26 = vld [vmem:[%s5529_s21 + $0x28] sm:$0xff] }
 0x2d2   : > { %v1683_v9 = vmul.f32 %v4951_v3, %v1613_v30 }
 0x2d3   : > { %1917 = vmatmul.bf16.vlgmr.msrb.gmra.mxu1 %v1689_v29  ;;  %1955 = vmatmul.bf16.vlgmr.msrb.gmra.mxu3 %v1689_v29 }
 0x2d4   : > { %v1690_v63 = vpack.c.bf16 %v1683_v9, %v1682_v31 }
 0x2d6   : > { %1903 = vmatmul.bf16.gmra.mxu0 %v1690_v63  ;;  %1941 = vmatmul.bf16.gmra.mxu2 %v1690_v63  ;;  %v1667_v33 = vpop.f32.mrf.mxu3  ;;  %v4982_v63 = vld [vmem:[%s5529_s21 + $0x30] sm:$0xff] }
 0x2d7   : > { %v1686_v37 = vmul.f32 %v4955_v35, %v1667_v33  ;;  %v4983_v35 = vld [vmem:[%s5529_s21 + $0x38] sm:$0xff]  ;;  %s3326_s21 = scalar_lea.sflag [#allocation4], %s5523_s16 }
 0x2de   : > { %v1669_v36 = vpop.f32.mrf.mxu3 }
 0x2df   : > { %v1687_v38 = vmul.f32 %v4957_v4, %v1669_v36 }
 0x2e1   : > { %v1691_v49 = vpack.c.bf16 %v1687_v38, %v1686_v37 }
 0x2e3   : > { %1922 = vmatmul.bf16.gmra.mxu1 %v1691_v49  ;;  %1960 = vmatmul.bf16.gmra.mxu3 %v1691_v49  ;;  %v4136_v49 = vld [vmem:[#allocation11 + $0xe0] sm:$0xf] }
 0x33e   : > { %v1899_v41 = vpop.f32.mrf.mxu0 }
 0x33f   : > { %v1900_v46 = vadd.f32 %v1899_v41, %v1726_v42  ;;  %v4264_v41 = vld [vmem:[#allocation11 + $0x1e0] sm:$0xf] }
 0x344   : > { %v1937_v43 = vpop.f32.mrf.mxu2 }
 0x345   : > { %v1938_v51 = vadd.f32 %v1937_v43, %v1727_v47  ;;  %v4137_v43 = vor.u32 %v4700_v40, %v4136_v49  ;;  %v4716_v49 = vld [vmem:[#allocation11 + $0x16c] sm:$0xf0]  ;;  %v4682_v40 = vld [vmem:[#allocation11 + $0x64] sm:$0xf] }
 0x346   : > { %v1901_v50 = vpop.f32.mrf.mxu0 }
 0x347   : > { %v1902_v2 = vadd.f32 %v1901_v50, %v1726_v42  ;;  %2469 = vmatpush.bf16.msra.mxu0 %v4137_v43 }
 0x34c   : > { %v1939_v58 = vpop.f32.mrf.mxu2 }
 0x34d   : > { %v1940_v8 = vadd.f32 %v1939_v58, %v1727_v47  ;;  %v4696_v58 = vld [vmem:[#allocation11 + $0xcc] sm:$0xf0] }
 0x350   : > { %v1918_v45 = vpop.f32.mrf.mxu1 }
 0x351   : > { %v1919_v48 = vadd.f32 %v1918_v45, %v1900_v46  ;;  %v4732_v45 = vld [vmem:[#allocation11 + $0x1ec] sm:$0xf0]  ;;  %v4698_v46 = vld [vmem:[#allocation11 + $0xe4] sm:$0xf] }
 0x353   : > { %v5647_v54 = vadd.f32 %v4976_v53, %v1919_v48  ;;  %v1904_v60 = vpop.f32.mrf.mxu0  ;;  %v4265_v48 = vor.u32 %v4732_v45, %v4264_v41  ;;  %v4074_v41 = vld [vmem:[#allocation11 + $0x70] sm:$0xf0] }
 0x354   : > { %v1905_v0 = vadd.f32 %v1904_v60, %v1726_v42  ;;  %v4077_v45 = vor.u32 %v4682_v40, %v4074_v41 }
 0x355   : > { %v1975_v6 = vmul.f32 %v5647_v54, %v5647_v54  ;;  %2488 = vmatpush.bf16.msra.mxu1 %v4265_v48 }
 0x356   : > { %v1956_v52 = vpop.f32.mrf.mxu3 }
 0x357   : > { %v1957_v55 = vadd.f32 %v1956_v52, %v1938_v51  ;;  %v4730_v51 = vld [vmem:[#allocation11 + $0x1e4] sm:$0xf]  ;;  %v4266_v52 = vld [vmem:[#allocation11 + $0x1f0] sm:$0xf0] }
 0x358   : > { %v1920_v56 = vpop.f32.mrf.mxu1  ;;  %v4269_v53 = vor.u32 %v4730_v51, %v4266_v52  ;;  %v4680_v51 = vld [vmem:[#allocation11 + $0x4c] sm:$0xf0]  ;;  %v4184_v52 = vld [vmem:[#allocation11 + $0x140] sm:$0xf] }
 0x359   : > { %v5650_v44 = vadd.f32 %v4977_v59, %v1957_v55  ;;  %v1921_v5 = vadd.f32 %v1920_v56, %v1902_v2  ;;  %v1942_v14 = vpop.f32.mrf.mxu2  ;;  %v4120_v55 = vld [vmem:[#allocation11 + $0xc0] sm:$0xf]  ;;  %v4728_v59 = vld [vmem:[#allocation11 + $0x1cc] sm:$0xf0] }
 0x35a   : > { %v1943_v18 = vadd.f32 %v1942_v14, %v1727_v47  ;;  %v4248_v56 = vld [vmem:[#allocation11 + $0x1c0] sm:$0xf]  ;;  %2526 = vmatpush.bf16.msra.mxu3 %v4269_v53  ;;  %v4121_v2 = vor.u32 %v4696_v58, %v4120_v55  ;;  %v4692_v14 = vld [vmem:[#allocation11 + $0xac] sm:$0xf0]  ;;  %v4678_v58 = vld [vmem:[#allocation11 + $0x44] sm:$0xf] }
 0x35b   : > { %v1976_v7 = vmul.f32 %v5650_v44, %v5650_v44  ;;  %v5657_v12 = vadd.f32 %v4978_v11, %v1921_v5  ;;  %v1906_v20 = vpop.f32.mrf.mxu0  ;;  %v4694_v5 = vld [vmem:[#allocation11 + $0xc4] sm:$0xf]  ;;  %v4712_v55 = vld [vmem:[#allocation11 + $0x14c] sm:$0xf0] }
 0x35c   : > { %v1907_v25 = vadd.f32 %v1906_v20, %v1726_v42  ;;  %v5321_v42 = vmov 256.0   ;;  %2470 = vmatpush.bf16.msra.mxu0 %v4121_v2  ;;  %v4722_v20 = vld [vmem:[#allocation11 + $0x1a4] sm:$0xf] }
 0x35d   : > { %v1983_v57 = vadd.f32 %v1976_v7, %v1975_v6  ;;  %v1977_v34 = vmul.f32 %v5657_v12, %v5657_v12  ;;  %4958 = vrcp.f32 %v5321_v42  ;;  %v4122_v6 = vld [vmem:[#allocation11 + $0xd0] sm:$0xf0]  ;;  %v4249_v7 = vor.u32 %v4728_v59, %v4248_v56 }
 0x35e   : > { %v1958_v10 = vpop.f32.mrf.mxu3  ;;  %v4125_v60 = vor.u32 %v4694_v5, %v4122_v6  ;;  %v4058_v56 = vld [vmem:[#allocation11 + $0x50] sm:$0xf0]  ;;  %v4185_v59 = vor.u32 %v4712_v55, %v4184_v52  ;;  %v4710_v6 = vld [vmem:[#allocation11 + $0x144] sm:$0xf]  ;;  %v4695_v55 = vld [vmem:[#allocation11 + $0xcc] sm:$0xf] }
 0x35f   : > { %v1959_v13 = vadd.f32 %v1958_v10, %v1940_v8  ;;  %1984 = vadd.xlane.f32.xlu1 %v1983_v57  ;;  %v4726_v8 = vld [vmem:[#allocation11 + $0x1c4] sm:$0xf]  ;;  %v4250_v57 = vld [vmem:[#allocation11 + $0x1d0] sm:$0xf0]  ;;  %2489 = vmatpush.bf16.msra.mxu1 %v4249_v7  ;;  %v4061_v5 = vor.u32 %v4678_v58, %v4058_v56  ;;  %v4130_v58 = vld [vmem:[#allocation11 + $0xd8] sm:$0xf0] }
 0x360   : > { %v1923_v61 = vpop.f32.mrf.mxu1  ;;  %v4253_v11 = vor.u32 %v4726_v8, %v4250_v57  ;;  %v4186_v7 = vld [vmem:[#allocation11 + $0x150] sm:$0xf0]  ;;  %v4040_v8 = vld [vmem:[#allocation11 + $0x20] sm:$0xf]  ;;  %v4676_v57 = vld [vmem:[#allocation11 + $0x2c] sm:$0xf0] }
 0x361   : > { %v5660_v15 = vadd.f32 %v4979_v39, %v1959_v13  ;;  %v1924_v16 = vadd.f32 %v1923_v61, %v1905_v0  ;;  %v1944_v3 = vpop.f32.mrf.mxu2  ;;  %v4104_v13 = vld [vmem:[#allocation11 + $0xa0] sm:$0xf]  ;;  %v4724_v39 = vld [vmem:[#allocation11 + $0x1ac] sm:$0xf0] }
 0x362   : > { %v1945_v31 = vadd.f32 %v1944_v3, %v1727_v47  ;;  %v4138_v47 = vld [vmem:[#allocation11 + $0xf0] sm:$0xf0]  ;;  %v4232_v61 = vld [vmem:[#allocation11 + $0x1a0] sm:$0xf]  ;;  %2527 = vmatpush.bf16.msra.mxu3 %v4253_v11  ;;  %v4105_v0 = vor.u32 %v4692_v14, %v4104_v13  ;;  %v4720_v3 = vld [vmem:[#allocation11 + $0x18c] sm:$0xf0]  ;;  %v4041_v13 = vor.u32 %v4676_v57, %v4040_v8 }
 0x363   : > { %v1978_v17 = vmul.f32 %v5660_v15, %v5660_v15  ;;  %v5667_v62 = vadd.f32 %v4980_v23, %v1924_v16  ;;  %v4141_v50 = vor.u32 %v4698_v46, %v4138_v47  ;;  %v5686_v10 = vpop.eup %4958  ;;  %v4690_v16 = vld [vmem:[#allocation11 + $0xa4] sm:$0xf]  ;;  %v4202_v47 = vld [vmem:[#allocation11 + $0x170] sm:$0xf0]  ;;  %v4168_v11 = vld [vmem:[#allocation11 + $0x120] sm:$0xf] }
 0x364   : > { %2471 = vmatpush.bf16.msra.mxu0 %v4105_v0  ;;  %v4714_v46 = vld [vmem:[#allocation11 + $0x164] sm:$0xf]  ;;  %vm2000_vm1 = vweird.f32 %v5686_v10  ;;  %v4708_v14 = vld [vmem:[#allocation11 + $0x12c] sm:$0xf0]  ;;  %v4042_v0 = vld [vmem:[#allocation11 + $0x30] sm:$0xf0] }
 0x365   : > { %v1986_v19 = vadd.f32 %v1978_v17, %v1977_v34  ;;  %v1979_v29 = vmul.f32 %v5667_v62, %v5667_v62  ;;  %2507 = vmatpush.bf16.msra.mxu2 %v4141_v50  ;;  %v4106_v34 = vld [vmem:[#allocation11 + $0xb0] sm:$0xf0]  ;;  %v1996_v17 = vmul.f32 256.0, %v5686_v10  ;;  %v4205_v48 = vor.u32 %v4714_v46, %v4202_v47  ;;  %v4056_v50 = vld [vmem:[#allocation11 + $0x40] sm:$0xf] }
 0x366   : > { %v1961_v21 = vpop.f32.mrf.mxu3  ;;  %v4057_v53 = vor.u32 %v4680_v51, %v4056_v50  ;;  %v4128_v47 = vld [vmem:[#allocation11 + $0xc8] sm:$0xf] }
 0x367   : > { %v1962_v1 = vadd.f32 %v1961_v21, %v1943_v18  ;;  %1987 = vadd.xlane.f32.xlu2 %v1986_v19  ;;  %v4233_v18 = vor.u32 %v4724_v39, %v4232_v61  ;;  %v4109_v19 = vor.u32 %v4690_v16, %v4106_v34  ;;  %v4234_v21 = vld [vmem:[#allocation11 + $0x1b0] sm:$0xf0]  ;;  %v4674_v61 = vld [vmem:[#allocation11 + $0x24] sm:$0xf]  ;;  %v4169_v16 = vor.u32 %v4708_v14, %v4168_v11  ;;  %v4256_v50 = vld [vmem:[#allocation11 + $0x1c8] sm:$0xf] }
 0x368   : > { %v1925_v24 = vpop.f32.mrf.mxu1  ;;  %v4237_v23 = vor.u32 %v4722_v20, %v4234_v21  ;;  %v4045_v34 = vor.u32 %v4674_v61, %v4042_v0  ;;  %v4024_v21 = vld [vmem:[#allocation11] sm:$0xf]  ;;  %v4112_v57 = vld [vmem:[#allocation11 + $0xa8] sm:$0xf]  ;;  %v4693_v11 = vld [vmem:[#allocation11 + $0xb4] sm:$0xf0] }
 0x369   : > { %v5670_v27 = vadd.f32 %v4981_v26, %v1962_v1  ;;  %v1926_v28 = vadd.f32 %v1925_v24, %v1907_v25  ;;  %2508 = vmatpush.bf16.msra.mxu2 %v4125_v60  ;;  %2490 = vmatpush.bf16.msra.mxu1 %v4233_v18  ;;  %v4088_v1 = vld [vmem:[#allocation11 + $0x80] sm:$0xf]  ;;  %v4688_v24 = vld [vmem:[#allocation11 + $0x8c] sm:$0xf0]  ;;  %v4189_v60 = vor.u32 %v4710_v6, %v4186_v7  ;;  %v4170_v18 = vld [vmem:[#allocation11 + $0x130] sm:$0xf0] }
 0x36a   : > { %v4216_v25 = vld [vmem:[#allocation11 + $0x180] sm:$0xf]  ;;  %2528 = vmatpush.bf16.msra.mxu3 %v4237_v23  ;;  %v4089_v26 = vor.u32 %v4688_v24, %v4088_v1  ;;  %v4672_v23 = vld [vmem:[#allocation11 + $0xc] sm:$0xf0]  ;;  %v4113_v14 = vor.u32 %v4693_v11, %v4112_v57  ;;  %v4725_v61 = vld [vmem:[#allocation11 + $0x1b4] sm:$0xf0] }
 0x36b   : > { %v1980_v30 = vmul.f32 %v5670_v27, %v5670_v27  ;;  %v5677_v22 = vadd.f32 %v4982_v63, %v1926_v28  ;;  %v4686_v28 = vld [vmem:[#allocation11 + $0x84] sm:$0xf]  ;;  %v4218_v63 = vld [vmem:[#allocation11 + $0x190] sm:$0xf0]  ;;  %v4152_v1 = vld [vmem:[#allocation11 + $0x100] sm:$0xf] }
 0x36c   : > { %2472 = vmatpush.bf16.msra.mxu0 %v4089_v26  ;;  %v4704_v26 = vld [vmem:[#allocation11 + $0x10c] sm:$0xf0]  ;;  %v4691_v0 = vld [vmem:[#allocation11 + $0xac] sm:$0xf] }
 0x36d   : > { %v1989_v9 = vadd.f32 %v1980_v30, %v1979_v29  ;;  %v1981_v36 = vmul.f32 %v5677_v22, %v5677_v22  ;;  %2509 = vmatpush.bf16.msra.mxu2 %v4109_v19  ;;  %v4090_v29 = vld [vmem:[#allocation11 + $0x90] sm:$0xf0]  ;;  %v1997_v30 = vsub.f32 1.0, %v1996_v17  ;;  %v4706_v17 = vld [vmem:[#allocation11 + $0x124] sm:$0xf] }
 0x36e   : > { %v1963_v32 = vpop.f32.mrf.mxu3  ;;  %v4173_v19 = vor.u32 %v4706_v17, %v4170_v18  ;;  %v4114_v17 = vld [vmem:[#allocation11 + $0xb8] sm:$0xf0]  ;;  %v4723_v18 = vld [vmem:[#allocation11 + $0x1ac] sm:$0xf] }
 0x36f   : > { %v1964_v33 = vadd.f32 %v1963_v32, %v1945_v31  ;;  %1990 = vadd.xlane.f32.xlu0 %v1989_v9  ;;  %v4217_v31 = vor.u32 %v4720_v3, %v4216_v25  ;;  %v4093_v9 = vor.u32 %v4686_v28, %v4090_v29  ;;  %v4718_v32 = vld [vmem:[#allocation11 + $0x184] sm:$0xf]  ;;  %v1998_v42 = vmul.f32 %v5686_v10, %v1997_v30 }
 0x370   : > { %v4025_v25 = vor.u32 %v4672_v23, %v4024_v21  ;;  %v4670_v3 = vld [vmem:[#allocation11 + $0x4] sm:$0xf]  ;;  %v4153_v28 = vor.u32 %v4704_v26, %v4152_v1  ;;  %v4096_v23 = vld [vmem:[#allocation11 + $0x88] sm:$0xf]  ;;  %v4689_v1 = vld [vmem:[#allocation11 + $0x94] sm:$0xf0] }
 0x371   : > { %v5680_v4 = vadd.f32 %v4983_v35, %v1964_v33  ;;  %v4221_v33 = vor.u32 %v4718_v32, %v4218_v63  ;;  %2491 = vmatpush.bf16.msra.mxu1 %v4217_v31  ;;  %2510 = vmatpush.bf16.msra.mxu2 %v4093_v9  ;;  %v4072_v35 = vld [vmem:[#allocation11 + $0x60] sm:$0xf]  ;;  %v1999_v2 = vadd.f32 %v5686_v10, %v1998_v42  ;;  %v4702_v30 = vld [vmem:[#allocation11 + $0x104] sm:$0xf]  ;;  %v4154_v31 = vld [vmem:[#allocation11 + $0x110] sm:$0xf0] }
 0x372   : > { %v4157_v32 = vor.u32 %v4702_v30, %v4154_v31  ;;  %v4144_v63 = vld [vmem:[#allocation11 + $0xe8] sm:$0xf]  ;;  %v4731_v42 = vld [vmem:[#allocation11 + $0x1ec] sm:$0xf]  ;;  %v4098_v31 = vld [vmem:[#allocation11 + $0x98] sm:$0xf0] }
 0x373   : > { %v1982_v37 = vmul.f32 %v5680_v4, %v5680_v4  ;;  %2529 = vmatpush.bf16.msra.mxu3 %v4221_v33  ;;  %v5693_v39 = vsel %vm2000_vm1, %v5686_v10, %v1999_v2  ;;  %v4026_v10 = vld [vmem:[#allocation11 + $0x10] sm:$0xf0]  ;;  %v4701_v33 = vld [vmem:[#allocation11 + $0xf4] sm:$0xf0]  ;;  %v4133_v2 = vor.u32 %v4695_v55, %v4130_v58  ;;  %v4210_v55 = vld [vmem:[#allocation11 + $0x178] sm:$0xf0] }
 0x374   : > { %v4029_v29 = vor.u32 %v4670_v3, %v4026_v10  ;;  %v4097_v3 = vor.u32 %v4689_v1, %v4096_v23  ;;  %v4721_v10 = vld [vmem:[#allocation11 + $0x194] sm:$0xf0] }
 0x375   : > { %v1992_v38 = vadd.f32 %v1982_v37, %v1981_v36  ;;  %v4684_v36 = vld [vmem:[#allocation11 + $0x6c] sm:$0xf0]  ;;  %v4200_v37 = vld [vmem:[#allocation11 + $0x160] sm:$0xf]  ;;  %2511 = vmatpush.bf16.msra.mxu2 %v4077_v45  ;;  %v4677_v23 = vld [vmem:[#allocation11 + $0x34] sm:$0xf0] }
 0x376   : > { %v4201_v43 = vor.u32 %v4716_v49, %v4200_v37  ;;  %v4733_v37 = vld [vmem:[#allocation11 + $0x1f4] sm:$0xf0]  ;;  %v4146_v49 = vld [vmem:[#allocation11 + $0xf8] sm:$0xf0] }
 0x377   : > { %1993 = vadd.xlane.f32.xlu1 %v1992_v38  ;;  %v4073_v38 = vor.u32 %v4684_v36, %v4072_v35  ;;  %2530 = vmatpush.bf16.msra.mxu3 %v4205_v48  ;;  %v4272_v35 = vld [vmem:[#allocation11 + $0x1e8] sm:$0xf]  ;;  %v4145_v36 = vor.u32 %v4701_v33, %v4144_v63  ;;  %v4697_v48 = vld [vmem:[#allocation11 + $0xd4] sm:$0xf0]  ;;  %v4226_v63 = vld [vmem:[#allocation11 + $0x198] sm:$0xf0] }
 0x378   : > { %2492 = vmatpush.bf16.msra.mxu1 %v4201_v43  ;;  %v4273_v40 = vor.u32 %v4733_v37, %v4272_v35  ;;  %v4274_v43 = vld [vmem:[#allocation11 + $0x1f8] sm:$0xf0]  ;;  %v4129_v52 = vor.u32 %v4697_v48, %v4128_v47  ;;  %v4717_v47 = vld [vmem:[#allocation11 + $0x174] sm:$0xf0]  ;;  %v4683_v48 = vld [vmem:[#allocation11 + $0x6c] sm:$0xf] }
 0x379   : > { %2473 = vmatpush.bf16.msra.mxu0 %v4073_v38  ;;  %2512 = vmatpush.bf16.msra.mxu2 %v4061_v5  ;;  %v4699_v38 = vld [vmem:[#allocation11 + $0xec] sm:$0xf]  ;;  %v4277_v45 = vor.u32 %v4731_v42, %v4274_v43  ;;  %v4258_v5 = vld [vmem:[#allocation11 + $0x1d8] sm:$0xf0]  ;;  %v4208_v42 = vld [vmem:[#allocation11 + $0x168] sm:$0xf] }
 0x37a   : > { %v4149_v41 = vor.u32 %v4699_v38, %v4146_v49 }
 0x37b   : > { %2531 = vmatpush.bf16.msra.mxu3 %v4189_v60 }
 0x37c   : > { %2493 = vmatpush.bf16.msra.mxu1 %v4185_v59  ;;  %v4727_v59 = vld [vmem:[#allocation11 + $0x1cc] sm:$0xf] }
 0x37d   : > { %2474 = vmatpush.bf16.msra.mxu0 %v4057_v53  ;;  %2513 = vmatpush.bf16.msra.mxu2 %v4045_v34  ;;  %v4729_v53 = vld [vmem:[#allocation11 + $0x1d4] sm:$0xf0]  ;;  %v4261_v60 = vor.u32 %v4727_v59, %v4258_v5  ;;  %v4192_v5 = vld [vmem:[#allocation11 + $0x148] sm:$0xf] }
 0x37e   : > { %v4257_v56 = vor.u32 %v4729_v53, %v4256_v50  ;;  %v4715_v53 = vld [vmem:[#allocation11 + $0x16c] sm:$0xf]  ;;  %v4681_v59 = vld [vmem:[#allocation11 + $0x54] sm:$0xf0] }
 0x37f   : > { %2532 = vmatpush.bf16.msra.mxu3 %v4173_v19  ;;  %v4242_v19 = vld [vmem:[#allocation11 + $0x1b8] sm:$0xf0] }
 0x380   : > { %2494 = vmatpush.bf16.msra.mxu1 %v4169_v16  ;;  %v4245_v21 = vor.u32 %v4723_v18, %v4242_v19 }
 0x381   : > { %2475 = vmatpush.bf16.msra.mxu0 %v4041_v13  ;;  %2514 = vmatpush.bf16.msra.mxu2 %v4029_v29  ;;  %v4240_v13 = vld [vmem:[#allocation11 + $0x1a8] sm:$0xf] }
 0x382   : > { %v4241_v34 = vor.u32 %v4725_v61, %v4240_v13  ;;  %v4713_v13 = vld [vmem:[#allocation11 + $0x154] sm:$0xf0] }
 0x383   : > { %2533 = vmatpush.bf16.msra.mxu3 %v4157_v32  ;;  %v4719_v32 = vld [vmem:[#allocation11 + $0x18c] sm:$0xf]  ;;  %v4193_v18 = vor.u32 %v4713_v13, %v4192_v5 }
 0x384   : > { %2495 = vmatpush.bf16.msra.mxu1 %v4153_v28  ;;  %v4687_v28 = vld [vmem:[#allocation11 + $0x8c] sm:$0xf] }
 0x385   : > { %2476 = vmatpush.bf16.msra.mxu0 %v4025_v25  ;;  %2583 = vmatpush.bf16.msrb.mxu2 %v4149_v41  ;;  %v4101_v35 = vor.u32 %v4687_v28, %v4098_v31  ;;  %v4685_v41 = vld [vmem:[#allocation11 + $0x74] sm:$0xf0]  ;;  %v4050_v31 = vld [vmem:[#allocation11 + $0x38] sm:$0xf0] }
 0x387   : > { %2602 = vmatpush.bf16.msrb.mxu3 %v4277_v45  ;;  %v1974_v45 = vld [vmem:[#allocation10] sm:$0x3] }
 0x388   : > { %2564 = vmatpush.bf16.msrb.mxu1 %v4273_v40  ;;  %v4080_v40 = vld [vmem:[#allocation11 + $0x68] sm:$0xf]  ;;  %v5722_v57 = vperm.slane %v1974_v45, 0 }
 0x389   : > { %2545 = vmatpush.bf16.msrb.mxu0 %v4145_v36  ;;  %2584 = vmatpush.bf16.msrb.mxu2 %v4133_v2  ;;  %v4229_v36 = vor.u32 %v4719_v32, %v4226_v63  ;;  %v4064_v2 = vld [vmem:[#allocation11 + $0x48] sm:$0xf]  ;;  %v4707_v32 = vld [vmem:[#allocation11 + $0x12c] sm:$0xf] }
 0x38a   : > { %v4065_v11 = vor.u32 %v4681_v59, %v4064_v2 }
 0x38b   : > { %2603 = vmatpush.bf16.msrb.mxu3 %v4261_v60 }
 0x38c   : > { %2565 = vmatpush.bf16.msrb.mxu1 %v4257_v56  ;;  %v4213_v56 = vor.u32 %v4715_v53, %v4210_v55  ;;  %v4162_v53 = vld [vmem:[#allocation11 + $0x118] sm:$0xf0] }
 0x38d   : > { %2546 = vmatpush.bf16.msrb.mxu0 %v4129_v52  ;;  %v4082_v52 = vld [vmem:[#allocation11 + $0x78] sm:$0xf0] }
 0x38e   : > { %v4085_v58 = vor.u32 %v4683_v48, %v4082_v52  ;;  %v4034_v48 = vld [vmem:[#allocation11 + $0x18] sm:$0xf0]  ;;  %v4703_v52 = vld [vmem:[#allocation11 + $0x10c] sm:$0xf] }
 0x38f   : > { %2604 = vmatpush.bf16.msrb.mxu3 %v4245_v21  ;;  %v4048_v21 = vld [vmem:[#allocation11 + $0x28] sm:$0xf] }
 0x390   : > { %2566 = vmatpush.bf16.msrb.mxu1 %v4241_v34  ;;  %v4194_v34 = vld [vmem:[#allocation11 + $0x158] sm:$0xf0] }
 0x391   : > { %2547 = vmatpush.bf16.msrb.mxu0 %v4113_v14  ;;  %v4679_v14 = vld [vmem:[#allocation11 + $0x4c] sm:$0xf] }
 0x393   : > { %2605 = vmatpush.bf16.msrb.mxu3 %v4229_v36  ;;  %v4032_v36 = vld [vmem:[#allocation11 + $0x8] sm:$0xf] }
 0x395   : > { %2548 = vmatpush.bf16.msrb.mxu0 %v4097_v3 }
 0x397   : > { %2606 = vmatpush.bf16.msrb.mxu3 %v4213_v56 }
 0x3d2   : > { %v1985_v20 = vpop.xlane.xlu1 %1984 }
 0x3d3   : > { %v2002_v24 = vmul.f32 %v5693_v39, %v1985_v20  ;;  %v4117_v20 = vor.u32 %v4691_v0, %v4114_v17  ;;  %v4066_v0 = vld [vmem:[#allocation11 + $0x58] sm:$0xf0] }
 0x3d4   : > { %v4069_v19 = vor.u32 %v4679_v14, %v4066_v0 }
 0x3d5   : > { %v5696_v9 = vadd.f32 1e-06, %v2002_v24  ;;  %v4224_v24 = vld [vmem:[#allocation11 + $0x188] sm:$0xf]  ;;  %2585 = vmatpush.bf16.msrb.mxu2 %v4117_v20 }
 0x3d6   : > { %v4225_v30 = vor.u32 %v4721_v10, %v4224_v24  ;;  %v4049_v24 = vor.u32 %v4677_v23, %v4048_v21 }
 0x3d7   : > { %4960 = vrsqrt.f32 %v5696_v9  ;;  %vm2016_vm3 = vweird.f32 %v5696_v9 }
 0x3d8   : > { %2567 = vmatpush.bf16.msrb.mxu1 %v4225_v30  ;;  %v4675_v30 = vld [vmem:[#allocation11 + $0x2c] sm:$0xf] }
 0x3d9   : > { %2586 = vmatpush.bf16.msrb.mxu2 %v4101_v35  ;;  %v4178_v35 = vld [vmem:[#allocation11 + $0x138] sm:$0xf0] }
 0x3da   : > { %v1988_v46 = vpop.xlane.xlu2 %1987 }
 0x3db   : > { %v2003_v51 = vmul.f32 %v5693_v39, %v1988_v46  ;;  %v4081_v46 = vor.u32 %v4685_v41, %v4080_v40  ;;  %v4181_v41 = vor.u32 %v4707_v32, %v4178_v35  ;;  %v4384_v35 = vld [vmem:[#allocation13 + $0xd0] sm:$0xf] }
 0x3dd   : > { %v5700_v6 = vpop.eup %4960  ;;  %v5702_v7 = vadd.f32 1e-06, %v2003_v51  ;;  %v4209_v51 = vor.u32 %v4717_v47, %v4208_v42  ;;  %2549 = vmatpush.bf16.msrb.mxu0 %v4081_v46  ;;  %2587 = vmatpush.bf16.msrb.mxu2 %v4085_v58  ;;  %v4160_v42 = vld [vmem:[#allocation11 + $0x108] sm:$0xf]  ;;  %v4671_v47 = vld [vmem:[#allocation11 + $0xc] sm:$0xf] }
 0x3de   : > { %v2011_v8 = vmul.f32 %v5700_v6, %v5696_v9  ;;  %vm2017_vm2 = vweird.f32 %v5700_v6  ;;  %v4037_v5 = vor.u32 %v4671_v47, %v4034_v48  ;;  %v4368_v48 = vld [vmem:[#allocation13 + $0xb0] sm:$0xf] }
 0x3df   : > { %4962 = vrsqrt.f32 %v5702_v7  ;;  %vm2018_vm4 = vmor %vm2016_vm3, %vm2017_vm2  ;;  %2568 = vmatpush.bf16.msrb.mxu1 %v4209_v51  ;;  %vm2026_vm6 = vweird.f32 %v5702_v7 }
 0x3e0   : > { %v2012_v16 = vmul.f32 %v5700_v6, %v2011_v8 }
 0x3e1   : > { %2550 = vmatpush.bf16.msrb.mxu0 %v4065_v11  ;;  %2588 = vmatpush.bf16.msrb.mxu2 %v4069_v19 }
 0x3e2   : > { %v2013_v25 = vmul.f32 0.5, %v2012_v16  ;;  %v1991_v26 = vpop.xlane.xlu0 %1990  ;;  %v4711_v16 = vld [vmem:[#allocation11 + $0x14c] sm:$0xf] }
 0x3e3   : > { %v2004_v29 = vmul.f32 %v5693_v39, %v1991_v26  ;;  %v4197_v20 = vor.u32 %v4711_v16, %v4194_v34  ;;  %v4709_v26 = vld [vmem:[#allocation11 + $0x134] sm:$0xf0]  ;;  %2569 = vmatpush.bf16.msrb.mxu1 %v4193_v18 }
 0x3e4   : > { %v2014_v33 = vsub.f32 1.5, %v2013_v25  ;;  %v4176_v25 = vld [vmem:[#allocation11 + $0x128] sm:$0xf] }
 0x3e5   : > { %v5709_v37 = vpop.eup %4962  ;;  %v5711_v38 = vadd.f32 1e-06, %v2004_v29  ;;  %v4177_v29 = vor.u32 %v4709_v26, %v4176_v25  ;;  %2607 = vmatpush.bf16.msrb.mxu3 %v4197_v20  ;;  %2551 = vmatpush.bf16.msrb.mxu0 %v4049_v24  ;;  %v4400_v24 = vld [vmem:[#allocation13 + $0xf0] sm:$0xf]  ;;  %v4765_v25 = vld [vmem:[#allocation13 + $0xf4] sm:$0xf0] }
 0x3e6   : > { %v2021_v49 = vmul.f32 %v5709_v37, %v5702_v7  ;;  %v2015_v43 = vmul.f32 %v5700_v6, %v2014_v33  ;;  %vm2027_vm5 = vweird.f32 %v5709_v37  ;;  %v4053_v33 = vor.u32 %v4675_v30, %v4050_v31  ;;  %v4745_v30 = vld [vmem:[#allocation13 + $0x54] sm:$0xf0] }
 0x3e7   : > { %4964 = vrsqrt.f32 %v5711_v38  ;;  %vm2028_vm7 = vmor %vm2026_vm6, %vm2027_vm5  ;;  %2570 = vmatpush.bf16.msrb.mxu1 %v4177_v29  ;;  %vm2036_vm9 = vweird.f32 %v5711_v38  ;;  %v4401_v26 = vor.u32 %v4765_v25, %v4400_v24  ;;  %v4320_v29 = vld [vmem:[#allocation13 + $0x50] sm:$0xf]  ;;  %v4797_v25 = vld [vmem:[#allocation13 + $0x1f4] sm:$0xf0] }
 0x3e8   : > { %v2022_v50 = vmul.f32 %v5709_v37, %v2021_v49  ;;  %v2019_v61 = vsel %vm2018_vm4, %v5700_v6, %v2015_v43  ;;  %v4705_v43 = vld [vmem:[#allocation11 + $0x114] sm:$0xf0]  ;;  %2589 = vmatpush.bf16.msrb.mxu2 %v4053_v33  ;;  %v4321_v32 = vor.u32 %v4745_v30, %v4320_v29  ;;  %v4528_v24 = vld [vmem:[#allocation13 + $0x1f0] sm:$0xf] }
 0x3e9   : > { %v2050_v3 = vmul.f32 %v2019_v61, %v5647_v54  ;;  %v2051_v63 = vmul.f32 %v2019_v61, %v5650_v44  ;;  %v5742_v54 = vperm.slane %v1974_v45, 1  ;;  %v4673_v44 = vld [vmem:[#allocation11 + $0x14] sm:$0xf0]  ;;  %2608 = vmatpush.bf16.msrb.mxu3 %v4181_v41  ;;  %v4448_v29 = vld [vmem:[#allocation13 + $0x150] sm:$0xf] }
 0x3ea   : > { %v2023_v60 = vmul.f32 0.5, %v2022_v50  ;;  %v1994_v8 = vpop.xlane.xlu1 %1993  ;;  %v4033_v45 = vor.u32 %v4673_v44, %v4032_v36  ;;  %v4761_v36 = vld [vmem:[#allocation13 + $0xd4] sm:$0xf0] }
 0x3eb   : > { %v2005_v9 = vmul.f32 %v5693_v39, %v1994_v8  ;;  %v5749_v51 = vmul.f32 %v5722_v57, %v2050_v3  ;;  %v5755_v58 = vmul.f32 %v5742_v54, %v2051_v63  ;;  %v4392_v3 = vld [vmem:[#allocation13 + $0xe0] sm:$0xf]  ;;  %v4741_v41 = vld [vmem:[#allocation13 + $0x34] sm:$0xf0] }
 0x3ec   : > { %v2024_v17 = vsub.f32 1.5, %v2023_v60  ;;  %2552 = vmatpush.bf16.msrb.mxu0 %v4033_v45  ;;  %v4165_v60 = vor.u32 %v4703_v52, %v4162_v53  ;;  %2590 = vmatpush.bf16.msrb.mxu2 %v4037_v5  ;;  %v4312_v63 = vld [vmem:[#allocation13 + $0x40] sm:$0xf]  ;;  %v4739_v45 = vld [vmem:[#allocation13 + $0x24] sm:$0xf0] }
 0x3ed   : > { %v5727_v1 = vpop.eup %4964  ;;  %v5730_v6 = vadd.f32 1e-06, %v2005_v9  ;;  %v4288_v52 = vld [vmem:[#allocation13 + $0x10] sm:$0xf]  ;;  %v4737_v53 = vld [vmem:[#allocation13 + $0x14] sm:$0xf0] }
 0x3ee   : > { %v2025_v10 = vmul.f32 %v5709_v37, %v2024_v17  ;;  %v2031_v28 = vmul.f32 %v5727_v1, %v5711_v38  ;;  %vm2037_vm8 = vweird.f32 %v5727_v1  ;;  %2609 = vmatpush.bf16.msrb.mxu3 %v4165_v60  ;;  %v4280_v5 = vld [vmem:[#allocation13] sm:$0xf]  ;;  %v4735_v60 = vld [vmem:[#allocation13 + $0x4] sm:$0xf0]  ;;  %v4777_v30 = vld [vmem:[#allocation13 + $0x154] sm:$0xf0] }
 0x3ef   : > { %4966 = vrsqrt.f32 %v5730_v6  ;;  %vm2038_vm10 = vmor %vm2036_vm9, %vm2037_vm8  ;;  %vm2046_vm12 = vweird.f32 %v5730_v6 }
 0x3f0   : > { %v2029_v49 = vsel %vm2028_vm7, %v5709_v37, %v2025_v10  ;;  %v2032_v40 = vmul.f32 %v5727_v1, %v2031_v28  ;;  %v4161_v37 = vor.u32 %v4705_v43, %v4160_v42  ;;  %v4763_v28 = vld [vmem:[#allocation13 + $0xe4] sm:$0xf0]  ;;  %v4376_v42 = vld [vmem:[#allocation13 + $0xc0] sm:$0xf] }
 0x3f1   : > { %v2052_v7 = vmul.f32 %v2029_v49, %v5657_v12  ;;  %v2053_v46 = vmul.f32 %v2029_v49, %v5660_v15  ;;  %v4393_v31 = vor.u32 %v4763_v28, %v4392_v3  ;;  %v4385_v49 = vor.u32 %v4761_v36, %v4384_v35  ;;  %v4759_v43 = vld [vmem:[#allocation13 + $0xc4] sm:$0xf0]  ;;  %v4520_v35 = vld [vmem:[#allocation13 + $0x1e0] sm:$0xf] }
 0x3f2   : > { %v2033_v50 = vmul.f32 0.5, %v2032_v40  ;;  %2571 = vmatpush.bf16.msrb.mxu1 %v4161_v37  ;;  %v4304_v40 = vld [vmem:[#allocation13 + $0x30] sm:$0xf]  ;;  %v4529_v3 = vor.u32 %v4797_v25, %v4528_v24  ;;  %v4795_v36 = vld [vmem:[#allocation13 + $0x1e4] sm:$0xf0] }
 0x3f3   : > { %v5752_v55 = vmul.f32 %v5722_v57, %v2052_v7  ;;  %v5758_v12 = vmul.f32 %v5742_v54, %v2053_v46  ;;  %v4305_v44 = vor.u32 %v4741_v41, %v4304_v40  ;;  %v4377_v7 = vor.u32 %v4759_v43, %v4376_v42  ;;  %v4296_v46 = vld [vmem:[#allocation13 + $0x20] sm:$0xf]  ;;  %v4394_v41 = vld [vmem:[#allocation13 + $0xe8] sm:$0xf0]  ;;  %v4775_v43 = vld [vmem:[#allocation13 + $0x144] sm:$0xf0] }
 0x3f4   : > { %v2034_v15 = vsub.f32 1.5, %v2033_v50  ;;  %v4297_v47 = vor.u32 %v4739_v45, %v4296_v46  ;;  %v4757_v50 = vld [vmem:[#allocation13 + $0xb4] sm:$0xf0]  ;;  %v4521_v40 = vor.u32 %v4795_v36, %v4520_v35  ;;  %v4440_v42 = vld [vmem:[#allocation13 + $0x140] sm:$0xf] }
 0x3f5   : > { %v4967_v56 = vpop.eup %4966  ;;  %v5762_v2 = vpack.c.bf16 %v5752_v55, %v5749_v51  ;;  %v5766_v59 = vpack.c.bf16 %v5758_v12, %v5755_v58  ;;  %v4369_v37 = vor.u32 %v4757_v50, %v4368_v48  ;;  %v4441_v45 = vor.u32 %v4775_v43, %v4440_v42  ;;  %v4512_v50 = vld [vmem:[#allocation13 + $0x1d0] sm:$0xf]  ;;  %v4298_v24 = vld [vmem:[#allocation13 + $0x28] sm:$0xf0]  ;;  %v4769_v35 = vld [vmem:[#allocation13 + $0x114] sm:$0xf0] }
 0x3f6   : > { %v2041_v8 = vmul.f32 %v4967_v56, %v5730_v6  ;;  %v2035_v11 = vmul.f32 %v5727_v1, %v2034_v15  ;;  %vm2047_vm11 = vweird.f32 %v4967_v56  ;;  %v4747_v6 = vld [vmem:[#allocation13 + $0x64] sm:$0xf0]  ;;  %v4289_v15 = vor.u32 %v4737_v53, %v4288_v52  ;;  %v4760_v52 = vld [vmem:[#allocation13 + $0xd4] sm:$0xf]  ;;  %v4496_v25 = vld [vmem:[#allocation13 + $0x1b0] sm:$0xf] }
 0x3f7   : > { %2477 = vmatmul.bf16.vlgmr.msra.gmra.mxu0 %v5762_v2  ;;  %2496 = vmatmul.bf16.vlgmr.msra.gmra.mxu1 %v5766_v59  ;;  %vm2048_vm13 = vmor %vm2046_vm12, %vm2047_vm11  ;;  %v4736_v36 = vld [vmem:[#allocation13 + $0x14] sm:$0xf] }
 0x3f8   : > { %v2042_v13 = vmul.f32 %v4967_v56, %v2041_v8  ;;  %2515 = vmatmul.bf16.vlgmr.msra.gmra.mxu2 %v5762_v2  ;;  %2534 = vmatmul.bf16.vlgmr.msra.gmra.mxu3 %v5766_v59  ;;  %v2039_v61 = vsel %vm2038_vm10, %v5727_v1, %v2035_v11  ;;  %v4281_v8 = vor.u32 %v4735_v60, %v4280_v5  ;;  %v4352_v11 = vld [vmem:[#allocation13 + $0x90] sm:$0xf]  ;;  %v4773_v60 = vld [vmem:[#allocation13 + $0x134] sm:$0xf0] }
 0x3f9   : > { %v2054_v16 = vmul.f32 %v2039_v61, %v5667_v62  ;;  %v2055_v34 = vmul.f32 %v2039_v61, %v5670_v27  ;;  %3086 = vmatpush.bf16.msra.mxu1 %v4401_v26  ;;  %v4464_v61 = vld [vmem:[#allocation13 + $0x170] sm:$0xf]  ;;  %v4764_v26 = vld [vmem:[#allocation13 + $0xf4] sm:$0xf]  ;;  %3124 = vmatpush.bf16.msra.mxu3 %v4529_v3 }
 0x3fa   : > { %v2043_v14 = vmul.f32 0.5, %v2042_v13  ;;  %v4753_v13 = vld [vmem:[#allocation13 + $0x94] sm:$0xf0]  ;;  %v4432_v5 = vld [vmem:[#allocation13 + $0x130] sm:$0xf] }
 0x3fb   : > { %v5783_v38 = vmul.f32 %v5722_v57, %v2054_v16  ;;  %v5789_v21 = vmul.f32 %v5742_v54, %v2055_v34  ;;  %v4338_v34 = vld [vmem:[#allocation13 + $0x78] sm:$0xf0] }
 0x3fc   : > { %v2044_v9 = vsub.f32 1.5, %v2043_v14  ;;  %v4353_v14 = vor.u32 %v4753_v13, %v4352_v11  ;;  %v4433_v13 = vor.u32 %v4773_v60, %v4432_v5 }
 0x3fd   : > { %3087 = vmatpush.bf16.msra.mxu1 %v4393_v31  ;;  %v4744_v31 = vld [vmem:[#allocation13 + $0x54] sm:$0xf]  ;;  %3125 = vmatpush.bf16.msra.mxu3 %v4521_v40 }
 0x3fe   : > { %v2045_v0 = vmul.f32 %v4967_v56, %v2044_v9  ;;  %v4781_v9 = vld [vmem:[#allocation13 + $0x174] sm:$0xf0] }
 0x3ff   : > { %v4465_v16 = vor.u32 %v4781_v9, %v4464_v61  ;;  %v4504_v9 = vld [vmem:[#allocation13 + $0x1c0] sm:$0xf] }
 0x400   : > { %v2049_v17 = vsel %vm2048_vm13, %v4967_v56, %v2045_v0  ;;  %v4360_v56 = vld [vmem:[#allocation13 + $0xa0] sm:$0xf]  ;;  %v4748_v0 = vld [vmem:[#allocation13 + $0x74] sm:$0xf] }
 0x401   : > { %v2056_v18 = vmul.f32 %v2049_v17, %v5677_v22  ;;  %v2057_v19 = vmul.f32 %v2049_v17, %v5680_v4  ;;  %v4336_v22 = vld [vmem:[#allocation13 + $0x70] sm:$0xf]  ;;  %v4749_v4 = vld [vmem:[#allocation13 + $0x74] sm:$0xf0]  ;;  %3088 = vmatpush.bf16.msra.mxu1 %v4385_v49  ;;  %v4341_v17 = vor.u32 %v4748_v0, %v4338_v34  ;;  %3105 = vmatpush.bf16.msra.mxu2 %v4465_v16  ;;  %v4762_v49 = vld [vmem:[#allocation13 + $0xe4] sm:$0xf] }
 0x402   : > { %v4337_v1 = vor.u32 %v4749_v4, %v4336_v22  ;;  %v4779_v22 = vld [vmem:[#allocation13 + $0x164] sm:$0xf0]  ;;  %v4746_v4 = vld [vmem:[#allocation13 + $0x64] sm:$0xf] }
 0x403   : > { %v5786_v20 = vmul.f32 %v5722_v57, %v2056_v18  ;;  %v5792_v23 = vmul.f32 %v5742_v54, %v2057_v19  ;;  %v4328_v57 = vld [vmem:[#allocation13 + $0x60] sm:$0xf]  ;;  %v4743_v54 = vld [vmem:[#allocation13 + $0x44] sm:$0xf0]  ;;  %v4758_v16 = vld [vmem:[#allocation13 + $0xc4] sm:$0xf] }
 0x404   : > { %3067 = vmatpush.bf16.msra.mxu0 %v4337_v1  ;;  %v4329_v10 = vor.u32 %v4747_v6, %v4328_v57  ;;  %v4313_v33 = vor.u32 %v4743_v54, %v4312_v63  ;;  %v4344_v18 = vld [vmem:[#allocation13 + $0x80] sm:$0xf]  ;;  %v4751_v19 = vld [vmem:[#allocation13 + $0x84] sm:$0xf0]  ;;  %v4330_v1 = vld [vmem:[#allocation13 + $0x68] sm:$0xf0]  ;;  %v4449_v63 = vor.u32 %v4777_v30, %v4448_v29 }
 0x405   : > { %v2073_v62 = vpack.c.bf16 %v5786_v20, %v5783_v38  ;;  %v2074_v27 = vpack.c.bf16 %v5792_v23, %v5789_v21  ;;  %3089 = vmatpush.bf16.msra.mxu1 %v4377_v7  ;;  %v4333_v6 = vor.u32 %v4746_v4, %v4330_v1  ;;  %v4322_v54 = vld [vmem:[#allocation13 + $0x58] sm:$0xf0]  ;;  %v4742_v7 = vld [vmem:[#allocation13 + $0x44] sm:$0xf]  ;;  %v4791_v0 = vld [vmem:[#allocation13 + $0x1c4] sm:$0xf0] }
 0x406   : > { %v4505_v34 = vor.u32 %v4791_v0, %v4504_v9  ;;  %v4738_v4 = vld [vmem:[#allocation13 + $0x24] sm:$0xf]  ;;  %v4756_v30 = vld [vmem:[#allocation13 + $0xb4] sm:$0xf]  ;;  %v4785_v9 = vld [vmem:[#allocation13 + $0x194] sm:$0xf0] }
 0x407   : > { %2482 = vmatmul.bf16.gmra.mxu0 %v2073_v62  ;;  %2501 = vmatmul.bf16.gmra.mxu1 %v2074_v27  ;;  %v4752_v0 = vld [vmem:[#allocation13 + $0x94] sm:$0xf] }
 0x408   : > { %2520 = vmatmul.bf16.gmra.mxu2 %v2073_v62  ;;  %2539 = vmatmul.bf16.gmra.mxu3 %v2074_v27 }
 0x409   : > { %3068 = vmatpush.bf16.msra.mxu0 %v4329_v10  ;;  %3090 = vmatpush.bf16.msra.mxu1 %v4369_v37  ;;  %v4402_v10 = vld [vmem:[#allocation13 + $0xf8] sm:$0xf0]  ;;  %v4793_v37 = vld [vmem:[#allocation13 + $0x1d4] sm:$0xf0] }
 0x40a   : > { %v4405_v28 = vor.u32 %v4764_v26, %v4402_v10  ;;  %v4789_v26 = vld [vmem:[#allocation13 + $0x1b4] sm:$0xf0] }
 0x40b   : > { %v4497_v29 = vor.u32 %v4789_v26, %v4496_v25  ;;  %v4472_v26 = vld [vmem:[#allocation13 + $0x180] sm:$0xf] }
 0x40d   : > { %3069 = vmatpush.bf16.msra.mxu0 %v4321_v32  ;;  %v5805_v32 = vld [vmem:[%s5960_s7] sm:$0xf] }
 0x40e   : > { %v5808_v46 = vperm.slane %v5805_v32, 0 }
 0x411   : > { %3070 = vmatpush.bf16.msra.mxu0 %v4313_v33  ;;  %v4325_v33 = vor.u32 %v4744_v31, %v4322_v54  ;;  %v4370_v31 = vld [vmem:[#allocation13 + $0xb8] sm:$0xf0] }
 0x412   : > { %v4373_v54 = vor.u32 %v4756_v30, %v4370_v31  ;;  %v4346_v30 = vld [vmem:[#allocation13 + $0x88] sm:$0xf0] }
 0x415   : > { %3071 = vmatpush.bf16.msra.mxu0 %v4305_v44  ;;  %v4397_v44 = vor.u32 %v4762_v49, %v4394_v41 }
 0x417   : > { %2553 = vmatmul.bf16.vlgmr.msrb.gmra.mxu0 %v5762_v2  ;;  %2572 = vmatmul.bf16.vlgmr.msrb.gmra.mxu1 %v5766_v59 }
 0x418   : > { %2591 = vmatmul.bf16.vlgmr.msrb.gmra.mxu2 %v5762_v2  ;;  %2610 = vmatmul.bf16.vlgmr.msrb.gmra.mxu3 %v5766_v59  ;;  %v4755_v2 = vld [vmem:[#allocation13 + $0xa4] sm:$0xf0] }
 0x419   : > { %3072 = vmatpush.bf16.msra.mxu0 %v4297_v47  ;;  %v4361_v59 = vor.u32 %v4755_v2, %v4360_v56  ;;  %v4314_v47 = vld [vmem:[#allocation13 + $0x48] sm:$0xf0]  ;;  %v4513_v56 = vor.u32 %v4793_v37, %v4512_v50  ;;  %v4386_v2 = vld [vmem:[#allocation13 + $0xd8] sm:$0xf0] }
 0x41a   : > { %v4317_v48 = vor.u32 %v4742_v7, %v4314_v47  ;;  %v4488_v7 = vld [vmem:[#allocation13 + $0x1a0] sm:$0xf]  ;;  %v4754_v47 = vld [vmem:[#allocation13 + $0xa4] sm:$0xf]  ;;  %v4362_v50 = vld [vmem:[#allocation13 + $0xa8] sm:$0xf0] }
 0x41b   : > { %3091 = vmatpush.bf16.msra.mxu1 %v4361_v59  ;;  %v4389_v59 = vor.u32 %v4760_v52, %v4386_v2  ;;  %3126 = vmatpush.bf16.msra.mxu3 %v4513_v56  ;;  %v4365_v52 = vor.u32 %v4754_v47, %v4362_v50  ;;  %v4767_v56 = vld [vmem:[#allocation13 + $0x104] sm:$0xf0]  ;;  %v4734_v2 = vld [vmem:[#allocation13 + $0x4] sm:$0xf]  ;;  %v4776_v50 = vld [vmem:[#allocation13 + $0x154] sm:$0xf] }
 0x41d   : > { %3073 = vmatpush.bf16.msra.mxu0 %v4289_v15 }
 0x41f   : > { %3092 = vmatpush.bf16.msra.mxu1 %v4353_v14  ;;  %v4306_v14 = vld [vmem:[#allocation13 + $0x38] sm:$0xf0]  ;;  %3127 = vmatpush.bf16.msra.mxu3 %v4505_v34 }
 0x421   : > { %3074 = vmatpush.bf16.msra.mxu0 %v4281_v8  ;;  %v4740_v8 = vld [vmem:[#allocation13 + $0x34] sm:$0xf] }
 0x422   : > { %v4309_v61 = vor.u32 %v4740_v8, %v4306_v14 }
 0x423   : > { %3128 = vmatpush.bf16.msra.mxu3 %v4497_v29 }
 0x425   : > { %3143 = vmatpush.bf16.msrb.mxu0 %v4341_v17  ;;  %v4378_v17 = vld [vmem:[#allocation13 + $0xc8] sm:$0xf0] }
 0x427   : > { %2558 = vmatmul.bf16.gmra.mxu0 %v2073_v62  ;;  %2577 = vmatmul.bf16.gmra.mxu1 %v2074_v27 }
 0x428   : > { %2596 = vmatmul.bf16.gmra.mxu2 %v2073_v62  ;;  %2615 = vmatmul.bf16.gmra.mxu3 %v2074_v27  ;;  %v4345_v62 = vor.u32 %v4751_v19, %v4344_v18  ;;  %v4456_v27 = vld [vmem:[#allocation13 + $0x160] sm:$0xf]  ;;  %v4381_v18 = vor.u32 %v4758_v16, %v4378_v17 }
 0x429   : > { %v4457_v57 = vor.u32 %v4779_v22, %v4456_v27  ;;  %3144 = vmatpush.bf16.msrb.mxu0 %v4333_v6  ;;  %v4424_v19 = vld [vmem:[#allocation13 + $0x120] sm:$0xf]  ;;  %v5812_v27 = vperm.slane %v5805_v32, 1  ;;  %v4771_v22 = vld [vmem:[#allocation13 + $0x124] sm:$0xf0] }
 0x42a   : > { %3093 = vmatpush.bf16.msra.mxu1 %v4345_v62  ;;  %v4425_v6 = vor.u32 %v4771_v22, %v4424_v19  ;;  %v4354_v22 = vld [vmem:[#allocation13 + $0x98] sm:$0xf0] }
 0x42b   : > { %3106 = vmatpush.bf16.msra.mxu2 %v4457_v57 }
 0x42d   : > { %3145 = vmatpush.bf16.msrb.mxu0 %v4325_v33  ;;  %v4416_v33 = vld [vmem:[#allocation13 + $0x110] sm:$0xf] }
 0x42e   : > { %3162 = vmatpush.bf16.msrb.mxu1 %v4405_v28  ;;  %v4301_v28 = vor.u32 %v4738_v4, %v4298_v24  ;;  %v4417_v41 = vor.u32 %v4769_v35, %v4416_v33  ;;  %v4357_v4 = vor.u32 %v4752_v0, %v4354_v22  ;;  %v4458_v35 = vld [vmem:[#allocation13 + $0x168] sm:$0xf0] }
 0x42f   : > { %3107 = vmatpush.bf16.msra.mxu2 %v4449_v63 }
 0x431   : > { %3146 = vmatpush.bf16.msrb.mxu0 %v4317_v48 }
 0x432   : > { %3163 = vmatpush.bf16.msrb.mxu1 %v4397_v44  ;;  %v4290_v44 = vld [vmem:[#allocation13 + $0x18] sm:$0xf0] }
 0x433   : > { %3108 = vmatpush.bf16.msra.mxu2 %v4441_v45  ;;  %v4293_v43 = vor.u32 %v4736_v36, %v4290_v44  ;;  %v4787_v45 = vld [vmem:[#allocation13 + $0x1a4] sm:$0xf0] }
 0x434   : > { %v4489_v48 = vor.u32 %v4787_v45, %v4488_v7 }
 0x435   : > { %3147 = vmatpush.bf16.msrb.mxu0 %v4309_v61  ;;  %v4480_v61 = vld [vmem:[#allocation13 + $0x190] sm:$0xf] }
 0x436   : > { %3164 = vmatpush.bf16.msrb.mxu1 %v4389_v59  ;;  %3129 = vmatpush.bf16.msra.mxu3 %v4489_v48  ;;  %v4282_v59 = vld [vmem:[#allocation13 + $0x8] sm:$0xf0]  ;;  %v4481_v19 = vor.u32 %v4785_v9, %v4480_v61  ;;  %v5828_v61 = vperm.slane %v5805_v32, 2 }
 0x437   : > { %3109 = vmatpush.bf16.msra.mxu2 %v4433_v13  ;;  %v4285_v14 = vor.u32 %v4734_v2, %v4282_v59  ;;  %v4794_v2 = vld [vmem:[#allocation13 + $0x1e4] sm:$0xf]  ;;  %v4522_v59 = vld [vmem:[#allocation13 + $0x1e8] sm:$0xf0] }
 0x439   : > { %3148 = vmatpush.bf16.msrb.mxu0 %v4301_v28 }
 0x43a   : > { %3165 = vmatpush.bf16.msrb.mxu1 %v4381_v18  ;;  %3130 = vmatpush.bf16.msra.mxu3 %v4481_v19 }
 0x43b   : > { %3110 = vmatpush.bf16.msra.mxu2 %v4425_v6 }
 0x43d   : > { %3149 = vmatpush.bf16.msrb.mxu0 %v4293_v43  ;;  %v4530_v43 = vld [vmem:[#allocation13 + $0x1f8] sm:$0xf0] }
 0x43e   : > { %3166 = vmatpush.bf16.msrb.mxu1 %v4373_v54 }
 0x43f   : > { %3111 = vmatpush.bf16.msra.mxu2 %v4417_v41 }
 0x441   : > { %3150 = vmatpush.bf16.msrb.mxu0 %v4285_v14 }
 0x442   : > { %3167 = vmatpush.bf16.msrb.mxu1 %v4365_v52 }
 0x446   : > { %3168 = vmatpush.bf16.msrb.mxu1 %v4357_v4 }
 0x474   : > { %v2478_v53 = vpop.f32.mrf.mxu0  ;;  %v2497_v15 = vpop.f32.mrf.mxu1 }
 0x475   : > { %v2479_v11 = vadd.f32 %v2478_v53, %v5808_v46  ;;  %v4408_v53 = vld [vmem:[#allocation13 + $0x100] sm:$0xf] }
 0x476   : > { %v4409_v13 = vor.u32 %v4767_v56, %v4408_v53 }
 0x477   : > { %v2498_v62 = vadd.f32 %v2497_v15, %v2479_v11 }
 0x478   : > { %3112 = vmatpush.bf16.msra.mxu2 %v4409_v13 }
 0x479   : > { %v2637_v49 = vmul.f32 0.01, %v2498_v62  ;;  %vm2621_vm14 = vcmp.gt.f32.partialorder %v2498_v62, 0.0 }
 0x47b   : > { %v2516_v57 = vpop.f32.mrf.mxu2  ;;  %v2535_v1 = vpop.f32.mrf.mxu3  ;;  %v2653_v5 = vsel %vm2621_vm14, %v2498_v62, %v2637_v49  ;;  %v4780_v62 = vld [vmem:[#allocation13 + $0x174] sm:$0xf] }
 0x47c   : > { %v2480_v3 = vpop.f32.mrf.mxu0  ;;  %v2499_v10 = vpop.f32.mrf.mxu1  ;;  %v2517_v40 = vadd.f32 %v2516_v57, %v5812_v27  ;;  %v4466_v57 = vld [vmem:[#allocation13 + $0x178] sm:$0xf0] }
 0x47d   : > { %v2481_v63 = vadd.f32 %v2480_v3, %v5808_v46  ;;  %v4469_v24 = vor.u32 %v4780_v62, %v4466_v57  ;;  %v4783_v3 = vld [vmem:[#allocation13 + $0x184] sm:$0xf0] }
 0x47e   : > { %v2536_v15 = vadd.f32 %v2535_v1, %v2517_v40  ;;  %v4473_v29 = vor.u32 %v4783_v3, %v4472_v26 }
 0x47f   : > { %v2500_v42 = vadd.f32 %v2499_v10, %v2481_v63  ;;  %v4750_v10 = vld [vmem:[#allocation13 + $0x84] sm:$0xf]  ;;  %3181 = vmatpush.bf16.msrb.mxu2 %v4469_v24 }
 0x480   : > { %vm2622_vm0 = vcmp.gt.f32.partialorder %v2536_v15, 0.0  ;;  %v2638_v1 = vmul.f32 0.01, %v2536_v15  ;;  %v4349_v31 = vor.u32 %v4750_v10, %v4346_v30  ;;  %v4778_v63 = vld [vmem:[#allocation13 + $0x164] sm:$0xf]  ;;  %3131 = vmatpush.bf16.msra.mxu3 %v4473_v29 }
 0x481   : > { %vm2625_vm15 = vcmp.gt.f32.partialorder %v2500_v42, 0.0  ;;  %v2641_v37 = vmul.f32 0.01, %v2500_v42  ;;  %v4461_v44 = vor.u32 %v4778_v63, %v4458_v35  ;;  %v4790_v10 = vld [vmem:[#allocation13 + $0x1c4] sm:$0xf]  ;;  %v5836_v63 = vperm.slane %v5805_v32, 3 }
 0x482   : > { %v2654_v54 = vsel %vm2622_vm0, %v2536_v15, %v2638_v1  ;;  %3169 = vmatpush.bf16.msrb.mxu1 %v4349_v31  ;;  %v4772_v1 = vld [vmem:[#allocation13 + $0x134] sm:$0xf]  ;;  %v4770_v30 = vld [vmem:[#allocation13 + $0x124] sm:$0xf]  ;;  %v4426_v31 = vld [vmem:[#allocation13 + $0x128] sm:$0xf0] }
 0x483   : > { %v2657_v60 = vsel %vm2625_vm15, %v2500_v42, %v2641_v37  ;;  %v2518_v8 = vpop.f32.mrf.mxu2  ;;  %v2537_v11 = vpop.f32.mrf.mxu3  ;;  %v4796_v42 = vld [vmem:[#allocation13 + $0x1f4] sm:$0xf]  ;;  %3182 = vmatpush.bf16.msrb.mxu2 %v4461_v44  ;;  %v4450_v37 = vld [vmem:[#allocation13 + $0x158] sm:$0xf0]  ;;  %v4429_v35 = vor.u32 %v4770_v30, %v4426_v31 }
 0x484   : > { %v5816_v16 = vpack.c.bf16 %v2657_v60, %v2653_v5  ;;  %v2519_v34 = vadd.f32 %v2518_v8, %v5812_v27  ;;  %v2483_v17 = vpop.f32.mrf.mxu0  ;;  %v2502_v18 = vpop.f32.mrf.mxu1  ;;  %v4533_v47 = vor.u32 %v4796_v42, %v4530_v43  ;;  %v4453_v53 = vor.u32 %v4776_v50, %v4450_v37  ;;  %v4774_v8 = vld [vmem:[#allocation13 + $0x144] sm:$0xf]  ;;  %v4788_v42 = vld [vmem:[#allocation13 + $0x1b4] sm:$0xf]  ;;  %v4498_v43 = vld [vmem:[#allocation13 + $0x1b8] sm:$0xf0] }
 0x485   : > { %v2484_v25 = vadd.f32 %v2483_v17, %v5808_v46  ;;  %v4525_v5 = vor.u32 %v4794_v2, %v4522_v59  ;;  %v4792_v17 = vld [vmem:[#allocation13 + $0x1d4] sm:$0xf]  ;;  %v4418_v50 = vld [vmem:[#allocation13 + $0x118] sm:$0xf0]  ;;  %v4786_v37 = vld [vmem:[#allocation13 + $0x1a4] sm:$0xf] }
 0x486   : > { %v2538_v6 = vadd.f32 %v2537_v11, %v2519_v34  ;;  %3075 = vmatmul.bf16.vlgmr.msra.gmra.mxu0 %v5816_v16  ;;  %3200 = vmatpush.bf16.msrb.mxu3 %v4533_v47  ;;  %v4442_v11 = vld [vmem:[#allocation13 + $0x148] sm:$0xf0]  ;;  %v4501_v47 = vor.u32 %v4788_v42, %v4498_v43  ;;  %v4768_v32 = vld [vmem:[#allocation13 + $0x114] sm:$0xf] }
 0x487   : > { %v2503_v49 = vadd.f32 %v2502_v18, %v2484_v25  ;;  %3183 = vmatpush.bf16.msrb.mxu2 %v4453_v53  ;;  %v4445_v34 = vor.u32 %v4774_v8, %v4442_v11  ;;  %v4514_v18 = vld [vmem:[#allocation13 + $0x1d8] sm:$0xf0]  ;;  %v4421_v53 = vor.u32 %v4768_v32, %v4418_v50  ;;  %v4410_v2 = vld [vmem:[#allocation13 + $0x108] sm:$0xf0]  ;;  %v4784_v8 = vld [vmem:[#allocation13 + $0x194] sm:$0xf] }
 0x488   : > { %vm2626_vm1 = vcmp.gt.f32.partialorder %v2538_v6, 0.0  ;;  %v2642_v28 = vmul.f32 0.01, %v2538_v6  ;;  %v4517_v57 = vor.u32 %v4792_v17, %v4514_v18 }
 0x489   : > { %v2645_v15 = vmul.f32 0.01, %v2503_v49  ;;  %vm2629_vm2 = vcmp.gt.f32.partialorder %v2503_v49, 0.0 }
 0x48a   : > { %v2658_v33 = vsel %vm2626_vm1, %v2538_v6, %v2642_v28  ;;  %3201 = vmatpush.bf16.msrb.mxu3 %v4525_v5  ;;  %v4434_v6 = vld [vmem:[#allocation13 + $0x138] sm:$0xf0]  ;;  %v4506_v28 = vld [vmem:[#allocation13 + $0x1c8] sm:$0xf0] }
 0x48b   : > { %v5822_v36 = vpack.c.bf16 %v2658_v33, %v2654_v54  ;;  %v2521_v40 = vpop.f32.mrf.mxu2  ;;  %v2540_v41 = vpop.f32.mrf.mxu3  ;;  %v2661_v9 = vsel %vm2629_vm2, %v2503_v49, %v2645_v15  ;;  %3184 = vmatpush.bf16.msrb.mxu2 %v4445_v34  ;;  %v4437_v26 = vor.u32 %v4772_v1, %v4434_v6  ;;  %v4509_v29 = vor.u32 %v4790_v10, %v4506_v28  ;;  %v4490_v15 = vld [vmem:[#allocation13 + $0x1a8] sm:$0xf0] }
 0x48c   : > { %v2485_v7 = vpop.f32.mrf.mxu0  ;;  %v2504_v45 = vpop.f32.mrf.mxu1  ;;  %v2522_v52 = vadd.f32 %v2521_v40, %v5812_v27 }
 0x48d   : > { %v2486_v48 = vadd.f32 %v2485_v7, %v5808_v46  ;;  %3094 = vmatmul.bf16.vlgmr.msra.gmra.mxu1 %v5822_v36 }
 0x48e   : > { %v2541_v46 = vadd.f32 %v2540_v41, %v2522_v52  ;;  %3202 = vmatpush.bf16.msrb.mxu3 %v4517_v57 }
 0x48f   : > { %v2505_v56 = vadd.f32 %v2504_v45, %v2486_v48  ;;  %3185 = vmatpush.bf16.msrb.mxu2 %v4437_v26 }
 0x490   : > { %v2646_v24 = vmul.f32 0.01, %v2541_v46  ;;  %vm2630_vm4 = vcmp.gt.f32.partialorder %v2541_v46, 0.0 }
 0x491   : > { %vm2633_vm3 = vcmp.gt.f32.partialorder %v2505_v56, 0.0  ;;  %v2649_v60 = vmul.f32 0.01, %v2505_v56 }
 0x492   : > { %v2662_v54 = vsel %vm2630_vm4, %v2541_v46, %v2646_v24  ;;  %3203 = vmatpush.bf16.msrb.mxu3 %v4509_v29  ;;  %v4482_v46 = vld [vmem:[#allocation13 + $0x198] sm:$0xf0]  ;;  %v4782_v24 = vld [vmem:[#allocation13 + $0x184] sm:$0xf] }
 0x493   : > { %v2523_v13 = vpop.f32.mrf.mxu2  ;;  %v2542_v14 = vpop.f32.mrf.mxu3  ;;  %v2665_v0 = vsel %vm2633_vm3, %v2505_v56, %v2649_v60  ;;  %3186 = vmatpush.bf16.msrb.mxu2 %v4429_v35  ;;  %v4766_v56 = vld [vmem:[#allocation13 + $0x104] sm:$0xf]  ;;  %v4493_v60 = vor.u32 %v4786_v37, %v4490_v15  ;;  %v4485_v18 = vor.u32 %v4784_v8, %v4482_v46 }
 0x494   : > { %v2524_v19 = vadd.f32 %v2523_v13, %v5812_v27  ;;  %v2554_v22 = vpop.f32.mrf.mxu0  ;;  %v2573_v4 = vpop.f32.mrf.mxu1  ;;  %v5831_v62 = vpack.c.bf16 %v2665_v0, %v2661_v9  ;;  %v4413_v13 = vor.u32 %v4766_v56, %v4410_v2 }
 0x495   : > { %v2555_v3 = vadd.f32 %v2554_v22, %v5828_v61 }
 0x496   : > { %v2543_v25 = vadd.f32 %v2542_v14, %v2524_v19  ;;  %3080 = vmatmul.bf16.gmra.mxu0 %v5831_v62  ;;  %3204 = vmatpush.bf16.msrb.mxu3 %v4501_v47 }
 0x497   : > { %v2574_v49 = vadd.f32 %v2573_v4, %v2555_v3  ;;  %3187 = vmatpush.bf16.msrb.mxu2 %v4421_v53 }
 0x498   : > { %vm2634_vm5 = vcmp.gt.f32.partialorder %v2543_v25, 0.0  ;;  %v2650_v27 = vmul.f32 0.01, %v2543_v25 }
 0x499   : > { %v2639_v59 = vmul.f32 0.01, %v2574_v49  ;;  %vm2623_vm6 = vcmp.gt.f32.partialorder %v2574_v49, 0.0 }
 0x49a   : > { %v2666_v33 = vsel %vm2634_vm5, %v2543_v25, %v2650_v27  ;;  %3205 = vmatpush.bf16.msrb.mxu3 %v4493_v60  ;;  %v4474_v25 = vld [vmem:[#allocation13 + $0x188] sm:$0xf0] }
 0x49b   : > { %v2592_v40 = vpop.f32.mrf.mxu2  ;;  %v2611_v41 = vpop.f32.mrf.mxu3  ;;  %v5838_v44 = vpack.c.bf16 %v2666_v33, %v2662_v54  ;;  %v2655_v9 = vsel %vm2623_vm6, %v2574_v49, %v2639_v59  ;;  %3188 = vmatpush.bf16.msrb.mxu2 %v4413_v13  ;;  %v4477_v3 = vor.u32 %v4782_v24, %v4474_v25 }
 0x49c   : > { %v2556_v7 = vpop.f32.mrf.mxu0  ;;  %v2575_v45 = vpop.f32.mrf.mxu1  ;;  %v2593_v52 = vadd.f32 %v2592_v40, %v5836_v63 }
 0x49d   : > { %v2557_v48 = vadd.f32 %v2556_v7, %v5828_v61  ;;  %3099 = vmatmul.bf16.gmra.mxu1 %v5838_v44 }
 0x49e   : > { %v2612_v14 = vadd.f32 %v2611_v41, %v2593_v52  ;;  %3206 = vmatpush.bf16.msrb.mxu3 %v4485_v18 }
 0x49f   : > { %v2576_v5 = vadd.f32 %v2575_v45, %v2557_v48 }
 0x4a0   : > { %v2640_v1 = vmul.f32 0.01, %v2612_v14  ;;  %vm2624_vm8 = vcmp.gt.f32.partialorder %v2612_v14, 0.0 }
 0x4a1   : > { %vm2627_vm7 = vcmp.gt.f32.partialorder %v2576_v5, 0.0  ;;  %v2643_v11 = vmul.f32 0.01, %v2576_v5 }
 0x4a2   : > { %v2656_v28 = vsel %vm2624_vm8, %v2612_v14, %v2640_v1  ;;  %3207 = vmatpush.bf16.msrb.mxu3 %v4477_v3 }
 0x4a3   : > { %v2659_v0 = vsel %vm2627_vm7, %v2576_v5, %v2643_v11  ;;  %v2594_v34 = vpop.f32.mrf.mxu2  ;;  %v2613_v17 = vpop.f32.mrf.mxu3 }
 0x4a4   : > { %v2671_v19 = vpack.c.bf16 %v2659_v0, %v2655_v9  ;;  %v2595_v22 = vadd.f32 %v2594_v34, %v5836_v63  ;;  %v2559_v4 = vpop.f32.mrf.mxu0  ;;  %v2578_v57 = vpop.f32.mrf.mxu1 }
 0x4a5   : > { %v2560_v26 = vadd.f32 %v2559_v4, %v5828_v61 }
 0x4a6   : > { %v2614_v6 = vadd.f32 %v2613_v17, %v2595_v22  ;;  %3113 = vmatmul.bf16.vlgmr.msra.gmra.mxu2 %v2671_v19  ;;  %3151 = vmatmul.bf16.vlgmr.msrb.gmra.mxu0 %v5816_v16 }
 0x4a7   : > { %v2579_v30 = vadd.f32 %v2578_v57, %v2560_v26 }
 0x4a8   : > { %vm2628_vm9 = vcmp.gt.f32.partialorder %v2614_v6, 0.0  ;;  %v2644_v10 = vmul.f32 0.01, %v2614_v6 }
 0x4a9   : > { %v2647_v40 = vmul.f32 0.01, %v2579_v30  ;;  %vm2631_vm10 = vcmp.gt.f32.partialorder %v2579_v30, 0.0 }
 0x4aa   : > { %v2660_v27 = vsel %vm2628_vm9, %v2614_v6, %v2644_v10 }
 0x4ab   : > { %v2672_v29 = vpack.c.bf16 %v2660_v27, %v2656_v28  ;;  %v2597_v31 = vpop.f32.mrf.mxu2  ;;  %v2616_v54 = vpop.f32.mrf.mxu3  ;;  %v2663_v45 = vsel %vm2631_vm10, %v2579_v30, %v2647_v40 }
 0x4ac   : > { %v2561_v33 = vpop.f32.mrf.mxu0  ;;  %v2598_v16 = vadd.f32 %v2597_v31, %v5836_v63  ;;  %v2580_v49 = vpop.f32.mrf.mxu1 }
 0x4ad   : > { %v2562_v35 = vadd.f32 %v2561_v33, %v5828_v61  ;;  %3132 = vmatmul.bf16.vlgmr.msra.gmra.mxu3 %v2672_v29  ;;  %3170 = vmatmul.bf16.vlgmr.msrb.gmra.mxu1 %v5822_v36 }
 0x4ae   : > { %v2617_v43 = vadd.f32 %v2616_v54, %v2598_v16 }
 0x4af   : > { %v2581_v41 = vadd.f32 %v2580_v49, %v2562_v35 }
 0x4b0   : > { %v2648_v61 = vmul.f32 0.01, %v2617_v43  ;;  %vm2632_vm12 = vcmp.gt.f32.partialorder %v2617_v43, 0.0 }
 0x4b1   : > { %vm2635_vm11 = vcmp.gt.f32.partialorder %v2581_v41, 0.0  ;;  %v2651_v42 = vmul.f32 0.01, %v2581_v41 }
 0x4b2   : > { %v2664_v52 = vsel %vm2632_vm12, %v2617_v43, %v2648_v61 }
 0x4b3   : > { %v2599_v7 = vpop.f32.mrf.mxu2  ;;  %v2667_v47 = vsel %vm2635_vm11, %v2581_v41, %v2651_v42  ;;  %v2618_v50 = vpop.f32.mrf.mxu3 }
 0x4b4   : > { %v2600_v48 = vadd.f32 %v2599_v7, %v5836_v63  ;;  %v2675_v32 = vpack.c.bf16 %v2667_v47, %v2663_v45 }
 0x4b6   : > { %v2619_v37 = vadd.f32 %v2618_v50, %v2600_v48  ;;  %3118 = vmatmul.bf16.gmra.mxu2 %v2675_v32  ;;  %3156 = vmatmul.bf16.gmra.mxu0 %v5831_v62 }
 0x4b8   : > { %vm2636_vm13 = vcmp.gt.f32.partialorder %v2619_v37, 0.0  ;;  %v2652_v36 = vmul.f32 0.01, %v2619_v37 }
 0x4ba   : > { %v2668_v53 = vsel %vm2636_vm13, %v2619_v37, %v2652_v36 }
 0x4bb   : > { %v2676_v15 = vpack.c.bf16 %v2668_v53, %v2664_v52 }
 0x4bd   : > { %3137 = vmatmul.bf16.gmra.mxu3 %v2676_v15  ;;  %3175 = vmatmul.bf16.gmra.mxu1 %v5838_v44  ;;  %v2741_v44 = vld [vmem:[%s5962_s9] sm:$0x3] }
 0x4be   : > { %v2743_v18 = vperm.slane %v2741_v44, 0  ;;  %v2744_v4 = vperm.slane %v2741_v44, 1 }
 0x4c6   : > { %3189 = vmatmul.bf16.vlgmr.msrb.gmra.mxu2 %v2671_v19 }
 0x4cd   : > { %3208 = vmatmul.bf16.vlgmr.msrb.gmra.mxu3 %v2672_v29 }
 0x4d6   : > { %3194 = vmatmul.bf16.gmra.mxu2 %v2675_v32 }
 0x4dd   : > { %3213 = vmatmul.bf16.gmra.mxu3 %v2676_v15 }
 0x503   : > { %v3076_v63 = vpop.f32.mrf.mxu0 }
 0x504   : > { %v3077_v22 = vadd.f32 %v3076_v63, %v2743_v18 }
 0x50a   : > { %v3095_v56 = vpop.f32.mrf.mxu1 }
 0x50b   : > { %v3078_v2 = vpop.f32.mrf.mxu0  ;;  %v3096_v1 = vadd.f32 %v3095_v56, %v3077_v22 }
 0x50c   : > { %v3079_v27 = vadd.f32 %v3078_v2, %v2743_v18 }
 0x512   : > { %v3097_v59 = vpop.f32.mrf.mxu1 }
 0x513   : > { %v3081_v60 = vpop.f32.mrf.mxu0  ;;  %v3098_v31 = vadd.f32 %v3097_v59, %v3079_v27 }
 0x514   : > { %v3082_v47 = vadd.f32 %v3081_v60, %v2743_v18 }
 0x51a   : > { %v3100_v62 = vpop.f32.mrf.mxu1 }
 0x51b   : > { %v3083_v11 = vpop.f32.mrf.mxu0  ;;  %v3101_v61 = vadd.f32 %v3100_v62, %v3082_v47 }
 0x522   : > { %v3102_v9 = vpop.f32.mrf.mxu1 }
 0x523   : > { %v3152_v17 = vpop.f32.mrf.mxu0 }
 0x524   : > { %v3153_v24 = vadd.f32 %v3152_v17, %v2744_v4 }
 0x529   : > { %v3114_v5 = vpop.f32.mrf.mxu2 }
 0x52a   : > { %v3171_v19 = vpop.f32.mrf.mxu1  ;;  %v3115_v25 = vadd.f32 %v3114_v5, %v3096_v1  ;;  %v3084_v5 = vadd.f32 %v3083_v11, %v2743_v18 }
 0x52b   : > { %v3154_v26 = vpop.f32.mrf.mxu0  ;;  %v3172_v3 = vadd.f32 %v3171_v19, %v3153_v24 }
 0x52c   : > { %v3155_v16 = vadd.f32 %v3154_v26, %v2744_v4 }
 0x530   : > { %v3133_v8 = vpop.f32.mrf.mxu3 }
 0x531   : > { %v3116_v46 = vpop.f32.mrf.mxu2  ;;  %v3134_v10 = vadd.f32 %v3133_v8, %v3115_v25 }
 0x532   : > { %v3173_v28 = vpop.f32.mrf.mxu1  ;;  %v3117_v49 = vadd.f32 %v3116_v46, %v3098_v31  ;;  %v3103_v46 = vadd.f32 %v3102_v9, %v3084_v5 }
 0x533   : > { %v5856_v54 = vadd.f32 %v3134_v10, %v5749_v51  ;;  %v3174_v41 = vadd.f32 %v3173_v28, %v3155_v16  ;;  %v3157_v45 = vpop.f32.mrf.mxu0  ;;  %v3227_v16 = vld [vmem:[#allocation14] sm:$0x3] }
 0x534   : > { %v3158_v52 = vadd.f32 %v3157_v45, %v2744_v4  ;;  %v3305_v45 = vperm.slane %v3227_v16, 0  ;;  %v3306_v47 = vperm.slane %v3227_v16, 1 }
 0x535   : > { %v3228_v43 = vmul.f32 %v5856_v54, %v5856_v54 }
 0x538   : > { %v3135_v13 = vpop.f32.mrf.mxu3 }
 0x539   : > { %v3119_v14 = vpop.f32.mrf.mxu2  ;;  %v3136_v42 = vadd.f32 %v3135_v13, %v3117_v49 }
 0x53a   : > { %v3176_v32 = vpop.f32.mrf.mxu1  ;;  %v3120_v53 = vadd.f32 %v3119_v14, %v3101_v61 }
 0x53b   : > { %v5866_v37 = vadd.f32 %v3136_v42, %v5752_v55  ;;  %v3177_v63 = vadd.f32 %v3176_v32, %v3158_v52  ;;  %v3159_v62 = vpop.f32.mrf.mxu0 }
 0x53c   : > { %v3160_v44 = vadd.f32 %v3159_v62, %v2744_v4 }
 0x53d   : > { %v3230_v2 = vmul.f32 %v5866_v37, %v5866_v37 }
 0x540   : > { %v3138_v0 = vpop.f32.mrf.mxu3 }
 0x541   : > { %v3121_v34 = vpop.f32.mrf.mxu2  ;;  %v3139_v56 = vadd.f32 %v3138_v0, %v3120_v53 }
 0x542   : > { %v3122_v0 = vadd.f32 %v3121_v34, %v3103_v46 }
 0x543   : > { %v5876_v13 = vadd.f32 %v3139_v56, %v5783_v38 }
 0x545   : > { %v3232_v11 = vmul.f32 %v5876_v13, %v5876_v13 }
 0x548   : > { %v3140_v57 = vpop.f32.mrf.mxu3 }
 0x549   : > { %v3190_v6 = vpop.f32.mrf.mxu2  ;;  %v3141_v1 = vadd.f32 %v3140_v57, %v3122_v0 }
 0x54a   : > { %v3191_v29 = vadd.f32 %v3190_v6, %v3172_v3 }
 0x54b   : > { %v5886_v24 = vadd.f32 %v3141_v1, %v5786_v20 }
 0x54d   : > { %v3234_v34 = vmul.f32 %v5886_v24, %v5886_v24 }
 0x550   : > { %v3209_v30 = vpop.f32.mrf.mxu3 }
 0x551   : > { %v3210_v33 = vadd.f32 %v3209_v30, %v3191_v29  ;;  %v3192_v35 = vpop.f32.mrf.mxu2 }
 0x552   : > { %v3193_v48 = vadd.f32 %v3192_v35, %v3174_v41 }
 0x553   : > { %v5859_v40 = vadd.f32 %v3210_v33, %v5755_v58 }
 0x555   : > { %v3229_v7 = vmul.f32 %v5859_v40, %v5859_v40 }
 0x557   : > { %v3236_v51 = vadd.f32 %v3229_v7, %v3228_v43 }
 0x558   : > { %v3211_v50 = vpop.f32.mrf.mxu3 }
 0x559   : > { %v3212_v58 = vadd.f32 %v3211_v50, %v3193_v48  ;;  %3237 = vadd.xlane.f32.xlu2 %v3236_v51  ;;  %v3195_v36 = vpop.f32.mrf.mxu2 }
 0x55a   : > { %v3196_v60 = vadd.f32 %v3195_v36, %v3177_v63 }
 0x55b   : > { %v5869_v15 = vadd.f32 %v3212_v58, %v5758_v12  ;;  %v3178_v12 = vpop.f32.mrf.mxu1 }
 0x55c   : > { %v3179_v22 = vadd.f32 %v3178_v12, %v3160_v44 }
 0x55d   : > { %v3231_v59 = vmul.f32 %v5869_v15, %v5869_v15 }
 0x55f   : > { %v3239_v55 = vadd.f32 %v3231_v59, %v3230_v2 }
 0x560   : > { %v3214_v8 = vpop.f32.mrf.mxu3 }
 0x561   : > { %v3215_v14 = vadd.f32 %v3214_v8, %v3196_v60  ;;  %3240 = vadd.xlane.f32.xlu0 %v3239_v55  ;;  %v3197_v19 = vpop.f32.mrf.mxu2 }
 0x562   : > { %v3198_v18 = vadd.f32 %v3197_v19, %v3179_v22 }
 0x563   : > { %v5879_v17 = vadd.f32 %v3215_v14, %v5789_v21 }
 0x565   : > { %v3233_v9 = vmul.f32 %v5879_v17, %v5879_v17 }
 0x567   : > { %v3242_v38 = vadd.f32 %v3233_v9, %v3232_v11 }
 0x568   : > { %v3216_v6 = vpop.f32.mrf.mxu3 }
 0x569   : > { %v3217_v4 = vadd.f32 %v3216_v6, %v3198_v18  ;;  %3243 = vadd.xlane.f32.xlu1 %v3242_v38 }
 0x56b   : > { %v5889_v21 = vadd.f32 %v3217_v4, %v5792_v23 }
 0x56d   : > { %v3235_v57 = vmul.f32 %v5889_v21, %v5889_v21 }
 0x56f   : > { %v3245_v25 = vadd.f32 %v3235_v57, %v3234_v34 }
 0x571   : > { %3246 = vadd.xlane.f32.xlu2 %v3245_v25 }
 0x5cc   : > { %v3238_v26 = vpop.xlane.xlu2 %3237 }
 0x5cd   : > { %v3248_v3 = vmul.f32 %v3238_v26, %v5693_v39 }
 0x5cf   : > { %v3252_v10 = vadd.f32 1e-06, %v3248_v3 }
 0x5d1   : > { %4968 = vrsqrt.f32 %v3252_v10  ;;  %vm3262_vm15 = vweird.f32 %v3252_v10 }
 0x5d4   : > { %v3241_v20 = vpop.xlane.xlu0 %3240 }
 0x5d5   : > { %v3249_v28 = vmul.f32 %v3241_v20, %v5693_v39 }
 0x5d7   : > { %v4969_v27 = vpop.eup %4968  ;;  %v3253_v29 = vadd.f32 1e-06, %v3249_v28 }
 0x5d8   : > { %v3257_v23 = vmul.f32 %v4969_v27, %v3252_v10  ;;  %vm3263_vm14 = vweird.f32 %v4969_v27 }
 0x5d9   : > { %4970 = vrsqrt.f32 %v3253_v29  ;;  %vm3264_vm0 = vmor %vm3262_vm15, %vm3263_vm14  ;;  %vm3272_vm2 = vweird.f32 %v3253_v29 }
 0x5da   : > { %v3258_v30 = vmul.f32 %v4969_v27, %v3257_v23 }
 0x5dc   : > { %v3259_v31 = vmul.f32 0.5, %v3258_v30  ;;  %v3244_v33 = vpop.xlane.xlu1 %3243 }
 0x5dd   : > { %v3250_v35 = vmul.f32 %v3244_v33, %v5693_v39 }
 0x5de   : > { %v3260_v49 = vsub.f32 1.5, %v3259_v31 }
 0x5df   : > { %v4971_v41 = vpop.eup %4970  ;;  %v3254_v42 = vadd.f32 1e-06, %v3250_v35 }
 0x5e0   : > { %v3261_v43 = vmul.f32 %v4969_v27, %v3260_v49  ;;  %v3267_v7 = vmul.f32 %v4971_v41, %v3253_v29  ;;  %vm3273_vm1 = vweird.f32 %v4971_v41 }
 0x5e1   : > { %4972 = vrsqrt.f32 %v3254_v42  ;;  %vm3274_vm3 = vmor %vm3272_vm2, %vm3273_vm1  ;;  %vm3282_vm5 = vweird.f32 %v3254_v42 }
 0x5e2   : > { %v3265_v48 = vsel %vm3264_vm0, %v4969_v27, %v3261_v43  ;;  %v3268_v51 = vmul.f32 %v4971_v41, %v3267_v7 }
 0x5e3   : > { %v3296_v32 = vmul.f32 %v3265_v48, %v5856_v54  ;;  %v3297_v50 = vmul.f32 %v3265_v48, %v5859_v40 }
 0x5e4   : > { %v3269_v61 = vmul.f32 0.5, %v3268_v51  ;;  %v3247_v58 = vpop.xlane.xlu2 %3246 }
 0x5e5   : > { %v3309_v36 = vmul.f32 %v3305_v45, %v3296_v32  ;;  %v3310_v52 = vmul.f32 %v3306_v47, %v3297_v50  ;;  %v3251_v53 = vmul.f32 %v3247_v58, %v5693_v39 }
 0x5e6   : > { %v3270_v63 = vsub.f32 1.5, %v3269_v61 }
 0x5e7   : > { %v4973_v56 = vpop.eup %4972  ;;  %3317 = vst [vmem:[%s5903_s14] sm:$0xff] %v3309_v36  ;;  %v3255_v2 = vadd.f32 1e-06, %v3251_v53 }
 0x5e8   : > { %3318 = vst [vmem:[%s5903_s14 + $0x8] sm:$0xff] %v3310_v52  ;;  %v3271_v54 = vmul.f32 %v4971_v41, %v3270_v63  ;;  %v3277_v40 = vmul.f32 %v4973_v56, %v3254_v42  ;;  %vm3283_vm4 = vweird.f32 %v4973_v56 }
 0x5e9   : > { %4974 = vrsqrt.f32 %v3255_v2  ;;  %vm3284_vm6 = vmor %vm3282_vm5, %vm3283_vm4  ;;  %vm3292_vm8 = vweird.f32 %v3255_v2 }
 0x5ea   : > { %v3275_v59 = vsel %vm3274_vm3, %v4971_v41, %v3271_v54  ;;  %v3278_v39 = vmul.f32 %v4973_v56, %v3277_v40 }
 0x5eb   : > { %v3298_v5 = vmul.f32 %v3275_v59, %v5866_v37  ;;  %v3299_v60 = vmul.f32 %v3275_v59, %v5869_v15 }
 0x5ec   : > { %v3279_v55 = vmul.f32 0.5, %v3278_v39 }
 0x5ed   : > { %v3311_v62 = vmul.f32 %v3305_v45, %v3298_v5  ;;  %v3312_v8 = vmul.f32 %v3306_v47, %v3299_v60 }
 0x5ee   : > { %v3280_v46 = vsub.f32 1.5, %v3279_v55 }
 0x5ef   : > { %v4975_v14 = vpop.eup %4974  ;;  %3319 = vst [vmem:[%s5903_s14 + $0x10] sm:$0xff] %v3311_v62 }
 0x5f0   : > { %3320 = vst [vmem:[%s5903_s14 + $0x18] sm:$0xff] %v3312_v8  ;;  %v3281_v12 = vmul.f32 %v4973_v56, %v3280_v46  ;;  %v3287_v44 = vmul.f32 %v4975_v14, %v3255_v2  ;;  %vm3293_vm7 = vweird.f32 %v4975_v14 }
 0x5f1   : > { %vm3294_vm9 = vmor %vm3292_vm8, %vm3293_vm7 }
 0x5f2   : > { %v3285_v0 = vsel %vm3284_vm6, %v4973_v56, %v3281_v12  ;;  %v3288_v19 = vmul.f32 %v4975_v14, %v3287_v44 }
 0x5f3   : > { %v3300_v37 = vmul.f32 %v3285_v0, %v5876_v13  ;;  %v3301_v15 = vmul.f32 %v3285_v0, %v5879_v17 }
 0x5f4   : > { %v3289_v22 = vmul.f32 0.5, %v3288_v19 }
 0x5f5   : > { %v3313_v1 = vmul.f32 %v3305_v45, %v3300_v37  ;;  %v3314_v11 = vmul.f32 %v3306_v47, %v3301_v15 }
 0x5f6   : > { %v3290_v9 = vsub.f32 1.5, %v3289_v22 }
 0x5f7   : > { %3321 = vst [vmem:[%s5903_s14 + $0x20] sm:$0xff] %v3313_v1 }
 0x5f8   : > { %3322 = vst [vmem:[%s5903_s14 + $0x28] sm:$0xff] %v3314_v11  ;;  %v3291_v18 = vmul.f32 %v4975_v14, %v3290_v9 }
 0x5fa   : > { %v3295_v13 = vsel %vm3294_vm9, %v4975_v14, %v3291_v18 }
 0x5fb   : > { %v3302_v17 = vmul.f32 %v3295_v13, %v5886_v24  ;;  %v3303_v38 = vmul.f32 %v3295_v13, %v5889_v21 }
 0x5fd   : > { %v3315_v6 = vmul.f32 %v3305_v45, %v3302_v17  ;;  %v3316_v4 = vmul.f32 %v3306_v47, %v3303_v38 }
 0x5ff   : > { %3323 = vst [vmem:[%s5903_s14 + $0x30] sm:$0xff] %v3315_v6 }
 0x600   : > { %3324 = vst [vmem:[%s5903_s14 + $0x38] sm:$0xff] %v3316_v4 }
 0x601   : > { %5251 = shalt.err (!%p5248_p9)
}
 0x602   : > { %s5322_s16 = smov 256   ;;  %s5323_s14 = smov 16  }
 0x603   : > { %4830 = dma.vmem_to_hbm [thread:$0]  (%p5489_p13), %s3340_s5, 1024, %s3342_s24, %s3326_s21, %s5322_s16, %s5322_s16, %s5323_s14  }
 0x604 PF: > { %s3356_s28 = sand.u32 1, %s5294_s17   ;;  %p5988_p10 = scmp.ge.s32.totalorder %s5306_s20, 2 }
 0x605   : > { %s3357_s23 = scalar_lea.sflag [#allocation4], %s3356_s28 }
 0x606   : > { %p4859_p11 = pnand %p5988_p10, %p5494_p4 }
 0x608   : > { %p4860_p0 = pneg %p4859_p11 }
 0x60a   : > { %5289 = dma.done.wait (%p4860_p0), %s3357_s23, 1024  }
 0x60b   : > { %5291 = vsyncadd (%p4860_p0), %s3357_s23, 4294966272  ;;  %p28_p2 = scmp.ge.s32.totalorder %s5469_s11, 4   ;;  %s5989_s17 = smov %s5298_s18 }
 0x60c   : > { %s5990_s18 = smov %s5302_s19  ;;  %s5991_s19 = smov %s5481_s22 }
 0x60d   : > { %s5992_s20 = smov %s5469_s11  ;;  %30 = sbr.rel (!%p28_p2) target bundleno = 15 (0xf), region = 137 }
 0x612   :  { %3363 = vsyncpa [#allocation3], 1 }
 0x613   :  { %3365 = vsyncpa [#allocation3 + $0x1], 1 }
 0x614   :  { %3366 = vsyncpa [#allocation6], 1 }
 0x615   :  { %3367 = vsyncpa [#allocation9], 1 }
 0x616   :  { %3368 = vsyncpa [#allocation12], 1 }
 0x617   :  { %3369 = vsyncpa [#allocation15], 1 }
 0x618   :  { %3370 = vsyncpa [#allocation4], 1 }
 0x619   :  { %3372 = vsyncpa [#allocation4 + $0x1], 1 }

// kernel: tpu_custom_call.1
= control target key start
LH: loop header
LB: loop body
LE: loop exit
PB: predicated region body
PF: predicated region fallthrough
CT: control target
= control target key end

     0   :  { %s5953_s0 = inlined_call_operand.hbm [shape: f32[4,16,256], index: 0, kind: input, shape index: {}]   ;;  %s5954_s1 = inlined_call_operand.hbm [shape: bf16[256,768], index: 1, kind: input, shape index: {}]   ;;  %s5955_s2 = inlined_call_operand.hbm [shape: f32[1,768], index: 2, kind: input, shape index: {}]   ;;  %s5956_s3 = inlined_call_operand.hbm [shape: bf16[256,256], index: 3, kind: input, shape index: {}]   ;;  %s5957_s4 = inlined_call_operand.vmem [shape: f32[1,256], index: 4, kind: input, shape index: {}]   ;;  %s5958_s5 = inlined_call_operand.hbm [shape: f32[1,256], index: 5, kind: input, shape index: {}]   ;;  %s5959_s6 = inlined_call_operand.hbm [shape: bf16[256,512], index: 6, kind: input, shape index: {}]   ;;  %s5960_s7 = inlined_call_operand.vmem [shape: f32[1,512], index: 7, kind: input, shape index: {}]   ;;  %s5961_s8 = inlined_call_operand.hbm [shape: bf16[512,256], index: 8, kind: input, shape index: {}]   ;;  %s5962_s9 = inlined_call_operand.vmem [shape: f32[1,256], index: 9, kind: input, shape index: {}]   ;;  %s5963_s10 = inlined_call_operand.hbm [shape: f32[1,256], index: 10, kind: input, shape index: {}]   ;;  %s5964_s11 = inlined_call_operand.hbm [shape: f32[4,16,256], index: 11, kind: output, shape index: {}]  }
   0x1   :  { %5969 = sst [smem:[#allocation23_spill]] %s5954_s1 }
   0x2   :  { %5970 = sst [smem:[#allocation24_spill]] %s5955_s2 }
   0x3   :  { %5971 = sst [smem:[#allocation25_spill]] %s5956_s3 }
   0x4   :  { %5972 = sst [smem:[#allocation26_spill]] %s5958_s5 }
   0x5   :  { %5973 = sst [smem:[#allocation27_spill]] %s5964_s11 }
   0x6   :  { %16 = vsyncpa [#allocation3], 0 }
   0x7   :  { %18 = vsyncpa [#allocation3 + $0x1], 0 }
   0x8   :  { %19 = vsyncpa [#allocation6], 0 }
   0x9   :  { %20 = vsyncpa [#allocation9], 0 }
   0xa   :  { %21 = vsyncpa [#allocation12], 0 }
   0xb   :  { %22 = vsyncpa [#allocation15], 0 }
   0xc   :  { %23 = vsyncpa [#allocation4], 0 }
   0xd   :  { %25 = vsyncpa [#allocation4 + $0x1], 0  ;;  %s5384_s17 = smov 0   ;;  %s5386_s18 = smov 0  }
   0xe   :  { %s5388_s19 = smov 0   ;;  %s5390_s20 = smov 0  }
   0xf LB: > { %s5974_s1 = sld [smem:[#allocation23_spill]]  ;;  %s5408_s24 = sadd.s32 4294967295, %s5306_s20   ;;  %s5306_s20 = sphi %s5390_s20, %s5992_s20   ;;  %s5302_s19 = sphi %s5388_s19, %s5991_s19   ;;  %s5298_s18 = sphi %s5386_s18, %s5990_s18   ;;  %s5294_s17 = sphi %s5384_s17, %s5989_s17  }
  0x10   : > { %p3483_p0 = scmp.ge.s32.totalorder %s5306_s20, 1  ;;  %p52_p1 = scmp.eq.s32.totalorder %s5408_s24, 0 }
  0x11   : > { %p298_p2 = scmp.lt.s32.totalorder %s5306_s20, 3  ;;  %s5308_s26 = smov [#allocation5]  }
  0x12   : > { %s311_s27 = sshll.u32 %s5308_s26, 4  ;;  %s5976_s3 = sld [smem:[#allocation25_spill]]  ;;  %s312_s27 = int_to_ptr.vmem [resolvable:$true] %s311_s27 }
  0x13   : > { %p5413_p3 = pnand %p3483_p0, %p298_p2  ;;  %s5309_s13 = smov [#allocation8]  }
  0x14   : > { %s337_s14 = sshll.u32 %s5309_s13, 4  ;;  %s5310_s15 = smov 384   ;;  %s338_s14 = int_to_ptr.vmem [resolvable:$true] %s337_s14 }
  0x15   : > { %s309_s23 = sshll.u32 %s5974_s1, 4  ;;  %p4832_p4 = pneg %p5413_p3  ;;  %s310_s23 = int_to_ptr.hbm [resolvable:$true] %s309_s23 }
  0x16   : > { %s5311_s16 = smov 24   ;;  %s5966_s21 = smov 128  }
  0x17   : > { %p5425_p6 = pnand %p4832_p4, %p52_p1  ;;  %s5313_s22 = smov 8  }
  0x18   : > { %s335_s30 = sshll.u32 %s5976_s3, 4  ;;  %s364_s29 = sshll.u32 %s5959_s6, 4  ;;  %s336_s30 = int_to_ptr.hbm [resolvable:$true] %s335_s30  ;;  %s365_s29 = int_to_ptr.hbm [resolvable:$true] %s364_s29 }
  0x19   : > { %4835 = dma.hbm_to_vmem [thread:$0]  (!%p5425_p6), %s310_s23, 12288, %s312_s27, [#allocation6], %s5310_s15, %s5310_s15, %s5311_s16  }
  0x1a   : > { %4841 = dma.hbm_to_vmem [thread:$0]  (!%p5425_p6), %s336_s30, 4096, %s338_s14, [#allocation9], %s5966_s21, %s5966_s21, %s5313_s22  }
  0x1b   : > { %s5314_s13 = smov [#allocation11]   ;;  %s5978_s2 = sld [smem:[#allocation24_spill]] }
  0x1c   : > { %s366_s1 = sshll.u32 %s5314_s13, 4  ;;  %s5967_s27 = smov 256   ;;  %s367_s1 = int_to_ptr.vmem [resolvable:$true] %s366_s1 }
  0x1d   : > { %s5968_s15 = smov 16   ;;  %s5317_s30 = smov [#allocation7]  }
  0x1e   : > { %4847 = dma.hbm_to_vmem [thread:$0]  (!%p5425_p6), %s365_s29, 8192, %s367_s1, [#allocation12], %s5967_s27, %s5967_s27, %s5968_s15  }
  0x1f   : > { %s326_s14 = sshll.u32 %s5317_s30, 4  ;;  %s5979_s5 = sld [smem:[#allocation26_spill]]  ;;  %s327_s14 = int_to_ptr.vmem [resolvable:$true] %s326_s14 }
  0x20   : > { %s381_s13 = sshll.u32 %s5961_s8, 4  ;;  %s5318_s21 = smov [#allocation10]   ;;  %s382_s13 = int_to_ptr.hbm [resolvable:$true] %s381_s13 }
  0x21   : > { %s324_s23 = sshll.u32 %s5978_s2, 4  ;;  %s355_s1 = sshll.u32 %s5318_s21, 4  ;;  %s325_s23 = int_to_ptr.hbm [resolvable:$true] %s324_s23  ;;  %s356_s1 = int_to_ptr.vmem [resolvable:$true] %s355_s1 }
  0x22   : > { %4838 = dma.hbm_to_vmem [thread:$0]  (!%p5425_p6), %s325_s23, 96, %s327_s14, [#allocation6]  }
  0x23   : > { %s5319_s29 = smov [#allocation13]   ;;  %s399_s16 = sshll.u32 %s5963_s10, 4  ;;  %s400_s16 = int_to_ptr.hbm [resolvable:$true] %s399_s16 }
  0x24   : > { %s383_s23 = sshll.u32 %s5319_s29, 4  ;;  %s5980_s21 = smov 128   ;;  %s384_s23 = int_to_ptr.vmem [resolvable:$true] %s383_s23 }
  0x25   : > { %s353_s28 = sshll.u32 %s5979_s5, 4  ;;  %s5320_s26 = smov [#allocation14]   ;;  %s354_s28 = int_to_ptr.hbm [resolvable:$true] %s353_s28 }
  0x26   : > { %4844 = dma.hbm_to_vmem [thread:$0]  (!%p5425_p6), %s354_s28, 32, %s356_s1, [#allocation9]  }
  0x27   : > { %4850 = dma.hbm_to_vmem [thread:$0]  (!%p5425_p6), %s382_s13, 8192, %s384_s23, [#allocation12], %s5980_s21, %s5980_s21, %s5313_s22  }
  0x28   : > { %s401_s28 = sshll.u32 %s5320_s26, 4  ;;  %s3482_s3 = sadd.s32 4294967294, %s5306_s20   ;;  %s402_s28 = int_to_ptr.vmem [resolvable:$true] %s401_s28 }
  0x29   : > { %4853 = dma.hbm_to_vmem [thread:$0]  (!%p5425_p6), %s400_s16, 32, %s402_s28, [#allocation15]  }
  0x2a   : > { %s5469_s11 = sadd.s32 1, %s5306_s20   ;;  %s38_s1 = sadd.s32 1, %s5302_s19 }
  0x2b   : > { %s35_s29 = ssub.s32 %s5306_s20, %s5469_s11  ;;  %p45_p7 = scmp.ne.s32.totalorder %s5302_s19, %s5298_s18 }
  0x2c   : > { %p36_p8 = scmp.eq.s32.totalorder %s35_s29, 0  ;;  %p46_p9 = scmp.eq.s32.totalorder %s5306_s20, 0 }
  0x2d   : > { %p51_p10 = scmp.ne.s32.totalorder %s5298_s18, %s5294_s17  ;;  %p285_p11 = scmp.eq.s32.totalorder %s5408_s24, 1 }
  0x2e   : > { %s5481_s22 = scalar_select %p36_p8, %s5302_s19, %s38_s1  }
  0x2f   : > { %p5485_p12 = por %p52_p1, %p51_p10  ;;  %p5489_p13 = por %p285_p11, %p45_p7 }
  0x30   : > { %p291_p0 = scmp.eq.s32.totalorder %s3482_s3, 1  ;;  %p47_p2 = por %p46_p9, %p45_p7 }
  0x31   : > { %s412_s23 = sand.u32 1, %s5302_s19   ;;  %p4869_p6 = scmp.lt.s32.totalorder %s5306_s20, 2 }
  0x32   : > { %p5494_p4 = por %p291_p0, %p51_p10  ;;  %s3492_s14 = sshll.u32 %s412_s23, 6 }
  0x33   : > { %s4541_s16 = sshll.u32 %s5306_s20, 6  ;;  %s416_s29 = scalar_lea.vmem [#allocation2], %s3492_s14 }
  0x34   : > { %s422_s28 = scalar_lea.hbm %s5953_s0, %s4541_s16  ;;  %s425_s27 = sshll.u32 %s416_s29, 4  ;;  %s426_s27 = int_to_ptr.vmem [resolvable:$true] %s425_s27 }
  0x35   : > { %s423_s1 = sshll.u32 %s422_s28, 4  ;;  %p5503_p8 = pnand %p4869_p6, %p47_p2  ;;  %s424_s1 = int_to_ptr.hbm [resolvable:$true] %s423_s1 }
  0x36   : > { %s413_s15 = scalar_lea.sflag [#allocation3], %s412_s23  ;;  %s5194_s2 = sshra.s32 %s424_s1, 4  ;;  %s5195_s2 = int_to_ptr.hbm [resolvable:$true] %s5194_s2 }
  0x37   : > { %s5196_s5 = scalar_lea.hbm %s5195_s2, 64  ;;  %p5198_p9 = pneg %p5503_p8 }
  0x38   : > { %p5197_p7 = scmp.ne.s32.totalorder %s5195_s2, %s5196_s5  ;;  %s5201_s14 = scalar_lea.hbm %s5953_s0, 128 }
  0x39   : > { %p5202_p0 = scmp.lt.s32.totalorder %s5195_s2, %s5953_s0  ;;  %p5203_p2 = scmp.lt.s32.totalorder %s5201_s14, %s5196_s5 }
  0x3a   : > { %p5199_p10 = pnand %p5198_p9, %p5197_p7 }
  0x3b   : > { %p5204_p6 = por %p5203_p2, %p5202_p0 }
  0x3c   : > { %p5200_p11 = pneg %p5199_p10 }
  0x3e   : > { %p5205_p5 = pnand %p5204_p6, %p5200_p11 }
  0x40   : > { %5208 = shalt.err (!%p5205_p5)
}
  0x41   : > { %s5985_s23 = smov 16   ;;  %s5986_s29 = smov 256  }
  0x42   : > { %4857 = dma.hbm_to_vmem [thread:$0]  (!%p5503_p8), %s424_s1, 1024, %s426_s27, %s413_s15, %s5986_s29, %s5986_s29, %s5985_s23  }
  0x43   : > { %437 = sbr.rel (%p5413_p3) target bundleno = 1540 (0x604), region = 64  ;;  %s5523_s16 = sand.u32 (!%p5413_p3), 1, %s5298_s18  }
  0x44   : > { %s3497_s2 = sshll.u32 (!%p5413_p3), %s5523_s16, 6  ;;  %s440_s5 = scalar_lea.sflag (!%p5413_p3), [#allocation3], %s5523_s16 }
  0x45   : > { %s5529_s21 = scalar_lea.vmem (!%p5413_p3), [#allocation2], %s3497_s2 }
  0x48   : > { %5269 = dma.done.wait (%p5485_p12), %s440_s5, 1024  }
  0x49   : > { %5271 = vsyncadd (%p5485_p12), %s440_s5, 4294966272 }
  0x4a   : > { %5273 = dma.done.wait (%p52_p1), [#allocation6], 12384  }
  0x4b   : > { %5275 = vsyncadd (%p52_p1), [#allocation6], 4294954912 }
  0x4c   : > { %5277 = dma.done.wait (%p52_p1), [#allocation9], 4128  }
  0x4d   : > { %5279 = vsyncadd (%p52_p1), [#allocation9], 4294963168 }
  0x4e   : > { %5281 = dma.done.wait (%p52_p1), [#allocation12], 16384  }
  0x4f   : > { %5283 = vsyncadd (%p52_p1), [#allocation12], 4294950912 }
  0x50   : > { %5285 = dma.done.wait (%p52_p1), [#allocation15], 32  }
  0x51   : > { %5287 = vsyncadd (%p52_p1), [#allocation15], 4294967264  ;;  %v3676_v0 = vld [vmem:[#allocation5 + $0x150] sm:$0xf]  ;;  %v4587_v1 = vld [vmem:[#allocation5 + $0x164] sm:$0xf0] }
  0x52   : > { %v4584_v2 = vld [vmem:[#allocation5 + $0x154] sm:$0xf]  ;;  %v3677_v3 = vor.u32 %v4587_v1, %v3676_v0  ;;  %v3678_v4 = vld [vmem:[#allocation5 + $0x168] sm:$0xf0]  ;;  %v3868_v9 = vld [vmem:[#allocation5 + $0x2d0] sm:$0xf] }
  0x53   : > { %v4632_v5 = vld [vmem:[#allocation5 + $0x2d4] sm:$0xf]  ;;  %v3870_v6 = vld [vmem:[#allocation5 + $0x2e8] sm:$0xf0]  ;;  %v3681_v7 = vor.u32 %v4584_v2, %v3678_v4  ;;  %v4635_v10 = vld [vmem:[#allocation5 + $0x2e4] sm:$0xf0] }
  0x54   : > { %v3873_v8 = vor.u32 %v4632_v5, %v3870_v6  ;;  %v3652_v11 = vld [vmem:[#allocation5 + $0x120] sm:$0xf]  ;;  %1123 = vmatpush.bf16.msra.mxu0 %v3677_v3  ;;  %v3869_v12 = vor.u32 %v4635_v10, %v3868_v9  ;;  %v4581_v13 = vld [vmem:[#allocation5 + $0x134] sm:$0xf0]  ;;  %v4578_v14 = vld [vmem:[#allocation5 + $0x124] sm:$0xf] }
  0x55   : > { %v3654_v15 = vld [vmem:[#allocation5 + $0x138] sm:$0xf0]  ;;  %1161 = vmatpush.bf16.msra.mxu2 %v3681_v7  ;;  %v3653_v16 = vor.u32 %v4581_v13, %v3652_v11  ;;  %v4626_v18 = vld [vmem:[#allocation5 + $0x2a4] sm:$0xf]  ;;  %v3844_v20 = vld [vmem:[#allocation5 + $0x2a0] sm:$0xf] }
  0x56   : > { %1180 = vmatpush.bf16.msra.mxu3 %v3873_v8  ;;  %v3657_v17 = vor.u32 %v4578_v14, %v3654_v15  ;;  %v3846_v19 = vld [vmem:[#allocation5 + $0x2b8] sm:$0xf0]  ;;  %1142 = vmatpush.bf16.msra.mxu1 %v3869_v12  ;;  %v4629_v22 = vld [vmem:[#allocation5 + $0x2b4] sm:$0xf0]  ;;  %v3628_v23 = vld [vmem:[#allocation5 + $0xf0] sm:$0xf] }
  0x57   : > { %v3849_v21 = vor.u32 %v4626_v18, %v3846_v19  ;;  %v4575_v24 = vld [vmem:[#allocation5 + $0x104] sm:$0xf0]  ;;  %v3845_v25 = vor.u32 %v4629_v22, %v3844_v20  ;;  %v4572_v26 = vld [vmem:[#allocation5 + $0xf4] sm:$0xf]  ;;  %v3630_v27 = vld [vmem:[#allocation5 + $0x108] sm:$0xf0] }
  0x58   : > { %v4620_v28 = vld [vmem:[#allocation5 + $0x274] sm:$0xf]  ;;  %1124 = vmatpush.bf16.msra.mxu0 %v3653_v16  ;;  %v3629_v29 = vor.u32 %v4575_v24, %v3628_v23  ;;  %v3822_v30 = vld [vmem:[#allocation5 + $0x288] sm:$0xf0]  ;;  %v3820_v31 = vld [vmem:[#allocation5 + $0x270] sm:$0xf]  ;;  %v3633_v33 = vor.u32 %v4572_v26, %v3630_v27 }
  0x59   : > { %v4623_v32 = vld [vmem:[#allocation5 + $0x284] sm:$0xf0]  ;;  %1162 = vmatpush.bf16.msra.mxu2 %v3657_v17  ;;  %v3825_v34 = vor.u32 %v4620_v28, %v3822_v30  ;;  %v3604_v35 = vld [vmem:[#allocation5 + $0xc0] sm:$0xf]  ;;  %v4569_v36 = vld [vmem:[#allocation5 + $0xd4] sm:$0xf0] }
  0x5a   : > { %1181 = vmatpush.bf16.msra.mxu3 %v3849_v21  ;;  %v4566_v37 = vld [vmem:[#allocation5 + $0xc4] sm:$0xf]  ;;  %1143 = vmatpush.bf16.msra.mxu1 %v3845_v25  ;;  %v3821_v38 = vor.u32 %v4623_v32, %v3820_v31  ;;  %v3606_v39 = vld [vmem:[#allocation5 + $0xd8] sm:$0xf0]  ;;  %v3796_v42 = vld [vmem:[#allocation5 + $0x240] sm:$0xf]  ;;  %v3605_v44 = vor.u32 %v4569_v36, %v3604_v35 }
  0x5b   : > { %v4614_v40 = vld [vmem:[#allocation5 + $0x244] sm:$0xf]  ;;  %v3798_v41 = vld [vmem:[#allocation5 + $0x258] sm:$0xf0]  ;;  %v4617_v43 = vld [vmem:[#allocation5 + $0x254] sm:$0xf0]  ;;  %v3609_v45 = vor.u32 %v4566_v37, %v3606_v39 }
  0x5c   : > { %1125 = vmatpush.bf16.msra.mxu0 %v3629_v29  ;;  %v3801_v46 = vor.u32 %v4614_v40, %v3798_v41  ;;  %v3580_v47 = vld [vmem:[#allocation5 + $0x90] sm:$0xf]  ;;  %v4563_v48 = vld [vmem:[#allocation5 + $0xa4] sm:$0xf0]  ;;  %v4560_v49 = vld [vmem:[#allocation5 + $0x94] sm:$0xf]  ;;  %v3797_v50 = vor.u32 %v4617_v43, %v3796_v42 }
  0x5d   : > { %1163 = vmatpush.bf16.msra.mxu2 %v3633_v33  ;;  %v3582_v51 = vld [vmem:[#allocation5 + $0xa8] sm:$0xf0]  ;;  %v4608_v52 = vld [vmem:[#allocation5 + $0x214] sm:$0xf]  ;;  %v3772_v54 = vld [vmem:[#allocation5 + $0x210] sm:$0xf]  ;;  %v3581_v56 = vor.u32 %v4563_v48, %v3580_v47 }
  0x5e   : > { %1182 = vmatpush.bf16.msra.mxu3 %v3825_v34  ;;  %1144 = vmatpush.bf16.msra.mxu1 %v3821_v38  ;;  %v3774_v53 = vld [vmem:[#allocation5 + $0x228] sm:$0xf0]  ;;  %v4611_v55 = vld [vmem:[#allocation5 + $0x224] sm:$0xf0]  ;;  %v3585_v57 = vor.u32 %v4560_v49, %v3582_v51  ;;  %v3556_v59 = vld [vmem:[#allocation5 + $0x60] sm:$0xf] }
  0x5f   : > { %v3777_v58 = vor.u32 %v4608_v52, %v3774_v53  ;;  %v4557_v60 = vld [vmem:[#allocation5 + $0x74] sm:$0xf0]  ;;  %v4554_v61 = vld [vmem:[#allocation5 + $0x64] sm:$0xf]  ;;  %v3773_v62 = vor.u32 %v4611_v55, %v3772_v54  ;;  %v3558_v63 = vld [vmem:[#allocation5 + $0x78] sm:$0xf0] }
  0x60   : > { %1126 = vmatpush.bf16.msra.mxu0 %v3605_v44  ;;  %v4602_v0 = vld [vmem:[#allocation5 + $0x1e4] sm:$0xf]  ;;  %v3750_v1 = vld [vmem:[#allocation5 + $0x1f8] sm:$0xf0]  ;;  %v3748_v2 = vld [vmem:[#allocation5 + $0x1e0] sm:$0xf]  ;;  %v3557_v4 = vor.u32 %v4557_v60, %v3556_v59  ;;  %v3561_v5 = vor.u32 %v4554_v61, %v3558_v63 }
  0x61   : > { %1164 = vmatpush.bf16.msra.mxu2 %v3609_v45  ;;  %v4605_v3 = vld [vmem:[#allocation5 + $0x1f4] sm:$0xf0]  ;;  %v3753_v6 = vor.u32 %v4602_v0, %v3750_v1  ;;  %v3532_v7 = vld [vmem:[#allocation5 + $0x30] sm:$0xf]  ;;  %v4551_v8 = vld [vmem:[#allocation5 + $0x44] sm:$0xf0] }
  0x62   : > { %1183 = vmatpush.bf16.msra.mxu3 %v3801_v46  ;;  %1145 = vmatpush.bf16.msra.mxu1 %v3797_v50  ;;  %v4548_v9 = vld [vmem:[#allocation5 + $0x34] sm:$0xf]  ;;  %v3749_v10 = vor.u32 %v4605_v3, %v3748_v2  ;;  %v3534_v11 = vld [vmem:[#allocation5 + $0x48] sm:$0xf0]  ;;  %v3724_v14 = vld [vmem:[#allocation5 + $0x1b0] sm:$0xf]  ;;  %v3533_v16 = vor.u32 %v4551_v8, %v3532_v7 }
  0x63   : > { %v4596_v12 = vld [vmem:[#allocation5 + $0x1b4] sm:$0xf]  ;;  %v3726_v13 = vld [vmem:[#allocation5 + $0x1c8] sm:$0xf0]  ;;  %v4599_v15 = vld [vmem:[#allocation5 + $0x1c4] sm:$0xf0]  ;;  %v3537_v19 = vor.u32 %v4548_v9, %v3534_v11 }
  0x64   : > { %1127 = vmatpush.bf16.msra.mxu0 %v3581_v56  ;;  %v3508_v17 = vld [vmem:[#allocation5] sm:$0xf]  ;;  %v4545_v18 = vld [vmem:[#allocation5 + $0x14] sm:$0xf0]  ;;  %v3729_v20 = vor.u32 %v4596_v12, %v3726_v13  ;;  %v4542_v21 = vld [vmem:[#allocation5 + $0x4] sm:$0xf]  ;;  %v3725_v24 = vor.u32 %v4599_v15, %v3724_v14 }
  0x65   : > { %1165 = vmatpush.bf16.msra.mxu2 %v3585_v57  ;;  %v3510_v22 = vld [vmem:[#allocation5 + $0x18] sm:$0xf0]  ;;  %v4590_v23 = vld [vmem:[#allocation5 + $0x184] sm:$0xf]  ;;  %v3700_v26 = vld [vmem:[#allocation5 + $0x180] sm:$0xf]  ;;  %v3509_v31 = vor.u32 %v4545_v18, %v3508_v17 }
  0x66   : > { %1184 = vmatpush.bf16.msra.mxu3 %v3777_v58  ;;  %1146 = vmatpush.bf16.msra.mxu1 %v3773_v62  ;;  %v3702_v25 = vld [vmem:[#allocation5 + $0x198] sm:$0xf0]  ;;  %v4593_v27 = vld [vmem:[#allocation5 + $0x194] sm:$0xf0]  ;;  %v521_v28 = vld [vmem:[%s5529_s21] sm:$0xff]  ;;  %v3513_v35 = vor.u32 %v4542_v21, %v3510_v22  ;;  %vm1479_vm0 = vcmask 130048  }
  0x67   : > { %v3684_v29 = vld [vmem:[#allocation5 + $0x158] sm:$0xf]  ;;  %v4588_v30 = vld [vmem:[#allocation5 + $0x16c] sm:$0xf0]  ;;  %v4585_v33 = vld [vmem:[#allocation5 + $0x15c] sm:$0xf]  ;;  %v3705_v36 = vor.u32 %v4590_v23, %v3702_v25  ;;  %v3701_v39 = vor.u32 %v4593_v27, %v3700_v26 }
  0x68   : > { %1128 = vmatpush.bf16.msra.mxu0 %v3557_v4  ;;  %v523_v32 = vld [vmem:[%s5529_s21 + $0x10] sm:$0xff]  ;;  %v522_v37 = vld [vmem:[%s5529_s21 + $0x8] sm:$0xff]  ;;  %v524_v38 = vld [vmem:[%s5529_s21 + $0x18] sm:$0xff]  ;;  %v3685_v40 = vor.u32 %v4588_v30, %v3684_v29  ;;  %s5903_s14 = scalar_lea.vmem [#allocation16], %s3497_s2  ;;  %s4799_s26 = sshll.u32 %s5408_s24, 6 }
  0x69   : > { %1166 = vmatpush.bf16.msra.mxu2 %v3561_v5  ;;  %v3686_v34 = vld [vmem:[#allocation5 + $0x170] sm:$0xf0]  ;;  %v4633_v41 = vld [vmem:[#allocation5 + $0x2dc] sm:$0xf]  ;;  %v3876_v43 = vld [vmem:[#allocation5 + $0x2d8] sm:$0xf]  ;;  %v5555_v44 = vpack.c.bf16 %v523_v32, %v521_v28  ;;  %v5557_v49 = vpack.c.bf16 %v524_v38, %v522_v37 }
  0x6a   : > { %1185 = vmatpush.bf16.msra.mxu3 %v3753_v6  ;;  %1147 = vmatpush.bf16.msra.mxu1 %v3749_v10  ;;  %v3878_v42 = vld [vmem:[#allocation5 + $0x2f0] sm:$0xf0]  ;;  %v3689_v45 = vor.u32 %v4585_v33, %v3686_v34  ;;  %v4636_v46 = vld [vmem:[#allocation5 + $0x2ec] sm:$0xf0]  ;;  %v3660_v47 = vld [vmem:[#allocation5 + $0x128] sm:$0xf] }
  0x6b   : > { %v4582_v48 = vld [vmem:[#allocation5 + $0x13c] sm:$0xf0]  ;;  %v4579_v50 = vld [vmem:[#allocation5 + $0x12c] sm:$0xf]  ;;  %v3662_v51 = vld [vmem:[#allocation5 + $0x140] sm:$0xf0]  ;;  %v3881_v52 = vor.u32 %v4633_v41, %v3878_v42  ;;  %v3877_v53 = vor.u32 %v4636_v46, %v3876_v43 }
  0x6c   : > { %1129 = vmatpush.bf16.msra.mxu0 %v3533_v16  ;;  %v3661_v54 = vor.u32 %v4582_v48, %v3660_v47  ;;  %v4627_v55 = vld [vmem:[#allocation5 + $0x2ac] sm:$0xf]  ;;  %v3854_v56 = vld [vmem:[#allocation5 + $0x2c0] sm:$0xf0]  ;;  %v3852_v57 = vld [vmem:[#allocation5 + $0x2a8] sm:$0xf]  ;;  %v3665_v58 = vor.u32 %v4579_v50, %v3662_v51 }
  0x6d   : > { %1167 = vmatpush.bf16.msra.mxu2 %v3537_v19  ;;  %v4630_v59 = vld [vmem:[#allocation5 + $0x2bc] sm:$0xf0]  ;;  %v3636_v60 = vld [vmem:[#allocation5 + $0xf8] sm:$0xf]  ;;  %v4576_v61 = vld [vmem:[#allocation5 + $0x10c] sm:$0xf0]  ;;  %v3857_v0 = vor.u32 %v4627_v55, %v3854_v56 }
  0x6e   : > { %1186 = vmatpush.bf16.msra.mxu3 %v3729_v20  ;;  %1148 = vmatpush.bf16.msra.mxu1 %v3725_v24  ;;  %v4573_v62 = vld [vmem:[#allocation5 + $0xfc] sm:$0xf]  ;;  %v3638_v63 = vld [vmem:[#allocation5 + $0x110] sm:$0xf0]  ;;  %v3853_v1 = vor.u32 %v4630_v59, %v3852_v57  ;;  %v3637_v2 = vor.u32 %v4576_v61, %v3636_v60  ;;  %v3828_v5 = vld [vmem:[#allocation5 + $0x278] sm:$0xf] }
  0x6f   : > { %v4621_v3 = vld [vmem:[#allocation5 + $0x27c] sm:$0xf]  ;;  %v3830_v4 = vld [vmem:[#allocation5 + $0x290] sm:$0xf0]  ;;  %v3641_v6 = vor.u32 %v4573_v62, %v3638_v63  ;;  %v4624_v7 = vld [vmem:[#allocation5 + $0x28c] sm:$0xf0] }
  0x70   : > { %1130 = vmatpush.bf16.msra.mxu0 %v3509_v31  ;;  %v3612_v8 = vld [vmem:[#allocation5 + $0xc8] sm:$0xf]  ;;  %v4570_v9 = vld [vmem:[#allocation5 + $0xdc] sm:$0xf0]  ;;  %v4567_v10 = vld [vmem:[#allocation5 + $0xcc] sm:$0xf]  ;;  %v3833_v12 = vor.u32 %v4621_v3, %v3830_v4  ;;  %v3829_v14 = vor.u32 %v4624_v7, %v3828_v5 }
  0x71   : > { %1168 = vmatpush.bf16.msra.mxu2 %v3513_v35  ;;  %v3614_v11 = vld [vmem:[#allocation5 + $0xe0] sm:$0xf0]  ;;  %v4615_v13 = vld [vmem:[#allocation5 + $0x24c] sm:$0xf]  ;;  %v3613_v15 = vor.u32 %v4570_v9, %v3612_v8  ;;  %v3804_v17 = vld [vmem:[#allocation5 + $0x248] sm:$0xf] }
  0x72   : > { %1187 = vmatpush.bf16.msra.mxu3 %v3705_v36  ;;  %1149 = vmatpush.bf16.msra.mxu1 %v3701_v39  ;;  %v3806_v16 = vld [vmem:[#allocation5 + $0x260] sm:$0xf0]  ;;  %v4618_v18 = vld [vmem:[#allocation5 + $0x25c] sm:$0xf0]  ;;  %v3617_v19 = vor.u32 %v4567_v10, %v3614_v11  ;;  %v3588_v21 = vld [vmem:[#allocation5 + $0x98] sm:$0xf] }
  0x73   : > { %1131 = vmatmul.bf16.vlgmr.msra.gmra.mxu0 %v5555_v44  ;;  %v525_v20 = vld [vmem:[%s5529_s21 + $0x20] sm:$0xff]  ;;  %v4564_v22 = vld [vmem:[#allocation5 + $0xac] sm:$0xf0]  ;;  %v4561_v24 = vld [vmem:[#allocation5 + $0x9c] sm:$0xf]  ;;  %v3809_v26 = vor.u32 %v4615_v13, %v3806_v16  ;;  %v3805_v29 = vor.u32 %v4618_v18, %v3804_v17  ;;  %s5987_s29 = sld [smem:[#allocation27_spill]] }
  0x74   : > { %1199 = vmatpush.bf16.msrb.mxu0 %v3685_v40  ;;  %1169 = vmatmul.bf16.vlgmr.msra.gmra.mxu2 %v5555_v44  ;;  %v527_v23 = vld [vmem:[%s5529_s21 + $0x30] sm:$0xff]  ;;  %v526_v27 = vld [vmem:[%s5529_s21 + $0x28] sm:$0xff]  ;;  %v528_v28 = vld [vmem:[%s5529_s21 + $0x38] sm:$0xff]  ;;  %v3589_v30 = vor.u32 %v4564_v22, %v3588_v21  ;;  %s3339_s5 = sshll.u32 %s5903_s14, 4  ;;  %s3340_s5 = int_to_ptr.vmem [resolvable:$true] %s3339_s5 }
  0x75   : > { %1237 = vmatpush.bf16.msrb.mxu2 %v3689_v45  ;;  %1188 = vmatmul.bf16.vlgmr.msra.gmra.mxu3 %v5557_v49  ;;  %v3590_v25 = vld [vmem:[#allocation5 + $0xb0] sm:$0xf0]  ;;  %v4609_v31 = vld [vmem:[#allocation5 + $0x21c] sm:$0xf]  ;;  %v3780_v33 = vld [vmem:[#allocation5 + $0x218] sm:$0xf]  ;;  %v5567_v34 = vpack.c.bf16 %v527_v23, %v525_v20  ;;  %v5569_v39 = vpack.c.bf16 %v528_v28, %v526_v27 }
  0x76   : > { %1256 = vmatpush.bf16.msrb.mxu3 %v3881_v52  ;;  %1150 = vmatmul.bf16.vlgmr.msra.gmra.mxu1 %v5557_v49  ;;  %v3782_v32 = vld [vmem:[#allocation5 + $0x230] sm:$0xf0]  ;;  %v3593_v35 = vor.u32 %v4561_v24, %v3590_v25  ;;  %v4612_v36 = vld [vmem:[#allocation5 + $0x22c] sm:$0xf0]  ;;  %v3564_v37 = vld [vmem:[#allocation5 + $0x68] sm:$0xf] }
  0x77   : > { %1218 = vmatpush.bf16.msrb.mxu1 %v3877_v53  ;;  %v4558_v38 = vld [vmem:[#allocation5 + $0x7c] sm:$0xf0]  ;;  %v4555_v40 = vld [vmem:[#allocation5 + $0x6c] sm:$0xf]  ;;  %v3566_v41 = vld [vmem:[#allocation5 + $0x80] sm:$0xf0]  ;;  %v3785_v42 = vor.u32 %v4609_v31, %v3782_v32  ;;  %v3781_v43 = vor.u32 %v4612_v36, %v3780_v33 }
  0x78   : > { %1200 = vmatpush.bf16.msrb.mxu0 %v3661_v54  ;;  %v3565_v45 = vor.u32 %v4558_v38, %v3564_v37  ;;  %v4603_v46 = vld [vmem:[#allocation5 + $0x1ec] sm:$0xf]  ;;  %v3758_v47 = vld [vmem:[#allocation5 + $0x200] sm:$0xf0]  ;;  %v3756_v48 = vld [vmem:[#allocation5 + $0x1e8] sm:$0xf]  ;;  %v3569_v50 = vor.u32 %v4555_v40, %v3566_v41 }
  0x79   : > { %1238 = vmatpush.bf16.msrb.mxu2 %v3665_v58  ;;  %v4606_v51 = vld [vmem:[#allocation5 + $0x1fc] sm:$0xf0]  ;;  %v3540_v52 = vld [vmem:[#allocation5 + $0x38] sm:$0xf]  ;;  %v4552_v53 = vld [vmem:[#allocation5 + $0x4c] sm:$0xf0]  ;;  %v3761_v56 = vor.u32 %v4603_v46, %v3758_v47  ;;  %s3338_s2 = scalar_lea.hbm %s5987_s29, %s4799_s26 }
  0x7a   : > { %1257 = vmatpush.bf16.msrb.mxu3 %v3857_v0  ;;  %v4549_v54 = vld [vmem:[#allocation5 + $0x3c] sm:$0xf]  ;;  %v3542_v55 = vld [vmem:[#allocation5 + $0x50] sm:$0xf0]  ;;  %v3757_v58 = vor.u32 %v4606_v51, %v3756_v48  ;;  %v3541_v59 = vor.u32 %v4552_v53, %v3540_v52  ;;  %v3732_v61 = vld [vmem:[#allocation5 + $0x1b8] sm:$0xf] }
  0x7b   : > { %1219 = vmatpush.bf16.msrb.mxu1 %v3853_v1  ;;  %v4597_v57 = vld [vmem:[#allocation5 + $0x1bc] sm:$0xf]  ;;  %v3734_v60 = vld [vmem:[#allocation5 + $0x1d0] sm:$0xf0]  ;;  %v4600_v62 = vld [vmem:[#allocation5 + $0x1cc] sm:$0xf0]  ;;  %v3545_v63 = vor.u32 %v4549_v54, %v3542_v55 }
  0x7c   : > { %1201 = vmatpush.bf16.msrb.mxu0 %v3637_v2  ;;  %v3516_v0 = vld [vmem:[#allocation5 + $0x8] sm:$0xf]  ;;  %v4546_v1 = vld [vmem:[#allocation5 + $0x1c] sm:$0xf0]  ;;  %v4543_v2 = vld [vmem:[#allocation5 + $0xc] sm:$0xf]  ;;  %v3733_v7 = vor.u32 %v4600_v62, %v3732_v61 }
  0x7d   : > { %1239 = vmatpush.bf16.msrb.mxu2 %v3641_v6  ;;  %v3518_v3 = vld [vmem:[#allocation5 + $0x20] sm:$0xf0]  ;;  %v3692_v4 = vld [vmem:[#allocation5 + $0x160] sm:$0xf]  ;;  %v4589_v5 = vld [vmem:[#allocation5 + $0x174] sm:$0xf0]  ;;  %v3737_v6 = vor.u32 %v4597_v57, %v3734_v60  ;;  %v3517_v8 = vor.u32 %v4546_v1, %v3516_v0 }
  0x7e   : > { %1258 = vmatpush.bf16.msrb.mxu3 %v3833_v12  ;;  %v4591_v9 = vld [vmem:[#allocation5 + $0x18c] sm:$0xf]  ;;  %v3710_v10 = vld [vmem:[#allocation5 + $0x1a0] sm:$0xf0]  ;;  %v3521_v11 = vor.u32 %v4543_v2, %v3518_v3  ;;  %v3708_v12 = vld [vmem:[#allocation5 + $0x188] sm:$0xf] }
  0x7f   : > { %1220 = vmatpush.bf16.msrb.mxu1 %v3829_v14  ;;  %v4594_v13 = vld [vmem:[#allocation5 + $0x19c] sm:$0xf0]  ;;  %v3693_v14 = vor.u32 %v4589_v5, %v3692_v4  ;;  %v3668_v17 = vld [vmem:[#allocation5 + $0x130] sm:$0xf]  ;;  %v4583_v18 = vld [vmem:[#allocation5 + $0x144] sm:$0xf0] }
  0x80   : > { %1202 = vmatpush.bf16.msrb.mxu0 %v3613_v15  ;;  %v3713_v15 = vor.u32 %v4591_v9, %v3710_v10  ;;  %v3709_v16 = vor.u32 %v4594_v13, %v3708_v12  ;;  %v4586_v20 = vld [vmem:[#allocation5 + $0x164] sm:$0xf]  ;;  %v3694_v21 = vld [vmem:[#allocation5 + $0x178] sm:$0xf0]  ;;  %v3670_v27 = vld [vmem:[#allocation5 + $0x148] sm:$0xf0] }
  0x81   : > { %1240 = vmatpush.bf16.msrb.mxu2 %v3617_v19  ;;  %v3669_v19 = vor.u32 %v4583_v18, %v3668_v17  ;;  %v3697_v22 = vor.u32 %v4586_v20, %v3694_v21  ;;  %v4634_v23 = vld [vmem:[#allocation5 + $0x2e4] sm:$0xf]  ;;  %v3886_v24 = vld [vmem:[#allocation5 + $0x2f8] sm:$0xf0]  ;;  %v3644_v36 = vld [vmem:[#allocation5 + $0x100] sm:$0xf] }
  0x82   : > { %1259 = vmatpush.bf16.msrb.mxu3 %v3809_v26  ;;  %v3889_v25 = vor.u32 %v4634_v23, %v3886_v24  ;;  %v4580_v26 = vld [vmem:[#allocation5 + $0x134] sm:$0xf]  ;;  %v4574_v32 = vld [vmem:[#allocation5 + $0x104] sm:$0xf]  ;;  %v3646_v33 = vld [vmem:[#allocation5 + $0x118] sm:$0xf0] }
  0x83   : > { %1221 = vmatpush.bf16.msrb.mxu1 %v3805_v29  ;;  %1136 = vmatmul.bf16.gmra.mxu0 %v5567_v34  ;;  %v3673_v28 = vor.u32 %v4580_v26, %v3670_v27  ;;  %v4628_v29 = vld [vmem:[#allocation5 + $0x2b4] sm:$0xf]  ;;  %v4577_v37 = vld [vmem:[#allocation5 + $0x114] sm:$0xf0]  ;;  %v4622_v38 = vld [vmem:[#allocation5 + $0x284] sm:$0xf] }
  0x84   : > { %1203 = vmatpush.bf16.msrb.mxu0 %v3589_v30  ;;  %1174 = vmatmul.bf16.gmra.mxu2 %v5567_v34  ;;  %v3862_v30 = vld [vmem:[#allocation5 + $0x2c8] sm:$0xf0]  ;;  %v3645_v40 = vor.u32 %v4577_v37, %v3644_v36  ;;  %v3838_v41 = vld [vmem:[#allocation5 + $0x298] sm:$0xf0]  ;;  %v4571_v51 = vld [vmem:[#allocation5 + $0xe4] sm:$0xf0] }
  0x85   : > { %1241 = vmatpush.bf16.msrb.mxu2 %v3593_v35  ;;  %1193 = vmatmul.bf16.gmra.mxu3 %v5569_v39  ;;  %v3865_v31 = vor.u32 %v4628_v29, %v3862_v30  ;;  %v3649_v35 = vor.u32 %v4574_v32, %v3646_v33  ;;  %v3841_v46 = vor.u32 %v4622_v38, %v3838_v41  ;;  %v3622_v48 = vld [vmem:[#allocation5 + $0xe8] sm:$0xf0]  ;;  %v4616_v53 = vld [vmem:[#allocation5 + $0x254] sm:$0xf]  ;;  %v4631_v57 = vld [vmem:[#allocation5 + $0x2c4] sm:$0xf0] }
  0x86   : > { %1260 = vmatpush.bf16.msrb.mxu3 %v3785_v42  ;;  %1155 = vmatmul.bf16.gmra.mxu1 %v5569_v39  ;;  %v3884_v42 = vld [vmem:[#allocation5 + $0x2e0] sm:$0xf]  ;;  %v3814_v55 = vld [vmem:[#allocation5 + $0x268] sm:$0xf0]  ;;  %v3598_v61 = vld [vmem:[#allocation5 + $0xb8] sm:$0xf0] }
  0x87   : > { %1222 = vmatpush.bf16.msrb.mxu1 %v3781_v43  ;;  %v4637_v43 = vld [vmem:[#allocation5 + $0x2f4] sm:$0xf0]  ;;  %v3596_v62 = vld [vmem:[#allocation5 + $0xa0] sm:$0xf]  ;;  %v4610_v1 = vld [vmem:[#allocation5 + $0x224] sm:$0xf] }
  0x88   : > { %1204 = vmatpush.bf16.msrb.mxu0 %v3565_v45  ;;  %v4568_v45 = vld [vmem:[#allocation5 + $0xd4] sm:$0xf]  ;;  %v3885_v47 = vor.u32 %v4637_v43, %v3884_v42  ;;  %v3790_v3 = vld [vmem:[#allocation5 + $0x238] sm:$0xf0]  ;;  %v3836_v4 = vld [vmem:[#allocation5 + $0x280] sm:$0xf] }
  0x89   : > { %1242 = vmatpush.bf16.msrb.mxu2 %v3569_v50  ;;  %v3620_v50 = vld [vmem:[#allocation5 + $0xd0] sm:$0xf]  ;;  %v3625_v52 = vor.u32 %v4568_v45, %v3622_v48  ;;  %v4625_v5 = vld [vmem:[#allocation5 + $0x294] sm:$0xf0]  ;;  %v3574_v9 = vld [vmem:[#allocation5 + $0x88] sm:$0xf0] }
  0x8a   : > { %1261 = vmatpush.bf16.msrb.mxu3 %v3761_v56  ;;  %v3621_v54 = vor.u32 %v4571_v51, %v3620_v50  ;;  %v3860_v56 = vld [vmem:[#allocation5 + $0x2b0] sm:$0xf]  ;;  %v4604_v13 = vld [vmem:[#allocation5 + $0x1f4] sm:$0xf]  ;;  %v4619_v17 = vld [vmem:[#allocation5 + $0x264] sm:$0xf0] }
  0x8b   : > { %1223 = vmatpush.bf16.msrb.mxu1 %v3757_v58  ;;  %v4562_v58 = vld [vmem:[#allocation5 + $0xa4] sm:$0xf]  ;;  %v3861_v60 = vor.u32 %v4631_v57, %v3860_v56  ;;  %v3572_v10 = vld [vmem:[#allocation5 + $0x70] sm:$0xf]  ;;  %v3550_v21 = vld [vmem:[#allocation5 + $0x58] sm:$0xf0] }
  0x8c   : > { %1205 = vmatpush.bf16.msrb.mxu0 %v3541_v59  ;;  %v3817_v59 = vor.u32 %v4616_v53, %v3814_v55  ;;  %v3601_v0 = vor.u32 %v4562_v58, %v3598_v61  ;;  %v4550_v18 = vld [vmem:[#allocation5 + $0x44] sm:$0xf]  ;;  %v4553_v23 = vld [vmem:[#allocation5 + $0x54] sm:$0xf0]  ;;  %v3742_v27 = vld [vmem:[#allocation5 + $0x1d8] sm:$0xf0] }
  0x8d   : > { %1243 = vmatpush.bf16.msrb.mxu2 %v3545_v63  ;;  %v4565_v63 = vld [vmem:[#allocation5 + $0xb4] sm:$0xf0]  ;;  %v3553_v24 = vor.u32 %v4550_v18, %v3550_v21  ;;  %v4544_v30 = vld [vmem:[#allocation5 + $0x14] sm:$0xf]  ;;  %v3526_v33 = vld [vmem:[#allocation5 + $0x28] sm:$0xf0] }
  0x8e   : > { %1262 = vmatpush.bf16.msrb.mxu3 %v3737_v6  ;;  %v3597_v2 = vor.u32 %v4565_v63, %v3596_v62  ;;  %v4556_v6 = vld [vmem:[#allocation5 + $0x74] sm:$0xf]  ;;  %v4613_v29 = vld [vmem:[#allocation5 + $0x234] sm:$0xf0]  ;;  %v4547_v36 = vld [vmem:[#allocation5 + $0x24] sm:$0xf0]  ;;  %v3529_v37 = vor.u32 %v4544_v30, %v3526_v33 }
  0x8f   : > { %1224 = vmatpush.bf16.msrb.mxu1 %v3733_v7  ;;  %v3793_v7 = vor.u32 %v4610_v1, %v3790_v3  ;;  %v3577_v12 = vor.u32 %v4556_v6, %v3574_v9  ;;  %v4592_v38 = vld [vmem:[#allocation5 + $0x194] sm:$0xf]  ;;  %v3718_v41 = vld [vmem:[#allocation5 + $0x1a8] sm:$0xf0]  ;;  %v3764_v42 = vld [vmem:[#allocation5 + $0x1f0] sm:$0xf] }
  0x90   : > { %1206 = vmatpush.bf16.msrb.mxu0 %v3517_v8  ;;  %v3837_v8 = vor.u32 %v4625_v5, %v3836_v4  ;;  %v4607_v43 = vld [vmem:[#allocation5 + $0x204] sm:$0xf0]  ;;  %v3721_v45 = vor.u32 %v4592_v38, %v3718_v41  ;;  %v4601_v48 = vld [vmem:[#allocation5 + $0x1d4] sm:$0xf0]  ;;  %v3716_v51 = vld [vmem:[#allocation5 + $0x190] sm:$0xf] }
  0x91   : > { %1244 = vmatpush.bf16.msrb.mxu2 %v3521_v11  ;;  %v4559_v11 = vld [vmem:[#allocation5 + $0x84] sm:$0xf0]  ;;  %s3341_s24 = sshll.u32 %s3338_s2, 4  ;;  %s5244_s1 = scalar_lea.hbm %s5987_s29, 128  ;;  %s3342_s24 = int_to_ptr.hbm [resolvable:$true] %s3341_s24 }
  0x92   : > { %1263 = vmatpush.bf16.msrb.mxu3 %v3713_v15  ;;  %v3766_v15 = vld [vmem:[#allocation5 + $0x208] sm:$0xf0]  ;;  %s5238_s25 = sshra.s32 %s3342_s24, 4  ;;  %s5239_s25 = int_to_ptr.hbm [resolvable:$true] %s5238_s25 }
  0x93   : > { %1225 = vmatpush.bf16.msrb.mxu1 %v3709_v16  ;;  %1207 = vmatmul.bf16.vlgmr.msrb.gmra.mxu0 %v5555_v44  ;;  %v3812_v16 = vld [vmem:[#allocation5 + $0x250] sm:$0xf]  ;;  %s5240_s27 = scalar_lea.hbm %s5239_s25, 64  ;;  %p5245_p12 = scmp.lt.s32.totalorder %s5239_s25, %s5987_s29 }
  0x94   : > { %1275 = vmatpush.bf16.msra.mxu0 %v3693_v14  ;;  %1245 = vmatmul.bf16.vlgmr.msrb.gmra.mxu2 %v5555_v44  ;;  %v3573_v14 = vor.u32 %v4559_v11, %v3572_v10  ;;  %v3813_v20 = vor.u32 %v4619_v17, %v3812_v16  ;;  %p5241_p1 = scmp.ne.s32.totalorder %s5239_s25, %s5240_s27  ;;  %p5246_p8 = scmp.lt.s32.totalorder %s5244_s1, %s5240_s27 }
  0x95   : > { %1264 = vmatmul.bf16.vlgmr.msrb.gmra.mxu3 %v5557_v49  ;;  %1313 = vmatpush.bf16.msra.mxu2 %v3697_v22  ;;  %v3548_v22 = vld [vmem:[#allocation5 + $0x40] sm:$0xf] }
  0x96   : > { %1226 = vmatmul.bf16.vlgmr.msrb.gmra.mxu1 %v5557_v49  ;;  %1332 = vmatpush.bf16.msra.mxu3 %v3889_v25  ;;  %v4598_v25 = vld [vmem:[#allocation5 + $0x1c4] sm:$0xf]  ;;  %v3549_v26 = vor.u32 %v4553_v23, %v3548_v22  ;;  %p5242_p3 = pnand %p5241_p1, %p5489_p13  ;;  %p5247_p7 = por %p5246_p8, %p5245_p12 }
  0x97   : > { %1294 = vmatpush.bf16.msra.mxu1 %v3885_v47  ;;  %v3740_v47 = vld [vmem:[#allocation5 + $0x1c0] sm:$0xf] }
  0x98   : > { %1276 = vmatpush.bf16.msra.mxu0 %v3669_v19  ;;  %v3769_v19 = vor.u32 %v4604_v13, %v3766_v15  ;;  %v3741_v50 = vor.u32 %v4601_v48, %v3740_v47  ;;  %p5243_p5 = pneg %p5242_p3 }
  0x99   : > { %1314 = vmatpush.bf16.msra.mxu2 %v3673_v28  ;;  %v3788_v28 = vld [vmem:[#allocation5 + $0x220] sm:$0xf] }
  0x9a   : > { %1333 = vmatpush.bf16.msra.mxu3 %v3865_v31  ;;  %v3745_v31 = vor.u32 %v4598_v25, %v3742_v27  ;;  %v3789_v32 = vor.u32 %v4613_v29, %v3788_v28  ;;  %p5248_p9 = pnand %p5247_p7, %p5243_p5 }
  0x9b   : > { %1295 = vmatpush.bf16.msra.mxu1 %v3861_v60 }
  0x9c   : > { %1277 = vmatpush.bf16.msra.mxu0 %v3645_v40 }
  0x9d   : > { %1315 = vmatpush.bf16.msra.mxu2 %v3649_v35  ;;  %v3524_v35 = vld [vmem:[#allocation5 + $0x10] sm:$0xf] }
  0x9e   : > { %1334 = vmatpush.bf16.msra.mxu3 %v3841_v46  ;;  %v3525_v40 = vor.u32 %v4547_v36, %v3524_v35  ;;  %v3765_v46 = vor.u32 %v4607_v43, %v3764_v42 }
  0x9f   : > { %1296 = vmatpush.bf16.msra.mxu1 %v3837_v8 }
  0xa0   : > { %1278 = vmatpush.bf16.msra.mxu0 %v3621_v54 }
  0xa1   : > { %1316 = vmatpush.bf16.msra.mxu2 %v3625_v52  ;;  %v4595_v52 = vld [vmem:[#allocation5 + $0x1a4] sm:$0xf0] }
  0xa2   : > { %1335 = vmatpush.bf16.msra.mxu3 %v3817_v59  ;;  %v3717_v54 = vor.u32 %v4595_v52, %v3716_v51 }
  0xa3   : > { %1212 = vmatmul.bf16.gmra.mxu0 %v5567_v34  ;;  %1297 = vmatpush.bf16.msra.mxu1 %v3813_v20 }
  0xa4   : > { %1250 = vmatmul.bf16.gmra.mxu2 %v5567_v34  ;;  %1279 = vmatpush.bf16.msra.mxu0 %v3597_v2  ;;  %v5599_v2 = vld [vmem:[#allocation7] sm:$0x3f] }
  0xa5   : > { %1269 = vmatmul.bf16.gmra.mxu3 %v5569_v39  ;;  %1317 = vmatpush.bf16.msra.mxu2 %v3601_v0  ;;  %v5608_v9 = vperm.slane %v5599_v2, 3  ;;  %v632_v22 = vperm.slane %v5599_v2, 1 }
  0xa6   : > { %1231 = vmatmul.bf16.gmra.mxu1 %v5569_v39  ;;  %1336 = vmatpush.bf16.msra.mxu3 %v3793_v7 }
  0xa7   : > { %1298 = vmatpush.bf16.msra.mxu1 %v3789_v32 }
  0xa8   : > { %1280 = vmatpush.bf16.msra.mxu0 %v3573_v14 }
  0xa9   : > { %1318 = vmatpush.bf16.msra.mxu2 %v3577_v12 }
  0xaa   : > { %1337 = vmatpush.bf16.msra.mxu3 %v3769_v19 }
  0xab   : > { %1299 = vmatpush.bf16.msra.mxu1 %v3765_v46 }
  0xac   : > { %1281 = vmatpush.bf16.msra.mxu0 %v3549_v26 }
  0xad   : > { %1319 = vmatpush.bf16.msra.mxu2 %v3553_v24 }
  0xae   : > { %1338 = vmatpush.bf16.msra.mxu3 %v3745_v31 }
  0xaf   : > { %1300 = vmatpush.bf16.msra.mxu1 %v3741_v50 }
  0xb0   : > { %1282 = vmatpush.bf16.msra.mxu0 %v3525_v40 }
  0xb1   : > { %1320 = vmatpush.bf16.msra.mxu2 %v3529_v37 }
  0xb2   : > { %1339 = vmatpush.bf16.msra.mxu3 %v3721_v45 }
  0xb3   : > { %1283 = vmatmul.bf16.vlgmr.msra.gmra.mxu0 %v5555_v44  ;;  %1301 = vmatpush.bf16.msra.mxu1 %v3717_v54 }
  0xb4   : > { %1321 = vmatmul.bf16.vlgmr.msra.gmra.mxu2 %v5555_v44 }
  0xb5   : > { %1340 = vmatmul.bf16.vlgmr.msra.gmra.mxu3 %v5557_v49 }
  0xb6   : > { %1302 = vmatmul.bf16.vlgmr.msra.gmra.mxu1 %v5557_v49 }
  0xc3   : > { %1288 = vmatmul.bf16.gmra.mxu0 %v5567_v34 }
  0xc4   : > { %1326 = vmatmul.bf16.gmra.mxu2 %v5567_v34  ;;  %v633_v34 = vperm.slane %v5599_v2, 2 }
  0xc5   : > { %1345 = vmatmul.bf16.gmra.mxu3 %v5569_v39 }
  0xc6   : > { %1307 = vmatmul.bf16.gmra.mxu1 %v5569_v39  ;;  %v631_v39 = vperm.slane %v5599_v2, 0 }
  0xf0   : > { %v1132_v53 = vpop.f32.mrf.mxu0 }
  0xf1   : > { %v1133_v12 = vadd.f32 %v1132_v53, %v631_v39 }
  0xf3   : > { %v1151_v55 = vpop.f32.mrf.mxu1 }
  0xf4   : > { %v1152_v20 = vadd.f32 %v1151_v55, %v1133_v12 }
  0xf6   : > { %v1351_v30 = vpack.c.bf16 %v1152_v20, %v1152_v20 }
  0xf7   : > { %v1170_v56 = vpop.f32.mrf.mxu2 }
  0xf8   : > { %v1189_v57 = vpop.f32.mrf.mxu3  ;;  %v1134_v58 = vpop.f32.mrf.mxu0  ;;  %v1171_v35 = vadd.f32 %v1170_v56, %v632_v22  ;;  %v1377_v43 = vunpack.c.l.b16 %v1351_v30 }
  0xf9   : > { %v1135_v13 = vadd.f32 %v1134_v58, %v631_v39 }
  0xfa   : > { %v1190_v47 = vadd.f32 %v1189_v57, %v1171_v35 }
  0xfb   : > { %v1153_v59 = vpop.f32.mrf.mxu1 }
  0xfc   : > { %v1154_v21 = vadd.f32 %v1153_v59, %v1135_v13 }
  0xfe   : > { %v1352_v31 = vpack.c.bf16 %v1154_v21, %v1154_v21 }
  0xff   : > { %v1172_v44 = vpop.f32.mrf.mxu2 }
 0x100   : > { %v1191_v60 = vpop.f32.mrf.mxu3  ;;  %v1137_v61 = vpop.f32.mrf.mxu0  ;;  %v1173_v26 = vadd.f32 %v1172_v44, %v632_v22  ;;  %v1378_v45 = vunpack.c.l.b16 %v1352_v31 }
 0x101   : > { %v1138_v58 = vadd.f32 %v1137_v61, %v631_v39 }
 0x102   : > { %v1192_v42 = vadd.f32 %v1191_v60, %v1173_v26  ;;  %v1379_v55 = vpack.c.b16 %v1378_v45, %v1377_v43 }
 0x103   : > { %v5590_v62 = vpop.f32.mrf.mxu1 }
 0x104   : > { %v1356_v52 = vpack.c.bf16 %v1192_v42, %v1192_v42 }
 0x106   : > { %v1430_v57 = vunpack.c.l.b16 %v1356_v52 }
 0x107   : > { %v5593_v63 = vpop.f32.mrf.mxu2 }
 0x108   : > { %v5595_v49 = vpop.f32.mrf.mxu3  ;;  %v1139_v0 = vpop.f32.mrf.mxu0  ;;  %v1176_v20 = vadd.f32 %v5593_v63, %v632_v22 }
 0x109   : > { %v1140_v56 = vadd.f32 %v1139_v0, %v631_v39 }
 0x10b   : > { %v5597_v1 = vpop.f32.mrf.mxu1 }
 0x10c   : > { %v1159_v12 = vadd.f32 %v5597_v1, %v1140_v56 }
 0x10f   : > { %v5602_v3 = vpop.f32.mrf.mxu2 }
 0x110   : > { %v5604_v4 = vpop.f32.mrf.mxu3  ;;  %v1208_v5 = vpop.f32.mrf.mxu0 }
 0x111   : > { %v1209_v6 = vadd.f32 %v1208_v5, %v633_v34  ;;  %v1355_v5 = vpack.c.bf16 %v1190_v47, %v1190_v47 }
 0x113   : > { %v1227_v7 = vpop.f32.mrf.mxu1  ;;  %v1429_v13 = vunpack.c.l.b16 %v1355_v5 }
 0x114   : > { %v1228_v8 = vadd.f32 %v1227_v7, %v1209_v6 }
 0x115   : > { %v1431_v39 = vpack.c.b16 %v1430_v57, %v1429_v13 }
 0x116   : > { %v1359_v15 = vpack.c.bf16 %v1228_v8, %v1228_v8 }
 0x117   : > { %v1246_v10 = vpop.f32.mrf.mxu2 }
 0x118   : > { %v1265_v11 = vpop.f32.mrf.mxu3  ;;  %v1210_v14 = vpop.f32.mrf.mxu0  ;;  %v1247_v17 = vadd.f32 %v1246_v10, %v5608_v9  ;;  %v1383_v23 = vunpack.c.l.b16 %v1359_v15  ;;  %v1178_v15 = vadd.f32 %v5602_v3, %v632_v22  ;;  %v1195_v3 = vadd.f32 %v5595_v49, %v1176_v20 }
 0x119   : > { %v1211_v16 = vadd.f32 %v1210_v14, %v633_v34 }
 0x11a   : > { %v1266_v25 = vadd.f32 %v1265_v11, %v1247_v17  ;;  %v1157_v11 = vadd.f32 %v5590_v62, %v1138_v58 }
 0x11b   : > { %v1229_v18 = vpop.f32.mrf.mxu1 }
 0x11c   : > { %v1230_v19 = vadd.f32 %v1229_v18, %v1211_v16  ;;  %v1363_v38 = vpack.c.bf16 %v1266_v25, %v1266_v25  ;;  %v1353_v17 = vpack.c.bf16 %v1157_v11, %v1157_v11  ;;  %v1354_v18 = vpack.c.bf16 %v1159_v12, %v1159_v12 }
 0x11e   : > { %v1360_v24 = vpack.c.bf16 %v1230_v19, %v1230_v19  ;;  %v1435_v50 = vunpack.c.l.b16 %v1363_v38  ;;  %v1403_v25 = vunpack.c.l.b16 %v1353_v17  ;;  %v1404_v26 = vunpack.c.l.b16 %v1354_v18 }
 0x11f   : > { %v1248_v28 = vpop.f32.mrf.mxu2 }
 0x120   : > { %v1384_v27 = vunpack.c.l.b16 %v1360_v24  ;;  %v1267_v29 = vpop.f32.mrf.mxu3  ;;  %v1249_v32 = vadd.f32 %v1248_v28, %v5608_v9  ;;  %v1213_v33 = vpop.f32.mrf.mxu0  ;;  %v1197_v24 = vadd.f32 %v5604_v4, %v1178_v15  ;;  %v1405_v31 = vpack.c.b16 %v1404_v26, %v1403_v25 }
 0x121   : > { %v1214_v37 = vadd.f32 %v1213_v33, %v633_v34  ;;  %v636_v4 = vperm.slane %v5599_v2, 5 }
 0x122   : > { %v1385_v36 = vpack.c.b16 %v1384_v27, %v1383_v23  ;;  %v1268_v40 = vadd.f32 %v1267_v29, %v1249_v32  ;;  %v1358_v30 = vpack.c.bf16 %v1197_v24, %v1197_v24  ;;  %v1357_v32 = vpack.c.bf16 %v1195_v3, %v1195_v3 }
 0x123   : > { %v1232_v41 = vpop.f32.mrf.mxu1 }
 0x124   : > { %1394 = vmatpush.bf16.xpose.msrb.mxu0 %v1385_v36  ;;  %v1364_v46 = vpack.c.bf16 %v1268_v40, %v1268_v40  ;;  %v1233_v48 = vadd.f32 %v1232_v41, %v1214_v37  ;;  %v1456_v63 = vunpack.c.l.b16 %v1358_v30  ;;  %v1455_v22 = vunpack.c.l.b16 %v1357_v32 }
 0x125   : > { %v635_v36 = vperm.slane %v5599_v2, 4 }
 0x126   : > { %v1436_v51 = vunpack.c.l.b16 %v1364_v46  ;;  %v1361_v6 = vpack.c.bf16 %v1233_v48, %v1233_v48  ;;  %v1457_v33 = vpack.c.b16 %v1456_v63, %v1455_v22 }
 0x127   : > { %v1251_v53 = vpop.f32.mrf.mxu2 }
 0x128   : > { %v1270_v54 = vpop.f32.mrf.mxu3  ;;  %v1437_v59 = vpack.c.b16 %v1436_v51, %v1435_v50  ;;  %v1215_v44 = vpop.f32.mrf.mxu0  ;;  %v1252_v60 = vadd.f32 %v1251_v53, %v5608_v9  ;;  %v1409_v14 = vunpack.c.l.b16 %v1361_v6 }
 0x129   : > { %v1216_v7 = vadd.f32 %v1215_v44, %v633_v34 }
 0x12a   : > { %1446 = vmatpush.bf16.xpose.msrb.mxu2 %v1437_v59  ;;  %v1271_v0 = vadd.f32 %v1270_v54, %v1252_v60 }
 0x12b   : > { %v1234_v8 = vpop.f32.mrf.mxu1  ;;  %1395 = vmatmul.bf16.vlgmr.msrb.gmra.mxu0 %v1379_v55 }
 0x12c   : > { %v1235_v10 = vadd.f32 %v1234_v8, %v1216_v7  ;;  %v1365_v62 = vpack.c.bf16 %v1271_v0, %v1271_v0 }
 0x12e   : > { %v1362_v61 = vpack.c.bf16 %v1235_v10, %v1235_v10  ;;  %v1461_v28 = vunpack.c.l.b16 %v1365_v62 }
 0x12f   : > { %v1253_v34 = vpop.f32.mrf.mxu2 }
 0x130   : > { %v1410_v16 = vunpack.c.l.b16 %v1362_v61  ;;  %v1254_v19 = vadd.f32 %v1253_v34, %v5608_v9  ;;  %v1272_v23 = vpop.f32.mrf.mxu3  ;;  %v1284_v35 = vpop.f32.mrf.mxu0 }
 0x131   : > { %1447 = vmatmul.bf16.vlgmr.msrb.gmra.mxu2 %v1431_v39  ;;  %v1285_v40 = vadd.f32 %v1284_v35, %v635_v36 }
 0x132   : > { %v1411_v21 = vpack.c.b16 %v1410_v16, %v1409_v14  ;;  %v1273_v1 = vadd.f32 %v1272_v23, %v1254_v19 }
 0x133   : > { %v1303_v42 = vpop.f32.mrf.mxu1 }
 0x134   : > { %1420 = vmatpush.bf16.xpose.msrb.mxu1 %v1411_v21  ;;  %v1366_v27 = vpack.c.bf16 %v1273_v1, %v1273_v1  ;;  %v1304_v45 = vadd.f32 %v1303_v42, %v1285_v40 }
 0x136   : > { %v1462_v29 = vunpack.c.l.b16 %v1366_v27  ;;  %v1367_v53 = vpack.c.bf16 %v1304_v45, %v1304_v45 }
 0x137   : > { %v1322_v37 = vpop.f32.mrf.mxu2 }
 0x138   : > { %v1463_v9 = vpack.c.b16 %v1462_v29, %v1461_v28  ;;  %v1323_v38 = vadd.f32 %v1322_v37, %v636_v4  ;;  %v1341_v49 = vpop.f32.mrf.mxu3  ;;  %v1286_v41 = vpop.f32.mrf.mxu0  ;;  %v1567_v44 = vunpack.c.l.b16 %v1367_v53 }
 0x139   : > { %v1287_v50 = vadd.f32 %v1286_v41, %v635_v36 }
 0x13a   : > { %1472 = vmatpush.bf16.xpose.msrb.mxu3 %v1463_v9  ;;  %v1342_v43 = vadd.f32 %v1341_v49, %v1323_v38 }
 0x13b   : > { %1421 = vmatmul.bf16.vlgmr.msrb.gmra.mxu1 %v1405_v31  ;;  %v1305_v54 = vpop.f32.mrf.mxu1 }
 0x13c   : > { %v1371_v48 = vpack.c.bf16 %v1342_v43, %v1342_v43  ;;  %v1306_v56 = vadd.f32 %v1305_v54, %v1287_v50 }
 0x13e   : > { %v1623_v55 = vunpack.c.l.b16 %v1371_v48  ;;  %v1368_v5 = vpack.c.bf16 %v1306_v56, %v1306_v56 }
 0x13f   : > { %v1324_v46 = vpop.f32.mrf.mxu2 }
 0x140   : > { %v1325_v47 = vadd.f32 %v1324_v46, %v636_v4  ;;  %v1343_v51 = vpop.f32.mrf.mxu3  ;;  %v1289_v2 = vpop.f32.mrf.mxu0  ;;  %v1568_v60 = vunpack.c.l.b16 %v1368_v5 }
 0x141   : > { %1473 = vmatmul.bf16.vlgmr.msrb.gmra.mxu3 %v1457_v33  ;;  %v1290_v57 = vadd.f32 %v1289_v2, %v635_v36 }
 0x142   : > { %v1344_v52 = vadd.f32 %v1343_v51, %v1325_v47  ;;  %v1569_v10 = vpack.c.b16 %v1568_v60, %v1567_v44 }
 0x143   : > { %v1308_v11 = vpop.f32.mrf.mxu1 }
 0x144   : > { %v1372_v58 = vpack.c.bf16 %v1344_v52, %v1344_v52  ;;  %1581 = vmatpush.bf16.msra.mxu0 %v1569_v10  ;;  %v1309_v13 = vadd.f32 %v1308_v11, %v1290_v57 }
 0x146   : > { %v1624_v59 = vunpack.c.l.b16 %v1372_v58  ;;  %v1369_v17 = vpack.c.bf16 %v1309_v13, %v1309_v13 }
 0x147   : > { %v1327_v6 = vpop.f32.mrf.mxu2 }
 0x148   : > { %v1625_v7 = vpack.c.b16 %v1624_v59, %v1623_v55  ;;  %v1346_v8 = vpop.f32.mrf.mxu3  ;;  %v1328_v12 = vadd.f32 %v1327_v6, %v636_v4  ;;  %v1291_v61 = vpop.f32.mrf.mxu0  ;;  %v1595_v1 = vunpack.c.l.b16 %v1369_v17 }
 0x149   : > { %v1292_v39 = vadd.f32 %v1291_v61, %v635_v36 }
 0x14a   : > { %1637 = vmatpush.bf16.msra.mxu2 %v1625_v7  ;;  %v1347_v15 = vadd.f32 %v1346_v8, %v1328_v12 }
 0x14b   : > { %v1310_v19 = vpop.f32.mrf.mxu1 }
 0x14c   : > { %v1373_v18 = vpack.c.bf16 %v1347_v15, %v1347_v15  ;;  %v1311_v21 = vadd.f32 %v1310_v19, %v1292_v39 }
 0x14e   : > { %v1651_v23 = vunpack.c.l.b16 %v1373_v18  ;;  %v1370_v24 = vpack.c.bf16 %v1311_v21, %v1311_v21 }
 0x14f   : > { %v1329_v14 = vpop.f32.mrf.mxu2 }
 0x150   : > { %v1330_v0 = vadd.f32 %v1329_v14, %v636_v4  ;;  %v1348_v16 = vpop.f32.mrf.mxu3  ;;  %v1596_v26 = vunpack.c.l.b16 %v1370_v24 }
 0x152   : > { %v1349_v34 = vadd.f32 %v1348_v16, %v1330_v0  ;;  %v1597_v27 = vpack.c.b16 %v1596_v26, %v1595_v1 }
 0x154   : > { %v1374_v20 = vpack.c.bf16 %v1349_v34, %v1349_v34  ;;  %1609 = vmatpush.bf16.msra.mxu1 %v1597_v27 }
 0x156   : > { %v1652_v62 = vunpack.c.l.b16 %v1374_v20 }
 0x158   : > { %v1653_v25 = vpack.c.b16 %v1652_v62, %v1651_v23 }
 0x15a   : > { %1665 = vmatpush.bf16.msra.mxu3 %v1653_v25 }
 0x1a8   : > { %v1396_v3 = vpop.f32.mrf.mxu0 }
 0x1a9   : > { %v1480_v28 = vsel %vm1479_vm0, %v1396_v3, -inf }
 0x1aa   : > { %1481 = vmax.xlane.f32.xlu1 %v1480_v28 }
 0x1b0   : > { %v1398_v29 = vpop.f32.mrf.mxu0 }
 0x1b1   : > { %v1483_v30 = vsel %vm1479_vm0, %v1398_v29, -inf }
 0x1b2   : > { %1484 = vmax.xlane.f32.xlu1 %v1483_v30 }
 0x1b4   : > { %v1448_v31 = vpop.f32.mrf.mxu2 }
 0x1b5   : > { %v1492_v9 = vsel %vm1479_vm0, %v1448_v31, -inf }
 0x1b6   : > { %1493 = vmax.xlane.f32.xlu0 %v1492_v9 }
 0x1b8   : > { %v1422_v32 = vpop.f32.mrf.mxu1 }
 0x1b9   : > { %v1486_v37 = vsel %vm1479_vm0, %v1422_v32, -inf }
 0x1bc   : > { %v1450_v63 = vpop.f32.mrf.mxu2 }
 0x1bd   : > { %v1495_v22 = vsel %vm1479_vm0, %v1450_v63, -inf }
 0x1be   : > { %1496 = vmax.xlane.f32.xlu0 %v1495_v22 }
 0x1c0   : > { %v1424_v33 = vpop.f32.mrf.mxu1 }
 0x1c1   : > { %v1489_v35 = vsel %vm1479_vm0, %v1424_v33, -inf }
 0x1c2   : > { %1490 = vmax.xlane.f32.xlu1 %v1489_v35 }
 0x1c4   : > { %v1474_v4 = vpop.f32.mrf.mxu3 }
 0x1c5   : > { %v1498_v36 = vsel %vm1479_vm0, %v1474_v4, -inf }
 0x1c6   : > { %1499 = vmax.xlane.f32.xlu2 %v1498_v36  ;;  %1487 = vmax.xlane.f32.xlu0 %v1486_v37  ;;  %v3952_v36 = vld [vmem:[#allocation8 + $0x70] sm:$0xf]  ;;  %v4653_v37 = vld [vmem:[#allocation8 + $0x74] sm:$0xf0] }
 0x1cc   : > { %v1476_v38 = vpop.f32.mrf.mxu3 }
 0x1cd   : > { %v1501_v49 = vsel %vm1479_vm0, %v1476_v38, -inf }
 0x1ce   : > { %1502 = vmax.xlane.f32.xlu2 %v1501_v49  ;;  %v3953_v49 = vor.u32 %v4653_v37, %v3952_v36  ;;  %v3898_v36 = vld [vmem:[#allocation8 + $0x8] sm:$0xf0] }
 0x1d0   : > { %1890 = vmatpush.bf16.msrb.mxu0 %v3953_v49  ;;  %v4663_v49 = vld [vmem:[#allocation8 + $0xc4] sm:$0xf0] }
 0x21d   : > { %v1482_v40 = vpop.xlane.xlu1 %1481 }
 0x21e   : > { %v1504_v41 = vsub.f32 %v1396_v3, %v1482_v40  ;;  %v3954_v40 = vld [vmem:[#allocation8 + $0x78] sm:$0xf0] }
 0x220   : > { %v1512_v42 = vmul.f32 1.442695, %v1504_v41 }
 0x222   : > { %4926 = vpow2.f32 %v1512_v42  ;;  %v3944_v42 = vld [vmem:[#allocation8 + $0x60] sm:$0xf] }
 0x225   : > { %v1485_v43 = vpop.xlane.xlu1 %1484 }
 0x226   : > { %v1505_v45 = vsub.f32 %v1398_v29, %v1485_v43  ;;  %v4651_v43 = vld [vmem:[#allocation8 + $0x64] sm:$0xf0] }
 0x228   : > { %v4927_v46 = vpop.eup %4926  ;;  %v1514_v47 = vmul.f32 1.442695, %v1505_v45  ;;  %v4650_v45 = vld [vmem:[#allocation8 + $0x64] sm:$0xf] }
 0x229   : > { %v1528_v48 = vsel %vm1479_vm0, %v4927_v46, 0.0  ;;  %v1494_v50 = vpop.xlane.xlu0 %1493  ;;  %v1552_v53 = vpack.c.bf16 %v4927_v46, %v4927_v46  ;;  %v3945_v46 = vor.u32 %v4651_v43, %v3944_v42  ;;  %v3994_v42 = vld [vmem:[#allocation8 + $0xc8] sm:$0xf0] }
 0x22a   : > { %4928 = vpow2.f32 %v1514_v47  ;;  %1529 = vadd.xlane.f32.xlu2 %v1528_v48  ;;  %v1508_v51 = vsub.f32 %v1448_v31, %v1494_v50  ;;  %v3946_v47 = vld [vmem:[#allocation8 + $0x68] sm:$0xf0]  ;;  %v3936_v50 = vld [vmem:[#allocation8 + $0x50] sm:$0xf] }
 0x22b   : > { %v1562_v2 = vunpack.c.l.b16 %v1552_v53  ;;  %v3949_v48 = vor.u32 %v4650_v45, %v3946_v47  ;;  %1891 = vmatpush.bf16.msrb.mxu0 %v3945_v46  ;;  %v3984_v45 = vld [vmem:[#allocation8 + $0xb0] sm:$0xf]  ;;  %v4661_v46 = vld [vmem:[#allocation8 + $0xb4] sm:$0xf0]  ;;  %v4660_v47 = vld [vmem:[#allocation8 + $0xb4] sm:$0xf] }
 0x22c   : > { %v1520_v52 = vmul.f32 1.442695, %v1508_v51  ;;  %v4649_v51 = vld [vmem:[#allocation8 + $0x54] sm:$0xf0] }
 0x22d   : > { %v3937_v53 = vor.u32 %v4649_v51, %v3936_v50  ;;  %v3986_v50 = vld [vmem:[#allocation8 + $0xb8] sm:$0xf0] }
 0x22e   : > { %4930 = vpow2.f32 %v1520_v52  ;;  %v4648_v52 = vld [vmem:[#allocation8 + $0x54] sm:$0xf]  ;;  %v3989_v51 = vor.u32 %v4660_v47, %v3986_v50 }
 0x22f   : > { %1892 = vmatpush.bf16.msrb.mxu0 %v3937_v53  ;;  %v4659_v53 = vld [vmem:[#allocation8 + $0xa4] sm:$0xf0] }
 0x230   : > { %v4929_v54 = vpop.eup %4928 }
 0x231   : > { %v1553_v55 = vpack.c.bf16 %v4929_v54, %v4929_v54  ;;  %v1531_v58 = vsel %vm1479_vm0, %v4929_v54, 0.0  ;;  %v1497_v56 = vpop.xlane.xlu0 %1496  ;;  %v3938_v54 = vld [vmem:[#allocation8 + $0x58] sm:$0xf0] }
 0x232   : > { %1532 = vadd.xlane.f32.xlu0 %v1531_v58  ;;  %v1509_v44 = vsub.f32 %v1450_v63, %v1497_v56  ;;  %v3928_v58 = vld [vmem:[#allocation8 + $0x40] sm:$0xf]  ;;  %v4647_v56 = vld [vmem:[#allocation8 + $0x44] sm:$0xf0] }
 0x233   : > { %v1563_v59 = vunpack.c.l.b16 %v1553_v55  ;;  %v3941_v55 = vor.u32 %v4648_v52, %v3938_v54  ;;  %v3976_v52 = vld [vmem:[#allocation8 + $0xa0] sm:$0xf]  ;;  %v4658_v54 = vld [vmem:[#allocation8 + $0xa4] sm:$0xf] }
 0x234   : > { %v4931_v5 = vpop.eup %4930  ;;  %v1522_v7 = vmul.f32 1.442695, %v1509_v44  ;;  %v3930_v44 = vld [vmem:[#allocation8 + $0x48] sm:$0xf0] }
 0x235   : > { %v1564_v6 = vpack.c.b16 %v1563_v59, %v1562_v2  ;;  %v1491_v60 = vpop.xlane.xlu1 %1490  ;;  %v1540_v57 = vsel %vm1479_vm0, %v4931_v5, 0.0  ;;  %v1556_v61 = vpack.c.bf16 %v4931_v5, %v4931_v5  ;;  %v4646_v2 = vld [vmem:[#allocation8 + $0x44] sm:$0xf]  ;;  %v3929_v59 = vor.u32 %v4647_v56, %v3928_v58  ;;  %v3978_v58 = vld [vmem:[#allocation8 + $0xa8] sm:$0xf0] }
 0x236   : > { %v1507_v8 = vsub.f32 %v1424_v33, %v1491_v60  ;;  %4932 = vpow2.f32 %v1522_v7  ;;  %1541 = vadd.xlane.f32.xlu1 %v1540_v57  ;;  %v3933_v5 = vor.u32 %v4646_v2, %v3930_v44  ;;  %v4645_v7 = vld [vmem:[#allocation8 + $0x34] sm:$0xf0]  ;;  %v4644_v60 = vld [vmem:[#allocation8 + $0x34] sm:$0xf]  ;;  %v3922_v57 = vld [vmem:[#allocation8 + $0x38] sm:$0xf0]  ;;  %v3981_v56 = vor.u32 %v4658_v54, %v3978_v58 }
 0x237   : > { %3890 = vmatmul.msk.bf16.vlgmr.msra.gmra.mxu0 %vm1479_vm0, %v1564_v6  ;;  %v1618_v18 = vunpack.c.l.b16 %v1556_v61  ;;  %v3920_v6 = vld [vmem:[#allocation8 + $0x30] sm:$0xf]  ;;  %v4018_v61 = vld [vmem:[#allocation8 + $0xf8] sm:$0xf0]  ;;  %v4656_v44 = vld [vmem:[#allocation8 + $0x94] sm:$0xf] }
 0x238   : > { %v1518_v10 = vmul.f32 1.442695, %v1507_v8  ;;  %1893 = vmatpush.bf16.msrb.mxu0 %v3929_v59  ;;  %v3921_v8 = vor.u32 %v4645_v7, %v3920_v6  ;;  %v3968_v2 = vld [vmem:[#allocation8 + $0x90] sm:$0xf]  ;;  %v4657_v59 = vld [vmem:[#allocation8 + $0x94] sm:$0xf0] }
 0x239   : > { %v1500_v11 = vpop.xlane.xlu2 %1499  ;;  %v1488_v12 = vpop.xlane.xlu0 %1487  ;;  %v3970_v6 = vld [vmem:[#allocation8 + $0x98] sm:$0xf0] }
 0x23a   : > { %4934 = vpow2.f32 %v1518_v10  ;;  %v1510_v13 = vsub.f32 %v1474_v4, %v1500_v11  ;;  %v1506_v14 = vsub.f32 %v1422_v32, %v1488_v12  ;;  %v3925_v10 = vor.u32 %v4644_v60, %v3922_v57  ;;  %v4016_v11 = vld [vmem:[#allocation8 + $0xf0] sm:$0xf]  ;;  %v4669_v12 = vld [vmem:[#allocation8 + $0xf4] sm:$0xf0]  ;;  %v3960_v60 = vld [vmem:[#allocation8 + $0x80] sm:$0xf] }
 0x23b   : > { %v3973_v7 = vor.u32 %v4656_v44, %v3970_v6  ;;  %v4654_v57 = vld [vmem:[#allocation8 + $0x84] sm:$0xf] }
 0x23c   : > { %v4933_v0 = vpop.eup %4932  ;;  %v1524_v39 = vmul.f32 1.442695, %v1510_v13  ;;  %v1516_v15 = vmul.f32 1.442695, %v1506_v14  ;;  %v4668_v13 = vld [vmem:[#allocation8 + $0xf4] sm:$0xf]  ;;  %1894 = vmatpush.bf16.msrb.mxu0 %v3921_v8  ;;  %v4017_v14 = vor.u32 %v4669_v12, %v4016_v11 }
 0x23d   : > { %v1557_v16 = vpack.c.bf16 %v4933_v0, %v4933_v0  ;;  %v1543_v34 = vsel %vm1479_vm0, %v4933_v0, 0.0  ;;  %v4021_v0 = vor.u32 %v4668_v13, %v4018_v61  ;;  %v4655_v8 = vld [vmem:[#allocation8 + $0x84] sm:$0xf0]  ;;  %v3962_v11 = vld [vmem:[#allocation8 + $0x88] sm:$0xf0] }
 0x23e   : > { %4936 = vpow2.f32 %v1524_v39  ;;  %1544 = vadd.xlane.f32.xlu2 %v1543_v34  ;;  %v3912_v39 = vld [vmem:[#allocation8 + $0x20] sm:$0xf]  ;;  %1909 = vmatpush.bf16.msrb.mxu1 %v4017_v14  ;;  %v3965_v12 = vor.u32 %v4654_v57, %v3962_v11  ;;  %v4978_v11 = vld [vmem:[%s5529_s21 + $0x10] sm:$0xff] }
 0x23f   : > { %v1619_v19 = vunpack.c.l.b16 %v1557_v16  ;;  %4938 = vpow2.f32 %v1516_v15  ;;  %v4643_v15 = vld [vmem:[#allocation8 + $0x24] sm:$0xf0]  ;;  %v4642_v16 = vld [vmem:[#allocation8 + $0x24] sm:$0xf]  ;;  %1947 = vmatpush.bf16.msrb.mxu3 %v4021_v0 }
 0x240   : > { %v4935_v17 = vpop.eup %4934  ;;  %v3913_v34 = vor.u32 %v4643_v15, %v3912_v39 }
 0x241   : > { %v1537_v20 = vsel %vm1479_vm0, %v4935_v17, 0.0  ;;  %v1620_v21 = vpack.c.b16 %v1619_v19, %v1618_v18  ;;  %v1503_v23 = vpop.xlane.xlu2 %1502  ;;  %v1555_v24 = vpack.c.bf16 %v4935_v17, %v4935_v17  ;;  %v3914_v17 = vld [vmem:[#allocation8 + $0x28] sm:$0xf0]  ;;  %v4008_v18 = vld [vmem:[#allocation8 + $0xe0] sm:$0xf] }
 0x242   : > { %1538 = vadd.xlane.f32.xlu1 %v1537_v20  ;;  %v1511_v62 = vsub.f32 %v1476_v38, %v1503_v23  ;;  %v4652_v38 = vld [vmem:[#allocation8 + $0x74] sm:$0xf]  ;;  %v4667_v19 = vld [vmem:[#allocation8 + $0xe4] sm:$0xf0]  ;;  %v3917_v20 = vor.u32 %v4642_v16, %v3914_v17  ;;  %v4666_v23 = vld [vmem:[#allocation8 + $0xe4] sm:$0xf]  ;;  %1895 = vmatpush.bf16.msrb.mxu0 %v3913_v34 }
 0x243   : > { %3892 = vmatmul.msk.bf16.vlgmr.msra.gmra.mxu2 %vm1479_vm0, %v1620_v21  ;;  %v1591_v29 = vunpack.c.l.b16 %v1555_v24  ;;  %v3957_v41 = vor.u32 %v4652_v38, %v3954_v40  ;;  %v4009_v21 = vor.u32 %v4667_v19, %v4008_v18  ;;  %v3904_v24 = vld [vmem:[#allocation8 + $0x10] sm:$0xf]  ;;  %v3992_v38 = vld [vmem:[#allocation8 + $0xc0] sm:$0xf]  ;;  %v4662_v40 = vld [vmem:[#allocation8 + $0xc4] sm:$0xf] }
 0x244   : > { %v4937_v1 = vpop.eup %4936  ;;  %v1526_v25 = vmul.f32 1.442695, %v1511_v62  ;;  %v4010_v62 = vld [vmem:[#allocation8 + $0xe8] sm:$0xf0]  ;;  %v3997_v43 = vor.u32 %v4662_v40, %v3994_v42  ;;  %v1724_v40 = vld [vmem:[%s5957_s4] sm:$0x3] }
 0x245   : > { %v4939_v26 = vpop.eup %4938  ;;  %v1546_v27 = vsel %vm1479_vm0, %v4937_v1, 0.0  ;;  %v1558_v9 = vpack.c.bf16 %v4937_v1, %v4937_v1  ;;  %1928 = vmatpush.bf16.msrb.mxu2 %v3957_v41  ;;  %v4013_v1 = vor.u32 %v4666_v23, %v4010_v62  ;;  %1910 = vmatpush.bf16.msrb.mxu1 %v4009_v21  ;;  %v3993_v41 = vor.u32 %v4663_v49, %v3992_v38 }
 0x246   : > { %v1554_v3 = vpack.c.bf16 %v4939_v26, %v4939_v26  ;;  %4940 = vpow2.f32 %v1526_v25  ;;  %1547 = vadd.xlane.f32.xlu2 %v1546_v27  ;;  %v1534_v28 = vsel %vm1479_vm0, %v4939_v26, 0.0  ;;  %v4641_v25 = vld [vmem:[#allocation8 + $0x14] sm:$0xf0]  ;;  %v4640_v26 = vld [vmem:[#allocation8 + $0x14] sm:$0xf]  ;;  %v1726_v42 = vperm.slane %v1724_v40, 0 }
 0x247   : > { %1535 = vadd.xlane.f32.xlu0 %v1534_v28  ;;  %v1646_v33 = vunpack.c.l.b16 %v1558_v9  ;;  %v3905_v27 = vor.u32 %v4641_v25, %v3904_v24  ;;  %1948 = vmatpush.bf16.msrb.mxu3 %v4013_v1  ;;  %v1727_v47 = vperm.slane %v1724_v40, 1  ;;  %v4700_v40 = vld [vmem:[#allocation11 + $0xec] sm:$0xf0] }
 0x248   : > { %v1590_v30 = vunpack.c.l.b16 %v1554_v3  ;;  %v3906_v3 = vld [vmem:[#allocation8 + $0x18] sm:$0xf0] }
 0x249   : > { %1929 = vmatpush.bf16.msrb.mxu2 %v3949_v48  ;;  %v3909_v28 = vor.u32 %v4640_v26, %v3906_v3  ;;  %1896 = vmatpush.bf16.msrb.mxu0 %v3905_v27  ;;  %v3985_v48 = vor.u32 %v4661_v46, %v3984_v45 }
 0x24a   : > { %v1592_v31 = vpack.c.b16 %v1591_v29, %v1590_v30  ;;  %v4000_v29 = vld [vmem:[#allocation8 + $0xd0] sm:$0xf]  ;;  %v4665_v30 = vld [vmem:[#allocation8 + $0xd4] sm:$0xf0] }
 0x24b   : > { %v4001_v9 = vor.u32 %v4665_v30, %v4000_v29 }
 0x24c   : > { %v4941_v32 = vpop.eup %4940  ;;  %3891 = vmatmul.msk.bf16.vlgmr.msra.gmra.mxu1 %vm1479_vm0, %v1592_v31  ;;  %v4664_v31 = vld [vmem:[#allocation8 + $0xd4] sm:$0xf] }
 0x24d   : > { %v1559_v63 = vpack.c.bf16 %v4941_v32, %v4941_v32  ;;  %v1549_v22 = vsel %vm1479_vm0, %v4941_v32, 0.0  ;;  %1930 = vmatpush.bf16.msrb.mxu2 %v3941_v55  ;;  %v4002_v32 = vld [vmem:[#allocation8 + $0xd8] sm:$0xf0]  ;;  %1911 = vmatpush.bf16.msrb.mxu1 %v4001_v9  ;;  %v3977_v55 = vor.u32 %v4659_v53, %v3976_v52 }
 0x24e   : > { %v4976_v53 = vld [vmem:[%s5529_s21] sm:$0xff] }
 0x24f   : > { %v1647_v35 = vunpack.c.l.b16 %v1559_v63  ;;  %1550 = vadd.xlane.f32.xlu0 %v1549_v22  ;;  %v4005_v63 = vor.u32 %v4664_v31, %v4002_v32  ;;  %v3896_v22 = vld [vmem:[#allocation8] sm:$0xf] }
 0x251   : > { %v1648_v4 = vpack.c.b16 %v1647_v35, %v1646_v33  ;;  %1931 = vmatpush.bf16.msrb.mxu2 %v3933_v5  ;;  %v4639_v33 = vld [vmem:[#allocation8 + $0x4] sm:$0xf0]  ;;  %v4638_v35 = vld [vmem:[#allocation8 + $0x4] sm:$0xf]  ;;  %1949 = vmatpush.bf16.msrb.mxu3 %v4005_v63  ;;  %v3969_v5 = vor.u32 %v4657_v59, %v3968_v2 }
 0x252   : > { %v3901_v37 = vor.u32 %v4638_v35, %v3898_v36  ;;  %1912 = vmatpush.bf16.msrb.mxu1 %v3993_v41  ;;  %v4977_v59 = vld [vmem:[%s5529_s21 + $0x8] sm:$0xff] }
 0x253   : > { %3893 = vmatmul.msk.bf16.vlgmr.msra.gmra.mxu3 %vm1479_vm0, %v1648_v4  ;;  %v3897_v4 = vor.u32 %v4639_v33, %v3896_v22 }
 0x255   : > { %1932 = vmatpush.bf16.msrb.mxu2 %v3925_v10  ;;  %1897 = vmatpush.bf16.msrb.mxu0 %v3897_v4  ;;  %v3961_v10 = vor.u32 %v4655_v8, %v3960_v60 }
 0x256   : > { %1950 = vmatpush.bf16.msrb.mxu3 %v3997_v43  ;;  %1913 = vmatpush.bf16.msrb.mxu1 %v3985_v48 }
 0x259   : > { %1933 = vmatpush.bf16.msrb.mxu2 %v3917_v20 }
 0x25a   : > { %1951 = vmatpush.bf16.msrb.mxu3 %v3989_v51  ;;  %1914 = vmatpush.bf16.msrb.mxu1 %v3977_v55 }
 0x25d   : > { %1934 = vmatpush.bf16.msrb.mxu2 %v3909_v28 }
 0x25e   : > { %1952 = vmatpush.bf16.msrb.mxu3 %v3981_v56  ;;  %1915 = vmatpush.bf16.msrb.mxu1 %v3969_v5 }
 0x261   : > { %1935 = vmatpush.bf16.msrb.mxu2 %v3901_v37 }
 0x262   : > { %1953 = vmatpush.bf16.msrb.mxu3 %v3973_v7  ;;  %1916 = vmatpush.bf16.msrb.mxu1 %v3961_v10 }
 0x266   : > { %1954 = vmatpush.bf16.msrb.mxu3 %v3965_v12 }
 0x29d   : > { %v1530_v13 = vpop.xlane.xlu2 %1529 }
 0x29e   : > { %4942 = vrcp.f32 %v1530_v13 }
 0x2a4   : > { %v4943_v0 = vpop.eup %4942 }
 0x2a5   : > { %v1533_v14 = vpop.xlane.xlu0 %1532 }
 0x2a6   : > { %4944 = vrcp.f32 %v1533_v14 }
 0x2a9   : > { %v1542_v18 = vpop.xlane.xlu1 %1541 }
 0x2aa   : > { %4946 = vrcp.f32 %v1542_v18 }
 0x2ac   : > { %v4945_v39 = vpop.eup %4944 }
 0x2b0   : > { %v4947_v1 = vpop.eup %4946 }
 0x2b1   : > { %v1545_v19 = vpop.xlane.xlu2 %1544 }
 0x2b2   : > { %4948 = vrcp.f32 %v1545_v19 }
 0x2b4   : > { %v1583_v61 = vpop.f32.mrf.mxu0 }
 0x2b5   : > { %v1680_v16 = vmul.f32 %v4943_v0, %v1583_v61  ;;  %v1539_v21 = vpop.xlane.xlu1 %1538 }
 0x2b6   : > { %4950 = vrcp.f32 %v1539_v21 }
 0x2b8   : > { %v4949_v24 = vpop.eup %4948 }
 0x2b9   : > { %v1548_v32 = vpop.xlane.xlu2 %1547 }
 0x2ba   : > { %v1536_v23 = vpop.xlane.xlu0 %1535 }
 0x2bb   : > { %4952 = vrcp.f32 %v1536_v23  ;;  %v4980_v23 = vld [vmem:[%s5529_s21 + $0x20] sm:$0xff] }
 0x2bc   : > { %v1585_v15 = vpop.f32.mrf.mxu0  ;;  %v4951_v3 = vpop.eup %4950  ;;  %4954 = vrcp.f32 %v1548_v32 }
 0x2bd   : > { %v1681_v34 = vmul.f32 %v4945_v39, %v1585_v15  ;;  %v4979_v39 = vld [vmem:[%s5529_s21 + $0x18] sm:$0xff] }
 0x2bf   : > { %v1688_v17 = vpack.c.bf16 %v1681_v34, %v1680_v16 }
 0x2c1   : > { %1898 = vmatmul.bf16.vlgmr.msrb.gmra.mxu0 %v1688_v17  ;;  %1936 = vmatmul.bf16.vlgmr.msrb.gmra.mxu2 %v1688_v17  ;;  %v4953_v28 = vpop.eup %4952 }
 0x2c2   : > { %v1551_v22 = vpop.xlane.xlu0 %1550  ;;  %v4955_v35 = vpop.eup %4954 }
 0x2c3   : > { %4956 = vrcp.f32 %v1551_v22 }
 0x2c6   : > { %v1639_v20 = vpop.f32.mrf.mxu2 }
 0x2c7   : > { %v1684_v26 = vmul.f32 %v4947_v1, %v1639_v20 }
 0x2c9   : > { %v1611_v62 = vpop.f32.mrf.mxu1  ;;  %v4957_v4 = vpop.eup %4956 }
 0x2ca   : > { %v1682_v31 = vmul.f32 %v4953_v28, %v1611_v62 }
 0x2ce   : > { %v1641_v25 = vpop.f32.mrf.mxu2 }
 0x2cf   : > { %v1685_v27 = vmul.f32 %v4949_v24, %v1641_v25 }
 0x2d1   : > { %v1689_v29 = vpack.c.bf16 %v1685_v27, %v1684_v26  ;;  %v1613_v30 = vpop.f32.mrf.mxu1  ;;  %v4981_v26 = vld [vmem:[%s5529_s21 + $0x28] sm:$0xff] }
 0x2d2   : > { %v1683_v9 = vmul.f32 %v4951_v3, %v1613_v30 }
 0x2d3   : > { %1917 = vmatmul.bf16.vlgmr.msrb.gmra.mxu1 %v1689_v29  ;;  %1955 = vmatmul.bf16.vlgmr.msrb.gmra.mxu3 %v1689_v29 }
 0x2d4   : > { %v1690_v63 = vpack.c.bf16 %v1683_v9, %v1682_v31 }
 0x2d6   : > { %1903 = vmatmul.bf16.gmra.mxu0 %v1690_v63  ;;  %1941 = vmatmul.bf16.gmra.mxu2 %v1690_v63  ;;  %v1667_v33 = vpop.f32.mrf.mxu3  ;;  %v4982_v63 = vld [vmem:[%s5529_s21 + $0x30] sm:$0xff] }
 0x2d7   : > { %v1686_v37 = vmul.f32 %v4955_v35, %v1667_v33  ;;  %v4983_v35 = vld [vmem:[%s5529_s21 + $0x38] sm:$0xff]  ;;  %s3326_s21 = scalar_lea.sflag [#allocation4], %s5523_s16 }
 0x2de   : > { %v1669_v36 = vpop.f32.mrf.mxu3 }
 0x2df   : > { %v1687_v38 = vmul.f32 %v4957_v4, %v1669_v36 }
 0x2e1   : > { %v1691_v49 = vpack.c.bf16 %v1687_v38, %v1686_v37 }
 0x2e3   : > { %1922 = vmatmul.bf16.gmra.mxu1 %v1691_v49  ;;  %1960 = vmatmul.bf16.gmra.mxu3 %v1691_v49  ;;  %v4136_v49 = vld [vmem:[#allocation11 + $0xe0] sm:$0xf] }
 0x33e   : > { %v1899_v41 = vpop.f32.mrf.mxu0 }
 0x33f   : > { %v1900_v46 = vadd.f32 %v1899_v41, %v1726_v42  ;;  %v4264_v41 = vld [vmem:[#allocation11 + $0x1e0] sm:$0xf] }
 0x344   : > { %v1937_v43 = vpop.f32.mrf.mxu2 }
 0x345   : > { %v1938_v51 = vadd.f32 %v1937_v43, %v1727_v47  ;;  %v4137_v43 = vor.u32 %v4700_v40, %v4136_v49  ;;  %v4716_v49 = vld [vmem:[#allocation11 + $0x16c] sm:$0xf0]  ;;  %v4682_v40 = vld [vmem:[#allocation11 + $0x64] sm:$0xf] }
 0x346   : > { %v1901_v50 = vpop.f32.mrf.mxu0 }
 0x347   : > { %v1902_v2 = vadd.f32 %v1901_v50, %v1726_v42  ;;  %2469 = vmatpush.bf16.msra.mxu0 %v4137_v43 }
 0x34c   : > { %v1939_v58 = vpop.f32.mrf.mxu2 }
 0x34d   : > { %v1940_v8 = vadd.f32 %v1939_v58, %v1727_v47  ;;  %v4696_v58 = vld [vmem:[#allocation11 + $0xcc] sm:$0xf0] }
 0x350   : > { %v1918_v45 = vpop.f32.mrf.mxu1 }
 0x351   : > { %v1919_v48 = vadd.f32 %v1918_v45, %v1900_v46  ;;  %v4732_v45 = vld [vmem:[#allocation11 + $0x1ec] sm:$0xf0]  ;;  %v4698_v46 = vld [vmem:[#allocation11 + $0xe4] sm:$0xf] }
 0x353   : > { %v5647_v54 = vadd.f32 %v4976_v53, %v1919_v48  ;;  %v1904_v60 = vpop.f32.mrf.mxu0  ;;  %v4265_v48 = vor.u32 %v4732_v45, %v4264_v41  ;;  %v4074_v41 = vld [vmem:[#allocation11 + $0x70] sm:$0xf0] }
 0x354   : > { %v1905_v0 = vadd.f32 %v1904_v60, %v1726_v42  ;;  %v4077_v45 = vor.u32 %v4682_v40, %v4074_v41 }
 0x355   : > { %v1975_v6 = vmul.f32 %v5647_v54, %v5647_v54  ;;  %2488 = vmatpush.bf16.msra.mxu1 %v4265_v48 }
 0x356   : > { %v1956_v52 = vpop.f32.mrf.mxu3 }
 0x357   : > { %v1957_v55 = vadd.f32 %v1956_v52, %v1938_v51  ;;  %v4730_v51 = vld [vmem:[#allocation11 + $0x1e4] sm:$0xf]  ;;  %v4266_v52 = vld [vmem:[#allocation11 + $0x1f0] sm:$0xf0] }
 0x358   : > { %v1920_v56 = vpop.f32.mrf.mxu1  ;;  %v4269_v53 = vor.u32 %v4730_v51, %v4266_v52  ;;  %v4680_v51 = vld [vmem:[#allocation11 + $0x4c] sm:$0xf0]  ;;  %v4184_v52 = vld [vmem:[#allocation11 + $0x140] sm:$0xf] }
 0x359   : > { %v5650_v44 = vadd.f32 %v4977_v59, %v1957_v55  ;;  %v1921_v5 = vadd.f32 %v1920_v56, %v1902_v2  ;;  %v1942_v14 = vpop.f32.mrf.mxu2  ;;  %v4120_v55 = vld [vmem:[#allocation11 + $0xc0] sm:$0xf]  ;;  %v4728_v59 = vld [vmem:[#allocation11 + $0x1cc] sm:$0xf0] }
 0x35a   : > { %v1943_v18 = vadd.f32 %v1942_v14, %v1727_v47  ;;  %v4248_v56 = vld [vmem:[#allocation11 + $0x1c0] sm:$0xf]  ;;  %2526 = vmatpush.bf16.msra.mxu3 %v4269_v53  ;;  %v4121_v2 = vor.u32 %v4696_v58, %v4120_v55  ;;  %v4692_v14 = vld [vmem:[#allocation11 + $0xac] sm:$0xf0]  ;;  %v4678_v58 = vld [vmem:[#allocation11 + $0x44] sm:$0xf] }
 0x35b   : > { %v1976_v7 = vmul.f32 %v5650_v44, %v5650_v44  ;;  %v5657_v12 = vadd.f32 %v4978_v11, %v1921_v5  ;;  %v1906_v20 = vpop.f32.mrf.mxu0  ;;  %v4694_v5 = vld [vmem:[#allocation11 + $0xc4] sm:$0xf]  ;;  %v4712_v55 = vld [vmem:[#allocation11 + $0x14c] sm:$0xf0] }
 0x35c   : > { %v1907_v25 = vadd.f32 %v1906_v20, %v1726_v42  ;;  %v5321_v42 = vmov 256.0   ;;  %2470 = vmatpush.bf16.msra.mxu0 %v4121_v2  ;;  %v4722_v20 = vld [vmem:[#allocation11 + $0x1a4] sm:$0xf] }
 0x35d   : > { %v1983_v57 = vadd.f32 %v1976_v7, %v1975_v6  ;;  %v1977_v34 = vmul.f32 %v5657_v12, %v5657_v12  ;;  %4958 = vrcp.f32 %v5321_v42  ;;  %v4122_v6 = vld [vmem:[#allocation11 + $0xd0] sm:$0xf0]  ;;  %v4249_v7 = vor.u32 %v4728_v59, %v4248_v56 }
 0x35e   : > { %v1958_v10 = vpop.f32.mrf.mxu3  ;;  %v4125_v60 = vor.u32 %v4694_v5, %v4122_v6  ;;  %v4058_v56 = vld [vmem:[#allocation11 + $0x50] sm:$0xf0]  ;;  %v4185_v59 = vor.u32 %v4712_v55, %v4184_v52  ;;  %v4710_v6 = vld [vmem:[#allocation11 + $0x144] sm:$0xf]  ;;  %v4695_v55 = vld [vmem:[#allocation11 + $0xcc] sm:$0xf] }
 0x35f   : > { %v1959_v13 = vadd.f32 %v1958_v10, %v1940_v8  ;;  %1984 = vadd.xlane.f32.xlu1 %v1983_v57  ;;  %v4726_v8 = vld [vmem:[#allocation11 + $0x1c4] sm:$0xf]  ;;  %v4250_v57 = vld [vmem:[#allocation11 + $0x1d0] sm:$0xf0]  ;;  %2489 = vmatpush.bf16.msra.mxu1 %v4249_v7  ;;  %v4061_v5 = vor.u32 %v4678_v58, %v4058_v56  ;;  %v4130_v58 = vld [vmem:[#allocation11 + $0xd8] sm:$0xf0] }
 0x360   : > { %v1923_v61 = vpop.f32.mrf.mxu1  ;;  %v4253_v11 = vor.u32 %v4726_v8, %v4250_v57  ;;  %v4186_v7 = vld [vmem:[#allocation11 + $0x150] sm:$0xf0]  ;;  %v4040_v8 = vld [vmem:[#allocation11 + $0x20] sm:$0xf]  ;;  %v4676_v57 = vld [vmem:[#allocation11 + $0x2c] sm:$0xf0] }
 0x361   : > { %v5660_v15 = vadd.f32 %v4979_v39, %v1959_v13  ;;  %v1924_v16 = vadd.f32 %v1923_v61, %v1905_v0  ;;  %v1944_v3 = vpop.f32.mrf.mxu2  ;;  %v4104_v13 = vld [vmem:[#allocation11 + $0xa0] sm:$0xf]  ;;  %v4724_v39 = vld [vmem:[#allocation11 + $0x1ac] sm:$0xf0] }
 0x362   : > { %v1945_v31 = vadd.f32 %v1944_v3, %v1727_v47  ;;  %v4138_v47 = vld [vmem:[#allocation11 + $0xf0] sm:$0xf0]  ;;  %v4232_v61 = vld [vmem:[#allocation11 + $0x1a0] sm:$0xf]  ;;  %2527 = vmatpush.bf16.msra.mxu3 %v4253_v11  ;;  %v4105_v0 = vor.u32 %v4692_v14, %v4104_v13  ;;  %v4720_v3 = vld [vmem:[#allocation11 + $0x18c] sm:$0xf0]  ;;  %v4041_v13 = vor.u32 %v4676_v57, %v4040_v8 }
 0x363   : > { %v1978_v17 = vmul.f32 %v5660_v15, %v5660_v15  ;;  %v5667_v62 = vadd.f32 %v4980_v23, %v1924_v16  ;;  %v4141_v50 = vor.u32 %v4698_v46, %v4138_v47  ;;  %v5686_v10 = vpop.eup %4958  ;;  %v4690_v16 = vld [vmem:[#allocation11 + $0xa4] sm:$0xf]  ;;  %v4202_v47 = vld [vmem:[#allocation11 + $0x170] sm:$0xf0]  ;;  %v4168_v11 = vld [vmem:[#allocation11 + $0x120] sm:$0xf] }
 0x364   : > { %2471 = vmatpush.bf16.msra.mxu0 %v4105_v0  ;;  %v4714_v46 = vld [vmem:[#allocation11 + $0x164] sm:$0xf]  ;;  %vm2000_vm1 = vweird.f32 %v5686_v10  ;;  %v4708_v14 = vld [vmem:[#allocation11 + $0x12c] sm:$0xf0]  ;;  %v4042_v0 = vld [vmem:[#allocation11 + $0x30] sm:$0xf0] }
 0x365   : > { %v1986_v19 = vadd.f32 %v1978_v17, %v1977_v34  ;;  %v1979_v29 = vmul.f32 %v5667_v62, %v5667_v62  ;;  %2507 = vmatpush.bf16.msra.mxu2 %v4141_v50  ;;  %v4106_v34 = vld [vmem:[#allocation11 + $0xb0] sm:$0xf0]  ;;  %v1996_v17 = vmul.f32 256.0, %v5686_v10  ;;  %v4205_v48 = vor.u32 %v4714_v46, %v4202_v47  ;;  %v4056_v50 = vld [vmem:[#allocation11 + $0x40] sm:$0xf] }
 0x366   : > { %v1961_v21 = vpop.f32.mrf.mxu3  ;;  %v4057_v53 = vor.u32 %v4680_v51, %v4056_v50  ;;  %v4128_v47 = vld [vmem:[#allocation11 + $0xc8] sm:$0xf] }
 0x367   : > { %v1962_v1 = vadd.f32 %v1961_v21, %v1943_v18  ;;  %1987 = vadd.xlane.f32.xlu2 %v1986_v19  ;;  %v4233_v18 = vor.u32 %v4724_v39, %v4232_v61  ;;  %v4109_v19 = vor.u32 %v4690_v16, %v4106_v34  ;;  %v4234_v21 = vld [vmem:[#allocation11 + $0x1b0] sm:$0xf0]  ;;  %v4674_v61 = vld [vmem:[#allocation11 + $0x24] sm:$0xf]  ;;  %v4169_v16 = vor.u32 %v4708_v14, %v4168_v11  ;;  %v4256_v50 = vld [vmem:[#allocation11 + $0x1c8] sm:$0xf] }
 0x368   : > { %v1925_v24 = vpop.f32.mrf.mxu1  ;;  %v4237_v23 = vor.u32 %v4722_v20, %v4234_v21  ;;  %v4045_v34 = vor.u32 %v4674_v61, %v4042_v0  ;;  %v4024_v21 = vld [vmem:[#allocation11] sm:$0xf]  ;;  %v4112_v57 = vld [vmem:[#allocation11 + $0xa8] sm:$0xf]  ;;  %v4693_v11 = vld [vmem:[#allocation11 + $0xb4] sm:$0xf0] }
 0x369   : > { %v5670_v27 = vadd.f32 %v4981_v26, %v1962_v1  ;;  %v1926_v28 = vadd.f32 %v1925_v24, %v1907_v25  ;;  %2508 = vmatpush.bf16.msra.mxu2 %v4125_v60  ;;  %2490 = vmatpush.bf16.msra.mxu1 %v4233_v18  ;;  %v4088_v1 = vld [vmem:[#allocation11 + $0x80] sm:$0xf]  ;;  %v4688_v24 = vld [vmem:[#allocation11 + $0x8c] sm:$0xf0]  ;;  %v4189_v60 = vor.u32 %v4710_v6, %v4186_v7  ;;  %v4170_v18 = vld [vmem:[#allocation11 + $0x130] sm:$0xf0] }
 0x36a   : > { %v4216_v25 = vld [vmem:[#allocation11 + $0x180] sm:$0xf]  ;;  %2528 = vmatpush.bf16.msra.mxu3 %v4237_v23  ;;  %v4089_v26 = vor.u32 %v4688_v24, %v4088_v1  ;;  %v4672_v23 = vld [vmem:[#allocation11 + $0xc] sm:$0xf0]  ;;  %v4113_v14 = vor.u32 %v4693_v11, %v4112_v57  ;;  %v4725_v61 = vld [vmem:[#allocation11 + $0x1b4] sm:$0xf0] }
 0x36b   : > { %v1980_v30 = vmul.f32 %v5670_v27, %v5670_v27  ;;  %v5677_v22 = vadd.f32 %v4982_v63, %v1926_v28  ;;  %v4686_v28 = vld [vmem:[#allocation11 + $0x84] sm:$0xf]  ;;  %v4218_v63 = vld [vmem:[#allocation11 + $0x190] sm:$0xf0]  ;;  %v4152_v1 = vld [vmem:[#allocation11 + $0x100] sm:$0xf] }
 0x36c   : > { %2472 = vmatpush.bf16.msra.mxu0 %v4089_v26  ;;  %v4704_v26 = vld [vmem:[#allocation11 + $0x10c] sm:$0xf0]  ;;  %v4691_v0 = vld [vmem:[#allocation11 + $0xac] sm:$0xf] }
 0x36d   : > { %v1989_v9 = vadd.f32 %v1980_v30, %v1979_v29  ;;  %v1981_v36 = vmul.f32 %v5677_v22, %v5677_v22  ;;  %2509 = vmatpush.bf16.msra.mxu2 %v4109_v19  ;;  %v4090_v29 = vld [vmem:[#allocation11 + $0x90] sm:$0xf0]  ;;  %v1997_v30 = vsub.f32 1.0, %v1996_v17  ;;  %v4706_v17 = vld [vmem:[#allocation11 + $0x124] sm:$0xf] }
 0x36e   : > { %v1963_v32 = vpop.f32.mrf.mxu3  ;;  %v4173_v19 = vor.u32 %v4706_v17, %v4170_v18  ;;  %v4114_v17 = vld [vmem:[#allocation11 + $0xb8] sm:$0xf0]  ;;  %v4723_v18 = vld [vmem:[#allocation11 + $0x1ac] sm:$0xf] }
 0x36f   : > { %v1964_v33 = vadd.f32 %v1963_v32, %v1945_v31  ;;  %1990 = vadd.xlane.f32.xlu0 %v1989_v9  ;;  %v4217_v31 = vor.u32 %v4720_v3, %v4216_v25  ;;  %v4093_v9 = vor.u32 %v4686_v28, %v4090_v29  ;;  %v4718_v32 = vld [vmem:[#allocation11 + $0x184] sm:$0xf]  ;;  %v1998_v42 = vmul.f32 %v5686_v10, %v1997_v30 }
 0x370   : > { %v4025_v25 = vor.u32 %v4672_v23, %v4024_v21  ;;  %v4670_v3 = vld [vmem:[#allocation11 + $0x4] sm:$0xf]  ;;  %v4153_v28 = vor.u32 %v4704_v26, %v4152_v1  ;;  %v4096_v23 = vld [vmem:[#allocation11 + $0x88] sm:$0xf]  ;;  %v4689_v1 = vld [vmem:[#allocation11 + $0x94] sm:$0xf0] }
 0x371   : > { %v5680_v4 = vadd.f32 %v4983_v35, %v1964_v33  ;;  %v4221_v33 = vor.u32 %v4718_v32, %v4218_v63  ;;  %2491 = vmatpush.bf16.msra.mxu1 %v4217_v31  ;;  %2510 = vmatpush.bf16.msra.mxu2 %v4093_v9  ;;  %v4072_v35 = vld [vmem:[#allocation11 + $0x60] sm:$0xf]  ;;  %v1999_v2 = vadd.f32 %v5686_v10, %v1998_v42  ;;  %v4702_v30 = vld [vmem:[#allocation11 + $0x104] sm:$0xf]  ;;  %v4154_v31 = vld [vmem:[#allocation11 + $0x110] sm:$0xf0] }
 0x372   : > { %v4157_v32 = vor.u32 %v4702_v30, %v4154_v31  ;;  %v4144_v63 = vld [vmem:[#allocation11 + $0xe8] sm:$0xf]  ;;  %v4731_v42 = vld [vmem:[#allocation11 + $0x1ec] sm:$0xf]  ;;  %v4098_v31 = vld [vmem:[#allocation11 + $0x98] sm:$0xf0] }
 0x373   : > { %v1982_v37 = vmul.f32 %v5680_v4, %v5680_v4  ;;  %2529 = vmatpush.bf16.msra.mxu3 %v4221_v33  ;;  %v5693_v39 = vsel %vm2000_vm1, %v5686_v10, %v1999_v2  ;;  %v4026_v10 = vld [vmem:[#allocation11 + $0x10] sm:$0xf0]  ;;  %v4701_v33 = vld [vmem:[#allocation11 + $0xf4] sm:$0xf0]  ;;  %v4133_v2 = vor.u32 %v4695_v55, %v4130_v58  ;;  %v4210_v55 = vld [vmem:[#allocation11 + $0x178] sm:$0xf0] }
 0x374   : > { %v4029_v29 = vor.u32 %v4670_v3, %v4026_v10  ;;  %v4097_v3 = vor.u32 %v4689_v1, %v4096_v23  ;;  %v4721_v10 = vld [vmem:[#allocation11 + $0x194] sm:$0xf0] }
 0x375   : > { %v1992_v38 = vadd.f32 %v1982_v37, %v1981_v36  ;;  %v4684_v36 = vld [vmem:[#allocation11 + $0x6c] sm:$0xf0]  ;;  %v4200_v37 = vld [vmem:[#allocation11 + $0x160] sm:$0xf]  ;;  %2511 = vmatpush.bf16.msra.mxu2 %v4077_v45  ;;  %v4677_v23 = vld [vmem:[#allocation11 + $0x34] sm:$0xf0] }
 0x376   : > { %v4201_v43 = vor.u32 %v4716_v49, %v4200_v37  ;;  %v4733_v37 = vld [vmem:[#allocation11 + $0x1f4] sm:$0xf0]  ;;  %v4146_v49 = vld [vmem:[#allocation11 + $0xf8] sm:$0xf0] }
 0x377   : > { %1993 = vadd.xlane.f32.xlu1 %v1992_v38  ;;  %v4073_v38 = vor.u32 %v4684_v36, %v4072_v35  ;;  %2530 = vmatpush.bf16.msra.mxu3 %v4205_v48  ;;  %v4272_v35 = vld [vmem:[#allocation11 + $0x1e8] sm:$0xf]  ;;  %v4145_v36 = vor.u32 %v4701_v33, %v4144_v63  ;;  %v4697_v48 = vld [vmem:[#allocation11 + $0xd4] sm:$0xf0]  ;;  %v4226_v63 = vld [vmem:[#allocation11 + $0x198] sm:$0xf0] }
 0x378   : > { %2492 = vmatpush.bf16.msra.mxu1 %v4201_v43  ;;  %v4273_v40 = vor.u32 %v4733_v37, %v4272_v35  ;;  %v4274_v43 = vld [vmem:[#allocation11 + $0x1f8] sm:$0xf0]  ;;  %v4129_v52 = vor.u32 %v4697_v48, %v4128_v47  ;;  %v4717_v47 = vld [vmem:[#allocation11 + $0x174] sm:$0xf0]  ;;  %v4683_v48 = vld [vmem:[#allocation11 + $0x6c] sm:$0xf] }
 0x379   : > { %2473 = vmatpush.bf16.msra.mxu0 %v4073_v38  ;;  %2512 = vmatpush.bf16.msra.mxu2 %v4061_v5  ;;  %v4699_v38 = vld [vmem:[#allocation11 + $0xec] sm:$0xf]  ;;  %v4277_v45 = vor.u32 %v4731_v42, %v4274_v43  ;;  %v4258_v5 = vld [vmem:[#allocation11 + $0x1d8] sm:$0xf0]  ;;  %v4208_v42 = vld [vmem:[#allocation11 + $0x168] sm:$0xf] }
 0x37a   : > { %v4149_v41 = vor.u32 %v4699_v38, %v4146_v49 }
 0x37b   : > { %2531 = vmatpush.bf16.msra.mxu3 %v4189_v60 }
 0x37c   : > { %2493 = vmatpush.bf16.msra.mxu1 %v4185_v59  ;;  %v4727_v59 = vld [vmem:[#allocation11 + $0x1cc] sm:$0xf] }
 0x37d   : > { %2474 = vmatpush.bf16.msra.mxu0 %v4057_v53  ;;  %2513 = vmatpush.bf16.msra.mxu2 %v4045_v34  ;;  %v4729_v53 = vld [vmem:[#allocation11 + $0x1d4] sm:$0xf0]  ;;  %v4261_v60 = vor.u32 %v4727_v59, %v4258_v5  ;;  %v4192_v5 = vld [vmem:[#allocation11 + $0x148] sm:$0xf] }
 0x37e   : > { %v4257_v56 = vor.u32 %v4729_v53, %v4256_v50  ;;  %v4715_v53 = vld [vmem:[#allocation11 + $0x16c] sm:$0xf]  ;;  %v4681_v59 = vld [vmem:[#allocation11 + $0x54] sm:$0xf0] }
 0x37f   : > { %2532 = vmatpush.bf16.msra.mxu3 %v4173_v19  ;;  %v4242_v19 = vld [vmem:[#allocation11 + $0x1b8] sm:$0xf0] }
 0x380   : > { %2494 = vmatpush.bf16.msra.mxu1 %v4169_v16  ;;  %v4245_v21 = vor.u32 %v4723_v18, %v4242_v19 }
 0x381   : > { %2475 = vmatpush.bf16.msra.mxu0 %v4041_v13  ;;  %2514 = vmatpush.bf16.msra.mxu2 %v4029_v29  ;;  %v4240_v13 = vld [vmem:[#allocation11 + $0x1a8] sm:$0xf] }
 0x382   : > { %v4241_v34 = vor.u32 %v4725_v61, %v4240_v13  ;;  %v4713_v13 = vld [vmem:[#allocation11 + $0x154] sm:$0xf0] }
 0x383   : > { %2533 = vmatpush.bf16.msra.mxu3 %v4157_v32  ;;  %v4719_v32 = vld [vmem:[#allocation11 + $0x18c] sm:$0xf]  ;;  %v4193_v18 = vor.u32 %v4713_v13, %v4192_v5 }
 0x384   : > { %2495 = vmatpush.bf16.msra.mxu1 %v4153_v28  ;;  %v4687_v28 = vld [vmem:[#allocation11 + $0x8c] sm:$0xf] }
 0x385   : > { %2476 = vmatpush.bf16.msra.mxu0 %v4025_v25  ;;  %2583 = vmatpush.bf16.msrb.mxu2 %v4149_v41  ;;  %v4101_v35 = vor.u32 %v4687_v28, %v4098_v31  ;;  %v4685_v41 = vld [vmem:[#allocation11 + $0x74] sm:$0xf0]  ;;  %v4050_v31 = vld [vmem:[#allocation11 + $0x38] sm:$0xf0] }
 0x387   : > { %2602 = vmatpush.bf16.msrb.mxu3 %v4277_v45  ;;  %v1974_v45 = vld [vmem:[#allocation10] sm:$0x3] }
 0x388   : > { %2564 = vmatpush.bf16.msrb.mxu1 %v4273_v40  ;;  %v4080_v40 = vld [vmem:[#allocation11 + $0x68] sm:$0xf]  ;;  %v5722_v57 = vperm.slane %v1974_v45, 0 }
 0x389   : > { %2545 = vmatpush.bf16.msrb.mxu0 %v4145_v36  ;;  %2584 = vmatpush.bf16.msrb.mxu2 %v4133_v2  ;;  %v4229_v36 = vor.u32 %v4719_v32, %v4226_v63  ;;  %v4064_v2 = vld [vmem:[#allocation11 + $0x48] sm:$0xf]  ;;  %v4707_v32 = vld [vmem:[#allocation11 + $0x12c] sm:$0xf] }
 0x38a   : > { %v4065_v11 = vor.u32 %v4681_v59, %v4064_v2 }
 0x38b   : > { %2603 = vmatpush.bf16.msrb.mxu3 %v4261_v60 }
 0x38c   : > { %2565 = vmatpush.bf16.msrb.mxu1 %v4257_v56  ;;  %v4213_v56 = vor.u32 %v4715_v53, %v4210_v55  ;;  %v4162_v53 = vld [vmem:[#allocation11 + $0x118] sm:$0xf0] }
 0x38d   : > { %2546 = vmatpush.bf16.msrb.mxu0 %v4129_v52  ;;  %v4082_v52 = vld [vmem:[#allocation11 + $0x78] sm:$0xf0] }
 0x38e   : > { %v4085_v58 = vor.u32 %v4683_v48, %v4082_v52  ;;  %v4034_v48 = vld [vmem:[#allocation11 + $0x18] sm:$0xf0]  ;;  %v4703_v52 = vld [vmem:[#allocation11 + $0x10c] sm:$0xf] }
 0x38f   : > { %2604 = vmatpush.bf16.msrb.mxu3 %v4245_v21  ;;  %v4048_v21 = vld [vmem:[#allocation11 + $0x28] sm:$0xf] }
 0x390   : > { %2566 = vmatpush.bf16.msrb.mxu1 %v4241_v34  ;;  %v4194_v34 = vld [vmem:[#allocation11 + $0x158] sm:$0xf0] }
 0x391   : > { %2547 = vmatpush.bf16.msrb.mxu0 %v4113_v14  ;;  %v4679_v14 = vld [vmem:[#allocation11 + $0x4c] sm:$0xf] }
 0x393   : > { %2605 = vmatpush.bf16.msrb.mxu3 %v4229_v36  ;;  %v4032_v36 = vld [vmem:[#allocation11 + $0x8] sm:$0xf] }
 0x395   : > { %2548 = vmatpush.bf16.msrb.mxu0 %v4097_v3 }
 0x397   : > { %2606 = vmatpush.bf16.msrb.mxu3 %v4213_v56 }
 0x3d2   : > { %v1985_v20 = vpop.xlane.xlu1 %1984 }
 0x3d3   : > { %v2002_v24 = vmul.f32 %v5693_v39, %v1985_v20  ;;  %v4117_v20 = vor.u32 %v4691_v0, %v4114_v17  ;;  %v4066_v0 = vld [vmem:[#allocation11 + $0x58] sm:$0xf0] }
 0x3d4   : > { %v4069_v19 = vor.u32 %v4679_v14, %v4066_v0 }
 0x3d5   : > { %v5696_v9 = vadd.f32 1e-06, %v2002_v24  ;;  %v4224_v24 = vld [vmem:[#allocation11 + $0x188] sm:$0xf]  ;;  %2585 = vmatpush.bf16.msrb.mxu2 %v4117_v20 }
 0x3d6   : > { %v4225_v30 = vor.u32 %v4721_v10, %v4224_v24  ;;  %v4049_v24 = vor.u32 %v4677_v23, %v4048_v21 }
 0x3d7   : > { %4960 = vrsqrt.f32 %v5696_v9  ;;  %vm2016_vm3 = vweird.f32 %v5696_v9 }
 0x3d8   : > { %2567 = vmatpush.bf16.msrb.mxu1 %v4225_v30  ;;  %v4675_v30 = vld [vmem:[#allocation11 + $0x2c] sm:$0xf] }
 0x3d9   : > { %2586 = vmatpush.bf16.msrb.mxu2 %v4101_v35  ;;  %v4178_v35 = vld [vmem:[#allocation11 + $0x138] sm:$0xf0] }
 0x3da   : > { %v1988_v46 = vpop.xlane.xlu2 %1987 }
 0x3db   : > { %v2003_v51 = vmul.f32 %v5693_v39, %v1988_v46  ;;  %v4081_v46 = vor.u32 %v4685_v41, %v4080_v40  ;;  %v4181_v41 = vor.u32 %v4707_v32, %v4178_v35  ;;  %v4384_v35 = vld [vmem:[#allocation13 + $0xd0] sm:$0xf] }
 0x3dd   : > { %v5700_v6 = vpop.eup %4960  ;;  %v5702_v7 = vadd.f32 1e-06, %v2003_v51  ;;  %v4209_v51 = vor.u32 %v4717_v47, %v4208_v42  ;;  %2549 = vmatpush.bf16.msrb.mxu0 %v4081_v46  ;;  %2587 = vmatpush.bf16.msrb.mxu2 %v4085_v58  ;;  %v4160_v42 = vld [vmem:[#allocation11 + $0x108] sm:$0xf]  ;;  %v4671_v47 = vld [vmem:[#allocation11 + $0xc] sm:$0xf] }
 0x3de   : > { %v2011_v8 = vmul.f32 %v5700_v6, %v5696_v9  ;;  %vm2017_vm2 = vweird.f32 %v5700_v6  ;;  %v4037_v5 = vor.u32 %v4671_v47, %v4034_v48  ;;  %v4368_v48 = vld [vmem:[#allocation13 + $0xb0] sm:$0xf] }
 0x3df   : > { %4962 = vrsqrt.f32 %v5702_v7  ;;  %vm2018_vm4 = vmor %vm2016_vm3, %vm2017_vm2  ;;  %2568 = vmatpush.bf16.msrb.mxu1 %v4209_v51  ;;  %vm2026_vm6 = vweird.f32 %v5702_v7 }
 0x3e0   : > { %v2012_v16 = vmul.f32 %v5700_v6, %v2011_v8 }
 0x3e1   : > { %2550 = vmatpush.bf16.msrb.mxu0 %v4065_v11  ;;  %2588 = vmatpush.bf16.msrb.mxu2 %v4069_v19 }
 0x3e2   : > { %v2013_v25 = vmul.f32 0.5, %v2012_v16  ;;  %v1991_v26 = vpop.xlane.xlu0 %1990  ;;  %v4711_v16 = vld [vmem:[#allocation11 + $0x14c] sm:$0xf] }
 0x3e3   : > { %v2004_v29 = vmul.f32 %v5693_v39, %v1991_v26  ;;  %v4197_v20 = vor.u32 %v4711_v16, %v4194_v34  ;;  %v4709_v26 = vld [vmem:[#allocation11 + $0x134] sm:$0xf0]  ;;  %2569 = vmatpush.bf16.msrb.mxu1 %v4193_v18 }
 0x3e4   : > { %v2014_v33 = vsub.f32 1.5, %v2013_v25  ;;  %v4176_v25 = vld [vmem:[#allocation11 + $0x128] sm:$0xf] }
 0x3e5   : > { %v5709_v37 = vpop.eup %4962  ;;  %v5711_v38 = vadd.f32 1e-06, %v2004_v29  ;;  %v4177_v29 = vor.u32 %v4709_v26, %v4176_v25  ;;  %2607 = vmatpush.bf16.msrb.mxu3 %v4197_v20  ;;  %2551 = vmatpush.bf16.msrb.mxu0 %v4049_v24  ;;  %v4400_v24 = vld [vmem:[#allocation13 + $0xf0] sm:$0xf]  ;;  %v4765_v25 = vld [vmem:[#allocation13 + $0xf4] sm:$0xf0] }
 0x3e6   : > { %v2021_v49 = vmul.f32 %v5709_v37, %v5702_v7  ;;  %v2015_v43 = vmul.f32 %v5700_v6, %v2014_v33  ;;  %vm2027_vm5 = vweird.f32 %v5709_v37  ;;  %v4053_v33 = vor.u32 %v4675_v30, %v4050_v31  ;;  %v4745_v30 = vld [vmem:[#allocation13 + $0x54] sm:$0xf0] }
 0x3e7   : > { %4964 = vrsqrt.f32 %v5711_v38  ;;  %vm2028_vm7 = vmor %vm2026_vm6, %vm2027_vm5  ;;  %2570 = vmatpush.bf16.msrb.mxu1 %v4177_v29  ;;  %vm2036_vm9 = vweird.f32 %v5711_v38  ;;  %v4401_v26 = vor.u32 %v4765_v25, %v4400_v24  ;;  %v4320_v29 = vld [vmem:[#allocation13 + $0x50] sm:$0xf]  ;;  %v4797_v25 = vld [vmem:[#allocation13 + $0x1f4] sm:$0xf0] }
 0x3e8   : > { %v2022_v50 = vmul.f32 %v5709_v37, %v2021_v49  ;;  %v2019_v61 = vsel %vm2018_vm4, %v5700_v6, %v2015_v43  ;;  %v4705_v43 = vld [vmem:[#allocation11 + $0x114] sm:$0xf0]  ;;  %2589 = vmatpush.bf16.msrb.mxu2 %v4053_v33  ;;  %v4321_v32 = vor.u32 %v4745_v30, %v4320_v29  ;;  %v4528_v24 = vld [vmem:[#allocation13 + $0x1f0] sm:$0xf] }
 0x3e9   : > { %v2050_v3 = vmul.f32 %v2019_v61, %v5647_v54  ;;  %v2051_v63 = vmul.f32 %v2019_v61, %v5650_v44  ;;  %v5742_v54 = vperm.slane %v1974_v45, 1  ;;  %v4673_v44 = vld [vmem:[#allocation11 + $0x14] sm:$0xf0]  ;;  %2608 = vmatpush.bf16.msrb.mxu3 %v4181_v41  ;;  %v4448_v29 = vld [vmem:[#allocation13 + $0x150] sm:$0xf] }
 0x3ea   : > { %v2023_v60 = vmul.f32 0.5, %v2022_v50  ;;  %v1994_v8 = vpop.xlane.xlu1 %1993  ;;  %v4033_v45 = vor.u32 %v4673_v44, %v4032_v36  ;;  %v4761_v36 = vld [vmem:[#allocation13 + $0xd4] sm:$0xf0] }
 0x3eb   : > { %v2005_v9 = vmul.f32 %v5693_v39, %v1994_v8  ;;  %v5749_v51 = vmul.f32 %v5722_v57, %v2050_v3  ;;  %v5755_v58 = vmul.f32 %v5742_v54, %v2051_v63  ;;  %v4392_v3 = vld [vmem:[#allocation13 + $0xe0] sm:$0xf]  ;;  %v4741_v41 = vld [vmem:[#allocation13 + $0x34] sm:$0xf0] }
 0x3ec   : > { %v2024_v17 = vsub.f32 1.5, %v2023_v60  ;;  %2552 = vmatpush.bf16.msrb.mxu0 %v4033_v45  ;;  %v4165_v60 = vor.u32 %v4703_v52, %v4162_v53  ;;  %2590 = vmatpush.bf16.msrb.mxu2 %v4037_v5  ;;  %v4312_v63 = vld [vmem:[#allocation13 + $0x40] sm:$0xf]  ;;  %v4739_v45 = vld [vmem:[#allocation13 + $0x24] sm:$0xf0] }
 0x3ed   : > { %v5727_v1 = vpop.eup %4964  ;;  %v5730_v6 = vadd.f32 1e-06, %v2005_v9  ;;  %v4288_v52 = vld [vmem:[#allocation13 + $0x10] sm:$0xf]  ;;  %v4737_v53 = vld [vmem:[#allocation13 + $0x14] sm:$0xf0] }
 0x3ee   : > { %v2025_v10 = vmul.f32 %v5709_v37, %v2024_v17  ;;  %v2031_v28 = vmul.f32 %v5727_v1, %v5711_v38  ;;  %vm2037_vm8 = vweird.f32 %v5727_v1  ;;  %2609 = vmatpush.bf16.msrb.mxu3 %v4165_v60  ;;  %v4280_v5 = vld [vmem:[#allocation13] sm:$0xf]  ;;  %v4735_v60 = vld [vmem:[#allocation13 + $0x4] sm:$0xf0]  ;;  %v4777_v30 = vld [vmem:[#allocation13 + $0x154] sm:$0xf0] }
 0x3ef   : > { %4966 = vrsqrt.f32 %v5730_v6  ;;  %vm2038_vm10 = vmor %vm2036_vm9, %vm2037_vm8  ;;  %vm2046_vm12 = vweird.f32 %v5730_v6 }
 0x3f0   : > { %v2029_v49 = vsel %vm2028_vm7, %v5709_v37, %v2025_v10  ;;  %v2032_v40 = vmul.f32 %v5727_v1, %v2031_v28  ;;  %v4161_v37 = vor.u32 %v4705_v43, %v4160_v42  ;;  %v4763_v28 = vld [vmem:[#allocation13 + $0xe4] sm:$0xf0]  ;;  %v4376_v42 = vld [vmem:[#allocation13 + $0xc0] sm:$0xf] }
 0x3f1   : > { %v2052_v7 = vmul.f32 %v2029_v49, %v5657_v12  ;;  %v2053_v46 = vmul.f32 %v2029_v49, %v5660_v15  ;;  %v4393_v31 = vor.u32 %v4763_v28, %v4392_v3  ;;  %v4385_v49 = vor.u32 %v4761_v36, %v4384_v35  ;;  %v4759_v43 = vld [vmem:[#allocation13 + $0xc4] sm:$0xf0]  ;;  %v4520_v35 = vld [vmem:[#allocation13 + $0x1e0] sm:$0xf] }
 0x3f2   : > { %v2033_v50 = vmul.f32 0.5, %v2032_v40  ;;  %2571 = vmatpush.bf16.msrb.mxu1 %v4161_v37  ;;  %v4304_v40 = vld [vmem:[#allocation13 + $0x30] sm:$0xf]  ;;  %v4529_v3 = vor.u32 %v4797_v25, %v4528_v24  ;;  %v4795_v36 = vld [vmem:[#allocation13 + $0x1e4] sm:$0xf0] }
 0x3f3   : > { %v5752_v55 = vmul.f32 %v5722_v57, %v2052_v7  ;;  %v5758_v12 = vmul.f32 %v5742_v54, %v2053_v46  ;;  %v4305_v44 = vor.u32 %v4741_v41, %v4304_v40  ;;  %v4377_v7 = vor.u32 %v4759_v43, %v4376_v42  ;;  %v4296_v46 = vld [vmem:[#allocation13 + $0x20] sm:$0xf]  ;;  %v4394_v41 = vld [vmem:[#allocation13 + $0xe8] sm:$0xf0]  ;;  %v4775_v43 = vld [vmem:[#allocation13 + $0x144] sm:$0xf0] }
 0x3f4   : > { %v2034_v15 = vsub.f32 1.5, %v2033_v50  ;;  %v4297_v47 = vor.u32 %v4739_v45, %v4296_v46  ;;  %v4757_v50 = vld [vmem:[#allocation13 + $0xb4] sm:$0xf0]  ;;  %v4521_v40 = vor.u32 %v4795_v36, %v4520_v35  ;;  %v4440_v42 = vld [vmem:[#allocation13 + $0x140] sm:$0xf] }
 0x3f5   : > { %v4967_v56 = vpop.eup %4966  ;;  %v5762_v2 = vpack.c.bf16 %v5752_v55, %v5749_v51  ;;  %v5766_v59 = vpack.c.bf16 %v5758_v12, %v5755_v58  ;;  %v4369_v37 = vor.u32 %v4757_v50, %v4368_v48  ;;  %v4441_v45 = vor.u32 %v4775_v43, %v4440_v42  ;;  %v4512_v50 = vld [vmem:[#allocation13 + $0x1d0] sm:$0xf]  ;;  %v4298_v24 = vld [vmem:[#allocation13 + $0x28] sm:$0xf0]  ;;  %v4769_v35 = vld [vmem:[#allocation13 + $0x114] sm:$0xf0] }
 0x3f6   : > { %v2041_v8 = vmul.f32 %v4967_v56, %v5730_v6  ;;  %v2035_v11 = vmul.f32 %v5727_v1, %v2034_v15  ;;  %vm2047_vm11 = vweird.f32 %v4967_v56  ;;  %v4747_v6 = vld [vmem:[#allocation13 + $0x64] sm:$0xf0]  ;;  %v4289_v15 = vor.u32 %v4737_v53, %v4288_v52  ;;  %v4760_v52 = vld [vmem:[#allocation13 + $0xd4] sm:$0xf]  ;;  %v4496_v25 = vld [vmem:[#allocation13 + $0x1b0] sm:$0xf] }
 0x3f7   : > { %2477 = vmatmul.bf16.vlgmr.msra.gmra.mxu0 %v5762_v2  ;;  %2496 = vmatmul.bf16.vlgmr.msra.gmra.mxu1 %v5766_v59  ;;  %vm2048_vm13 = vmor %vm2046_vm12, %vm2047_vm11  ;;  %v4736_v36 = vld [vmem:[#allocation13 + $0x14] sm:$0xf] }
 0x3f8   : > { %v2042_v13 = vmul.f32 %v4967_v56, %v2041_v8  ;;  %2515 = vmatmul.bf16.vlgmr.msra.gmra.mxu2 %v5762_v2  ;;  %2534 = vmatmul.bf16.vlgmr.msra.gmra.mxu3 %v5766_v59  ;;  %v2039_v61 = vsel %vm2038_vm10, %v5727_v1, %v2035_v11  ;;  %v4281_v8 = vor.u32 %v4735_v60, %v4280_v5  ;;  %v4352_v11 = vld [vmem:[#allocation13 + $0x90] sm:$0xf]  ;;  %v4773_v60 = vld [vmem:[#allocation13 + $0x134] sm:$0xf0] }
 0x3f9   : > { %v2054_v16 = vmul.f32 %v2039_v61, %v5667_v62  ;;  %v2055_v34 = vmul.f32 %v2039_v61, %v5670_v27  ;;  %3086 = vmatpush.bf16.msra.mxu1 %v4401_v26  ;;  %v4464_v61 = vld [vmem:[#allocation13 + $0x170] sm:$0xf]  ;;  %v4764_v26 = vld [vmem:[#allocation13 + $0xf4] sm:$0xf]  ;;  %3124 = vmatpush.bf16.msra.mxu3 %v4529_v3 }
 0x3fa   : > { %v2043_v14 = vmul.f32 0.5, %v2042_v13  ;;  %v4753_v13 = vld [vmem:[#allocation13 + $0x94] sm:$0xf0]  ;;  %v4432_v5 = vld [vmem:[#allocation13 + $0x130] sm:$0xf] }
 0x3fb   : > { %v5783_v38 = vmul.f32 %v5722_v57, %v2054_v16  ;;  %v5789_v21 = vmul.f32 %v5742_v54, %v2055_v34  ;;  %v4338_v34 = vld [vmem:[#allocation13 + $0x78] sm:$0xf0] }
 0x3fc   : > { %v2044_v9 = vsub.f32 1.5, %v2043_v14  ;;  %v4353_v14 = vor.u32 %v4753_v13, %v4352_v11  ;;  %v4433_v13 = vor.u32 %v4773_v60, %v4432_v5 }
 0x3fd   : > { %3087 = vmatpush.bf16.msra.mxu1 %v4393_v31  ;;  %v4744_v31 = vld [vmem:[#allocation13 + $0x54] sm:$0xf]  ;;  %3125 = vmatpush.bf16.msra.mxu3 %v4521_v40 }
 0x3fe   : > { %v2045_v0 = vmul.f32 %v4967_v56, %v2044_v9  ;;  %v4781_v9 = vld [vmem:[#allocation13 + $0x174] sm:$0xf0] }
 0x3ff   : > { %v4465_v16 = vor.u32 %v4781_v9, %v4464_v61  ;;  %v4504_v9 = vld [vmem:[#allocation13 + $0x1c0] sm:$0xf] }
 0x400   : > { %v2049_v17 = vsel %vm2048_vm13, %v4967_v56, %v2045_v0  ;;  %v4360_v56 = vld [vmem:[#allocation13 + $0xa0] sm:$0xf]  ;;  %v4748_v0 = vld [vmem:[#allocation13 + $0x74] sm:$0xf] }
 0x401   : > { %v2056_v18 = vmul.f32 %v2049_v17, %v5677_v22  ;;  %v2057_v19 = vmul.f32 %v2049_v17, %v5680_v4  ;;  %v4336_v22 = vld [vmem:[#allocation13 + $0x70] sm:$0xf]  ;;  %v4749_v4 = vld [vmem:[#allocation13 + $0x74] sm:$0xf0]  ;;  %3088 = vmatpush.bf16.msra.mxu1 %v4385_v49  ;;  %v4341_v17 = vor.u32 %v4748_v0, %v4338_v34  ;;  %3105 = vmatpush.bf16.msra.mxu2 %v4465_v16  ;;  %v4762_v49 = vld [vmem:[#allocation13 + $0xe4] sm:$0xf] }
 0x402   : > { %v4337_v1 = vor.u32 %v4749_v4, %v4336_v22  ;;  %v4779_v22 = vld [vmem:[#allocation13 + $0x164] sm:$0xf0]  ;;  %v4746_v4 = vld [vmem:[#allocation13 + $0x64] sm:$0xf] }
 0x403   : > { %v5786_v20 = vmul.f32 %v5722_v57, %v2056_v18  ;;  %v5792_v23 = vmul.f32 %v5742_v54, %v2057_v19  ;;  %v4328_v57 = vld [vmem:[#allocation13 + $0x60] sm:$0xf]  ;;  %v4743_v54 = vld [vmem:[#allocation13 + $0x44] sm:$0xf0]  ;;  %v4758_v16 = vld [vmem:[#allocation13 + $0xc4] sm:$0xf] }
 0x404   : > { %3067 = vmatpush.bf16.msra.mxu0 %v4337_v1  ;;  %v4329_v10 = vor.u32 %v4747_v6, %v4328_v57  ;;  %v4313_v33 = vor.u32 %v4743_v54, %v4312_v63  ;;  %v4344_v18 = vld [vmem:[#allocation13 + $0x80] sm:$0xf]  ;;  %v4751_v19 = vld [vmem:[#allocation13 + $0x84] sm:$0xf0]  ;;  %v4330_v1 = vld [vmem:[#allocation13 + $0x68] sm:$0xf0]  ;;  %v4449_v63 = vor.u32 %v4777_v30, %v4448_v29 }
 0x405   : > { %v2073_v62 = vpack.c.bf16 %v5786_v20, %v5783_v38  ;;  %v2074_v27 = vpack.c.bf16 %v5792_v23, %v5789_v21  ;;  %3089 = vmatpush.bf16.msra.mxu1 %v4377_v7  ;;  %v4333_v6 = vor.u32 %v4746_v4, %v4330_v1  ;;  %v4322_v54 = vld [vmem:[#allocation13 + $0x58] sm:$0xf0]  ;;  %v4742_v7 = vld [vmem:[#allocation13 + $0x44] sm:$0xf]  ;;  %v4791_v0 = vld [vmem:[#allocation13 + $0x1c4] sm:$0xf0] }
 0x406   : > { %v4505_v34 = vor.u32 %v4791_v0, %v4504_v9  ;;  %v4738_v4 = vld [vmem:[#allocation13 + $0x24] sm:$0xf]  ;;  %v4756_v30 = vld [vmem:[#allocation13 + $0xb4] sm:$0xf]  ;;  %v4785_v9 = vld [vmem:[#allocation13 + $0x194] sm:$0xf0] }
 0x407   : > { %2482 = vmatmul.bf16.gmra.mxu0 %v2073_v62  ;;  %2501 = vmatmul.bf16.gmra.mxu1 %v2074_v27  ;;  %v4752_v0 = vld [vmem:[#allocation13 + $0x94] sm:$0xf] }
 0x408   : > { %2520 = vmatmul.bf16.gmra.mxu2 %v2073_v62  ;;  %2539 = vmatmul.bf16.gmra.mxu3 %v2074_v27 }
 0x409   : > { %3068 = vmatpush.bf16.msra.mxu0 %v4329_v10  ;;  %3090 = vmatpush.bf16.msra.mxu1 %v4369_v37  ;;  %v4402_v10 = vld [vmem:[#allocation13 + $0xf8] sm:$0xf0]  ;;  %v4793_v37 = vld [vmem:[#allocation13 + $0x1d4] sm:$0xf0] }
 0x40a   : > { %v4405_v28 = vor.u32 %v4764_v26, %v4402_v10  ;;  %v4789_v26 = vld [vmem:[#allocation13 + $0x1b4] sm:$0xf0] }
 0x40b   : > { %v4497_v29 = vor.u32 %v4789_v26, %v4496_v25  ;;  %v4472_v26 = vld [vmem:[#allocation13 + $0x180] sm:$0xf] }
 0x40d   : > { %3069 = vmatpush.bf16.msra.mxu0 %v4321_v32  ;;  %v5805_v32 = vld [vmem:[%s5960_s7] sm:$0xf] }
 0x40e   : > { %v5808_v46 = vperm.slane %v5805_v32, 0 }
 0x411   : > { %3070 = vmatpush.bf16.msra.mxu0 %v4313_v33  ;;  %v4325_v33 = vor.u32 %v4744_v31, %v4322_v54  ;;  %v4370_v31 = vld [vmem:[#allocation13 + $0xb8] sm:$0xf0] }
 0x412   : > { %v4373_v54 = vor.u32 %v4756_v30, %v4370_v31  ;;  %v4346_v30 = vld [vmem:[#allocation13 + $0x88] sm:$0xf0] }
 0x415   : > { %3071 = vmatpush.bf16.msra.mxu0 %v4305_v44  ;;  %v4397_v44 = vor.u32 %v4762_v49, %v4394_v41 }
 0x417   : > { %2553 = vmatmul.bf16.vlgmr.msrb.gmra.mxu0 %v5762_v2  ;;  %2572 = vmatmul.bf16.vlgmr.msrb.gmra.mxu1 %v5766_v59 }
 0x418   : > { %2591 = vmatmul.bf16.vlgmr.msrb.gmra.mxu2 %v5762_v2  ;;  %2610 = vmatmul.bf16.vlgmr.msrb.gmra.mxu3 %v5766_v59  ;;  %v4755_v2 = vld [vmem:[#allocation13 + $0xa4] sm:$0xf0] }
 0x419   : > { %3072 = vmatpush.bf16.msra.mxu0 %v4297_v47  ;;  %v4361_v59 = vor.u32 %v4755_v2, %v4360_v56  ;;  %v4314_v47 = vld [vmem:[#allocation13 + $0x48] sm:$0xf0]  ;;  %v4513_v56 = vor.u32 %v4793_v37, %v4512_v50  ;;  %v4386_v2 = vld [vmem:[#allocation13 + $0xd8] sm:$0xf0] }
 0x41a   : > { %v4317_v48 = vor.u32 %v4742_v7, %v4314_v47  ;;  %v4488_v7 = vld [vmem:[#allocation13 + $0x1a0] sm:$0xf]  ;;  %v4754_v47 = vld [vmem:[#allocation13 + $0xa4] sm:$0xf]  ;;  %v4362_v50 = vld [vmem:[#allocation13 + $0xa8] sm:$0xf0] }
 0x41b   : > { %3091 = vmatpush.bf16.msra.mxu1 %v4361_v59  ;;  %v4389_v59 = vor.u32 %v4760_v52, %v4386_v2  ;;  %3126 = vmatpush.bf16.msra.mxu3 %v4513_v56  ;;  %v4365_v52 = vor.u32 %v4754_v47, %v4362_v50  ;;  %v4767_v56 = vld [vmem:[#allocation13 + $0x104] sm:$0xf0]  ;;  %v4734_v2 = vld [vmem:[#allocation13 + $0x4] sm:$0xf]  ;;  %v4776_v50 = vld [vmem:[#allocation13 + $0x154] sm:$0xf] }
 0x41d   : > { %3073 = vmatpush.bf16.msra.mxu0 %v4289_v15 }
 0x41f   : > { %3092 = vmatpush.bf16.msra.mxu1 %v4353_v14  ;;  %v4306_v14 = vld [vmem:[#allocation13 + $0x38] sm:$0xf0]  ;;  %3127 = vmatpush.bf16.msra.mxu3 %v4505_v34 }
 0x421   : > { %3074 = vmatpush.bf16.msra.mxu0 %v4281_v8  ;;  %v4740_v8 = vld [vmem:[#allocation13 + $0x34] sm:$0xf] }
 0x422   : > { %v4309_v61 = vor.u32 %v4740_v8, %v4306_v14 }
 0x423   : > { %3128 = vmatpush.bf16.msra.mxu3 %v4497_v29 }
 0x425   : > { %3143 = vmatpush.bf16.msrb.mxu0 %v4341_v17  ;;  %v4378_v17 = vld [vmem:[#allocation13 + $0xc8] sm:$0xf0] }
 0x427   : > { %2558 = vmatmul.bf16.gmra.mxu0 %v2073_v62  ;;  %2577 = vmatmul.bf16.gmra.mxu1 %v2074_v27 }
 0x428   : > { %2596 = vmatmul.bf16.gmra.mxu2 %v2073_v62  ;;  %2615 = vmatmul.bf16.gmra.mxu3 %v2074_v27  ;;  %v4345_v62 = vor.u32 %v4751_v19, %v4344_v18  ;;  %v4456_v27 = vld [vmem:[#allocation13 + $0x160] sm:$0xf]  ;;  %v4381_v18 = vor.u32 %v4758_v16, %v4378_v17 }
 0x429   : > { %v4457_v57 = vor.u32 %v4779_v22, %v4456_v27  ;;  %3144 = vmatpush.bf16.msrb.mxu0 %v4333_v6  ;;  %v4424_v19 = vld [vmem:[#allocation13 + $0x120] sm:$0xf]  ;;  %v5812_v27 = vperm.slane %v5805_v32, 1  ;;  %v4771_v22 = vld [vmem:[#allocation13 + $0x124] sm:$0xf0] }
 0x42a   : > { %3093 = vmatpush.bf16.msra.mxu1 %v4345_v62  ;;  %v4425_v6 = vor.u32 %v4771_v22, %v4424_v19  ;;  %v4354_v22 = vld [vmem:[#allocation13 + $0x98] sm:$0xf0] }
 0x42b   : > { %3106 = vmatpush.bf16.msra.mxu2 %v4457_v57 }
 0x42d   : > { %3145 = vmatpush.bf16.msrb.mxu0 %v4325_v33  ;;  %v4416_v33 = vld [vmem:[#allocation13 + $0x110] sm:$0xf] }
 0x42e   : > { %3162 = vmatpush.bf16.msrb.mxu1 %v4405_v28  ;;  %v4301_v28 = vor.u32 %v4738_v4, %v4298_v24  ;;  %v4417_v41 = vor.u32 %v4769_v35, %v4416_v33  ;;  %v4357_v4 = vor.u32 %v4752_v0, %v4354_v22  ;;  %v4458_v35 = vld [vmem:[#allocation13 + $0x168] sm:$0xf0] }
 0x42f   : > { %3107 = vmatpush.bf16.msra.mxu2 %v4449_v63 }
 0x431   : > { %3146 = vmatpush.bf16.msrb.mxu0 %v4317_v48 }
 0x432   : > { %3163 = vmatpush.bf16.msrb.mxu1 %v4397_v44  ;;  %v4290_v44 = vld [vmem:[#allocation13 + $0x18] sm:$0xf0] }
 0x433   : > { %3108 = vmatpush.bf16.msra.mxu2 %v4441_v45  ;;  %v4293_v43 = vor.u32 %v4736_v36, %v4290_v44  ;;  %v4787_v45 = vld [vmem:[#allocation13 + $0x1a4] sm:$0xf0] }
 0x434   : > { %v4489_v48 = vor.u32 %v4787_v45, %v4488_v7 }
 0x435   : > { %3147 = vmatpush.bf16.msrb.mxu0 %v4309_v61  ;;  %v4480_v61 = vld [vmem:[#allocation13 + $0x190] sm:$0xf] }
 0x436   : > { %3164 = vmatpush.bf16.msrb.mxu1 %v4389_v59  ;;  %3129 = vmatpush.bf16.msra.mxu3 %v4489_v48  ;;  %v4282_v59 = vld [vmem:[#allocation13 + $0x8] sm:$0xf0]  ;;  %v4481_v19 = vor.u32 %v4785_v9, %v4480_v61  ;;  %v5828_v61 = vperm.slane %v5805_v32, 2 }
 0x437   : > { %3109 = vmatpush.bf16.msra.mxu2 %v4433_v13  ;;  %v4285_v14 = vor.u32 %v4734_v2, %v4282_v59  ;;  %v4794_v2 = vld [vmem:[#allocation13 + $0x1e4] sm:$0xf]  ;;  %v4522_v59 = vld [vmem:[#allocation13 + $0x1e8] sm:$0xf0] }
 0x439   : > { %3148 = vmatpush.bf16.msrb.mxu0 %v4301_v28 }
 0x43a   : > { %3165 = vmatpush.bf16.msrb.mxu1 %v4381_v18  ;;  %3130 = vmatpush.bf16.msra.mxu3 %v4481_v19 }
 0x43b   : > { %3110 = vmatpush.bf16.msra.mxu2 %v4425_v6 }
 0x43d   : > { %3149 = vmatpush.bf16.msrb.mxu0 %v4293_v43  ;;  %v4530_v43 = vld [vmem:[#allocation13 + $0x1f8] sm:$0xf0] }
 0x43e   : > { %3166 = vmatpush.bf16.msrb.mxu1 %v4373_v54 }
 0x43f   : > { %3111 = vmatpush.bf16.msra.mxu2 %v4417_v41 }
 0x441   : > { %3150 = vmatpush.bf16.msrb.mxu0 %v4285_v14 }
 0x442   : > { %3167 = vmatpush.bf16.msrb.mxu1 %v4365_v52 }
 0x446   : > { %3168 = vmatpush.bf16.msrb.mxu1 %v4357_v4 }
 0x474   : > { %v2478_v53 = vpop.f32.mrf.mxu0  ;;  %v2497_v15 = vpop.f32.mrf.mxu1 }
 0x475   : > { %v2479_v11 = vadd.f32 %v2478_v53, %v5808_v46  ;;  %v4408_v53 = vld [vmem:[#allocation13 + $0x100] sm:$0xf] }
 0x476   : > { %v4409_v13 = vor.u32 %v4767_v56, %v4408_v53 }
 0x477   : > { %v2498_v62 = vadd.f32 %v2497_v15, %v2479_v11 }
 0x478   : > { %3112 = vmatpush.bf16.msra.mxu2 %v4409_v13 }
 0x479   : > { %v2637_v49 = vmul.f32 0.01, %v2498_v62  ;;  %vm2621_vm14 = vcmp.gt.f32.partialorder %v2498_v62, 0.0 }
 0x47b   : > { %v2516_v57 = vpop.f32.mrf.mxu2  ;;  %v2535_v1 = vpop.f32.mrf.mxu3  ;;  %v2653_v5 = vsel %vm2621_vm14, %v2498_v62, %v2637_v49  ;;  %v4780_v62 = vld [vmem:[#allocation13 + $0x174] sm:$0xf] }
 0x47c   : > { %v2480_v3 = vpop.f32.mrf.mxu0  ;;  %v2499_v10 = vpop.f32.mrf.mxu1  ;;  %v2517_v40 = vadd.f32 %v2516_v57, %v5812_v27  ;;  %v4466_v57 = vld [vmem:[#allocation13 + $0x178] sm:$0xf0] }
 0x47d   : > { %v2481_v63 = vadd.f32 %v2480_v3, %v5808_v46  ;;  %v4469_v24 = vor.u32 %v4780_v62, %v4466_v57  ;;  %v4783_v3 = vld [vmem:[#allocation13 + $0x184] sm:$0xf0] }
 0x47e   : > { %v2536_v15 = vadd.f32 %v2535_v1, %v2517_v40  ;;  %v4473_v29 = vor.u32 %v4783_v3, %v4472_v26 }
 0x47f   : > { %v2500_v42 = vadd.f32 %v2499_v10, %v2481_v63  ;;  %v4750_v10 = vld [vmem:[#allocation13 + $0x84] sm:$0xf]  ;;  %3181 = vmatpush.bf16.msrb.mxu2 %v4469_v24 }
 0x480   : > { %vm2622_vm0 = vcmp.gt.f32.partialorder %v2536_v15, 0.0  ;;  %v2638_v1 = vmul.f32 0.01, %v2536_v15  ;;  %v4349_v31 = vor.u32 %v4750_v10, %v4346_v30  ;;  %v4778_v63 = vld [vmem:[#allocation13 + $0x164] sm:$0xf]  ;;  %3131 = vmatpush.bf16.msra.mxu3 %v4473_v29 }
 0x481   : > { %vm2625_vm15 = vcmp.gt.f32.partialorder %v2500_v42, 0.0  ;;  %v2641_v37 = vmul.f32 0.01, %v2500_v42  ;;  %v4461_v44 = vor.u32 %v4778_v63, %v4458_v35  ;;  %v4790_v10 = vld [vmem:[#allocation13 + $0x1c4] sm:$0xf]  ;;  %v5836_v63 = vperm.slane %v5805_v32, 3 }
 0x482   : > { %v2654_v54 = vsel %vm2622_vm0, %v2536_v15, %v2638_v1  ;;  %3169 = vmatpush.bf16.msrb.mxu1 %v4349_v31  ;;  %v4772_v1 = vld [vmem:[#allocation13 + $0x134] sm:$0xf]  ;;  %v4770_v30 = vld [vmem:[#allocation13 + $0x124] sm:$0xf]  ;;  %v4426_v31 = vld [vmem:[#allocation13 + $0x128] sm:$0xf0] }
 0x483   : > { %v2657_v60 = vsel %vm2625_vm15, %v2500_v42, %v2641_v37  ;;  %v2518_v8 = vpop.f32.mrf.mxu2  ;;  %v2537_v11 = vpop.f32.mrf.mxu3  ;;  %v4796_v42 = vld [vmem:[#allocation13 + $0x1f4] sm:$0xf]  ;;  %3182 = vmatpush.bf16.msrb.mxu2 %v4461_v44  ;;  %v4450_v37 = vld [vmem:[#allocation13 + $0x158] sm:$0xf0]  ;;  %v4429_v35 = vor.u32 %v4770_v30, %v4426_v31 }
 0x484   : > { %v5816_v16 = vpack.c.bf16 %v2657_v60, %v2653_v5  ;;  %v2519_v34 = vadd.f32 %v2518_v8, %v5812_v27  ;;  %v2483_v17 = vpop.f32.mrf.mxu0  ;;  %v2502_v18 = vpop.f32.mrf.mxu1  ;;  %v4533_v47 = vor.u32 %v4796_v42, %v4530_v43  ;;  %v4453_v53 = vor.u32 %v4776_v50, %v4450_v37  ;;  %v4774_v8 = vld [vmem:[#allocation13 + $0x144] sm:$0xf]  ;;  %v4788_v42 = vld [vmem:[#allocation13 + $0x1b4] sm:$0xf]  ;;  %v4498_v43 = vld [vmem:[#allocation13 + $0x1b8] sm:$0xf0] }
 0x485   : > { %v2484_v25 = vadd.f32 %v2483_v17, %v5808_v46  ;;  %v4525_v5 = vor.u32 %v4794_v2, %v4522_v59  ;;  %v4792_v17 = vld [vmem:[#allocation13 + $0x1d4] sm:$0xf]  ;;  %v4418_v50 = vld [vmem:[#allocation13 + $0x118] sm:$0xf0]  ;;  %v4786_v37 = vld [vmem:[#allocation13 + $0x1a4] sm:$0xf] }
 0x486   : > { %v2538_v6 = vadd.f32 %v2537_v11, %v2519_v34  ;;  %3075 = vmatmul.bf16.vlgmr.msra.gmra.mxu0 %v5816_v16  ;;  %3200 = vmatpush.bf16.msrb.mxu3 %v4533_v47  ;;  %v4442_v11 = vld [vmem:[#allocation13 + $0x148] sm:$0xf0]  ;;  %v4501_v47 = vor.u32 %v4788_v42, %v4498_v43  ;;  %v4768_v32 = vld [vmem:[#allocation13 + $0x114] sm:$0xf] }
 0x487   : > { %v2503_v49 = vadd.f32 %v2502_v18, %v2484_v25  ;;  %3183 = vmatpush.bf16.msrb.mxu2 %v4453_v53  ;;  %v4445_v34 = vor.u32 %v4774_v8, %v4442_v11  ;;  %v4514_v18 = vld [vmem:[#allocation13 + $0x1d8] sm:$0xf0]  ;;  %v4421_v53 = vor.u32 %v4768_v32, %v4418_v50  ;;  %v4410_v2 = vld [vmem:[#allocation13 + $0x108] sm:$0xf0]  ;;  %v4784_v8 = vld [vmem:[#allocation13 + $0x194] sm:$0xf] }
 0x488   : > { %vm2626_vm1 = vcmp.gt.f32.partialorder %v2538_v6, 0.0  ;;  %v2642_v28 = vmul.f32 0.01, %v2538_v6  ;;  %v4517_v57 = vor.u32 %v4792_v17, %v4514_v18 }
 0x489   : > { %v2645_v15 = vmul.f32 0.01, %v2503_v49  ;;  %vm2629_vm2 = vcmp.gt.f32.partialorder %v2503_v49, 0.0 }
 0x48a   : > { %v2658_v33 = vsel %vm2626_vm1, %v2538_v6, %v2642_v28  ;;  %3201 = vmatpush.bf16.msrb.mxu3 %v4525_v5  ;;  %v4434_v6 = vld [vmem:[#allocation13 + $0x138] sm:$0xf0]  ;;  %v4506_v28 = vld [vmem:[#allocation13 + $0x1c8] sm:$0xf0] }
 0x48b   : > { %v5822_v36 = vpack.c.bf16 %v2658_v33, %v2654_v54  ;;  %v2521_v40 = vpop.f32.mrf.mxu2  ;;  %v2540_v41 = vpop.f32.mrf.mxu3  ;;  %v2661_v9 = vsel %vm2629_vm2, %v2503_v49, %v2645_v15  ;;  %3184 = vmatpush.bf16.msrb.mxu2 %v4445_v34  ;;  %v4437_v26 = vor.u32 %v4772_v1, %v4434_v6  ;;  %v4509_v29 = vor.u32 %v4790_v10, %v4506_v28  ;;  %v4490_v15 = vld [vmem:[#allocation13 + $0x1a8] sm:$0xf0] }
 0x48c   : > { %v2485_v7 = vpop.f32.mrf.mxu0  ;;  %v2504_v45 = vpop.f32.mrf.mxu1  ;;  %v2522_v52 = vadd.f32 %v2521_v40, %v5812_v27 }
 0x48d   : > { %v2486_v48 = vadd.f32 %v2485_v7, %v5808_v46  ;;  %3094 = vmatmul.bf16.vlgmr.msra.gmra.mxu1 %v5822_v36 }
 0x48e   : > { %v2541_v46 = vadd.f32 %v2540_v41, %v2522_v52  ;;  %3202 = vmatpush.bf16.msrb.mxu3 %v4517_v57 }
 0x48f   : > { %v2505_v56 = vadd.f32 %v2504_v45, %v2486_v48  ;;  %3185 = vmatpush.bf16.msrb.mxu2 %v4437_v26 }
 0x490   : > { %v2646_v24 = vmul.f32 0.01, %v2541_v46  ;;  %vm2630_vm4 = vcmp.gt.f32.partialorder %v2541_v46, 0.0 }
 0x491   : > { %vm2633_vm3 = vcmp.gt.f32.partialorder %v2505_v56, 0.0  ;;  %v2649_v60 = vmul.f32 0.01, %v2505_v56 }
 0x492   : > { %v2662_v54 = vsel %vm2630_vm4, %v2541_v46, %v2646_v24  ;;  %3203 = vmatpush.bf16.msrb.mxu3 %v4509_v29  ;;  %v4482_v46 = vld [vmem:[#allocation13 + $0x198] sm:$0xf0]  ;;  %v4782_v24 = vld [vmem:[#allocation13 + $0x184] sm:$0xf] }
 0x493   : > { %v2523_v13 = vpop.f32.mrf.mxu2  ;;  %v2542_v14 = vpop.f32.mrf.mxu3  ;;  %v2665_v0 = vsel %vm2633_vm3, %v2505_v56, %v2649_v60  ;;  %3186 = vmatpush.bf16.msrb.mxu2 %v4429_v35  ;;  %v4766_v56 = vld [vmem:[#allocation13 + $0x104] sm:$0xf]  ;;  %v4493_v60 = vor.u32 %v4786_v37, %v4490_v15  ;;  %v4485_v18 = vor.u32 %v4784_v8, %v4482_v46 }
 0x494   : > { %v2524_v19 = vadd.f32 %v2523_v13, %v5812_v27  ;;  %v2554_v22 = vpop.f32.mrf.mxu0  ;;  %v2573_v4 = vpop.f32.mrf.mxu1  ;;  %v5831_v62 = vpack.c.bf16 %v2665_v0, %v2661_v9  ;;  %v4413_v13 = vor.u32 %v4766_v56, %v4410_v2 }
 0x495   : > { %v2555_v3 = vadd.f32 %v2554_v22, %v5828_v61 }
 0x496   : > { %v2543_v25 = vadd.f32 %v2542_v14, %v2524_v19  ;;  %3080 = vmatmul.bf16.gmra.mxu0 %v5831_v62  ;;  %3204 = vmatpush.bf16.msrb.mxu3 %v4501_v47 }
 0x497   : > { %v2574_v49 = vadd.f32 %v2573_v4, %v2555_v3  ;;  %3187 = vmatpush.bf16.msrb.mxu2 %v4421_v53 }
 0x498   : > { %vm2634_vm5 = vcmp.gt.f32.partialorder %v2543_v25, 0.0  ;;  %v2650_v27 = vmul.f32 0.01, %v2543_v25 }
 0x499   : > { %v2639_v59 = vmul.f32 0.01, %v2574_v49  ;;  %vm2623_vm6 = vcmp.gt.f32.partialorder %v2574_v49, 0.0 }
 0x49a   : > { %v2666_v33 = vsel %vm2634_vm5, %v2543_v25, %v2650_v27  ;;  %3205 = vmatpush.bf16.msrb.mxu3 %v4493_v60  ;;  %v4474_v25 = vld [vmem:[#allocation13 + $0x188] sm:$0xf0] }
 0x49b   : > { %v2592_v40 = vpop.f32.mrf.mxu2  ;;  %v2611_v41 = vpop.f32.mrf.mxu3  ;;  %v5838_v44 = vpack.c.bf16 %v2666_v33, %v2662_v54  ;;  %v2655_v9 = vsel %vm2623_vm6, %v2574_v49, %v2639_v59  ;;  %3188 = vmatpush.bf16.msrb.mxu2 %v4413_v13  ;;  %v4477_v3 = vor.u32 %v4782_v24, %v4474_v25 }
 0x49c   : > { %v2556_v7 = vpop.f32.mrf.mxu0  ;;  %v2575_v45 = vpop.f32.mrf.mxu1  ;;  %v2593_v52 = vadd.f32 %v2592_v40, %v5836_v63 }
 0x49d   : > { %v2557_v48 = vadd.f32 %v2556_v7, %v5828_v61  ;;  %3099 = vmatmul.bf16.gmra.mxu1 %v5838_v44 }
 0x49e   : > { %v2612_v14 = vadd.f32 %v2611_v41, %v2593_v52  ;;  %3206 = vmatpush.bf16.msrb.mxu3 %v4485_v18 }
 0x49f   : > { %v2576_v5 = vadd.f32 %v2575_v45, %v2557_v48 }
 0x4a0   : > { %v2640_v1 = vmul.f32 0.01, %v2612_v14  ;;  %vm2624_vm8 = vcmp.gt.f32.partialorder %v2612_v14, 0.0 }
 0x4a1   : > { %vm2627_vm7 = vcmp.gt.f32.partialorder %v2576_v5, 0.0  ;;  %v2643_v11 = vmul.f32 0.01, %v2576_v5 }
 0x4a2   : > { %v2656_v28 = vsel %vm2624_vm8, %v2612_v14, %v2640_v1  ;;  %3207 = vmatpush.bf16.msrb.mxu3 %v4477_v3 }
 0x4a3   : > { %v2659_v0 = vsel %vm2627_vm7, %v2576_v5, %v2643_v11  ;;  %v2594_v34 = vpop.f32.mrf.mxu2  ;;  %v2613_v17 = vpop.f32.mrf.mxu3 }
 0x4a4   : > { %v2671_v19 = vpack.c.bf16 %v2659_v0, %v2655_v9  ;;  %v2595_v22 = vadd.f32 %v2594_v34, %v5836_v63  ;;  %v2559_v4 = vpop.f32.mrf.mxu0  ;;  %v2578_v57 = vpop.f32.mrf.mxu1 }
 0x4a5   : > { %v2560_v26 = vadd.f32 %v2559_v4, %v5828_v61 }
 0x4a6   : > { %v2614_v6 = vadd.f32 %v2613_v17, %v2595_v22  ;;  %3113 = vmatmul.bf16.vlgmr.msra.gmra.mxu2 %v2671_v19  ;;  %3151 = vmatmul.bf16.vlgmr.msrb.gmra.mxu0 %v5816_v16 }
 0x4a7   : > { %v2579_v30 = vadd.f32 %v2578_v57, %v2560_v26 }
 0x4a8   : > { %vm2628_vm9 = vcmp.gt.f32.partialorder %v2614_v6, 0.0  ;;  %v2644_v10 = vmul.f32 0.01, %v2614_v6 }
 0x4a9   : > { %v2647_v40 = vmul.f32 0.01, %v2579_v30  ;;  %vm2631_vm10 = vcmp.gt.f32.partialorder %v2579_v30, 0.0 }
 0x4aa   : > { %v2660_v27 = vsel %vm2628_vm9, %v2614_v6, %v2644_v10 }
 0x4ab   : > { %v2672_v29 = vpack.c.bf16 %v2660_v27, %v2656_v28  ;;  %v2597_v31 = vpop.f32.mrf.mxu2  ;;  %v2616_v54 = vpop.f32.mrf.mxu3  ;;  %v2663_v45 = vsel %vm2631_vm10, %v2579_v30, %v2647_v40 }
 0x4ac   : > { %v2561_v33 = vpop.f32.mrf.mxu0  ;;  %v2598_v16 = vadd.f32 %v2597_v31, %v5836_v63  ;;  %v2580_v49 = vpop.f32.mrf.mxu1 }
 0x4ad   : > { %v2562_v35 = vadd.f32 %v2561_v33, %v5828_v61  ;;  %3132 = vmatmul.bf16.vlgmr.msra.gmra.mxu3 %v2672_v29  ;;  %3170 = vmatmul.bf16.vlgmr.msrb.gmra.mxu1 %v5822_v36 }
 0x4ae   : > { %v2617_v43 = vadd.f32 %v2616_v54, %v2598_v16 }
 0x4af   : > { %v2581_v41 = vadd.f32 %v2580_v49, %v2562_v35 }
 0x4b0   : > { %v2648_v61 = vmul.f32 0.01, %v2617_v43  ;;  %vm2632_vm12 = vcmp.gt.f32.partialorder %v2617_v43, 0.0 }
 0x4b1   : > { %vm2635_vm11 = vcmp.gt.f32.partialorder %v2581_v41, 0.0  ;;  %v2651_v42 = vmul.f32 0.01, %v2581_v41 }
 0x4b2   : > { %v2664_v52 = vsel %vm2632_vm12, %v2617_v43, %v2648_v61 }
 0x4b3   : > { %v2599_v7 = vpop.f32.mrf.mxu2  ;;  %v2667_v47 = vsel %vm2635_vm11, %v2581_v41, %v2651_v42  ;;  %v2618_v50 = vpop.f32.mrf.mxu3 }
 0x4b4   : > { %v2600_v48 = vadd.f32 %v2599_v7, %v5836_v63  ;;  %v2675_v32 = vpack.c.bf16 %v2667_v47, %v2663_v45 }
 0x4b6   : > { %v2619_v37 = vadd.f32 %v2618_v50, %v2600_v48  ;;  %3118 = vmatmul.bf16.gmra.mxu2 %v2675_v32  ;;  %3156 = vmatmul.bf16.gmra.mxu0 %v5831_v62 }
 0x4b8   : > { %vm2636_vm13 = vcmp.gt.f32.partialorder %v2619_v37, 0.0  ;;  %v2652_v36 = vmul.f32 0.01, %v2619_v37 }
 0x4ba   : > { %v2668_v53 = vsel %vm2636_vm13, %v2619_v37, %v2652_v36 }
 0x4bb   : > { %v2676_v15 = vpack.c.bf16 %v2668_v53, %v2664_v52 }
 0x4bd   : > { %3137 = vmatmul.bf16.gmra.mxu3 %v2676_v15  ;;  %3175 = vmatmul.bf16.gmra.mxu1 %v5838_v44  ;;  %v2741_v44 = vld [vmem:[%s5962_s9] sm:$0x3] }
 0x4be   : > { %v2743_v18 = vperm.slane %v2741_v44, 0  ;;  %v2744_v4 = vperm.slane %v2741_v44, 1 }
 0x4c6   : > { %3189 = vmatmul.bf16.vlgmr.msrb.gmra.mxu2 %v2671_v19 }
 0x4cd   : > { %3208 = vmatmul.bf16.vlgmr.msrb.gmra.mxu3 %v2672_v29 }
 0x4d6   : > { %3194 = vmatmul.bf16.gmra.mxu2 %v2675_v32 }
 0x4dd   : > { %3213 = vmatmul.bf16.gmra.mxu3 %v2676_v15 }
 0x503   : > { %v3076_v63 = vpop.f32.mrf.mxu0 }
 0x504   : > { %v3077_v22 = vadd.f32 %v3076_v63, %v2743_v18 }
 0x50a   : > { %v3095_v56 = vpop.f32.mrf.mxu1 }
 0x50b   : > { %v3078_v2 = vpop.f32.mrf.mxu0  ;;  %v3096_v1 = vadd.f32 %v3095_v56, %v3077_v22 }
 0x50c   : > { %v3079_v27 = vadd.f32 %v3078_v2, %v2743_v18 }
 0x512   : > { %v3097_v59 = vpop.f32.mrf.mxu1 }
 0x513   : > { %v3081_v60 = vpop.f32.mrf.mxu0  ;;  %v3098_v31 = vadd.f32 %v3097_v59, %v3079_v27 }
 0x514   : > { %v3082_v47 = vadd.f32 %v3081_v60, %v2743_v18 }
 0x51a   : > { %v3100_v62 = vpop.f32.mrf.mxu1 }
 0x51b   : > { %v3083_v11 = vpop.f32.mrf.mxu0  ;;  %v3101_v61 = vadd.f32 %v3100_v62, %v3082_v47 }
 0x522   : > { %v3102_v9 = vpop.f32.mrf.mxu1 }
 0x523   : > { %v3152_v17 = vpop.f32.mrf.mxu0 }
 0x524   : > { %v3153_v24 = vadd.f32 %v3152_v17, %v2744_v4 }
 0x529   : > { %v3114_v5 = vpop.f32.mrf.mxu2 }
 0x52a   : > { %v3171_v19 = vpop.f32.mrf.mxu1  ;;  %v3115_v25 = vadd.f32 %v3114_v5, %v3096_v1  ;;  %v3084_v5 = vadd.f32 %v3083_v11, %v2743_v18 }
 0x52b   : > { %v3154_v26 = vpop.f32.mrf.mxu0  ;;  %v3172_v3 = vadd.f32 %v3171_v19, %v3153_v24 }
 0x52c   : > { %v3155_v16 = vadd.f32 %v3154_v26, %v2744_v4 }
 0x530   : > { %v3133_v8 = vpop.f32.mrf.mxu3 }
 0x531   : > { %v3116_v46 = vpop.f32.mrf.mxu2  ;;  %v3134_v10 = vadd.f32 %v3133_v8, %v3115_v25 }
 0x532   : > { %v3173_v28 = vpop.f32.mrf.mxu1  ;;  %v3117_v49 = vadd.f32 %v3116_v46, %v3098_v31  ;;  %v3103_v46 = vadd.f32 %v3102_v9, %v3084_v5 }
 0x533   : > { %v5856_v54 = vadd.f32 %v3134_v10, %v5749_v51  ;;  %v3174_v41 = vadd.f32 %v3173_v28, %v3155_v16  ;;  %v3157_v45 = vpop.f32.mrf.mxu0  ;;  %v3227_v16 = vld [vmem:[#allocation14] sm:$0x3] }
 0x534   : > { %v3158_v52 = vadd.f32 %v3157_v45, %v2744_v4  ;;  %v3305_v45 = vperm.slane %v3227_v16, 0  ;;  %v3306_v47 = vperm.slane %v3227_v16, 1 }
 0x535   : > { %v3228_v43 = vmul.f32 %v5856_v54, %v5856_v54 }
 0x538   : > { %v3135_v13 = vpop.f32.mrf.mxu3 }
 0x539   : > { %v3119_v14 = vpop.f32.mrf.mxu2  ;;  %v3136_v42 = vadd.f32 %v3135_v13, %v3117_v49 }
 0x53a   : > { %v3176_v32 = vpop.f32.mrf.mxu1  ;;  %v3120_v53 = vadd.f32 %v3119_v14, %v3101_v61 }
 0x53b   : > { %v5866_v37 = vadd.f32 %v3136_v42, %v5752_v55  ;;  %v3177_v63 = vadd.f32 %v3176_v32, %v3158_v52  ;;  %v3159_v62 = vpop.f32.mrf.mxu0 }
 0x53c   : > { %v3160_v44 = vadd.f32 %v3159_v62, %v2744_v4 }
 0x53d   : > { %v3230_v2 = vmul.f32 %v5866_v37, %v5866_v37 }
 0x540   : > { %v3138_v0 = vpop.f32.mrf.mxu3 }
 0x541   : > { %v3121_v34 = vpop.f32.mrf.mxu2  ;;  %v3139_v56 = vadd.f32 %v3138_v0, %v3120_v53 }
 0x542   : > { %v3122_v0 = vadd.f32 %v3121_v34, %v3103_v46 }
 0x543   : > { %v5876_v13 = vadd.f32 %v3139_v56, %v5783_v38 }
 0x545   : > { %v3232_v11 = vmul.f32 %v5876_v13, %v5876_v13 }
 0x548   : > { %v3140_v57 = vpop.f32.mrf.mxu3 }
 0x549   : > { %v3190_v6 = vpop.f32.mrf.mxu2  ;;  %v3141_v1 = vadd.f32 %v3140_v57, %v3122_v0 }
 0x54a   : > { %v3191_v29 = vadd.f32 %v3190_v6, %v3172_v3 }
 0x54b   : > { %v5886_v24 = vadd.f32 %v3141_v1, %v5786_v20 }
 0x54d   : > { %v3234_v34 = vmul.f32 %v5886_v24, %v5886_v24 }
 0x550   : > { %v3209_v30 = vpop.f32.mrf.mxu3 }
 0x551   : > { %v3210_v33 = vadd.f32 %v3209_v30, %v3191_v29  ;;  %v3192_v35 = vpop.f32.mrf.mxu2 }
 0x552   : > { %v3193_v48 = vadd.f32 %v3192_v35, %v3174_v41 }
 0x553   : > { %v5859_v40 = vadd.f32 %v3210_v33, %v5755_v58 }
 0x555   : > { %v3229_v7 = vmul.f32 %v5859_v40, %v5859_v40 }
 0x557   : > { %v3236_v51 = vadd.f32 %v3229_v7, %v3228_v43 }
 0x558   : > { %v3211_v50 = vpop.f32.mrf.mxu3 }
 0x559   : > { %v3212_v58 = vadd.f32 %v3211_v50, %v3193_v48  ;;  %3237 = vadd.xlane.f32.xlu2 %v3236_v51  ;;  %v3195_v36 = vpop.f32.mrf.mxu2 }
 0x55a   : > { %v3196_v60 = vadd.f32 %v3195_v36, %v3177_v63 }
 0x55b   : > { %v5869_v15 = vadd.f32 %v3212_v58, %v5758_v12  ;;  %v3178_v12 = vpop.f32.mrf.mxu1 }
 0x55c   : > { %v3179_v22 = vadd.f32 %v3178_v12, %v3160_v44 }
 0x55d   : > { %v3231_v59 = vmul.f32 %v5869_v15, %v5869_v15 }
 0x55f   : > { %v3239_v55 = vadd.f32 %v3231_v59, %v3230_v2 }
 0x560   : > { %v3214_v8 = vpop.f32.mrf.mxu3 }
 0x561   : > { %v3215_v14 = vadd.f32 %v3214_v8, %v3196_v60  ;;  %3240 = vadd.xlane.f32.xlu0 %v3239_v55  ;;  %v3197_v19 = vpop.f32.mrf.mxu2 }
 0x562   : > { %v3198_v18 = vadd.f32 %v3197_v19, %v3179_v22 }
 0x563   : > { %v5879_v17 = vadd.f32 %v3215_v14, %v5789_v21 }
 0x565   : > { %v3233_v9 = vmul.f32 %v5879_v17, %v5879_v17 }
 0x567   : > { %v3242_v38 = vadd.f32 %v3233_v9, %v3232_v11 }
 0x568   : > { %v3216_v6 = vpop.f32.mrf.mxu3 }
 0x569   : > { %v3217_v4 = vadd.f32 %v3216_v6, %v3198_v18  ;;  %3243 = vadd.xlane.f32.xlu1 %v3242_v38 }
 0x56b   : > { %v5889_v21 = vadd.f32 %v3217_v4, %v5792_v23 }
 0x56d   : > { %v3235_v57 = vmul.f32 %v5889_v21, %v5889_v21 }
 0x56f   : > { %v3245_v25 = vadd.f32 %v3235_v57, %v3234_v34 }
 0x571   : > { %3246 = vadd.xlane.f32.xlu2 %v3245_v25 }
 0x5cc   : > { %v3238_v26 = vpop.xlane.xlu2 %3237 }
 0x5cd   : > { %v3248_v3 = vmul.f32 %v3238_v26, %v5693_v39 }
 0x5cf   : > { %v3252_v10 = vadd.f32 1e-06, %v3248_v3 }
 0x5d1   : > { %4968 = vrsqrt.f32 %v3252_v10  ;;  %vm3262_vm15 = vweird.f32 %v3252_v10 }
 0x5d4   : > { %v3241_v20 = vpop.xlane.xlu0 %3240 }
 0x5d5   : > { %v3249_v28 = vmul.f32 %v3241_v20, %v5693_v39 }
 0x5d7   : > { %v4969_v27 = vpop.eup %4968  ;;  %v3253_v29 = vadd.f32 1e-06, %v3249_v28 }
 0x5d8   : > { %v3257_v23 = vmul.f32 %v4969_v27, %v3252_v10  ;;  %vm3263_vm14 = vweird.f32 %v4969_v27 }
 0x5d9   : > { %4970 = vrsqrt.f32 %v3253_v29  ;;  %vm3264_vm0 = vmor %vm3262_vm15, %vm3263_vm14  ;;  %vm3272_vm2 = vweird.f32 %v3253_v29 }
 0x5da   : > { %v3258_v30 = vmul.f32 %v4969_v27, %v3257_v23 }
 0x5dc   : > { %v3259_v31 = vmul.f32 0.5, %v3258_v30  ;;  %v3244_v33 = vpop.xlane.xlu1 %3243 }
 0x5dd   : > { %v3250_v35 = vmul.f32 %v3244_v33, %v5693_v39 }
 0x5de   : > { %v3260_v49 = vsub.f32 1.5, %v3259_v31 }
 0x5df   : > { %v4971_v41 = vpop.eup %4970  ;;  %v3254_v42 = vadd.f32 1e-06, %v3250_v35 }
 0x5e0   : > { %v3261_v43 = vmul.f32 %v4969_v27, %v3260_v49  ;;  %v3267_v7 = vmul.f32 %v4971_v41, %v3253_v29  ;;  %vm3273_vm1 = vweird.f32 %v4971_v41 }
 0x5e1   : > { %4972 = vrsqrt.f32 %v3254_v42  ;;  %vm3274_vm3 = vmor %vm3272_vm2, %vm3273_vm1  ;;  %vm3282_vm5 = vweird.f32 %v3254_v42 }
 0x5e2   : > { %v3265_v48 = vsel %vm3264_vm0, %v4969_v27, %v3261_v43  ;;  %v3268_v51 = vmul.f32 %v4971_v41, %v3267_v7 }
 0x5e3   : > { %v3296_v32 = vmul.f32 %v3265_v48, %v5856_v54  ;;  %v3297_v50 = vmul.f32 %v3265_v48, %v5859_v40 }
 0x5e4   : > { %v3269_v61 = vmul.f32 0.5, %v3268_v51  ;;  %v3247_v58 = vpop.xlane.xlu2 %3246 }
 0x5e5   : > { %v3309_v36 = vmul.f32 %v3305_v45, %v3296_v32  ;;  %v3310_v52 = vmul.f32 %v3306_v47, %v3297_v50  ;;  %v3251_v53 = vmul.f32 %v3247_v58, %v5693_v39 }
 0x5e6   : > { %v3270_v63 = vsub.f32 1.5, %v3269_v61 }
 0x5e7   : > { %v4973_v56 = vpop.eup %4972  ;;  %3317 = vst [vmem:[%s5903_s14] sm:$0xff] %v3309_v36  ;;  %v3255_v2 = vadd.f32 1e-06, %v3251_v53 }
 0x5e8   : > { %3318 = vst [vmem:[%s5903_s14 + $0x8] sm:$0xff] %v3310_v52  ;;  %v3271_v54 = vmul.f32 %v4971_v41, %v3270_v63  ;;  %v3277_v40 = vmul.f32 %v4973_v56, %v3254_v42  ;;  %vm3283_vm4 = vweird.f32 %v4973_v56 }
 0x5e9   : > { %4974 = vrsqrt.f32 %v3255_v2  ;;  %vm3284_vm6 = vmor %vm3282_vm5, %vm3283_vm4  ;;  %vm3292_vm8 = vweird.f32 %v3255_v2 }
 0x5ea   : > { %v3275_v59 = vsel %vm3274_vm3, %v4971_v41, %v3271_v54  ;;  %v3278_v39 = vmul.f32 %v4973_v56, %v3277_v40 }
 0x5eb   : > { %v3298_v5 = vmul.f32 %v3275_v59, %v5866_v37  ;;  %v3299_v60 = vmul.f32 %v3275_v59, %v5869_v15 }
 0x5ec   : > { %v3279_v55 = vmul.f32 0.5, %v3278_v39 }
 0x5ed   : > { %v3311_v62 = vmul.f32 %v3305_v45, %v3298_v5  ;;  %v3312_v8 = vmul.f32 %v3306_v47, %v3299_v60 }
 0x5ee   : > { %v3280_v46 = vsub.f32 1.5, %v3279_v55 }
 0x5ef   : > { %v4975_v14 = vpop.eup %4974  ;;  %3319 = vst [vmem:[%s5903_s14 + $0x10] sm:$0xff] %v3311_v62 }
 0x5f0   : > { %3320 = vst [vmem:[%s5903_s14 + $0x18] sm:$0xff] %v3312_v8  ;;  %v3281_v12 = vmul.f32 %v4973_v56, %v3280_v46  ;;  %v3287_v44 = vmul.f32 %v4975_v14, %v3255_v2  ;;  %vm3293_vm7 = vweird.f32 %v4975_v14 }
 0x5f1   : > { %vm3294_vm9 = vmor %vm3292_vm8, %vm3293_vm7 }
 0x5f2   : > { %v3285_v0 = vsel %vm3284_vm6, %v4973_v56, %v3281_v12  ;;  %v3288_v19 = vmul.f32 %v4975_v14, %v3287_v44 }
 0x5f3   : > { %v3300_v37 = vmul.f32 %v3285_v0, %v5876_v13  ;;  %v3301_v15 = vmul.f32 %v3285_v0, %v5879_v17 }
 0x5f4   : > { %v3289_v22 = vmul.f32 0.5, %v3288_v19 }
 0x5f5   : > { %v3313_v1 = vmul.f32 %v3305_v45, %v3300_v37  ;;  %v3314_v11 = vmul.f32 %v3306_v47, %v3301_v15 }
 0x5f6   : > { %v3290_v9 = vsub.f32 1.5, %v3289_v22 }
 0x5f7   : > { %3321 = vst [vmem:[%s5903_s14 + $0x20] sm:$0xff] %v3313_v1 }
 0x5f8   : > { %3322 = vst [vmem:[%s5903_s14 + $0x28] sm:$0xff] %v3314_v11  ;;  %v3291_v18 = vmul.f32 %v4975_v14, %v3290_v9 }
 0x5fa   : > { %v3295_v13 = vsel %vm3294_vm9, %v4975_v14, %v3291_v18 }
 0x5fb   : > { %v3302_v17 = vmul.f32 %v3295_v13, %v5886_v24  ;;  %v3303_v38 = vmul.f32 %v3295_v13, %v5889_v21 }
 0x5fd   : > { %v3315_v6 = vmul.f32 %v3305_v45, %v3302_v17  ;;  %v3316_v4 = vmul.f32 %v3306_v47, %v3303_v38 }
 0x5ff   : > { %3323 = vst [vmem:[%s5903_s14 + $0x30] sm:$0xff] %v3315_v6 }
 0x600   : > { %3324 = vst [vmem:[%s5903_s14 + $0x38] sm:$0xff] %v3316_v4 }
 0x601   : > { %5251 = shalt.err (!%p5248_p9)
}
 0x602   : > { %s5322_s16 = smov 256   ;;  %s5323_s14 = smov 16  }
 0x603   : > { %4830 = dma.vmem_to_hbm [thread:$0]  (%p5489_p13), %s3340_s5, 1024, %s3342_s24, %s3326_s21, %s5322_s16, %s5322_s16, %s5323_s14  }
 0x604 PF: > { %s3356_s28 = sand.u32 1, %s5294_s17   ;;  %p5988_p10 = scmp.ge.s32.totalorder %s5306_s20, 2 }
 0x605   : > { %s3357_s23 = scalar_lea.sflag [#allocation4], %s3356_s28 }
 0x606   : > { %p4859_p11 = pnand %p5988_p10, %p5494_p4 }
 0x608   : > { %p4860_p0 = pneg %p4859_p11 }
 0x60a   : > { %5289 = dma.done.wait (%p4860_p0), %s3357_s23, 1024  }
 0x60b   : > { %5291 = vsyncadd (%p4860_p0), %s3357_s23, 4294966272  ;;  %p28_p2 = scmp.ge.s32.totalorder %s5469_s11, 4   ;;  %s5989_s17 = smov %s5298_s18 }
 0x60c   : > { %s5990_s18 = smov %s5302_s19  ;;  %s5991_s19 = smov %s5481_s22 }
 0x60d   : > { %s5992_s20 = smov %s5469_s11  ;;  %30 = sbr.rel (!%p28_p2) target bundleno = 15 (0xf), region = 137 }
 0x612   :  { %3363 = vsyncpa [#allocation3], 1 }
 0x613   :  { %3365 = vsyncpa [#allocation3 + $0x1], 1 }
 0x614   :  { %3366 = vsyncpa [#allocation6], 1 }
 0x615   :  { %3367 = vsyncpa [#allocation9], 1 }
 0x616   :  { %3368 = vsyncpa [#allocation12], 1 }
 0x617   :  { %3369 = vsyncpa [#allocation15], 1 }
 0x618   :  { %3370 = vsyncpa [#allocation4], 1 }
 0x619   :  { %3372 = vsyncpa [#allocation4 + $0x1], 1 }

</bundles_post_ra>
